<compile_context>
chip_gen: v7x
topology: tpu7x:2x2x1
jax: 0.10.0
libtpu: 0.0.40
codegen_flags: <defaults>
</compile_context>

<pallas_src>
import functools

import numpy as np
import jax
import jax.numpy as jnp
from jax import lax
from jax.experimental import pallas as pl
from jax.experimental.pallas import tpu as pltpu


# ----------------------------------------------------------------------------
# Pallas kernel: conv as a single deep "stacked-tap" matmul
# (+ bias, optional tanh, per-channel partial BN statistics).
# ----------------------------------------------------------------------------
def _conv_kernel(x_ref, w_ref, b_ref, mask_ref, y_ref, stat_ref,
                 *, k, row_pitch, n_tiles, activation):
    """One (image, output-row-tile) grid step.

    x_ref   : (1, Cin_p, Lin)      bf16  flattened padded image (+1 zero row)
    w_ref   : (Ck, k*k*Cin_p)      bf16  tap-stacked weight matrix
    b_ref   : (Ck, 1)              f32   bias
    mask_ref: (1, M)               f32   1.0 on valid output columns
    y_ref   : (1, Ck, M)           bf16/f32 conv output tile
    stat_ref: (1, 1, Ck, 2)        f32   masked per-channel [sum, sum_sq]
    """
    M = y_ref.shape[2]
    W = M + k - 1                              # slab width covers all kw shifts

    if n_tiles == 1:
        base = 0
    else:
        base = pl.multiple_of(pl.program_id(1) * M, 128)

    # Stack all k*k shifted tap windows along the contraction axis: one load
    # per kh, the kw shifts are in-register static slices.  One deep MXU dot
    # then contracts k*k*Cin_p (instead of k*k shallow Cin-deep dots) and the
    # result is accumulated as a value (no per-tap VMEM round trip).
    pieces = []
    for kh in range(k):
        off = kh * row_pitch
        if n_tiles == 1:
            slab = x_ref[0, :, off:off + W]
        else:
            slab = x_ref[0, :, pl.ds(base + off, W)]
        for kw in range(k):
            pieces.append(slab[:, kw:kw + M])
    xs = jnp.concatenate(pieces, axis=0) if len(pieces) > 1 else pieces[0]

    y = jnp.dot(w_ref[...], xs, preferred_element_type=jnp.float32) + b_ref[...]

    # Masked partial BatchNorm statistics on the pre-activation conv output
    # (ym is reused for both sums).
    ym = y * mask_ref[...]
    s1 = jnp.sum(ym, axis=1, keepdims=True)
    s2 = jnp.sum(ym * y, axis=1, keepdims=True)
    stat_ref[0, 0] = jnp.concatenate([s1, s2], axis=1)

    if activation == "tanh":
        y = jnp.tanh(y)
    y_ref[0] = y.astype(y_ref.dtype)


def _pick_row_tile(Ho, Wp, Lin, cin_p, cout, n_taps, out_bytes):
    """Largest output-row tile whose *total* resident VMEM footprint fits a
    conservative budget (derived for v7x's 64 MiB/TC; v5e/v6e have 128 MiB, so
    the same tiling leaves extra headroom there)."""
    budget = 24 * 1024 * 1024

    fixed = (2 * cin_p * Lin * 2                 # double-buffered bf16 input
             + 2 * cout * n_taps * cin_p * 2     # double-buffered bf16 weights
             + 2 * cout * 4)                     # bias

    def need(tr):
        m = tr * Wp
        return (fixed
                + 2 * m * 4                      # mask
                + 2 * cout * m * out_bytes       # double-buffered output block
                + 2 * cout * 2 * 4               # stats block
                + n_taps * cin_p * m * 2         # stacked tap slab (bf16)
                + cout * m * 4)                  # f32 conv result

    if need(Ho) <= budget:
        return Ho, 1, need(Ho)
    for tr in range(Ho - 1, 0, -1):
        if Ho % tr == 0 and (tr * Wp) % 128 == 0 and need(tr) <= budget:
            return tr, Ho // tr, need(tr)
    # TODO(synk): halo-tiled manual-DMA input pipeline for huge images.
    return Ho, 1, need(Ho)


def conv2d_taps(xp_nchw, w_taps, bias, *, k, activation="none",
                out_dtype=jnp.bfloat16):
    """Stride-1 kxk conv of an already-padded NCHW input, computed on the MXU
    as one deep matmul per (image, row-tile): (Ck, k*k*Cin_p)@(k*k*Cin_p, M).

    Returns:
      y     : (N, Ck, Ho, Wo) out_dtype raw conv output (bias added, pre-BN)
      stats : (Ck, 2) f32 per-channel [sum, sum_sq] over the valid output.
    """
    N, Cin, Hp, Wp = xp_nchw.shape
    Ho, Wo = Hp - k + 1, Wp - k + 1
    n_taps, Ck, Cin_w = w_taps.shape
    assert n_taps == k * k and Cin_w == Cin

    # Pad Cin to a multiple of 16 (bf16 sublane packing) so the in-kernel
    # tap-stack concatenation is tile aligned.
    Cin_p = -(-Cin // 16) * 16
    if Cin_p != Cin:
        xp_nchw = jnp.pad(xp_nchw, ((0, 0), (0, Cin_p - Cin), (0, 0), (0, 0)))
        w_taps = jnp.pad(w_taps, ((0, 0), (0, 0), (0, Cin_p - Cin)))

    # Flatten H*W onto the lane axis; append one zero row so every shifted
    # slab (width M + k - 1) stays in bounds.  Wrap columns are masked/cropped.
    xf = jnp.pad(xp_nchw, ((0, 0), (0, 0), (0, 1), (0, 0)))
    Lin = (Hp + 1) * Wp
    xf = xf.reshape(N, Cin_p, Lin).astype(jnp.bfloat16)

    # Tap-stacked weight: contraction index = tap-major, channel-minor.
    w_flat = jnp.transpose(w_taps, (1, 0, 2)).reshape(
        Ck, n_taps * Cin_p).astype(jnp.bfloat16)

    out_bytes = 2 if out_dtype == jnp.bfloat16 else 4
    TR, n_tiles, need = _pick_row_tile(Ho, Wp, Lin, Cin_p, Ck, n_taps, out_bytes)
    M = TR * Wp
    vmem_limit = int(min(max(need + (8 << 20), 32 << 20), 56 << 20))

    valid = jnp.tile((jnp.arange(Wp) < Wo).astype(jnp.float32), Ho)
    valid = valid.reshape(1, Ho * Wp)

    kernel = functools.partial(_conv_kernel, k=k, row_pitch=Wp,
                               n_tiles=n_tiles, activation=activation)

    # Grid = (batch, row-tiles), both parallel (v7x megacore gets >=2 steps
    # from the batch axis; no reduction axis since taps are fused in-kernel).
    y_flat, stats = pl.pallas_call(
        kernel,
        out_shape=(
            jax.ShapeDtypeStruct((N, Ck, Ho * Wp), out_dtype),
            jax.ShapeDtypeStruct((N, n_tiles, Ck, 2), jnp.float32),
        ),
        grid=(N, n_tiles),
        in_specs=[
            pl.BlockSpec((1, Cin_p, Lin), lambda n, t: (n, 0, 0)),
            pl.BlockSpec((Ck, n_taps * Cin_p), lambda n, t: (0, 0)),
            pl.BlockSpec((Ck, 1), lambda n, t: (0, 0)),
            pl.BlockSpec((1, M), lambda n, t: (0, t)),
        ],
        out_specs=(
            pl.BlockSpec((1, Ck, M), lambda n, t: (n, 0, t)),
            pl.BlockSpec((1, 1, Ck, 2), lambda n, t: (n, t, 0, 0)),
        ),
        compiler_params=pltpu.CompilerParams(
            dimension_semantics=("parallel", "parallel"),
            vmem_limit_bytes=vmem_limit),
    )(xf, w_flat, bias.reshape(Ck, 1).astype(jnp.float32), valid)

    y = y_flat.reshape(N, Ck, Ho, Wp)[:, :, :, :Wo]
    stats_tot = jnp.sum(stats, axis=(0, 1))                    # (Ck, 2)
    return y, stats_tot


# ----------------------------------------------------------------------------
# Pallas kernel: instance-wise averaging as an MXU segment mean (bf16 one-hot).
# ----------------------------------------------------------------------------
def _inst_mean_kernel(feat_ref, lab_ref, ids_ref, o_ref, *, n_valid):
    x = feat_ref[0]                                            # (C, HW)  bf16
    lab = lab_ref[0]                                           # (1, HW)  i32
    ids = ids_ref[...]                                         # (P, 1)   i32
    P = ids.shape[0]

    valid = lax.broadcasted_iota(jnp.int32, (P, 1), 0) < n_valid
    onehot = jnp.where(jnp.logical_and(ids == lab, valid),
                       1.0, 0.0).astype(jnp.bfloat16)          # (P, HW)

    # Per-id sums / counts: contract HW of both operands (no transposes,
    # no lane-padded (HW,1) label input).
    dn = (((1,), (1,)), ((), ()))
    sums = lax.dot_general(x, onehot, dn,
                           preferred_element_type=jnp.float32)         # (C, P)
    counts = lax.dot_general(jnp.ones_like(x[0:1]), onehot, dn,
                             preferred_element_type=jnp.float32)       # (1, P)
    means = sums / jnp.maximum(counts, 1.0)                            # (C, P)

    # Scatter means back to every pixel of each instance.
    o_ref[0] = jnp.dot(means.astype(jnp.bfloat16), onehot,
                       preferred_element_type=jnp.float32)             # (C, HW)


def instance_mean(feat, lab, ids, *, n_valid):
    N, C, HW = feat.shape
    P = ids.shape[0]
    kernel = functools.partial(_inst_mean_kernel, n_valid=n_valid)
    return pl.pallas_call(
        kernel,
        out_shape=jax.ShapeDtypeStruct((N, C, HW), jnp.float32),
        grid=(N,),
        in_specs=[
            pl.BlockSpec((1, C, HW), lambda b: (b, 0, 0)),
            pl.BlockSpec((1, 1, HW), lambda b: (b, 0, 0)),
            pl.BlockSpec((P, 1), lambda b: (0, 0)),
        ],
        out_specs=pl.BlockSpec((1, C, HW), lambda b: (b, 0, 0)),
        compiler_params=pltpu.CompilerParams(
            dimension_semantics=("parallel",),
            vmem_limit_bytes=48 * 1024 * 1024),
    )(feat, lab, ids)


# ----------------------------------------------------------------------------
# Plain-JAX glue: weight folding / space-depth shuffles (fused by XLA).
# ----------------------------------------------------------------------------
def _fold_down_weight(w):
    """Conv2d(k=3,s=2,p=1) weight (Cout, Cin, 3, 3) -> stride-1 2x2 conv over
    the space-to-depth input: (4 taps, Cout, 4*Cin), channel order (p, q, c)."""
    Cout, Cin = w.shape[0], w.shape[1]
    wf = jnp.zeros((2, 2, Cout, 2, 2, Cin), w.dtype)          # (a, b, co, p, q, ci)
    for a in range(2):
        for b in range(2):
            for p in range(2):
                for q in range(2):
                    kh, kw = 2 * a + p, 2 * b + q
                    if kh <= 2 and kw <= 2:
                        wf = wf.at[a, b, :, p, q, :].set(w[:, :, kh, kw])
    return wf.reshape(4, Cout, 4 * Cin)


def _fold_up_weight(w):
    """ConvTranspose2d(k=3,s=2,p=1,output_padding=1) weight (Cin, Cout, 3, 3)
    -> sub-pixel stride-1 2x2 conv producing 4 output phases:
    (4 taps, 4*Cout, Cin) with output-channel order (po, pw, co)."""
    Cin, Cout = w.shape[0], w.shape[1]
    wf = jnp.zeros((2, 2, 2, 2, Cout, Cin), w.dtype)          # (da, db, po, pw, co, ci)
    kmap = {(0, 0): 1, (1, 0): 2, (1, 1): 0}                  # (phase, delta) -> k idx
    for da in range(2):
        for db in range(2):
            for po in range(2):
                for pw in range(2):
                    if (po, da) in kmap and (pw, db) in kmap:
                        kh, kw = kmap[(po, da)], kmap[(pw, db)]
                        wf = wf.at[da, db, po, pw, :, :].set(w[:, :, kh, kw].T)
    return wf.reshape(4, 4 * Cout, Cin)


def _space_to_depth(x):
    """(N, C, H, W) -> (N, 4*C, H//2, W//2), channel order (p, q, c)."""
    N, C, H, W = x.shape
    x = x.reshape(N, C, H // 2, 2, W // 2, 2)
    x = x.transpose(0, 3, 5, 1, 2, 4)
    return x.reshape(N, 4 * C, H // 2, W // 2)


def _depth_to_space(y):
    """(N, 4*C, H, W) with channel order (po, pw, c) -> (N, C, 2H, 2W)."""
    N, C4, H, W = y.shape
    C = C4 // 4
    y = y.reshape(N, 2, 2, C, H, W)
    y = y.transpose(0, 3, 4, 1, 5, 2)
    return y.reshape(N, C, 2 * H, 2 * W)


# ----------------------------------------------------------------------------
# Parameter construction (deterministic, synthetic, PyTorch-style init).
# Layer *types* (strings) are returned separately so the jit'ed forward only
# traces arrays (fixes the previous "str as abstract array" failure).
# ----------------------------------------------------------------------------
def init_params(key, input_nc, output_nc, ngf, n_down):
    keys = list(jax.random.split(key, 4 * (2 + 2 * n_down)))
    it = iter(keys)

    def conv_p(cin, cout, k):
        s = 1.0 / np.sqrt(cin * k * k)
        w = jax.random.uniform(next(it), (cout, cin, k, k), jnp.float32, -s, s)
        b = jax.random.uniform(next(it), (cout,), jnp.float32, -s, s)
        return w, b

    def convT_p(cin, cout, k):
        s = 1.0 / np.sqrt(cin * k * k)
        w = jax.random.uniform(next(it), (cin, cout, k, k), jnp.float32, -s, s)
        b = jax.random.uniform(next(it), (cout,), jnp.float32, -s, s)
        return w, b

    types, params = [], []
    w, b = conv_p(input_nc, ngf, 7)
    types.append("conv7")
    params.append(dict(w=w, b=b, gamma=jnp.ones(ngf, jnp.float32),
                       beta=jnp.zeros(ngf, jnp.float32)))
    for i in range(n_down):
        mult = 2 ** i
        cin, cout = ngf * mult, ngf * mult * 2
        w, b = conv_p(cin, cout, 3)
        types.append("down")
        params.append(dict(w=w, b=b, gamma=jnp.ones(cout, jnp.float32),
                           beta=jnp.zeros(cout, jnp.float32)))
    for i in range(n_down):
        mult = 2 ** (n_down - i)
        cin, cout = ngf * mult, ngf * mult // 2
        w, b = convT_p(cin, cout, 3)
        types.append("up")
        params.append(dict(w=w, b=b, gamma=jnp.ones(cout, jnp.float32),
                           beta=jnp.zeros(cout, jnp.float32)))
    w, b = conv_p(ngf, output_nc, 7)
    types.append("final")
    params.append(dict(w=w, b=b))
    return tuple(types), params


# ----------------------------------------------------------------------------
# Full Encoder forward
# ----------------------------------------------------------------------------
def encoder_forward(layer_types, params, x_nchw, inst_nchw, inst_ids_padded,
                    *, n_valid):
    eps = 1e-5
    act = x_nchw.astype(jnp.bfloat16)

    for t, prm in zip(layer_types, params):
        if t in ("conv7", "final"):
            xp = jnp.pad(act, ((0, 0), (0, 0), (3, 3), (3, 3)), mode="reflect")
            co, ci = prm["w"].shape[0], prm["w"].shape[1]
            w_taps = jnp.transpose(prm["w"], (2, 3, 0, 1)).reshape(49, co, ci)
            bias = prm["b"]
            k = 7
        elif t == "down":
            xp = _space_to_depth(jnp.pad(act, ((0, 0), (0, 0), (1, 1), (1, 1))))
            w_taps = _fold_down_weight(prm["w"])
            bias = prm["b"]
            k = 2
        else:  # "up": ConvTranspose2d in its sub-pixel (phase) form
            xp = jnp.pad(act, ((0, 0), (0, 0), (0, 1), (0, 1)))
            w_taps = _fold_up_weight(prm["w"])
            bias = jnp.tile(prm["b"], 4)
            k = 2

        activation = "tanh" if t == "final" else "none"
        out_dtype = jnp.float32 if t == "final" else jnp.bfloat16
        y, stats = conv2d_taps(xp, w_taps, bias, k=k, activation=activation,
                               out_dtype=out_dtype)

        if t == "up":
            y = _depth_to_space(y)
            stats = stats.reshape(4, -1, 2).sum(axis=0)

        if t == "final":
            act = y
        else:
            # Training-mode BatchNorm2d statistics from the in-kernel partial
            # sums; the affine + ReLU fuse (in XLA) with the next layer's
            # padding / space-to-depth input prep, kept in bf16.
            n_elems = y.shape[0] * y.shape[2] * y.shape[3]
            mean = stats[:, 0] / n_elems
            var = jnp.maximum(stats[:, 1] / n_elems - mean * mean, 0.0)
            scale = prm["gamma"] * lax.rsqrt(var + eps)
            shift = prm["beta"] - mean * scale
            act = jnp.maximum(
                y.astype(jnp.float32) * scale[None, :, None, None]
                + shift[None, :, None, None], 0.0).astype(jnp.bfloat16)

    # Instance-wise averaging of the encoder output (MXU segment mean).
    N, C, H, W = act.shape
    feat = act.astype(jnp.bfloat16).reshape(N, C, H * W)
    lab = inst_nchw.reshape(N, 1, H * W).astype(jnp.int32)
    ids = inst_ids_padded.reshape(-1, 1).astype(jnp.int32)
    out = instance_mean(feat, lab, ids, n_valid=n_valid)
    return out.reshape(N, C, H, W)


# ----------------------------------------------------------------------------
if __name__ == "__main__":
    # Small shapes consistent with the module.
    batch, input_nc, output_nc, ngf, n_down, Hs = 2, 4, 3, 8, 2, 16

    key = jax.random.PRNGKey(0)
    kx, kinst, kp = jax.random.split(key, 3)
    x = jax.random.normal(kx, (batch, input_nc, Hs, Hs), jnp.float32)
    inst = jax.random.randint(kinst, (batch, 1, Hs, Hs), 1, 4, jnp.int32)

    # Mirrors the PyTorch host-side `np.unique(inst.cpu().numpy())`.
    ids_np = np.unique(np.asarray(inst).astype(np.int64)).astype(np.int32)
    n_valid = int(ids_np.shape[0])
    P = 128                                   # lane-aligned id slots for the MXU
    ids_padded = np.zeros((P,), np.int32)     # pad ids are masked in-kernel
    ids_padded[:n_valid] = ids_np

    layer_types, params = init_params(kp, input_nc, output_nc, ngf, n_down)

    # Layer types + n_valid are static (bound in the partial); only arrays
    # are traced jit arguments.
    fwd = jax.jit(functools.partial(encoder_forward, layer_types,
                                    n_valid=n_valid))
    out = fwd(params, x, inst, jnp.asarray(ids_padded))
    out = jax.block_until_ready(out)

    assert out.shape == (batch, output_nc, Hs, Hs)
    assert bool(jnp.all(jnp.isfinite(out)))
    print("KERNEL_OK")
</pallas_src>

<mosaic_0001>
module attributes {stable_mosaic.version = 11 : i64} {
  func.func @_conv_kernel(%arg0: i32, %arg1: i32, %arg2: memref<1x16x506xbf16, #tpu.memory_space<vmem>>, %arg3: memref<8x784xbf16, #tpu.memory_space<vmem>>, %arg4: memref<8x1xf32, #tpu.memory_space<vmem>>, %arg5: memref<1x352xf32, #tpu.memory_space<vmem>>, %arg6: memref<1x8x352xbf16, #tpu.memory_space<vmem>>, %arg7: memref<1x1x8x2xf32, #tpu.memory_space<vmem>>) attributes {dimension_semantics = [#tpu.dimension_semantics<parallel>, #tpu.dimension_semantics<parallel>], iteration_bounds = array<i64: 2, 1>, scalar_prefetch = 0 : i64, scratch_operands = 0 : i64, tpu.core_type = #tpu.core_type<tc>, window_params = [{transform_indices = @transform_0, window_bounds = array<i64: 1, 16, 506>}, {pipeline_mode = #tpu.pipeline_mode<synchronous>, transform_indices = @transform_1, window_bounds = array<i64: 8, 784>}, {pipeline_mode = #tpu.pipeline_mode<synchronous>, transform_indices = @transform_2, window_bounds = array<i64: 8, 1>}, {transform_indices = @transform_3, window_bounds = array<i64: 1, 352>}, {transform_indices = @transform_4, window_bounds = array<i64: 1, 8, 352>}, {transform_indices = @transform_5, window_bounds = array<i64: 1, 1, 8, 2>}]} {
    %c0 = arith.constant 0 : index
    %c0_0 = arith.constant 0 : index
    %c0_1 = arith.constant 0 : index
    %0 = vector.load %arg2[%c0, %c0_0, %c0_1] : memref<1x16x506xbf16, #tpu.memory_space<vmem>>, vector<1x16x358xbf16>
    %1 = vector.shape_cast %0 : vector<1x16x358xbf16> to vector<16x358xbf16>
    %2 = vector.extract_strided_slice %1 {offsets = [0, 0], sizes = [16, 352], strides = [1, 1]} : vector<16x358xbf16> to vector<16x352xbf16>
    %3 = vector.extract_strided_slice %1 {offsets = [0, 1], sizes = [16, 352], strides = [1, 1]} : vector<16x358xbf16> to vector<16x352xbf16>
    %4 = vector.extract_strided_slice %1 {offsets = [0, 2], sizes = [16, 352], strides = [1, 1]} : vector<16x358xbf16> to vector<16x352xbf16>
    %5 = vector.extract_strided_slice %1 {offsets = [0, 3], sizes = [16, 352], strides = [1, 1]} : vector<16x358xbf16> to vector<16x352xbf16>
    %6 = vector.extract_strided_slice %1 {offsets = [0, 4], sizes = [16, 352], strides = [1, 1]} : vector<16x358xbf16> to vector<16x352xbf16>
    %7 = vector.extract_strided_slice %1 {offsets = [0, 5], sizes = [16, 352], strides = [1, 1]} : vector<16x358xbf16> to vector<16x352xbf16>
    %8 = vector.extract_strided_slice %1 {offsets = [0, 6], sizes = [16, 352], strides = [1, 1]} : vector<16x358xbf16> to vector<16x352xbf16>
    %c0_2 = arith.constant 0 : index
    %c0_3 = arith.constant 0 : index
    %c22 = arith.constant 22 : index
    %9 = vector.load %arg2[%c0_2, %c0_3, %c22] : memref<1x16x506xbf16, #tpu.memory_space<vmem>>, vector<1x16x358xbf16>
    %10 = vector.shape_cast %9 : vector<1x16x358xbf16> to vector<16x358xbf16>
    %11 = vector.extract_strided_slice %10 {offsets = [0, 0], sizes = [16, 352], strides = [1, 1]} : vector<16x358xbf16> to vector<16x352xbf16>
    %12 = vector.extract_strided_slice %10 {offsets = [0, 1], sizes = [16, 352], strides = [1, 1]} : vector<16x358xbf16> to vector<16x352xbf16>
    %13 = vector.extract_strided_slice %10 {offsets = [0, 2], sizes = [16, 352], strides = [1, 1]} : vector<16x358xbf16> to vector<16x352xbf16>
    %14 = vector.extract_strided_slice %10 {offsets = [0, 3], sizes = [16, 352], strides = [1, 1]} : vector<16x358xbf16> to vector<16x352xbf16>
    %15 = vector.extract_strided_slice %10 {offsets = [0, 4], sizes = [16, 352], strides = [1, 1]} : vector<16x358xbf16> to vector<16x352xbf16>
    %16 = vector.extract_strided_slice %10 {offsets = [0, 5], sizes = [16, 352], strides = [1, 1]} : vector<16x358xbf16> to vector<16x352xbf16>
    %17 = vector.extract_strided_slice %10 {offsets = [0, 6], sizes = [16, 352], strides = [1, 1]} : vector<16x358xbf16> to vector<16x352xbf16>
    %c0_4 = arith.constant 0 : index
    %c0_5 = arith.constant 0 : index
    %c44 = arith.constant 44 : index
    %18 = vector.load %arg2[%c0_4, %c0_5, %c44] : memref<1x16x506xbf16, #tpu.memory_space<vmem>>, vector<1x16x358xbf16>
    %19 = vector.shape_cast %18 : vector<1x16x358xbf16> to vector<16x358xbf16>
    %20 = vector.extract_strided_slice %19 {offsets = [0, 0], sizes = [16, 352], strides = [1, 1]} : vector<16x358xbf16> to vector<16x352xbf16>
    %21 = vector.extract_strided_slice %19 {offsets = [0, 1], sizes = [16, 352], strides = [1, 1]} : vector<16x358xbf16> to vector<16x352xbf16>
    %22 = vector.extract_strided_slice %19 {offsets = [0, 2], sizes = [16, 352], strides = [1, 1]} : vector<16x358xbf16> to vector<16x352xbf16>
    %23 = vector.extract_strided_slice %19 {offsets = [0, 3], sizes = [16, 352], strides = [1, 1]} : vector<16x358xbf16> to vector<16x352xbf16>
    %24 = vector.extract_strided_slice %19 {offsets = [0, 4], sizes = [16, 352], strides = [1, 1]} : vector<16x358xbf16> to vector<16x352xbf16>
    %25 = vector.extract_strided_slice %19 {offsets = [0, 5], sizes = [16, 352], strides = [1, 1]} : vector<16x358xbf16> to vector<16x352xbf16>
    %26 = vector.extract_strided_slice %19 {offsets = [0, 6], sizes = [16, 352], strides = [1, 1]} : vector<16x358xbf16> to vector<16x352xbf16>
    %c0_6 = arith.constant 0 : index
    %c0_7 = arith.constant 0 : index
    %c66 = arith.constant 66 : index
    %27 = vector.load %arg2[%c0_6, %c0_7, %c66] : memref<1x16x506xbf16, #tpu.memory_space<vmem>>, vector<1x16x358xbf16>
    %28 = vector.shape_cast %27 : vector<1x16x358xbf16> to vector<16x358xbf16>
    %29 = vector.extract_strided_slice %28 {offsets = [0, 0], sizes = [16, 352], strides = [1, 1]} : vector<16x358xbf16> to vector<16x352xbf16>
    %30 = vector.extract_strided_slice %28 {offsets = [0, 1], sizes = [16, 352], strides = [1, 1]} : vector<16x358xbf16> to vector<16x352xbf16>
    %31 = vector.extract_strided_slice %28 {offsets = [0, 2], sizes = [16, 352], strides = [1, 1]} : vector<16x358xbf16> to vector<16x352xbf16>
    %32 = vector.extract_strided_slice %28 {offsets = [0, 3], sizes = [16, 352], strides = [1, 1]} : vector<16x358xbf16> to vector<16x352xbf16>
    %33 = vector.extract_strided_slice %28 {offsets = [0, 4], sizes = [16, 352], strides = [1, 1]} : vector<16x358xbf16> to vector<16x352xbf16>
    %34 = vector.extract_strided_slice %28 {offsets = [0, 5], sizes = [16, 352], strides = [1, 1]} : vector<16x358xbf16> to vector<16x352xbf16>
    %35 = vector.extract_strided_slice %28 {offsets = [0, 6], sizes = [16, 352], strides = [1, 1]} : vector<16x358xbf16> to vector<16x352xbf16>
    %c0_8 = arith.constant 0 : index
    %c0_9 = arith.constant 0 : index
    %c88 = arith.constant 88 : index
    %36 = vector.load %arg2[%c0_8, %c0_9, %c88] : memref<1x16x506xbf16, #tpu.memory_space<vmem>>, vector<1x16x358xbf16>
    %37 = vector.shape_cast %36 : vector<1x16x358xbf16> to vector<16x358xbf16>
    %38 = vector.extract_strided_slice %37 {offsets = [0, 0], sizes = [16, 352], strides = [1, 1]} : vector<16x358xbf16> to vector<16x352xbf16>
    %39 = vector.extract_strided_slice %37 {offsets = [0, 1], sizes = [16, 352], strides = [1, 1]} : vector<16x358xbf16> to vector<16x352xbf16>
    %40 = vector.extract_strided_slice %37 {offsets = [0, 2], sizes = [16, 352], strides = [1, 1]} : vector<16x358xbf16> to vector<16x352xbf16>
    %41 = vector.extract_strided_slice %37 {offsets = [0, 3], sizes = [16, 352], strides = [1, 1]} : vector<16x358xbf16> to vector<16x352xbf16>
    %42 = vector.extract_strided_slice %37 {offsets = [0, 4], sizes = [16, 352], strides = [1, 1]} : vector<16x358xbf16> to vector<16x352xbf16>
    %43 = vector.extract_strided_slice %37 {offsets = [0, 5], sizes = [16, 352], strides = [1, 1]} : vector<16x358xbf16> to vector<16x352xbf16>
    %44 = vector.extract_strided_slice %37 {offsets = [0, 6], sizes = [16, 352], strides = [1, 1]} : vector<16x358xbf16> to vector<16x352xbf16>
    %c0_10 = arith.constant 0 : index
    %c0_11 = arith.constant 0 : index
    %c110 = arith.constant 110 : index
    %45 = vector.load %arg2[%c0_10, %c0_11, %c110] : memref<1x16x506xbf16, #tpu.memory_space<vmem>>, vector<1x16x358xbf16>
    %46 = vector.shape_cast %45 : vector<1x16x358xbf16> to vector<16x358xbf16>
    %47 = vector.extract_strided_slice %46 {offsets = [0, 0], sizes = [16, 352], strides = [1, 1]} : vector<16x358xbf16> to vector<16x352xbf16>
    %48 = vector.extract_strided_slice %46 {offsets = [0, 1], sizes = [16, 352], strides = [1, 1]} : vector<16x358xbf16> to vector<16x352xbf16>
    %49 = vector.extract_strided_slice %46 {offsets = [0, 2], sizes = [16, 352], strides = [1, 1]} : vector<16x358xbf16> to vector<16x352xbf16>
    %50 = vector.extract_strided_slice %46 {offsets = [0, 3], sizes = [16, 352], strides = [1, 1]} : vector<16x358xbf16> to vector<16x352xbf16>
    %51 = vector.extract_strided_slice %46 {offsets = [0, 4], sizes = [16, 352], strides = [1, 1]} : vector<16x358xbf16> to vector<16x352xbf16>
    %52 = vector.extract_strided_slice %46 {offsets = [0, 5], sizes = [16, 352], strides = [1, 1]} : vector<16x358xbf16> to vector<16x352xbf16>
    %53 = vector.extract_strided_slice %46 {offsets = [0, 6], sizes = [16, 352], strides = [1, 1]} : vector<16x358xbf16> to vector<16x352xbf16>
    %c0_12 = arith.constant 0 : index
    %c0_13 = arith.constant 0 : index
    %c132 = arith.constant 132 : index
    %54 = vector.load %arg2[%c0_12, %c0_13, %c132] : memref<1x16x506xbf16, #tpu.memory_space<vmem>>, vector<1x16x358xbf16>
    %55 = vector.shape_cast %54 : vector<1x16x358xbf16> to vector<16x358xbf16>
    %56 = vector.extract_strided_slice %55 {offsets = [0, 0], sizes = [16, 352], strides = [1, 1]} : vector<16x358xbf16> to vector<16x352xbf16>
    %57 = vector.extract_strided_slice %55 {offsets = [0, 1], sizes = [16, 352], strides = [1, 1]} : vector<16x358xbf16> to vector<16x352xbf16>
    %58 = vector.extract_strided_slice %55 {offsets = [0, 2], sizes = [16, 352], strides = [1, 1]} : vector<16x358xbf16> to vector<16x352xbf16>
    %59 = vector.extract_strided_slice %55 {offsets = [0, 3], sizes = [16, 352], strides = [1, 1]} : vector<16x358xbf16> to vector<16x352xbf16>
    %60 = vector.extract_strided_slice %55 {offsets = [0, 4], sizes = [16, 352], strides = [1, 1]} : vector<16x358xbf16> to vector<16x352xbf16>
    %61 = vector.extract_strided_slice %55 {offsets = [0, 5], sizes = [16, 352], strides = [1, 1]} : vector<16x358xbf16> to vector<16x352xbf16>
    %62 = vector.extract_strided_slice %55 {offsets = [0, 6], sizes = [16, 352], strides = [1, 1]} : vector<16x358xbf16> to vector<16x352xbf16>
    %63 = tpu.concatenate %2, %3, %4, %5, %6, %7, %8, %11, %12, %13, %14, %15, %16, %17, %20, %21 in 0 : vector<16x352xbf16>, vector<16x352xbf16>, vector<16x352xbf16>, vector<16x352xbf16>, vector<16x352xbf16>, vector<16x352xbf16>, vector<16x352xbf16>, vector<16x352xbf16>, vector<16x352xbf16>, vector<16x352xbf16>, vector<16x352xbf16>, vector<16x352xbf16>, vector<16x352xbf16>, vector<16x352xbf16>, vector<16x352xbf16>, vector<16x352xbf16> -> vector<256x352xbf16>
    %64 = tpu.concatenate %22, %23, %24, %25, %26, %29, %30, %31, %32, %33, %34, %35, %38, %39, %40, %41 in 0 : vector<16x352xbf16>, vector<16x352xbf16>, vector<16x352xbf16>, vector<16x352xbf16>, vector<16x352xbf16>, vector<16x352xbf16>, vector<16x352xbf16>, vector<16x352xbf16>, vector<16x352xbf16>, vector<16x352xbf16>, vector<16x352xbf16>, vector<16x352xbf16>, vector<16x352xbf16>, vector<16x352xbf16>, vector<16x352xbf16>, vector<16x352xbf16> -> vector<256x352xbf16>
    %65 = tpu.concatenate %42, %43, %44, %47, %48, %49, %50, %51, %52, %53, %56, %57, %58, %59, %60, %61 in 0 : vector<16x352xbf16>, vector<16x352xbf16>, vector<16x352xbf16>, vector<16x352xbf16>, vector<16x352xbf16>, vector<16x352xbf16>, vector<16x352xbf16>, vector<16x352xbf16>, vector<16x352xbf16>, vector<16x352xbf16>, vector<16x352xbf16>, vector<16x352xbf16>, vector<16x352xbf16>, vector<16x352xbf16>, vector<16x352xbf16>, vector<16x352xbf16> -> vector<256x352xbf16>
    %66 = tpu.concatenate %63, %64, %65, %62 in 0 : vector<256x352xbf16>, vector<256x352xbf16>, vector<256x352xbf16>, vector<16x352xbf16> -> vector<784x352xbf16>
    %c0_14 = arith.constant 0 : index
    %c0_15 = arith.constant 0 : index
    %67 = vector.load %arg3[%c0_14, %c0_15] : memref<8x784xbf16, #tpu.memory_space<vmem>>, vector<8x784xbf16>
    %cst = arith.constant dense<0.000000e+00> : vector<8x352xf32>
    %68 = tpu.matmul %67, %66, %cst {dimension_numbers = #tpu.dot_dimension_numbers<[1], [0], [0], [1], [0, 0, 1, 1], [], []>} : vector<8x784xbf16>, vector<784x352xbf16>, vector<8x352xf32> -> vector<8x352xf32>
    %c0_16 = arith.constant 0 : index
    %c0_17 = arith.constant 0 : index
    %69 = vector.load %arg4[%c0_16, %c0_17] : memref<8x1xf32, #tpu.memory_space<vmem>>, vector<8x1xf32>
    %70 = vector.broadcast %69 : vector<8x1xf32> to vector<8x352xf32>
    %71 = arith.addf %68, %70 : vector<8x352xf32>
    %c0_18 = arith.constant 0 : index
    %c0_19 = arith.constant 0 : index
    %72 = vector.load %arg5[%c0_18, %c0_19] : memref<1x352xf32, #tpu.memory_space<vmem>>, vector<1x352xf32>
    %73 = vector.broadcast %72 : vector<1x352xf32> to vector<8x352xf32>
    %74 = arith.mulf %71, %73 : vector<8x352xf32>
    %cst_20 = arith.constant dense<0.000000e+00> : vector<8xf32>
    %75 = vector.multi_reduction <add>, %74, %cst_20 [1] : vector<8x352xf32> to vector<8xf32>
    %76 = vector.shape_cast %75 : vector<8xf32> to vector<8x1xf32>
    %77 = arith.mulf %74, %71 : vector<8x352xf32>
    %cst_21 = arith.constant dense<0.000000e+00> : vector<8xf32>
    %78 = vector.multi_reduction <add>, %77, %cst_21 [1] : vector<8x352xf32> to vector<8xf32>
    %79 = vector.shape_cast %78 : vector<8xf32> to vector<8x1xf32>
    %80 = tpu.concatenate %76, %79 in 1 : vector<8x1xf32>, vector<8x1xf32> -> vector<8x2xf32>
    %c0_22 = arith.constant 0 : index
    %c0_23 = arith.constant 0 : index
    %c0_24 = arith.constant 0 : index
    %c0_25 = arith.constant 0 : index
    %81 = vector.load %arg7[%c0_22, %c0_23, %c0_24, %c0_25] : memref<1x1x8x2xf32, #tpu.memory_space<vmem>>, vector<1x1x8x2xf32>
    %82 = vector.shape_cast %81 : vector<1x1x8x2xf32> to vector<8x2xf32>
    %83 = vector.shape_cast %80 : vector<8x2xf32> to vector<1x1x8x2xf32>
    tpu.vector_store %arg7[%c0_22, %c0_23, %c0_24, %c0_25], %83 {strides = array<i32>} : memref<1x1x8x2xf32, #tpu.memory_space<vmem>>, vector<1x1x8x2xf32>,
    %84 = arith.truncf %71 : vector<8x352xf32> to vector<8x352xbf16>
    %c0_26 = arith.constant 0 : index
    %c0_27 = arith.constant 0 : index
    %c0_28 = arith.constant 0 : index
    %85 = vector.load %arg6[%c0_26, %c0_27, %c0_28] : memref<1x8x352xbf16, #tpu.memory_space<vmem>>, vector<1x8x352xbf16>
    %86 = vector.shape_cast %85 : vector<1x8x352xbf16> to vector<8x352xbf16>
    %87 = vector.shape_cast %84 : vector<8x352xbf16> to vector<1x8x352xbf16>
    tpu.vector_store %arg6[%c0_26, %c0_27, %c0_28], %87 {strides = array<i32>} : memref<1x8x352xbf16, #tpu.memory_space<vmem>>, vector<1x8x352xbf16>,
    return
  }
  func.func @transform_0(%arg0: i32, %arg1: i32) -> (i32, i32, i32) {
    %c0_i32 = arith.constant 0 : i32
    %c0_i32_0 = arith.constant 0 : i32
    %c0_i32_1 = arith.constant 0 : i32
    return %arg0, %c0_i32, %c0_i32_0 : i32, i32, i32
  }
  func.func @transform_1(%arg0: i32, %arg1: i32) -> (i32, i32) {
    %c0_i32 = arith.constant 0 : i32
    %c0_i32_0 = arith.constant 0 : i32
    %c0_i32_1 = arith.constant 0 : i32
    return %c0_i32, %c0_i32_0 : i32, i32
  }
  func.func @transform_2(%arg0: i32, %arg1: i32) -> (i32, i32) {
    %c0_i32 = arith.constant 0 : i32
    %c0_i32_0 = arith.constant 0 : i32
    %c0_i32_1 = arith.constant 0 : i32
    return %c0_i32, %c0_i32_0 : i32, i32
  }
  func.func @transform_3(%arg0: i32, %arg1: i32) -> (i32, i32) {
    %c0_i32 = arith.constant 0 : i32
    %c0_i32_0 = arith.constant 0 : i32
    return %c0_i32, %arg1 : i32, i32
  }
  func.func @transform_4(%arg0: i32, %arg1: i32) -> (i32, i32, i32) {
    %c0_i32 = arith.constant 0 : i32
    %c0_i32_0 = arith.constant 0 : i32
    return %arg0, %c0_i32, %arg1 : i32, i32, i32
  }
  func.func @transform_5(%arg0: i32, %arg1: i32) -> (i32, i32, i32, i32) {
    %c0_i32 = arith.constant 0 : i32
    %c0_i32_0 = arith.constant 0 : i32
    %c0_i32_1 = arith.constant 0 : i32
    return %arg0, %arg1, %c0_i32, %c0_i32_0 : i32, i32, i32, i32
  }
}

module attributes {stable_mosaic.version = 11 : i64} {
  func.func @_conv_kernel(%arg0: i32, %arg1: i32, %arg2: memref<1x32x90xbf16, #tpu.memory_space<vmem>>, %arg3: memref<16x128xbf16, #tpu.memory_space<vmem>>, %arg4: memref<16x1xf32, #tpu.memory_space<vmem>>, %arg5: memref<1x72xf32, #tpu.memory_space<vmem>>, %arg6: memref<1x16x72xbf16, #tpu.memory_space<vmem>>, %arg7: memref<1x1x16x2xf32, #tpu.memory_space<vmem>>) attributes {dimension_semantics = [#tpu.dimension_semantics<parallel>, #tpu.dimension_semantics<parallel>], iteration_bounds = array<i64: 2, 1>, scalar_prefetch = 0 : i64, scratch_operands = 0 : i64, tpu.core_type = #tpu.core_type<tc>, window_params = [{transform_indices = @transform_0, window_bounds = array<i64: 1, 32, 90>}, {pipeline_mode = #tpu.pipeline_mode<synchronous>, transform_indices = @transform_1, window_bounds = array<i64: 16, 128>}, {pipeline_mode = #tpu.pipeline_mode<synchronous>, transform_indices = @transform_2, window_bounds = array<i64: 16, 1>}, {transform_indices = @transform_3, window_bounds = array<i64: 1, 72>}, {transform_indices = @transform_4, window_bounds = array<i64: 1, 16, 72>}, {transform_indices = @transform_5, window_bounds = array<i64: 1, 1, 16, 2>}]} {
    %c0 = arith.constant 0 : index
    %c0_0 = arith.constant 0 : index
    %c0_1 = arith.constant 0 : index
    %0 = vector.load %arg2[%c0, %c0_0, %c0_1] : memref<1x32x90xbf16, #tpu.memory_space<vmem>>, vector<1x32x73xbf16>
    %1 = vector.shape_cast %0 : vector<1x32x73xbf16> to vector<32x73xbf16>
    %2 = vector.extract_strided_slice %1 {offsets = [0, 0], sizes = [32, 72], strides = [1, 1]} : vector<32x73xbf16> to vector<32x72xbf16>
    %3 = vector.extract_strided_slice %1 {offsets = [0, 1], sizes = [32, 72], strides = [1, 1]} : vector<32x73xbf16> to vector<32x72xbf16>
    %c0_2 = arith.constant 0 : index
    %c0_3 = arith.constant 0 : index
    %c9 = arith.constant 9 : index
    %4 = vector.load %arg2[%c0_2, %c0_3, %c9] : memref<1x32x90xbf16, #tpu.memory_space<vmem>>, vector<1x32x73xbf16>
    %5 = vector.shape_cast %4 : vector<1x32x73xbf16> to vector<32x73xbf16>
    %6 = vector.extract_strided_slice %5 {offsets = [0, 0], sizes = [32, 72], strides = [1, 1]} : vector<32x73xbf16> to vector<32x72xbf16>
    %7 = vector.extract_strided_slice %5 {offsets = [0, 1], sizes = [32, 72], strides = [1, 1]} : vector<32x73xbf16> to vector<32x72xbf16>
    %8 = tpu.concatenate %2, %3, %6, %7 in 0 : vector<32x72xbf16>, vector<32x72xbf16>, vector<32x72xbf16>, vector<32x72xbf16> -> vector<128x72xbf16>
    %c0_4 = arith.constant 0 : index
    %c0_5 = arith.constant 0 : index
    %9 = vector.load %arg3[%c0_4, %c0_5] : memref<16x128xbf16, #tpu.memory_space<vmem>>, vector<16x128xbf16>
    %cst = arith.constant dense<0.000000e+00> : vector<16x72xf32>
    %10 = tpu.matmul %9, %8, %cst {dimension_numbers = #tpu.dot_dimension_numbers<[1], [0], [0], [1], [0, 0, 1, 1], [], []>} : vector<16x128xbf16>, vector<128x72xbf16>, vector<16x72xf32> -> vector<16x72xf32>
    %c0_6 = arith.constant 0 : index
    %c0_7 = arith.constant 0 : index
    %11 = vector.load %arg4[%c0_6, %c0_7] : memref<16x1xf32, #tpu.memory_space<vmem>>, vector<16x1xf32>
    %12 = vector.broadcast %11 : vector<16x1xf32> to vector<16x72xf32>
    %13 = arith.addf %10, %12 : vector<16x72xf32>
    %c0_8 = arith.constant 0 : index
    %c0_9 = arith.constant 0 : index
    %14 = vector.load %arg5[%c0_8, %c0_9] : memref<1x72xf32, #tpu.memory_space<vmem>>, vector<1x72xf32>
    %15 = vector.broadcast %14 : vector<1x72xf32> to vector<16x72xf32>
    %16 = arith.mulf %13, %15 : vector<16x72xf32>
    %cst_10 = arith.constant dense<0.000000e+00> : vector<16xf32>
    %17 = vector.multi_reduction <add>, %16, %cst_10 [1] : vector<16x72xf32> to vector<16xf32>
    %18 = vector.shape_cast %17 : vector<16xf32> to vector<16x1xf32>
    %19 = arith.mulf %16, %13 : vector<16x72xf32>
    %cst_11 = arith.constant dense<0.000000e+00> : vector<16xf32>
    %20 = vector.multi_reduction <add>, %19, %cst_11 [1] : vector<16x72xf32> to vector<16xf32>
    %21 = vector.shape_cast %20 : vector<16xf32> to vector<16x1xf32>
    %22 = tpu.concatenate %18, %21 in 1 : vector<16x1xf32>, vector<16x1xf32> -> vector<16x2xf32>
    %c0_12 = arith.constant 0 : index
    %c0_13 = arith.constant 0 : index
    %c0_14 = arith.constant 0 : index
    %c0_15 = arith.constant 0 : index
    %23 = vector.load %arg7[%c0_12, %c0_13, %c0_14, %c0_15] : memref<1x1x16x2xf32, #tpu.memory_space<vmem>>, vector<1x1x16x2xf32>
    %24 = vector.shape_cast %23 : vector<1x1x16x2xf32> to vector<16x2xf32>
    %25 = vector.shape_cast %22 : vector<16x2xf32> to vector<1x1x16x2xf32>
    tpu.vector_store %arg7[%c0_12, %c0_13, %c0_14, %c0_15], %25 {strides = array<i32>} : memref<1x1x16x2xf32, #tpu.memory_space<vmem>>, vector<1x1x16x2xf32>,
    %26 = arith.truncf %13 : vector<16x72xf32> to vector<16x72xbf16>
    %c0_16 = arith.constant 0 : index
    %c0_17 = arith.constant 0 : index
    %c0_18 = arith.constant 0 : index
    %27 = vector.load %arg6[%c0_16, %c0_17, %c0_18] : memref<1x16x72xbf16, #tpu.memory_space<vmem>>, vector<1x16x72xbf16>
    %28 = vector.shape_cast %27 : vector<1x16x72xbf16> to vector<16x72xbf16>
    %29 = vector.shape_cast %26 : vector<16x72xbf16> to vector<1x16x72xbf16>
    tpu.vector_store %arg6[%c0_16, %c0_17, %c0_18], %29 {strides = array<i32>} : memref<1x16x72xbf16, #tpu.memory_space<vmem>>, vector<1x16x72xbf16>,
    return
  }
  func.func @transform_0(%arg0: i32, %arg1: i32) -> (i32, i32, i32) {
    %c0_i32 = arith.constant 0 : i32
    %c0_i32_0 = arith.constant 0 : i32
    %c0_i32_1 = arith.constant 0 : i32
    return %arg0, %c0_i32, %c0_i32_0 : i32, i32, i32
  }
  func.func @transform_1(%arg0: i32, %arg1: i32) -> (i32, i32) {
    %c0_i32 = arith.constant 0 : i32
    %c0_i32_0 = arith.constant 0 : i32
    %c0_i32_1 = arith.constant 0 : i32
    return %c0_i32, %c0_i32_0 : i32, i32
  }
  func.func @transform_2(%arg0: i32, %arg1: i32) -> (i32, i32) {
    %c0_i32 = arith.constant 0 : i32
    %c0_i32_0 = arith.constant 0 : i32
    %c0_i32_1 = arith.constant 0 : i32
    return %c0_i32, %c0_i32_0 : i32, i32
  }
  func.func @transform_3(%arg0: i32, %arg1: i32) -> (i32, i32) {
    %c0_i32 = arith.constant 0 : i32
    %c0_i32_0 = arith.constant 0 : i32
    return %c0_i32, %arg1 : i32, i32
  }
  func.func @transform_4(%arg0: i32, %arg1: i32) -> (i32, i32, i32) {
    %c0_i32 = arith.constant 0 : i32
    %c0_i32_0 = arith.constant 0 : i32
    return %arg0, %c0_i32, %arg1 : i32, i32, i32
  }
  func.func @transform_5(%arg0: i32, %arg1: i32) -> (i32, i32, i32, i32) {
    %c0_i32 = arith.constant 0 : i32
    %c0_i32_0 = arith.constant 0 : i32
    %c0_i32_1 = arith.constant 0 : i32
    return %arg0, %arg1, %c0_i32, %c0_i32_0 : i32, i32, i32, i32
  }
}

module attributes {stable_mosaic.version = 11 : i64} {
  func.func @_conv_kernel(%arg0: i32, %arg1: i32, %arg2: memref<1x64x30xbf16, #tpu.memory_space<vmem>>, %arg3: memref<32x256xbf16, #tpu.memory_space<vmem>>, %arg4: memref<32x1xf32, #tpu.memory_space<vmem>>, %arg5: memref<1x20xf32, #tpu.memory_space<vmem>>, %arg6: memref<1x32x20xbf16, #tpu.memory_space<vmem>>, %arg7: memref<1x1x32x2xf32, #tpu.memory_space<vmem>>) attributes {dimension_semantics = [#tpu.dimension_semantics<parallel>, #tpu.dimension_semantics<parallel>], iteration_bounds = array<i64: 2, 1>, scalar_prefetch = 0 : i64, scratch_operands = 0 : i64, tpu.core_type = #tpu.core_type<tc>, window_params = [{transform_indices = @transform_0, window_bounds = array<i64: 1, 64, 30>}, {pipeline_mode = #tpu.pipeline_mode<synchronous>, transform_indices = @transform_1, window_bounds = array<i64: 32, 256>}, {pipeline_mode = #tpu.pipeline_mode<synchronous>, transform_indices = @transform_2, window_bounds = array<i64: 32, 1>}, {transform_indices = @transform_3, window_bounds = array<i64: 1, 20>}, {transform_indices = @transform_4, window_bounds = array<i64: 1, 32, 20>}, {transform_indices = @transform_5, window_bounds = array<i64: 1, 1, 32, 2>}]} {
    %c0 = arith.constant 0 : index
    %c0_0 = arith.constant 0 : index
    %c0_1 = arith.constant 0 : index
    %0 = vector.load %arg2[%c0, %c0_0, %c0_1] : memref<1x64x30xbf16, #tpu.memory_space<vmem>>, vector<1x64x21xbf16>
    %1 = vector.shape_cast %0 : vector<1x64x21xbf16> to vector<64x21xbf16>
    %2 = vector.extract_strided_slice %1 {offsets = [0, 0], sizes = [64, 20], strides = [1, 1]} : vector<64x21xbf16> to vector<64x20xbf16>
    %3 = vector.extract_strided_slice %1 {offsets = [0, 1], sizes = [64, 20], strides = [1, 1]} : vector<64x21xbf16> to vector<64x20xbf16>
    %c0_2 = arith.constant 0 : index
    %c0_3 = arith.constant 0 : index
    %c5 = arith.constant 5 : index
    %4 = vector.load %arg2[%c0_2, %c0_3, %c5] : memref<1x64x30xbf16, #tpu.memory_space<vmem>>, vector<1x64x21xbf16>
    %5 = vector.shape_cast %4 : vector<1x64x21xbf16> to vector<64x21xbf16>
    %6 = vector.extract_strided_slice %5 {offsets = [0, 0], sizes = [64, 20], strides = [1, 1]} : vector<64x21xbf16> to vector<64x20xbf16>
    %7 = vector.extract_strided_slice %5 {offsets = [0, 1], sizes = [64, 20], strides = [1, 1]} : vector<64x21xbf16> to vector<64x20xbf16>
    %8 = tpu.concatenate %2, %3, %6, %7 in 0 : vector<64x20xbf16>, vector<64x20xbf16>, vector<64x20xbf16>, vector<64x20xbf16> -> vector<256x20xbf16>
    %c0_4 = arith.constant 0 : index
    %c0_5 = arith.constant 0 : index
    %9 = vector.load %arg3[%c0_4, %c0_5] : memref<32x256xbf16, #tpu.memory_space<vmem>>, vector<32x256xbf16>
    %cst = arith.constant dense<0.000000e+00> : vector<32x20xf32>
    %10 = tpu.matmul %9, %8, %cst {dimension_numbers = #tpu.dot_dimension_numbers<[1], [0], [0], [1], [0, 0, 1, 1], [], []>} : vector<32x256xbf16>, vector<256x20xbf16>, vector<32x20xf32> -> vector<32x20xf32>
    %c0_6 = arith.constant 0 : index
    %c0_7 = arith.constant 0 : index
    %11 = vector.load %arg4[%c0_6, %c0_7] : memref<32x1xf32, #tpu.memory_space<vmem>>, vector<32x1xf32>
    %12 = vector.broadcast %11 : vector<32x1xf32> to vector<32x20xf32>
    %13 = arith.addf %10, %12 : vector<32x20xf32>
    %c0_8 = arith.constant 0 : index
    %c0_9 = arith.constant 0 : index
    %14 = vector.load %arg5[%c0_8, %c0_9] : memref<1x20xf32, #tpu.memory_space<vmem>>, vector<1x20xf32>
    %15 = vector.broadcast %14 : vector<1x20xf32> to vector<32x20xf32>
    %16 = arith.mulf %13, %15 : vector<32x20xf32>
    %cst_10 = arith.constant dense<0.000000e+00> : vector<32xf32>
    %17 = vector.multi_reduction <add>, %16, %cst_10 [1] : vector<32x20xf32> to vector<32xf32>
    %18 = vector.shape_cast %17 : vector<32xf32> to vector<32x1xf32>
    %19 = arith.mulf %16, %13 : vector<32x20xf32>
    %cst_11 = arith.constant dense<0.000000e+00> : vector<32xf32>
    %20 = vector.multi_reduction <add>, %19, %cst_11 [1] : vector<32x20xf32> to vector<32xf32>
    %21 = vector.shape_cast %20 : vector<32xf32> to vector<32x1xf32>
    %22 = tpu.concatenate %18, %21 in 1 : vector<32x1xf32>, vector<32x1xf32> -> vector<32x2xf32>
    %c0_12 = arith.constant 0 : index
    %c0_13 = arith.constant 0 : index
    %c0_14 = arith.constant 0 : index
    %c0_15 = arith.constant 0 : index
    %23 = vector.load %arg7[%c0_12, %c0_13, %c0_14, %c0_15] : memref<1x1x32x2xf32, #tpu.memory_space<vmem>>, vector<1x1x32x2xf32>
    %24 = vector.shape_cast %23 : vector<1x1x32x2xf32> to vector<32x2xf32>
    %25 = vector.shape_cast %22 : vector<32x2xf32> to vector<1x1x32x2xf32>
    tpu.vector_store %arg7[%c0_12, %c0_13, %c0_14, %c0_15], %25 {strides = array<i32>} : memref<1x1x32x2xf32, #tpu.memory_space<vmem>>, vector<1x1x32x2xf32>,
    %26 = arith.truncf %13 : vector<32x20xf32> to vector<32x20xbf16>
    %c0_16 = arith.constant 0 : index
    %c0_17 = arith.constant 0 : index
    %c0_18 = arith.constant 0 : index
    %27 = vector.load %arg6[%c0_16, %c0_17, %c0_18] : memref<1x32x20xbf16, #tpu.memory_space<vmem>>, vector<1x32x20xbf16>
    %28 = vector.shape_cast %27 : vector<1x32x20xbf16> to vector<32x20xbf16>
    %29 = vector.shape_cast %26 : vector<32x20xbf16> to vector<1x32x20xbf16>
    tpu.vector_store %arg6[%c0_16, %c0_17, %c0_18], %29 {strides = array<i32>} : memref<1x32x20xbf16, #tpu.memory_space<vmem>>, vector<1x32x20xbf16>,
    return
  }
  func.func @transform_0(%arg0: i32, %arg1: i32) -> (i32, i32, i32) {
    %c0_i32 = arith.constant 0 : i32
    %c0_i32_0 = arith.constant 0 : i32
    %c0_i32_1 = arith.constant 0 : i32
    return %arg0, %c0_i32, %c0_i32_0 : i32, i32, i32
  }
  func.func @transform_1(%arg0: i32, %arg1: i32) -> (i32, i32) {
    %c0_i32 = arith.constant 0 : i32
    %c0_i32_0 = arith.constant 0 : i32
    %c0_i32_1 = arith.constant 0 : i32
    return %c0_i32, %c0_i32_0 : i32, i32
  }
  func.func @transform_2(%arg0: i32, %arg1: i32) -> (i32, i32) {
    %c0_i32 = arith.constant 0 : i32
    %c0_i32_0 = arith.constant 0 : i32
    %c0_i32_1 = arith.constant 0 : i32
    return %c0_i32, %c0_i32_0 : i32, i32
  }
  func.func @transform_3(%arg0: i32, %arg1: i32) -> (i32, i32) {
    %c0_i32 = arith.constant 0 : i32
    %c0_i32_0 = arith.constant 0 : i32
    return %c0_i32, %arg1 : i32, i32
  }
  func.func @transform_4(%arg0: i32, %arg1: i32) -> (i32, i32, i32) {
    %c0_i32 = arith.constant 0 : i32
    %c0_i32_0 = arith.constant 0 : i32
    return %arg0, %c0_i32, %arg1 : i32, i32, i32
  }
  func.func @transform_5(%arg0: i32, %arg1: i32) -> (i32, i32, i32, i32) {
    %c0_i32 = arith.constant 0 : i32
    %c0_i32_0 = arith.constant 0 : i32
    %c0_i32_1 = arith.constant 0 : i32
    return %arg0, %arg1, %c0_i32, %c0_i32_0 : i32, i32, i32, i32
  }
}

module attributes {stable_mosaic.version = 11 : i64} {
  func.func @_conv_kernel(%arg0: i32, %arg1: i32, %arg2: memref<1x32x30xbf16, #tpu.memory_space<vmem>>, %arg3: memref<64x128xbf16, #tpu.memory_space<vmem>>, %arg4: memref<64x1xf32, #tpu.memory_space<vmem>>, %arg5: memref<1x20xf32, #tpu.memory_space<vmem>>, %arg6: memref<1x64x20xbf16, #tpu.memory_space<vmem>>, %arg7: memref<1x1x64x2xf32, #tpu.memory_space<vmem>>) attributes {dimension_semantics = [#tpu.dimension_semantics<parallel>, #tpu.dimension_semantics<parallel>], iteration_bounds = array<i64: 2, 1>, scalar_prefetch = 0 : i64, scratch_operands = 0 : i64, tpu.core_type = #tpu.core_type<tc>, window_params = [{transform_indices = @transform_0, window_bounds = array<i64: 1, 32, 30>}, {pipeline_mode = #tpu.pipeline_mode<synchronous>, transform_indices = @transform_1, window_bounds = array<i64: 64, 128>}, {pipeline_mode = #tpu.pipeline_mode<synchronous>, transform_indices = @transform_2, window_bounds = array<i64: 64, 1>}, {transform_indices = @transform_3, window_bounds = array<i64: 1, 20>}, {transform_indices = @transform_4, window_bounds = array<i64: 1, 64, 20>}, {transform_indices = @transform_5, window_bounds = array<i64: 1, 1, 64, 2>}]} {
    %c0 = arith.constant 0 : index
    %c0_0 = arith.constant 0 : index
    %c0_1 = arith.constant 0 : index
    %0 = vector.load %arg2[%c0, %c0_0, %c0_1] : memref<1x32x30xbf16, #tpu.memory_space<vmem>>, vector<1x32x21xbf16>
    %1 = vector.shape_cast %0 : vector<1x32x21xbf16> to vector<32x21xbf16>
    %2 = vector.extract_strided_slice %1 {offsets = [0, 0], sizes = [32, 20], strides = [1, 1]} : vector<32x21xbf16> to vector<32x20xbf16>
    %3 = vector.extract_strided_slice %1 {offsets = [0, 1], sizes = [32, 20], strides = [1, 1]} : vector<32x21xbf16> to vector<32x20xbf16>
    %c0_2 = arith.constant 0 : index
    %c0_3 = arith.constant 0 : index
    %c5 = arith.constant 5 : index
    %4 = vector.load %arg2[%c0_2, %c0_3, %c5] : memref<1x32x30xbf16, #tpu.memory_space<vmem>>, vector<1x32x21xbf16>
    %5 = vector.shape_cast %4 : vector<1x32x21xbf16> to vector<32x21xbf16>
    %6 = vector.extract_strided_slice %5 {offsets = [0, 0], sizes = [32, 20], strides = [1, 1]} : vector<32x21xbf16> to vector<32x20xbf16>
    %7 = vector.extract_strided_slice %5 {offsets = [0, 1], sizes = [32, 20], strides = [1, 1]} : vector<32x21xbf16> to vector<32x20xbf16>
    %8 = tpu.concatenate %2, %3, %6, %7 in 0 : vector<32x20xbf16>, vector<32x20xbf16>, vector<32x20xbf16>, vector<32x20xbf16> -> vector<128x20xbf16>
    %c0_4 = arith.constant 0 : index
    %c0_5 = arith.constant 0 : index
    %9 = vector.load %arg3[%c0_4, %c0_5] : memref<64x128xbf16, #tpu.memory_space<vmem>>, vector<64x128xbf16>
    %cst = arith.constant dense<0.000000e+00> : vector<64x20xf32>
    %10 = tpu.matmul %9, %8, %cst {dimension_numbers = #tpu.dot_dimension_numbers<[1], [0], [0], [1], [0, 0, 1, 1], [], []>} : vector<64x128xbf16>, vector<128x20xbf16>, vector<64x20xf32> -> vector<64x20xf32>
    %c0_6 = arith.constant 0 : index
    %c0_7 = arith.constant 0 : index
    %11 = vector.load %arg4[%c0_6, %c0_7] : memref<64x1xf32, #tpu.memory_space<vmem>>, vector<64x1xf32>
    %12 = vector.broadcast %11 : vector<64x1xf32> to vector<64x20xf32>
    %13 = arith.addf %10, %12 : vector<64x20xf32>
    %c0_8 = arith.constant 0 : index
    %c0_9 = arith.constant 0 : index
    %14 = vector.load %arg5[%c0_8, %c0_9] : memref<1x20xf32, #tpu.memory_space<vmem>>, vector<1x20xf32>
    %15 = vector.broadcast %14 : vector<1x20xf32> to vector<64x20xf32>
    %16 = arith.mulf %13, %15 : vector<64x20xf32>
    %cst_10 = arith.constant dense<0.000000e+00> : vector<64xf32>
    %17 = vector.multi_reduction <add>, %16, %cst_10 [1] : vector<64x20xf32> to vector<64xf32>
    %18 = vector.shape_cast %17 : vector<64xf32> to vector<64x1xf32>
    %19 = arith.mulf %16, %13 : vector<64x20xf32>
    %cst_11 = arith.constant dense<0.000000e+00> : vector<64xf32>
    %20 = vector.multi_reduction <add>, %19, %cst_11 [1] : vector<64x20xf32> to vector<64xf32>
    %21 = vector.shape_cast %20 : vector<64xf32> to vector<64x1xf32>
    %22 = tpu.concatenate %18, %21 in 1 : vector<64x1xf32>, vector<64x1xf32> -> vector<64x2xf32>
    %c0_12 = arith.constant 0 : index
    %c0_13 = arith.constant 0 : index
    %c0_14 = arith.constant 0 : index
    %c0_15 = arith.constant 0 : index
    %23 = vector.load %arg7[%c0_12, %c0_13, %c0_14, %c0_15] : memref<1x1x64x2xf32, #tpu.memory_space<vmem>>, vector<1x1x64x2xf32>
    %24 = vector.shape_cast %23 : vector<1x1x64x2xf32> to vector<64x2xf32>
    %25 = vector.shape_cast %22 : vector<64x2xf32> to vector<1x1x64x2xf32>
    tpu.vector_store %arg7[%c0_12, %c0_13, %c0_14, %c0_15], %25 {strides = array<i32>} : memref<1x1x64x2xf32, #tpu.memory_space<vmem>>, vector<1x1x64x2xf32>,
    %26 = arith.truncf %13 : vector<64x20xf32> to vector<64x20xbf16>
    %c0_16 = arith.constant 0 : index
    %c0_17 = arith.constant 0 : index
    %c0_18 = arith.constant 0 : index
    %27 = vector.load %arg6[%c0_16, %c0_17, %c0_18] : memref<1x64x20xbf16, #tpu.memory_space<vmem>>, vector<1x64x20xbf16>
    %28 = vector.shape_cast %27 : vector<1x64x20xbf16> to vector<64x20xbf16>
    %29 = vector.shape_cast %26 : vector<64x20xbf16> to vector<1x64x20xbf16>
    tpu.vector_store %arg6[%c0_16, %c0_17, %c0_18], %29 {strides = array<i32>} : memref<1x64x20xbf16, #tpu.memory_space<vmem>>, vector<1x64x20xbf16>,
    return
  }
  func.func @transform_0(%arg0: i32, %arg1: i32) -> (i32, i32, i32) {
    %c0_i32 = arith.constant 0 : i32
    %c0_i32_0 = arith.constant 0 : i32
    %c0_i32_1 = arith.constant 0 : i32
    return %arg0, %c0_i32, %c0_i32_0 : i32, i32, i32
  }
  func.func @transform_1(%arg0: i32, %arg1: i32) -> (i32, i32) {
    %c0_i32 = arith.constant 0 : i32
    %c0_i32_0 = arith.constant 0 : i32
    %c0_i32_1 = arith.constant 0 : i32
    return %c0_i32, %c0_i32_0 : i32, i32
  }
  func.func @transform_2(%arg0: i32, %arg1: i32) -> (i32, i32) {
    %c0_i32 = arith.constant 0 : i32
    %c0_i32_0 = arith.constant 0 : i32
    %c0_i32_1 = arith.constant 0 : i32
    return %c0_i32, %c0_i32_0 : i32, i32
  }
  func.func @transform_3(%arg0: i32, %arg1: i32) -> (i32, i32) {
    %c0_i32 = arith.constant 0 : i32
    %c0_i32_0 = arith.constant 0 : i32
    return %c0_i32, %arg1 : i32, i32
  }
  func.func @transform_4(%arg0: i32, %arg1: i32) -> (i32, i32, i32) {
    %c0_i32 = arith.constant 0 : i32
    %c0_i32_0 = arith.constant 0 : i32
    return %arg0, %c0_i32, %arg1 : i32, i32, i32
  }
  func.func @transform_5(%arg0: i32, %arg1: i32) -> (i32, i32, i32, i32) {
    %c0_i32 = arith.constant 0 : i32
    %c0_i32_0 = arith.constant 0 : i32
    %c0_i32_1 = arith.constant 0 : i32
    return %arg0, %arg1, %c0_i32, %c0_i32_0 : i32, i32, i32, i32
  }
}

module attributes {stable_mosaic.version = 11 : i64} {
  func.func @_conv_kernel(%arg0: i32, %arg1: i32, %arg2: memref<1x16x90xbf16, #tpu.memory_space<vmem>>, %arg3: memref<32x64xbf16, #tpu.memory_space<vmem>>, %arg4: memref<32x1xf32, #tpu.memory_space<vmem>>, %arg5: memref<1x72xf32, #tpu.memory_space<vmem>>, %arg6: memref<1x32x72xbf16, #tpu.memory_space<vmem>>, %arg7: memref<1x1x32x2xf32, #tpu.memory_space<vmem>>) attributes {dimension_semantics = [#tpu.dimension_semantics<parallel>, #tpu.dimension_semantics<parallel>], iteration_bounds = array<i64: 2, 1>, scalar_prefetch = 0 : i64, scratch_operands = 0 : i64, tpu.core_type = #tpu.core_type<tc>, window_params = [{transform_indices = @transform_0, window_bounds = array<i64: 1, 16, 90>}, {pipeline_mode = #tpu.pipeline_mode<synchronous>, transform_indices = @transform_1, window_bounds = array<i64: 32, 64>}, {pipeline_mode = #tpu.pipeline_mode<synchronous>, transform_indices = @transform_2, window_bounds = array<i64: 32, 1>}, {transform_indices = @transform_3, window_bounds = array<i64: 1, 72>}, {transform_indices = @transform_4, window_bounds = array<i64: 1, 32, 72>}, {transform_indices = @transform_5, window_bounds = array<i64: 1, 1, 32, 2>}]} {
    %c0 = arith.constant 0 : index
    %c0_0 = arith.constant 0 : index
    %c0_1 = arith.constant 0 : index
    %0 = vector.load %arg2[%c0, %c0_0, %c0_1] : memref<1x16x90xbf16, #tpu.memory_space<vmem>>, vector<1x16x73xbf16>
    %1 = vector.shape_cast %0 : vector<1x16x73xbf16> to vector<16x73xbf16>
    %2 = vector.extract_strided_slice %1 {offsets = [0, 0], sizes = [16, 72], strides = [1, 1]} : vector<16x73xbf16> to vector<16x72xbf16>
    %3 = vector.extract_strided_slice %1 {offsets = [0, 1], sizes = [16, 72], strides = [1, 1]} : vector<16x73xbf16> to vector<16x72xbf16>
    %c0_2 = arith.constant 0 : index
    %c0_3 = arith.constant 0 : index
    %c9 = arith.constant 9 : index
    %4 = vector.load %arg2[%c0_2, %c0_3, %c9] : memref<1x16x90xbf16, #tpu.memory_space<vmem>>, vector<1x16x73xbf16>
    %5 = vector.shape_cast %4 : vector<1x16x73xbf16> to vector<16x73xbf16>
    %6 = vector.extract_strided_slice %5 {offsets = [0, 0], sizes = [16, 72], strides = [1, 1]} : vector<16x73xbf16> to vector<16x72xbf16>
    %7 = vector.extract_strided_slice %5 {offsets = [0, 1], sizes = [16, 72], strides = [1, 1]} : vector<16x73xbf16> to vector<16x72xbf16>
    %8 = tpu.concatenate %2, %3, %6, %7 in 0 : vector<16x72xbf16>, vector<16x72xbf16>, vector<16x72xbf16>, vector<16x72xbf16> -> vector<64x72xbf16>
    %c0_4 = arith.constant 0 : index
    %c0_5 = arith.constant 0 : index
    %9 = vector.load %arg3[%c0_4, %c0_5] : memref<32x64xbf16, #tpu.memory_space<vmem>>, vector<32x64xbf16>
    %cst = arith.constant dense<0.000000e+00> : vector<32x72xf32>
    %10 = tpu.matmul %9, %8, %cst {dimension_numbers = #tpu.dot_dimension_numbers<[1], [0], [0], [1], [0, 0, 1, 1], [], []>} : vector<32x64xbf16>, vector<64x72xbf16>, vector<32x72xf32> -> vector<32x72xf32>
    %c0_6 = arith.constant 0 : index
    %c0_7 = arith.constant 0 : index
    %11 = vector.load %arg4[%c0_6, %c0_7] : memref<32x1xf32, #tpu.memory_space<vmem>>, vector<32x1xf32>
    %12 = vector.broadcast %11 : vector<32x1xf32> to vector<32x72xf32>
    %13 = arith.addf %10, %12 : vector<32x72xf32>
    %c0_8 = arith.constant 0 : index
    %c0_9 = arith.constant 0 : index
    %14 = vector.load %arg5[%c0_8, %c0_9] : memref<1x72xf32, #tpu.memory_space<vmem>>, vector<1x72xf32>
    %15 = vector.broadcast %14 : vector<1x72xf32> to vector<32x72xf32>
    %16 = arith.mulf %13, %15 : vector<32x72xf32>
    %cst_10 = arith.constant dense<0.000000e+00> : vector<32xf32>
    %17 = vector.multi_reduction <add>, %16, %cst_10 [1] : vector<32x72xf32> to vector<32xf32>
    %18 = vector.shape_cast %17 : vector<32xf32> to vector<32x1xf32>
    %19 = arith.mulf %16, %13 : vector<32x72xf32>
    %cst_11 = arith.constant dense<0.000000e+00> : vector<32xf32>
    %20 = vector.multi_reduction <add>, %19, %cst_11 [1] : vector<32x72xf32> to vector<32xf32>
    %21 = vector.shape_cast %20 : vector<32xf32> to vector<32x1xf32>
    %22 = tpu.concatenate %18, %21 in 1 : vector<32x1xf32>, vector<32x1xf32> -> vector<32x2xf32>
    %c0_12 = arith.constant 0 : index
    %c0_13 = arith.constant 0 : index
    %c0_14 = arith.constant 0 : index
    %c0_15 = arith.constant 0 : index
    %23 = vector.load %arg7[%c0_12, %c0_13, %c0_14, %c0_15] : memref<1x1x32x2xf32, #tpu.memory_space<vmem>>, vector<1x1x32x2xf32>
    %24 = vector.shape_cast %23 : vector<1x1x32x2xf32> to vector<32x2xf32>
    %25 = vector.shape_cast %22 : vector<32x2xf32> to vector<1x1x32x2xf32>
    tpu.vector_store %arg7[%c0_12, %c0_13, %c0_14, %c0_15], %25 {strides = array<i32>} : memref<1x1x32x2xf32, #tpu.memory_space<vmem>>, vector<1x1x32x2xf32>,
    %26 = arith.truncf %13 : vector<32x72xf32> to vector<32x72xbf16>
    %c0_16 = arith.constant 0 : index
    %c0_17 = arith.constant 0 : index
    %c0_18 = arith.constant 0 : index
    %27 = vector.load %arg6[%c0_16, %c0_17, %c0_18] : memref<1x32x72xbf16, #tpu.memory_space<vmem>>, vector<1x32x72xbf16>
    %28 = vector.shape_cast %27 : vector<1x32x72xbf16> to vector<32x72xbf16>
    %29 = vector.shape_cast %26 : vector<32x72xbf16> to vector<1x32x72xbf16>
    tpu.vector_store %arg6[%c0_16, %c0_17, %c0_18], %29 {strides = array<i32>} : memref<1x32x72xbf16, #tpu.memory_space<vmem>>, vector<1x32x72xbf16>,
    return
  }
  func.func @transform_0(%arg0: i32, %arg1: i32) -> (i32, i32, i32) {
    %c0_i32 = arith.constant 0 : i32
    %c0_i32_0 = arith.constant 0 : i32
    %c0_i32_1 = arith.constant 0 : i32
    return %arg0, %c0_i32, %c0_i32_0 : i32, i32, i32
  }
  func.func @transform_1(%arg0: i32, %arg1: i32) -> (i32, i32) {
    %c0_i32 = arith.constant 0 : i32
    %c0_i32_0 = arith.constant 0 : i32
    %c0_i32_1 = arith.constant 0 : i32
    return %c0_i32, %c0_i32_0 : i32, i32
  }
  func.func @transform_2(%arg0: i32, %arg1: i32) -> (i32, i32) {
    %c0_i32 = arith.constant 0 : i32
    %c0_i32_0 = arith.constant 0 : i32
    %c0_i32_1 = arith.constant 0 : i32
    return %c0_i32, %c0_i32_0 : i32, i32
  }
  func.func @transform_3(%arg0: i32, %arg1: i32) -> (i32, i32) {
    %c0_i32 = arith.constant 0 : i32
    %c0_i32_0 = arith.constant 0 : i32
    return %c0_i32, %arg1 : i32, i32
  }
  func.func @transform_4(%arg0: i32, %arg1: i32) -> (i32, i32, i32) {
    %c0_i32 = arith.constant 0 : i32
    %c0_i32_0 = arith.constant 0 : i32
    return %arg0, %c0_i32, %arg1 : i32, i32, i32
  }
  func.func @transform_5(%arg0: i32, %arg1: i32) -> (i32, i32, i32, i32) {
    %c0_i32 = arith.constant 0 : i32
    %c0_i32_0 = arith.constant 0 : i32
    %c0_i32_1 = arith.constant 0 : i32
    return %arg0, %arg1, %c0_i32, %c0_i32_0 : i32, i32, i32, i32
  }
}

module attributes {stable_mosaic.version = 11 : i64} {
  func.func @_conv_kernel(%arg0: i32, %arg1: i32, %arg2: memref<1x16x506xbf16, #tpu.memory_space<vmem>>, %arg3: memref<3x784xbf16, #tpu.memory_space<vmem>>, %arg4: memref<3x1xf32, #tpu.memory_space<vmem>>, %arg5: memref<1x352xf32, #tpu.memory_space<vmem>>, %arg6: memref<1x3x352xf32, #tpu.memory_space<vmem>>, %arg7: memref<1x1x3x2xf32, #tpu.memory_space<vmem>>) attributes {dimension_semantics = [#tpu.dimension_semantics<parallel>, #tpu.dimension_semantics<parallel>], iteration_bounds = array<i64: 2, 1>, scalar_prefetch = 0 : i64, scratch_operands = 0 : i64, tpu.core_type = #tpu.core_type<tc>, window_params = [{transform_indices = @transform_0, window_bounds = array<i64: 1, 16, 506>}, {pipeline_mode = #tpu.pipeline_mode<synchronous>, transform_indices = @transform_1, window_bounds = array<i64: 3, 784>}, {pipeline_mode = #tpu.pipeline_mode<synchronous>, transform_indices = @transform_2, window_bounds = array<i64: 3, 1>}, {transform_indices = @transform_3, window_bounds = array<i64: 1, 352>}, {transform_indices = @transform_4, window_bounds = array<i64: 1, 3, 352>}, {transform_indices = @transform_5, window_bounds = array<i64: 1, 1, 3, 2>}]} {
    %c0 = arith.constant 0 : index
    %c0_0 = arith.constant 0 : index
    %c0_1 = arith.constant 0 : index
    %0 = vector.load %arg2[%c0, %c0_0, %c0_1] : memref<1x16x506xbf16, #tpu.memory_space<vmem>>, vector<1x16x358xbf16>
    %1 = vector.shape_cast %0 : vector<1x16x358xbf16> to vector<16x358xbf16>
    %2 = vector.extract_strided_slice %1 {offsets = [0, 0], sizes = [16, 352], strides = [1, 1]} : vector<16x358xbf16> to vector<16x352xbf16>
    %3 = vector.extract_strided_slice %1 {offsets = [0, 1], sizes = [16, 352], strides = [1, 1]} : vector<16x358xbf16> to vector<16x352xbf16>
    %4 = vector.extract_strided_slice %1 {offsets = [0, 2], sizes = [16, 352], strides = [1, 1]} : vector<16x358xbf16> to vector<16x352xbf16>
    %5 = vector.extract_strided_slice %1 {offsets = [0, 3], sizes = [16, 352], strides = [1, 1]} : vector<16x358xbf16> to vector<16x352xbf16>
    %6 = vector.extract_strided_slice %1 {offsets = [0, 4], sizes = [16, 352], strides = [1, 1]} : vector<16x358xbf16> to vector<16x352xbf16>
    %7 = vector.extract_strided_slice %1 {offsets = [0, 5], sizes = [16, 352], strides = [1, 1]} : vector<16x358xbf16> to vector<16x352xbf16>
    %8 = vector.extract_strided_slice %1 {offsets = [0, 6], sizes = [16, 352], strides = [1, 1]} : vector<16x358xbf16> to vector<16x352xbf16>
    %c0_2 = arith.constant 0 : index
    %c0_3 = arith.constant 0 : index
    %c22 = arith.constant 22 : index
    %9 = vector.load %arg2[%c0_2, %c0_3, %c22] : memref<1x16x506xbf16, #tpu.memory_space<vmem>>, vector<1x16x358xbf16>
    %10 = vector.shape_cast %9 : vector<1x16x358xbf16> to vector<16x358xbf16>
    %11 = vector.extract_strided_slice %10 {offsets = [0, 0], sizes = [16, 352], strides = [1, 1]} : vector<16x358xbf16> to vector<16x352xbf16>
    %12 = vector.extract_strided_slice %10 {offsets = [0, 1], sizes = [16, 352], strides = [1, 1]} : vector<16x358xbf16> to vector<16x352xbf16>
    %13 = vector.extract_strided_slice %10 {offsets = [0, 2], sizes = [16, 352], strides = [1, 1]} : vector<16x358xbf16> to vector<16x352xbf16>
    %14 = vector.extract_strided_slice %10 {offsets = [0, 3], sizes = [16, 352], strides = [1, 1]} : vector<16x358xbf16> to vector<16x352xbf16>
    %15 = vector.extract_strided_slice %10 {offsets = [0, 4], sizes = [16, 352], strides = [1, 1]} : vector<16x358xbf16> to vector<16x352xbf16>
    %16 = vector.extract_strided_slice %10 {offsets = [0, 5], sizes = [16, 352], strides = [1, 1]} : vector<16x358xbf16> to vector<16x352xbf16>
    %17 = vector.extract_strided_slice %10 {offsets = [0, 6], sizes = [16, 352], strides = [1, 1]} : vector<16x358xbf16> to vector<16x352xbf16>
    %c0_4 = arith.constant 0 : index
    %c0_5 = arith.constant 0 : index
    %c44 = arith.constant 44 : index
    %18 = vector.load %arg2[%c0_4, %c0_5, %c44] : memref<1x16x506xbf16, #tpu.memory_space<vmem>>, vector<1x16x358xbf16>
    %19 = vector.shape_cast %18 : vector<1x16x358xbf16> to vector<16x358xbf16>
    %20 = vector.extract_strided_slice %19 {offsets = [0, 0], sizes = [16, 352], strides = [1, 1]} : vector<16x358xbf16> to vector<16x352xbf16>
    %21 = vector.extract_strided_slice %19 {offsets = [0, 1], sizes = [16, 352], strides = [1, 1]} : vector<16x358xbf16> to vector<16x352xbf16>
    %22 = vector.extract_strided_slice %19 {offsets = [0, 2], sizes = [16, 352], strides = [1, 1]} : vector<16x358xbf16> to vector<16x352xbf16>
    %23 = vector.extract_strided_slice %19 {offsets = [0, 3], sizes = [16, 352], strides = [1, 1]} : vector<16x358xbf16> to vector<16x352xbf16>
    %24 = vector.extract_strided_slice %19 {offsets = [0, 4], sizes = [16, 352], strides = [1, 1]} : vector<16x358xbf16> to vector<16x352xbf16>
    %25 = vector.extract_strided_slice %19 {offsets = [0, 5], sizes = [16, 352], strides = [1, 1]} : vector<16x358xbf16> to vector<16x352xbf16>
    %26 = vector.extract_strided_slice %19 {offsets = [0, 6], sizes = [16, 352], strides = [1, 1]} : vector<16x358xbf16> to vector<16x352xbf16>
    %c0_6 = arith.constant 0 : index
    %c0_7 = arith.constant 0 : index
    %c66 = arith.constant 66 : index
    %27 = vector.load %arg2[%c0_6, %c0_7, %c66] : memref<1x16x506xbf16, #tpu.memory_space<vmem>>, vector<1x16x358xbf16>
    %28 = vector.shape_cast %27 : vector<1x16x358xbf16> to vector<16x358xbf16>
    %29 = vector.extract_strided_slice %28 {offsets = [0, 0], sizes = [16, 352], strides = [1, 1]} : vector<16x358xbf16> to vector<16x352xbf16>
    %30 = vector.extract_strided_slice %28 {offsets = [0, 1], sizes = [16, 352], strides = [1, 1]} : vector<16x358xbf16> to vector<16x352xbf16>
    %31 = vector.extract_strided_slice %28 {offsets = [0, 2], sizes = [16, 352], strides = [1, 1]} : vector<16x358xbf16> to vector<16x352xbf16>
    %32 = vector.extract_strided_slice %28 {offsets = [0, 3], sizes = [16, 352], strides = [1, 1]} : vector<16x358xbf16> to vector<16x352xbf16>
    %33 = vector.extract_strided_slice %28 {offsets = [0, 4], sizes = [16, 352], strides = [1, 1]} : vector<16x358xbf16> to vector<16x352xbf16>
    %34 = vector.extract_strided_slice %28 {offsets = [0, 5], sizes = [16, 352], strides = [1, 1]} : vector<16x358xbf16> to vector<16x352xbf16>
    %35 = vector.extract_strided_slice %28 {offsets = [0, 6], sizes = [16, 352], strides = [1, 1]} : vector<16x358xbf16> to vector<16x352xbf16>
    %c0_8 = arith.constant 0 : index
    %c0_9 = arith.constant 0 : index
    %c88 = arith.constant 88 : index
    %36 = vector.load %arg2[%c0_8, %c0_9, %c88] : memref<1x16x506xbf16, #tpu.memory_space<vmem>>, vector<1x16x358xbf16>
    %37 = vector.shape_cast %36 : vector<1x16x358xbf16> to vector<16x358xbf16>
    %38 = vector.extract_strided_slice %37 {offsets = [0, 0], sizes = [16, 352], strides = [1, 1]} : vector<16x358xbf16> to vector<16x352xbf16>
    %39 = vector.extract_strided_slice %37 {offsets = [0, 1], sizes = [16, 352], strides = [1, 1]} : vector<16x358xbf16> to vector<16x352xbf16>
    %40 = vector.extract_strided_slice %37 {offsets = [0, 2], sizes = [16, 352], strides = [1, 1]} : vector<16x358xbf16> to vector<16x352xbf16>
    %41 = vector.extract_strided_slice %37 {offsets = [0, 3], sizes = [16, 352], strides = [1, 1]} : vector<16x358xbf16> to vector<16x352xbf16>
    %42 = vector.extract_strided_slice %37 {offsets = [0, 4], sizes = [16, 352], strides = [1, 1]} : vector<16x358xbf16> to vector<16x352xbf16>
    %43 = vector.extract_strided_slice %37 {offsets = [0, 5], sizes = [16, 352], strides = [1, 1]} : vector<16x358xbf16> to vector<16x352xbf16>
    %44 = vector.extract_strided_slice %37 {offsets = [0, 6], sizes = [16, 352], strides = [1, 1]} : vector<16x358xbf16> to vector<16x352xbf16>
    %c0_10 = arith.constant 0 : index
    %c0_11 = arith.constant 0 : index
    %c110 = arith.constant 110 : index
    %45 = vector.load %arg2[%c0_10, %c0_11, %c110] : memref<1x16x506xbf16, #tpu.memory_space<vmem>>, vector<1x16x358xbf16>
    %46 = vector.shape_cast %45 : vector<1x16x358xbf16> to vector<16x358xbf16>
    %47 = vector.extract_strided_slice %46 {offsets = [0, 0], sizes = [16, 352], strides = [1, 1]} : vector<16x358xbf16> to vector<16x352xbf16>
    %48 = vector.extract_strided_slice %46 {offsets = [0, 1], sizes = [16, 352], strides = [1, 1]} : vector<16x358xbf16> to vector<16x352xbf16>
    %49 = vector.extract_strided_slice %46 {offsets = [0, 2], sizes = [16, 352], strides = [1, 1]} : vector<16x358xbf16> to vector<16x352xbf16>
    %50 = vector.extract_strided_slice %46 {offsets = [0, 3], sizes = [16, 352], strides = [1, 1]} : vector<16x358xbf16> to vector<16x352xbf16>
    %51 = vector.extract_strided_slice %46 {offsets = [0, 4], sizes = [16, 352], strides = [1, 1]} : vector<16x358xbf16> to vector<16x352xbf16>
    %52 = vector.extract_strided_slice %46 {offsets = [0, 5], sizes = [16, 352], strides = [1, 1]} : vector<16x358xbf16> to vector<16x352xbf16>
    %53 = vector.extract_strided_slice %46 {offsets = [0, 6], sizes = [16, 352], strides = [1, 1]} : vector<16x358xbf16> to vector<16x352xbf16>
    %c0_12 = arith.constant 0 : index
    %c0_13 = arith.constant 0 : index
    %c132 = arith.constant 132 : index
    %54 = vector.load %arg2[%c0_12, %c0_13, %c132] : memref<1x16x506xbf16, #tpu.memory_space<vmem>>, vector<1x16x358xbf16>
    %55 = vector.shape_cast %54 : vector<1x16x358xbf16> to vector<16x358xbf16>
    %56 = vector.extract_strided_slice %55 {offsets = [0, 0], sizes = [16, 352], strides = [1, 1]} : vector<16x358xbf16> to vector<16x352xbf16>
    %57 = vector.extract_strided_slice %55 {offsets = [0, 1], sizes = [16, 352], strides = [1, 1]} : vector<16x358xbf16> to vector<16x352xbf16>
    %58 = vector.extract_strided_slice %55 {offsets = [0, 2], sizes = [16, 352], strides = [1, 1]} : vector<16x358xbf16> to vector<16x352xbf16>
    %59 = vector.extract_strided_slice %55 {offsets = [0, 3], sizes = [16, 352], strides = [1, 1]} : vector<16x358xbf16> to vector<16x352xbf16>
    %60 = vector.extract_strided_slice %55 {offsets = [0, 4], sizes = [16, 352], strides = [1, 1]} : vector<16x358xbf16> to vector<16x352xbf16>
    %61 = vector.extract_strided_slice %55 {offsets = [0, 5], sizes = [16, 352], strides = [1, 1]} : vector<16x358xbf16> to vector<16x352xbf16>
    %62 = vector.extract_strided_slice %55 {offsets = [0, 6], sizes = [16, 352], strides = [1, 1]} : vector<16x358xbf16> to vector<16x352xbf16>
    %63 = tpu.concatenate %2, %3, %4, %5, %6, %7, %8, %11, %12, %13, %14, %15, %16, %17, %20, %21 in 0 : vector<16x352xbf16>, vector<16x352xbf16>, vector<16x352xbf16>, vector<16x352xbf16>, vector<16x352xbf16>, vector<16x352xbf16>, vector<16x352xbf16>, vector<16x352xbf16>, vector<16x352xbf16>, vector<16x352xbf16>, vector<16x352xbf16>, vector<16x352xbf16>, vector<16x352xbf16>, vector<16x352xbf16>, vector<16x352xbf16>, vector<16x352xbf16> -> vector<256x352xbf16>
    %64 = tpu.concatenate %22, %23, %24, %25, %26, %29, %30, %31, %32, %33, %34, %35, %38, %39, %40, %41 in 0 : vector<16x352xbf16>, vector<16x352xbf16>, vector<16x352xbf16>, vector<16x352xbf16>, vector<16x352xbf16>, vector<16x352xbf16>, vector<16x352xbf16>, vector<16x352xbf16>, vector<16x352xbf16>, vector<16x352xbf16>, vector<16x352xbf16>, vector<16x352xbf16>, vector<16x352xbf16>, vector<16x352xbf16>, vector<16x352xbf16>, vector<16x352xbf16> -> vector<256x352xbf16>
    %65 = tpu.concatenate %42, %43, %44, %47, %48, %49, %50, %51, %52, %53, %56, %57, %58, %59, %60, %61 in 0 : vector<16x352xbf16>, vector<16x352xbf16>, vector<16x352xbf16>, vector<16x352xbf16>, vector<16x352xbf16>, vector<16x352xbf16>, vector<16x352xbf16>, vector<16x352xbf16>, vector<16x352xbf16>, vector<16x352xbf16>, vector<16x352xbf16>, vector<16x352xbf16>, vector<16x352xbf16>, vector<16x352xbf16>, vector<16x352xbf16>, vector<16x352xbf16> -> vector<256x352xbf16>
    %66 = tpu.concatenate %63, %64, %65, %62 in 0 : vector<256x352xbf16>, vector<256x352xbf16>, vector<256x352xbf16>, vector<16x352xbf16> -> vector<784x352xbf16>
    %c0_14 = arith.constant 0 : index
    %c0_15 = arith.constant 0 : index
    %67 = vector.load %arg3[%c0_14, %c0_15] : memref<3x784xbf16, #tpu.memory_space<vmem>>, vector<3x784xbf16>
    %cst = arith.constant dense<0.000000e+00> : vector<3x352xf32>
    %68 = tpu.matmul %67, %66, %cst {dimension_numbers = #tpu.dot_dimension_numbers<[1], [0], [0], [1], [0, 0, 1, 1], [], []>} : vector<3x784xbf16>, vector<784x352xbf16>, vector<3x352xf32> -> vector<3x352xf32>
    %c0_16 = arith.constant 0 : index
    %c0_17 = arith.constant 0 : index
    %69 = vector.load %arg4[%c0_16, %c0_17] : memref<3x1xf32, #tpu.memory_space<vmem>>, vector<3x1xf32>
    %70 = vector.broadcast %69 : vector<3x1xf32> to vector<3x352xf32>
    %71 = arith.addf %68, %70 : vector<3x352xf32>
    %c0_18 = arith.constant 0 : index
    %c0_19 = arith.constant 0 : index
    %72 = vector.load %arg5[%c0_18, %c0_19] : memref<1x352xf32, #tpu.memory_space<vmem>>, vector<1x352xf32>
    %73 = vector.broadcast %72 : vector<1x352xf32> to vector<3x352xf32>
    %74 = arith.mulf %71, %73 : vector<3x352xf32>
    %cst_20 = arith.constant dense<0.000000e+00> : vector<3xf32>
    %75 = vector.multi_reduction <add>, %74, %cst_20 [1] : vector<3x352xf32> to vector<3xf32>
    %76 = vector.shape_cast %75 : vector<3xf32> to vector<3x1xf32>
    %77 = arith.mulf %74, %71 : vector<3x352xf32>
    %cst_21 = arith.constant dense<0.000000e+00> : vector<3xf32>
    %78 = vector.multi_reduction <add>, %77, %cst_21 [1] : vector<3x352xf32> to vector<3xf32>
    %79 = vector.shape_cast %78 : vector<3xf32> to vector<3x1xf32>
    %80 = tpu.concatenate %76, %79 in 1 : vector<3x1xf32>, vector<3x1xf32> -> vector<3x2xf32>
    %c0_22 = arith.constant 0 : index
    %c0_23 = arith.constant 0 : index
    %c0_24 = arith.constant 0 : index
    %c0_25 = arith.constant 0 : index
    %81 = vector.load %arg7[%c0_22, %c0_23, %c0_24, %c0_25] : memref<1x1x3x2xf32, #tpu.memory_space<vmem>>, vector<1x1x3x2xf32>
    %82 = vector.shape_cast %81 : vector<1x1x3x2xf32> to vector<3x2xf32>
    %83 = vector.shape_cast %80 : vector<3x2xf32> to vector<1x1x3x2xf32>
    tpu.vector_store %arg7[%c0_22, %c0_23, %c0_24, %c0_25], %83 {strides = array<i32>} : memref<1x1x3x2xf32, #tpu.memory_space<vmem>>, vector<1x1x3x2xf32>,
    %84 = math.tanh %71 : vector<3x352xf32>
    %c0_26 = arith.constant 0 : index
    %c0_27 = arith.constant 0 : index
    %c0_28 = arith.constant 0 : index
    %85 = vector.load %arg6[%c0_26, %c0_27, %c0_28] : memref<1x3x352xf32, #tpu.memory_space<vmem>>, vector<1x3x352xf32>
    %86 = vector.shape_cast %85 : vector<1x3x352xf32> to vector<3x352xf32>
    %87 = vector.shape_cast %84 : vector<3x352xf32> to vector<1x3x352xf32>
    tpu.vector_store %arg6[%c0_26, %c0_27, %c0_28], %87 {strides = array<i32>} : memref<1x3x352xf32, #tpu.memory_space<vmem>>, vector<1x3x352xf32>,
    return
  }
  func.func @transform_0(%arg0: i32, %arg1: i32) -> (i32, i32, i32) {
    %c0_i32 = arith.constant 0 : i32
    %c0_i32_0 = arith.constant 0 : i32
    %c0_i32_1 = arith.constant 0 : i32
    return %arg0, %c0_i32, %c0_i32_0 : i32, i32, i32
  }
  func.func @transform_1(%arg0: i32, %arg1: i32) -> (i32, i32) {
    %c0_i32 = arith.constant 0 : i32
    %c0_i32_0 = arith.constant 0 : i32
    %c0_i32_1 = arith.constant 0 : i32
    return %c0_i32, %c0_i32_0 : i32, i32
  }
  func.func @transform_2(%arg0: i32, %arg1: i32) -> (i32, i32) {
    %c0_i32 = arith.constant 0 : i32
    %c0_i32_0 = arith.constant 0 : i32
    %c0_i32_1 = arith.constant 0 : i32
    return %c0_i32, %c0_i32_0 : i32, i32
  }
  func.func @transform_3(%arg0: i32, %arg1: i32) -> (i32, i32) {
    %c0_i32 = arith.constant 0 : i32
    %c0_i32_0 = arith.constant 0 : i32
    return %c0_i32, %arg1 : i32, i32
  }
  func.func @transform_4(%arg0: i32, %arg1: i32) -> (i32, i32, i32) {
    %c0_i32 = arith.constant 0 : i32
    %c0_i32_0 = arith.constant 0 : i32
    return %arg0, %c0_i32, %arg1 : i32, i32, i32
  }
  func.func @transform_5(%arg0: i32, %arg1: i32) -> (i32, i32, i32, i32) {
    %c0_i32 = arith.constant 0 : i32
    %c0_i32_0 = arith.constant 0 : i32
    %c0_i32_1 = arith.constant 0 : i32
    return %arg0, %arg1, %c0_i32, %c0_i32_0 : i32, i32, i32, i32
  }
}

module attributes {stable_mosaic.version = 11 : i64} {
  func.func @_inst_mean_kernel(%arg0: i32, %arg1: memref<1x3x256xbf16, #tpu.memory_space<vmem>>, %arg2: memref<1x1x256xi32, #tpu.memory_space<vmem>>, %arg3: memref<128x1xi32, #tpu.memory_space<vmem>>, %arg4: memref<1x3x256xf32, #tpu.memory_space<vmem>>) attributes {dimension_semantics = [#tpu.dimension_semantics<parallel>], iteration_bounds = array<i64: 2>, scalar_prefetch = 0 : i64, scratch_operands = 0 : i64, tpu.core_type = #tpu.core_type<tc>, window_params = [{transform_indices = @transform_0, window_bounds = array<i64: 1, 3, 256>}, {transform_indices = @transform_1, window_bounds = array<i64: 1, 1, 256>}, {pipeline_mode = #tpu.pipeline_mode<synchronous>, transform_indices = @transform_2, window_bounds = array<i64: 128, 1>}, {transform_indices = @transform_3, window_bounds = array<i64: 1, 3, 256>}]} {
    %c0 = arith.constant 0 : index
    %c0_0 = arith.constant 0 : index
    %c0_1 = arith.constant 0 : index
    %0 = vector.load %arg1[%c0, %c0_0, %c0_1] : memref<1x3x256xbf16, #tpu.memory_space<vmem>>, vector<1x3x256xbf16>
    %1 = vector.shape_cast %0 : vector<1x3x256xbf16> to vector<3x256xbf16>
    %c0_2 = arith.constant 0 : index
    %c0_3 = arith.constant 0 : index
    %c0_4 = arith.constant 0 : index
    %2 = vector.load %arg2[%c0_2, %c0_3, %c0_4] : memref<1x1x256xi32, #tpu.memory_space<vmem>>, vector<1x1x256xi32>
    %3 = vector.shape_cast %2 : vector<1x1x256xi32> to vector<1x256xi32>
    %c0_5 = arith.constant 0 : index
    %c0_6 = arith.constant 0 : index
    %4 = vector.load %arg3[%c0_5, %c0_6] : memref<128x1xi32, #tpu.memory_space<vmem>>, vector<128x1xi32>
    %5 = tpu.iota {dimensions = array<i32: 0>} : vector<128x1xi32>
    %c3_i32 = arith.constant 3 : i32
    %6 = vector.broadcast %c3_i32 : i32 to vector<128x1xi32>
    %7 = arith.cmpi slt, %5, %6 : vector<128x1xi32>
    %8 = vector.broadcast %4 : vector<128x1xi32> to vector<128x256xi32>
    %9 = vector.broadcast %3 : vector<1x256xi32> to vector<128x256xi32>
    %10 = arith.cmpi eq, %8, %9 : vector<128x256xi32>
    %11 = vector.broadcast %7 : vector<128x1xi1> to vector<128x256xi1>
    %12 = arith.andi %10, %11 : vector<128x256xi1>
    %cst = arith.constant 1.000000e+00 : f32
    %cst_7 = arith.constant 0.000000e+00 : f32
    %13 = vector.broadcast %cst : f32 to vector<128x256xf32>
    %14 = vector.broadcast %cst_7 : f32 to vector<128x256xf32>
    %15 = arith.select %12, %13, %14 : vector<128x256xi1>, vector<128x256xf32>
    %16 = arith.truncf %15 : vector<128x256xf32> to vector<128x256xbf16>
    %cst_8 = arith.constant dense<0.000000e+00> : vector<3x128xf32>
    %17 = tpu.matmul %1, %16, %cst_8 {dimension_numbers = #tpu.dot_dimension_numbers<[1], [1], [0], [0], [0, 0, 1, 0], [], []>} : vector<3x256xbf16>, vector<128x256xbf16>, vector<3x128xf32> -> vector<3x128xf32>
    %cst_9 = arith.constant 1.000000e+00 : bf16
    %18 = vector.broadcast %cst_9 : bf16 to vector<1x256xbf16>
    %cst_10 = arith.constant dense<0.000000e+00> : vector<1x128xf32>
    %19 = tpu.matmul %18, %16, %cst_10 {dimension_numbers = #tpu.dot_dimension_numbers<[1], [1], [0], [0], [0, 0, 1, 0], [], []>} : vector<1x256xbf16>, vector<128x256xbf16>, vector<1x128xf32> -> vector<1x128xf32>
    %cst_11 = arith.constant 1.000000e+00 : f32
    %20 = vector.broadcast %cst_11 : f32 to vector<1x128xf32>
    %21 = arith.maximumf %19, %20 : vector<1x128xf32>
    %22 = vector.broadcast %21 : vector<1x128xf32> to vector<3x128xf32>
    %23 = arith.divf %17, %22 : vector<3x128xf32>
    %24 = arith.truncf %23 : vector<3x128xf32> to vector<3x128xbf16>
    %cst_12 = arith.constant dense<0.000000e+00> : vector<3x256xf32>
    %25 = tpu.matmul %24, %16, %cst_12 {dimension_numbers = #tpu.dot_dimension_numbers<[1], [0], [0], [1], [0, 0, 1, 1], [], []>} : vector<3x128xbf16>, vector<128x256xbf16>, vector<3x256xf32> -> vector<3x256xf32>
    %c0_13 = arith.constant 0 : index
    %c0_14 = arith.constant 0 : index
    %c0_15 = arith.constant 0 : index
    %26 = vector.load %arg4[%c0_13, %c0_14, %c0_15] : memref<1x3x256xf32, #tpu.memory_space<vmem>>, vector<1x3x256xf32>
    %27 = vector.shape_cast %26 : vector<1x3x256xf32> to vector<3x256xf32>
    %28 = vector.shape_cast %25 : vector<3x256xf32> to vector<1x3x256xf32>
    tpu.vector_store %arg4[%c0_13, %c0_14, %c0_15], %28 {strides = array<i32>} : memref<1x3x256xf32, #tpu.memory_space<vmem>>, vector<1x3x256xf32>,
    return
  }
  func.func @transform_0(%arg0: i32) -> (i32, i32, i32) {
    %c0_i32 = arith.constant 0 : i32
    %c0_i32_0 = arith.constant 0 : i32
    %c0_i32_1 = arith.constant 0 : i32
    return %arg0, %c0_i32, %c0_i32_0 : i32, i32, i32
  }
  func.func @transform_1(%arg0: i32) -> (i32, i32, i32) {
    %c0_i32 = arith.constant 0 : i32
    %c0_i32_0 = arith.constant 0 : i32
    %c0_i32_1 = arith.constant 0 : i32
    return %arg0, %c0_i32, %c0_i32_0 : i32, i32, i32
  }
  func.func @transform_2(%arg0: i32) -> (i32, i32) {
    %c0_i32 = arith.constant 0 : i32
    %c0_i32_0 = arith.constant 0 : i32
    %c0_i32_1 = arith.constant 0 : i32
    return %c0_i32, %c0_i32_0 : i32, i32
  }
  func.func @transform_3(%arg0: i32) -> (i32, i32, i32) {
    %c0_i32 = arith.constant 0 : i32
    %c0_i32_0 = arith.constant 0 : i32
    %c0_i32_1 = arith.constant 0 : i32
    return %arg0, %c0_i32, %c0_i32_0 : i32, i32, i32
  }
}

</mosaic_0001>

<bundles_post_ra>
// kernel: tile.43
= control target key start
LH: loop header
LB: loop body
LE: loop exit
PB: predicated region body
PF: predicated region fallthrough
CT: control target
= control target key end

     0   :  { %s28_s0 = inlined_call_operand.vmem [shape: f32[22], index: 0, kind: input, shape index: {}]   ;;  %s29_s1 = inlined_call_operand.vmem [shape: f32[16,22], index: 1, kind: output, shape index: {}]  }
   0x1   :  { %v4_v0 = vld [vmem:[%s28_s0] ss:$0 sm:$0xff] }
   0x2   :  { %5 = vst [vmem:[%s29_s1] sm:$0xff] %v4_v0  ;;  %8 = vst [vmem:[%s29_s1 + $0x8] sm:$0xff] %v4_v0 }

// kernel: tile.44
= control target key start
LH: loop header
LB: loop body
LE: loop exit
PB: predicated region body
PF: predicated region fallthrough
CT: control target
= control target key end

     0   :  { %vm9_vm0 = vcmask 113664   ;;  %vm23_vm1 = vcmask 146432   ;;  %s171_s14 = smov 114   ;;  %s172_s15 = smov 92   ;;  %vm3_vm2 = vcmask 179200   ;;  %vm13_vm3 = vcmask 64512   ;;  %s259_s0 = inlined_call_operand.vmem [shape: f32[16,22], index: 0, kind: input, shape index: {}]   ;;  %s260_s1 = inlined_call_operand.vmem [shape: f32[1,352], index: 1, kind: output, shape index: {}]  }
   0x1   :  { %v137_v0 = vld [vmem:[%s259_s0 + $0xb] sm:$0x1]   ;;  %v141_v3 = vld [vmem:[%s259_s0 + $0xa] sm:$0x1]   ;;  %v139_v4 = vld [vmem:[%s259_s0 + $0x5] sm:$0x1]  }
   0x2   :  { %v138_v1 = vld [vmem:[%s259_s0 + $0xb] sm:$0x1]   ;;  %34 = vrot.lane.b32.xlu1 %v141_v3, %s172_s15  ;;  %v140_v5 = vld [vmem:[%s259_s0 + $0x5] sm:$0x1]   ;;  %v142_v7 = vld [vmem:[%s259_s0 + $0x4] sm:$0x1]  }
   0x3   :  { %v10_v2 = vsel %vm9_vm0, %v138_v1, %v137_v0  ;;  %v24_v6 = vsel %vm23_vm1, %v140_v5, %v139_v4  ;;  %s173_s20 = smov 110   ;;  %s174_s21 = smov 88   ;;  %v143_v8 = vld [vmem:[%s259_s0 + $0xf] sm:$0x1]   ;;  %v144_v9 = vld [vmem:[%s259_s0 + $0x9] sm:$0x1]  }
   0x4   :  { %11 = vrot.lane.b32.xlu0 %v10_v2, %s171_s14  ;;  %v2_v10 = vld [vmem:[%s259_s0] sm:$0x1]   ;;  %s175_s28 = smov 74   ;;  %s176_s29 = smov 70   ;;  %v145_v11 = vld [vmem:[%s259_s0 + $0x3] sm:$0x1]  }
   0x5   :  { %4 = vst.msk [vmem:[#allocation0] sm:$0x1] %vm3_vm2, %v2_v10   ;;  %v146_v12 = vld [vmem:[%s259_s0 + $0xe] sm:$0x1]   ;;  %s177_s5 = smov 66   ;;  %s178_s6 = smov 52  }
   0x6   :  { %41 = vrot.lane.b32.xlu1 %v142_v7, %s174_s21  ;;  %v147_v13 = vld [vmem:[%s259_s0 + $0x8] sm:$0x1]   ;;  %v148_v14 = vld [vmem:[%s259_s0 + $0x2] sm:$0x1]   ;;  %s179_s11 = smov 48   ;;  %s180_s12 = smov 44  }
   0x7   :  { %v149_v15 = vld [vmem:[%s259_s0 + $0xd] sm:$0x1]   ;;  %v150_v16 = vld [vmem:[%s259_s0 + $0x7] sm:$0x1]   ;;  %s181_s17 = smov 30   ;;  %s182_s18 = smov 26  }
   0x8   :  { %25 = vrot.lane.b32.xlu0 %v24_v6, %s173_s20  ;;  %v151_v17 = vld [vmem:[%s259_s0 + $0x1] sm:$0x1]   ;;  %v152_v18 = vld [vmem:[%s259_s0 + $0xc] sm:$0x1]   ;;  %s183_s23 = smov 22   ;;  %s184_s24 = smov 8  }
   0x9   :  { %v153_v19 = vld [vmem:[%s259_s0 + $0x6] sm:$0x1]   ;;  %s185_s0 = smov 4   ;;  %vm16_vm4 = vcmask 1048464   ;;  %vm27_vm5 = vcmask 31744   ;;  %vm30_vm6 = vcmask 1048432  }
   0xa   :  { %54 = vrot.lane.b32.xlu1 %v144_v9, %s176_s29  ;;  %vm36_vm7 = vcmask 933600   ;;  %vm43_vm8 = vcmask 900800   ;;  %vm49_vm9 = vcmask 786000   ;;  %vm56_vm10 = vcmask 753200  }
   0xb   :  { %vm63_vm11 = vcmask 720400   ;;  %vm69_vm12 = vcmask 605600   ;;  %vm76_vm13 = vcmask 572800   ;;  %vm83_vm14 = vcmask 540000  }
   0xc   :  { %47 = vrot.lane.b32.xlu0 %v143_v8, %s175_s28  ;;  %vm89_vm15 = vcmask 425200   ;;  %vm96_vm0 = vcmask 392400   ;;  %vm103_vm1 = vcmask 359600   ;;  %vm109_vm2 = vcmask 244800  }
   0xe   :  { %67 = vrot.lane.b32.xlu1 %v146_v12, %s178_s6 }
  0x10   :  { %61 = vrot.lane.b32.xlu0 %v145_v11, %s177_s5 }
  0x12   :  { %81 = vrot.lane.b32.xlu1 %v148_v14, %s180_s12 }
  0x14   :  { %74 = vrot.lane.b32.xlu0 %v147_v13, %s179_s11 }
  0x16   :  { %94 = vrot.lane.b32.xlu1 %v150_v16, %s182_s18 }
  0x18   :  { %87 = vrot.lane.b32.xlu0 %v149_v15, %s181_s17 }
  0x1a   :  { %107 = vrot.lane.b32.xlu1 %v152_v18, %s184_s24 }
  0x1c   :  { %101 = vrot.lane.b32.xlu0 %v151_v17, %s183_s23 }
  0x20   :  { %114 = vrot.lane.b32.xlu0 %v153_v19, %s185_s0 }
  0x74   :  { %v35_v21 = vpop.permute.xlu1 %34  }
  0x76   :  { %v12_v20 = vpop.permute.xlu0 %11  }
  0x77   :  { %15 = vst.msk [vmem:[#allocation0 + $0x10] sm:$0x1] %vm13_vm3, %v12_v20   ;;  %vm116_vm3 = vcmask 212000  }
  0x78   :  { %18 = vst.msk [vmem:[#allocation0 + $0x8] sm:$0x1] %vm16_vm4, %v12_v20   ;;  %v42_v23 = vpop.permute.xlu1 %41  }
  0x7a   :  { %v26_v22 = vpop.permute.xlu0 %25  }
  0x7b   :  { %29 = vst.msk [vmem:[#allocation0 + $0x8] sm:$0x1] %vm27_vm5, %v26_v22  }
  0x7c   :  { %31 = vst.msk [vmem:[#allocation0] sm:$0x1] %vm30_vm6, %v26_v22   ;;  %v55_v25 = vpop.permute.xlu1 %54  }
  0x7d   :  { %38 = vst.msk [vmem:[#allocation0 + $0x8] sm:$0x1] %vm36_vm7, %v35_v21  }
  0x7e   :  { %44 = vst.msk [vmem:[#allocation0] sm:$0x1] %vm43_vm8, %v42_v23   ;;  %v48_v24 = vpop.permute.xlu0 %47  }
  0x7f   :  { %51 = vst.msk [vmem:[#allocation0 + $0x10] sm:$0x1] %vm49_vm9, %v48_v24  }
  0x80   :  { %58 = vst.msk [vmem:[#allocation0 + $0x8] sm:$0x1] %vm56_vm10, %v55_v25   ;;  %v68_v27 = vpop.permute.xlu1 %67  }
  0x81   :  { %71 = vst.msk [vmem:[#allocation0 + $0x10] sm:$0x1] %vm69_vm12, %v68_v27  }
  0x82   :  { %v62_v26 = vpop.permute.xlu0 %61  }
  0x83   :  { %64 = vst.msk [vmem:[#allocation0] sm:$0x1] %vm63_vm11, %v62_v26  }
  0x84   :  { %v82_v29 = vpop.permute.xlu1 %81  }
  0x85   :  { %84 = vst.msk [vmem:[#allocation0] sm:$0x1] %vm83_vm14, %v82_v29  }
  0x86   :  { %v75_v28 = vpop.permute.xlu0 %74  }
  0x87   :  { %78 = vst.msk [vmem:[#allocation0 + $0x8] sm:$0x1] %vm76_vm13, %v75_v28  }
  0x88   :  { %v95_v31 = vpop.permute.xlu1 %94  }
  0x89   :  { %98 = vst.msk [vmem:[#allocation0 + $0x8] sm:$0x1] %vm96_vm0, %v95_v31  }
  0x8a   :  { %v88_v30 = vpop.permute.xlu0 %87  }
  0x8b   :  { %91 = vst.msk [vmem:[#allocation0 + $0x10] sm:$0x1] %vm89_vm15, %v88_v30  }
  0x8c   :  { %v108_v33 = vpop.permute.xlu1 %107  }
  0x8d   :  { %111 = vst.msk [vmem:[#allocation0 + $0x10] sm:$0x1] %vm109_vm2, %v108_v33  }
  0x8e   :  { %v102_v32 = vpop.permute.xlu0 %101  }
  0x8f   :  { %104 = vst.msk [vmem:[#allocation0] sm:$0x1] %vm103_vm1, %v102_v32  }
  0x92   :  { %v115_v34 = vpop.permute.xlu0 %114  }
  0x93   :  { %118 = vst.msk [vmem:[#allocation0 + $0x8] sm:$0x1] %vm116_vm3, %v115_v34  }
  0x94   :  { %v131_v36 = vld [vmem:[#allocation0 + $0x10] sm:$0x1] }
  0x95   :  { %155 = vst [vmem:[%s260_s1 + $0x2] sm:$0x1] %v131_v36 }
  0x96   :  { %v122_v35 = vld [vmem:[#allocation0] sm:$0x1] }
  0x97   :  { %124 = vst [vmem:[%s260_s1] sm:$0x1] %v122_v35 }
  0x9a   :  { %v126_v37 = vld [vmem:[#allocation0 + $0x8] sm:$0x1] }
  0x9b   :  { %154 = vst [vmem:[%s260_s1 + $0x1] sm:$0x1] %v126_v37 }

// kernel: encoder_forward.7
= control target key start
LH: loop header
LB: loop body
LE: loop exit
PB: predicated region body
PF: predicated region fallthrough
CT: control target
= control target key end

     0   :  { %s1985_s18 = smov 0   ;;  %s1987_s19 = smov 0   ;;  %s3135_s0 = inlined_call_operand.vmem [shape: bf16[2,16,506], index: 0, kind: input, shape index: {}]   ;;  %s3136_s1 = inlined_call_operand.vmem [shape: bf16[8,784], index: 1, kind: input, shape index: {}]   ;;  %s3137_s2 = inlined_call_operand.vmem [shape: f32[8,1], index: 2, kind: input, shape index: {}]   ;;  %s3138_s3 = inlined_call_operand.vmem [shape: f32[1,352], index: 3, kind: input, shape index: {}]   ;;  %s3139_s4 = inlined_call_operand.vmem [shape: bf16[2,8,352], index: 4, kind: output, shape index: {0}]   ;;  %s3140_s5 = inlined_call_operand.vmem [shape: f32[2,1,8,2], index: 5, kind: output, shape index: {1}]  }
   0x1   :  { %s1989_s20 = smov 0  }
   0x2 LB: > { %s28_s21 = sadd.s32 1, %s1920_s19  ;;  %p1713_p0 = scmp.ge.s32.totalorder %s1924_s20, 1  ;;  %s1924_s20 = sphi %s1989_s20, %s16_s20   ;;  %s1920_s19 = sphi %s1987_s19, %s3208_s19   ;;  %s1916_s18 = sphi %s1985_s18, %s3207_s18  }
   0x3   : > { %p30_p1 = scmp.ge.s32.totalorder %s28_s21, 2  ;;  %p216_p2 = scmp.lt.s32.totalorder %s1924_s20, 3 }
   0x5   : > { %s3210_s21 = smov (%p30_p1, %s28_s21), 0  ;;  %p217_p3 = pnand %p1713_p0, %p216_p2 }
   0x7   : > { %220 = sbr.rel (%p217_p3) target bundleno = 983 (0x3d7), region = 36 }
   0xe   : > { %p259_p4 = scmp.lt.s32.totalorder %s1916_s18, 1  ;;  %s1926_s26 = smov 127   ;;  %vm319_vm0 = vcmask 1039360   ;;  %vm331_vm1 = vcmask 1031168   ;;  %vm343_vm2 = vcmask 1022976   ;;  %vm355_vm3 = vcmask 1014784  }
   0xf   : > { %s1927_s27 = smov 126   ;;  %s1928_s28 = smov 125   ;;  %vm539_vm4 = vcmask 883712   ;;  %vm551_vm5 = vcmask 875520   ;;  %vm391_vm6 = vcmask 867328   ;;  %vm403_vm7 = vcmask 859136  }
  0x10   : > { %s3212_s18 = smov (!%p259_p4, %s1916_s18), 1  ;;  %s1929_s29 = smov 124   ;;  %vm415_vm8 = vcmask 850944   ;;  %vm427_vm9 = vcmask 842752   ;;  %vm824_vm10 = vcmask 670720   ;;  %vm439_vm11 = vcmask 834560  }
  0x11   : > { %s1739_s22 = sshll.u32 %s3212_s18, 5  ;;  %s1930_s30 = smov 108   ;;  %vm367_vm12 = vcmask 1006592   ;;  %vm593_vm13 = vcmask 703488   ;;  %vm379_vm14 = vcmask 998400   ;;  %vm605_vm15 = vcmask 695296  }
  0x12   : > { %s2009_s25 = scalar_lea.vmem %s3135_s0, %s1739_s22  ;;  %s1931_s6 = smov 107  }
  0x13   : > { %v2012_v0 = vld [vmem:[%s2009_s25 + $0xc] ss:$16 sps:$4 sm:$0xff]   ;;  %v2017_v1 = vld [vmem:[%s2009_s25] ss:$16 sps:$4 sm:$0xff]   ;;  %v2020_v2 = vld [vmem:[%s2009_s25 + $0x4] ss:$16 sps:$4 sm:$0xff]  }
  0x14   : > { %509 = vrot.lane.b32.xlu1 %v2012_v0, %s1926_s26  ;;  %v2023_v3 = vld [vmem:[%s2009_s25 + $0x8] ss:$16 sps:$4 sm:$0xff]   ;;  %315 = vrot.lane.b32.xlu0 %v2020_v2, %s1926_s26  ;;  %s1932_s7 = smov 106   ;;  %s1933_s8 = smov 105  }
  0x15   : > { %1196 = vmatprep.subr.bf16.mxu1 %v2020_v2  ;;  %s1934_s9 = smov 104   ;;  %s1935_s10 = smov 103   ;;  %v2106_v4 = vld [vmem:[%s2009_s25 + $0x8] ss:$16 sps:$4 sm:$0xff]  }
  0x16   : > { %1197 = vmatpush1.bf16.msra.mxu1 %v2017_v1  ;;  %s1936_s11 = smov 102   ;;  %s1937_s12 = smov 86  }
  0x17   : > { %s1938_s13 = smov 85   ;;  %s1939_s14 = smov 84  }
  0x18   : > { %313 = vrot.lane.b32.xlu1 %v2017_v1, %s1926_s26  ;;  %507 = vrot.lane.b32.xlu0 %v2023_v3, %s1926_s26  ;;  %s1940_s15 = smov 82   ;;  %s1941_s16 = smov 83  }
  0x19   : > { %s1942_s17 = smov 123   ;;  %s1943_s22 = smov 122  }
  0x1a   : > { %s1944_s23 = smov 110   ;;  %s1945_s24 = smov 109  }
  0x1c   : > { %513 = vrot.lane.b32.xlu1 %v2023_v3, %s1927_s27  ;;  %327 = vrot.lane.b32.xlu0 %v2020_v2, %s1927_s27 }
  0x20   : > { %325 = vrot.lane.b32.xlu1 %v2017_v1, %s1927_s27  ;;  %515 = vrot.lane.b32.xlu0 %v2012_v0, %s1927_s27 }
  0x24   : > { %519 = vrot.lane.b32.xlu1 %v2023_v3, %s1928_s28  ;;  %339 = vrot.lane.b32.xlu0 %v2020_v2, %s1928_s28 }
  0x28   : > { %337 = vrot.lane.b32.xlu1 %v2017_v1, %s1928_s28  ;;  %521 = vrot.lane.b32.xlu0 %v2012_v0, %s1928_s28 }
  0x2c   : > { %525 = vrot.lane.b32.xlu1 %v2023_v3, %s1929_s29  ;;  %351 = vrot.lane.b32.xlu0 %v2020_v2, %s1929_s29 }
  0x30   : > { %349 = vrot.lane.b32.xlu1 %v2017_v1, %s1929_s29  ;;  %527 = vrot.lane.b32.xlu0 %v2012_v0, %s1929_s29 }
  0x34   : > { %535 = vrot.lane.b32.xlu1 %v2023_v3, %s1930_s30  ;;  %533 = vrot.lane.b32.xlu0 %v2020_v2, %s1930_s30 }
  0x38   : > { %531 = vrot.lane.b32.xlu1 %v2017_v1, %s1930_s30  ;;  %537 = vrot.lane.b32.xlu0 %v2012_v0, %s1930_s30  ;;  %s1948_s30 = smov 88  }
  0x3c   : > { %547 = vrot.lane.b32.xlu1 %v2023_v3, %s1931_s6  ;;  %545 = vrot.lane.b32.xlu0 %v2020_v2, %s1931_s6 }
  0x40   : > { %543 = vrot.lane.b32.xlu1 %v2017_v1, %s1931_s6  ;;  %549 = vrot.lane.b32.xlu0 %v2012_v0, %s1931_s6  ;;  %s1949_s6 = smov 87  }
  0x44   : > { %555 = vrot.lane.b32.xlu1 %v2023_v3, %s1932_s7  ;;  %387 = vrot.lane.b32.xlu0 %v2020_v2, %s1932_s7 }
  0x48   : > { %385 = vrot.lane.b32.xlu1 %v2017_v1, %s1932_s7  ;;  %557 = vrot.lane.b32.xlu0 %v2012_v0, %s1932_s7 }
  0x4c   : > { %561 = vrot.lane.b32.xlu1 %v2023_v3, %s1933_s8  ;;  %399 = vrot.lane.b32.xlu0 %v2020_v2, %s1933_s8 }
  0x50   : > { %397 = vrot.lane.b32.xlu1 %v2017_v1, %s1933_s8  ;;  %563 = vrot.lane.b32.xlu0 %v2012_v0, %s1933_s8 }
  0x54   : > { %567 = vrot.lane.b32.xlu1 %v2023_v3, %s1934_s9  ;;  %411 = vrot.lane.b32.xlu0 %v2020_v2, %s1934_s9 }
  0x58   : > { %409 = vrot.lane.b32.xlu1 %v2017_v1, %s1934_s9  ;;  %569 = vrot.lane.b32.xlu0 %v2012_v0, %s1934_s9 }
  0x5c   : > { %573 = vrot.lane.b32.xlu1 %v2023_v3, %s1935_s10  ;;  %423 = vrot.lane.b32.xlu0 %v2020_v2, %s1935_s10 }
  0x60   : > { %421 = vrot.lane.b32.xlu1 %v2017_v1, %s1935_s10  ;;  %575 = vrot.lane.b32.xlu0 %v2012_v0, %s1935_s10 }
  0x64   : > { %579 = vrot.lane.b32.xlu1 %v2023_v3, %s1936_s11  ;;  %435 = vrot.lane.b32.xlu0 %v2020_v2, %s1936_s11 }
  0x68   : > { %433 = vrot.lane.b32.xlu1 %v2017_v1, %s1936_s11  ;;  %581 = vrot.lane.b32.xlu0 %v2012_v0, %s1936_s11 }
  0x6c   : > { %587 = vrot.lane.b32.xlu1 %v2020_v2, %s1937_s12  ;;  %317 = vrot.lane.b32.xlu0 %v2106_v4, %s1926_s26  ;;  %s1946_s26 = smov 101  }
  0x70   : > { %591 = vrot.lane.b32.xlu1 %v2012_v0, %s1937_s12  ;;  %589 = vrot.lane.b32.xlu0 %v2023_v3, %s1937_s12 }
  0x74   : > { %329 = vrot.lane.b32.xlu1 %v2106_v4, %s1927_s27  ;;  %585 = vrot.lane.b32.xlu0 %v2017_v1, %s1937_s12  ;;  %s1947_s27 = smov 100  }
  0x78   : > { %601 = vrot.lane.b32.xlu1 %v2023_v3, %s1938_s13  ;;  %599 = vrot.lane.b32.xlu0 %v2020_v2, %s1938_s13 }
  0x7c   : > { %597 = vrot.lane.b32.xlu1 %v2017_v1, %s1938_s13  ;;  %603 = vrot.lane.b32.xlu0 %v2012_v0, %s1938_s13 }
  0x80   : > { %479 = vrot.lane.b32.xlu1 %v2020_v2, %s1939_s14  ;;  %341 = vrot.lane.b32.xlu0 %v2106_v4, %s1928_s28 }
  0x84   : > { %483 = vrot.lane.b32.xlu1 %v2012_v0, %s1939_s14  ;;  %481 = vrot.lane.b32.xlu0 %v2023_v3, %s1939_s14 }
  0x86   : > { %v2136_v5 = vpop.permute.xlu1 %509  ;;  %v2138_v6 = vpop.permute.xlu0 %315 }
  0x88   : > { %353 = vrot.lane.b32.xlu1 %v2106_v4, %s1929_s29  ;;  %477 = vrot.lane.b32.xlu0 %v2017_v1, %s1939_s14 }
  0x8a   : > { %v314_v7 = vpop.permute.xlu1 %313  ;;  %v508_v8 = vpop.permute.xlu0 %507 }
  0x8b   : > { %v2171_v18 = vsel %vm319_vm0, %v508_v8, %v2136_v5  ;;  %v2179_v20 = vsel %vm319_vm0, %v2138_v6, %v508_v8  ;;  %v2188_v23 = vsel %vm319_vm0, %v314_v7, %v2138_v6 }
  0x8c   : > { %700 = vrot.lane.b32.xlu1 %v2023_v3, %s1940_s15  ;;  %698 = vrot.lane.b32.xlu0 %v2020_v2, %s1940_s15 }
  0x8e   : > { %v514_v9 = vpop.permute.xlu1 %513  ;;  %v2148_v10 = vpop.permute.xlu0 %327 }
  0x8f   : > { %v2204_v29 = vsel %vm331_vm1, %v2148_v10, %v514_v9 }
  0x90   : > { %496 = vrot.lane.b32.xlu1 %v2023_v3, %s1941_s16  ;;  %494 = vrot.lane.b32.xlu0 %v2020_v2, %s1941_s16 }
  0x92   : > { %v326_v11 = vpop.permute.xlu1 %325  ;;  %v2154_v12 = vpop.permute.xlu0 %515 }
  0x93   : > { %v2196_v27 = vsel %vm331_vm1, %v514_v9, %v2154_v12  ;;  %v2216_v32 = vsel %vm331_vm1, %v326_v11, %v2148_v10 }
  0x94   : > { %696 = vrot.lane.b32.xlu1 %v2017_v1, %s1940_s15  ;;  %498 = vrot.lane.b32.xlu0 %v2012_v0, %s1941_s16 }
  0x96   : > { %v520_v13 = vpop.permute.xlu1 %519  ;;  %v2160_v14 = vpop.permute.xlu0 %339 }
  0x97   : > { %v523_v36 = vsel %vm343_vm2, %v2160_v14, %v520_v13 }
  0x98   : > { %363 = vrot.lane.b32.xlu1 %v2020_v2, %s1942_s17  ;;  %492 = vrot.lane.b32.xlu0 %v2017_v1, %s1941_s16 }
  0x9a   : > { %v338_v15 = vpop.permute.xlu1 %337  ;;  %v2165_v16 = vpop.permute.xlu0 %521 }
  0x9b   : > { %v524_v34 = vsel %vm343_vm2, %v520_v13, %v2165_v16  ;;  %v2238_v39 = vsel %vm343_vm2, %v338_v15, %v2160_v14 }
  0x9c   : > { %361 = vrot.lane.b32.xlu1 %v2017_v1, %s1942_s17  ;;  %365 = vrot.lane.b32.xlu0 %v2106_v4, %s1942_s17 }
  0x9e   : > { %v526_v17 = vpop.permute.xlu1 %525  ;;  %v2173_v19 = vpop.permute.xlu0 %351 }
  0x9f   : > { %v529_v43 = vsel %vm355_vm3, %v2173_v19, %v526_v17 }
  0xa0   : > { %708 = vrot.lane.b32.xlu1 %v2171_v18, %s1940_s15  ;;  %706 = vrot.lane.b32.xlu0 %v2179_v20, %s1940_s15 }
  0xa2   : > { %v350_v21 = vpop.permute.xlu1 %349  ;;  %v2183_v22 = vpop.permute.xlu0 %527 }
  0xa3   : > { %3165 = vst [vmem:[#allocation2_spill] sm:$0xff] %v2183_v22  ;;  %v530_v41 = vsel %vm355_vm3, %v526_v17, %v2183_v22  ;;  %v2262_v47 = vsel %vm355_vm3, %v350_v21, %v2173_v19 }
  0xa4   : > { %375 = vrot.lane.b32.xlu1 %v2020_v2, %s1943_s22  ;;  %704 = vrot.lane.b32.xlu0 %v2188_v23, %s1940_s15 }
  0xa6   : > { %v536_v24 = vpop.permute.xlu1 %535  ;;  %v534_v25 = vpop.permute.xlu0 %533 }
  0xa7   : > { %v2285_v54 = vsel %vm539_vm4, %v534_v25, %v536_v24 }
  0xa8   : > { %373 = vrot.lane.b32.xlu1 %v2017_v1, %s1943_s22  ;;  %377 = vrot.lane.b32.xlu0 %v2106_v4, %s1943_s22  ;;  %s1828_s22 = smul.u32 12, %s3212_s18 }
  0xaa   : > { %v532_v26 = vpop.permute.xlu1 %531  ;;  %v2198_v28 = vpop.permute.xlu0 %537 }
  0xab   : > { %3166 = vst [vmem:[#allocation3_spill] sm:$0xff] %v2198_v28  ;;  %v2279_v52 = vsel %vm539_vm4, %v536_v24, %v2198_v28  ;;  %v2297_v58 = vsel %vm539_vm4, %v532_v26, %v534_v25  ;;  %vm629_vm4 = vcmask 891904  }
  0xac   : > { %716 = vrot.lane.b32.xlu1 %v2196_v27, %s1940_s15  ;;  %714 = vrot.lane.b32.xlu0 %v2204_v29, %s1940_s15 }
  0xae   : > { %v2208_v30 = vpop.permute.xlu1 %547  ;;  %v2210_v31 = vpop.permute.xlu0 %545 }
  0xaf   : > { %v2323_v8 = vsel %vm551_vm5, %v2210_v31, %v2208_v30 }
  0xb0   : > { %389 = vrot.lane.b32.xlu1 %v2106_v4, %s1932_s7  ;;  %712 = vrot.lane.b32.xlu0 %v2216_v32, %s1940_s15 }
  0xb2   : > { %v2220_v33 = vpop.permute.xlu1 %543  ;;  %v2224_v35 = vpop.permute.xlu0 %549 }
  0xb3   : > { %3167 = vst [vmem:[#allocation4_spill] sm:$0xff] %v2224_v35  ;;  %v2315_v63 = vsel %vm551_vm5, %v2208_v30, %v2224_v35  ;;  %v2335_v13 = vsel %vm551_vm5, %v2220_v33, %v2210_v31  ;;  %vm463_vm5 = vcmask 818176  }
  0xb4   : > { %724 = vrot.lane.b32.xlu1 %v524_v34, %s1940_s15  ;;  %722 = vrot.lane.b32.xlu0 %v523_v36, %s1940_s15 }
  0xb6   : > { %v2230_v37 = vpop.permute.xlu1 %555  ;;  %v2232_v38 = vpop.permute.xlu0 %387 }
  0xb8   : > { %401 = vrot.lane.b32.xlu1 %v2106_v4, %s1933_s8  ;;  %720 = vrot.lane.b32.xlu0 %v2238_v39, %s1940_s15 }
  0xba   : > { %v2242_v40 = vpop.permute.xlu1 %385  ;;  %v2246_v42 = vpop.permute.xlu0 %557 }
  0xbb   : > { %3168 = vst [vmem:[#allocation5_spill] sm:$0xff] %v2246_v42  ;;  %v2348_v21 = vsel %vm391_vm6, %v2230_v37, %v2246_v42  ;;  %v2372_v31 = vsel %vm391_vm6, %v2242_v40, %v2232_v38  ;;  %v2422_v42 = vld [vmem:[%s3136_s1] sm:$0xff] }
  0xbc   : > { %732 = vrot.lane.b32.xlu1 %v530_v41, %s1940_s15  ;;  %730 = vrot.lane.b32.xlu0 %v529_v43, %s1940_s15  ;;  %3170 = vst [vmem:[#allocation7_spill] sm:$0xff] %v2348_v21 }
  0xbe   : > { %v2252_v44 = vpop.permute.xlu1 %561  ;;  %v2254_v45 = vpop.permute.xlu0 %399 }
  0xbf   : > { %v2397_v40 = vsel %vm403_vm7, %v2254_v45, %v2252_v44 }
  0xc0   : > { %613 = vrot.lane.b32.xlu1 %v2023_v3, %s1944_s23  ;;  %611 = vrot.lane.b32.xlu0 %v2020_v2, %s1944_s23  ;;  %3174 = vst [vmem:[#allocation11_spill] sm:$0xff] %v2397_v40 }
  0xc2   : > { %v2258_v46 = vpop.permute.xlu1 %397  ;;  %v2264_v48 = vpop.permute.xlu0 %563 }
  0xc3   : > { %v2388_v36 = vsel %vm403_vm7, %v2252_v44, %v2264_v48 }
  0xc4   : > { %728 = vrot.lane.b32.xlu1 %v2262_v47, %s1940_s15  ;;  %615 = vrot.lane.b32.xlu0 %v2012_v0, %s1944_s23  ;;  %3173 = vst [vmem:[#allocation10_spill] sm:$0xff] %v2388_v36 }
  0xc6   : > { %v2269_v49 = vpop.permute.xlu1 %567  ;;  %v2271_v50 = vpop.permute.xlu0 %411 }
  0xc8   : > { %413 = vrot.lane.b32.xlu1 %v2106_v4, %s1934_s9  ;;  %609 = vrot.lane.b32.xlu0 %v2017_v1, %s1944_s23  ;;  %s1950_s9 = smov 36  }
  0xca   : > { %v2276_v51 = vpop.permute.xlu1 %409  ;;  %v2281_v53 = vpop.permute.xlu0 %569 }
  0xcc   : > { %740 = vrot.lane.b32.xlu1 %v2279_v52, %s1940_s15  ;;  %738 = vrot.lane.b32.xlu0 %v2285_v54, %s1940_s15 }
  0xce   : > { %v2289_v55 = vpop.permute.xlu1 %573  ;;  %v2291_v56 = vpop.permute.xlu0 %423 }
  0xd0   : > { %625 = vrot.lane.b32.xlu1 %v2023_v3, %s1945_s24  ;;  %623 = vrot.lane.b32.xlu0 %v2020_v2, %s1945_s24 }
  0xd2   : > { %v2295_v57 = vpop.permute.xlu1 %421  ;;  %v2299_v59 = vpop.permute.xlu0 %575 }
  0xd4   : > { %736 = vrot.lane.b32.xlu1 %v2297_v58, %s1940_s15  ;;  %627 = vrot.lane.b32.xlu0 %v2012_v0, %s1945_s24 }
  0xd6   : > { %v2304_v60 = vpop.permute.xlu1 %579  ;;  %v2306_v61 = vpop.permute.xlu0 %435 }
  0xd8   : > { %425 = vrot.lane.b32.xlu1 %v2106_v4, %s1935_s10  ;;  %621 = vrot.lane.b32.xlu0 %v2017_v1, %s1945_s24 }
  0xda   : > { %v2311_v62 = vpop.permute.xlu1 %433  ;;  %v2317_v7 = vpop.permute.xlu0 %581 }
  0xdb   : > { %3169 = vst [vmem:[#allocation6_spill] sm:$0xff] %v2317_v7 }
  0xdc   : > { %748 = vrot.lane.b32.xlu1 %v2315_v63, %s1940_s15  ;;  %746 = vrot.lane.b32.xlu0 %v2323_v8, %s1940_s15 }
  0xde   : > { %v2327_v9 = vpop.permute.xlu1 %587  ;;  %v2329_v11 = vpop.permute.xlu0 %317 }
  0xdf   : > { %v321_v15 = vsel %vm319_vm0, %v2138_v6, %v2329_v11  ;;  %v2357_v6 = vsel %vm391_vm6, %v2232_v38, %v2230_v37  ;;  %vm485_vm0 = vcmask 687104  }
  0xe0   : > { %437 = vrot.lane.b32.xlu1 %v2106_v4, %s1936_s11  ;;  %744 = vrot.lane.b32.xlu0 %v2335_v13, %s1940_s15  ;;  %3171 = vst [vmem:[#allocation8_spill] sm:$0xff] %v2357_v6  ;;  %s1952_s11 = smov 118  }
  0xe1   : > { %1198 = vmatprep.subr.bf16.mxu1 %v321_v15  ;;  %v2409_v15 = vsel %vm403_vm7, %v2258_v46, %v2254_v45 }
  0xe2   : > { %v2342_v17 = vpop.permute.xlu1 %591  ;;  %1199 = vmatpush1.bf16.msra.mxu1 %v2188_v23  ;;  %v2350_v24 = vpop.permute.xlu0 %589 }
  0xe4   : > { %756 = vrot.lane.b32.xlu1 %v2348_v21, %s1940_s15  ;;  %754 = vrot.lane.b32.xlu0 %v2357_v6, %s1940_s15 }
  0xe6   : > { %v2361_v25 = vpop.permute.xlu1 %329  ;;  %v2366_v30 = vpop.permute.xlu0 %585 }
  0xe7   : > { %3172 = vst [vmem:[#allocation9_spill] sm:$0xff] %v2361_v25  ;;  %v333_v26 = vsel %vm331_vm1, %v2148_v10, %v2361_v25  ;;  %vm500_vm1 = vcmask 678912  }
  0xe8   : > { %447 = vrot.lane.b32.xlu1 %v2020_v2, %s1946_s26  ;;  %1200 = vmatprep.subr.bf16.mxu1 %v333_v26 }
  0xe9   : > { %1201 = vmatpush1.bf16.msra.mxu1 %v2216_v32  ;;  %752 = vrot.lane.b32.xlu0 %v2372_v31, %s1940_s15 }
  0xea   : > { %v2377_v33 = vpop.permute.xlu1 %601  ;;  %v2379_v34 = vpop.permute.xlu0 %599 }
  0xec   : > { %445 = vrot.lane.b32.xlu1 %v2017_v1, %s1946_s26 }
  0xed   : > { %449 = vrot.lane.b32.xlu0 %v2106_v4, %s1946_s26  ;;  %s277_s26 = scalar_lea.vmem %s3139_s4, %s1828_s22 }
  0xee   : > { %v2383_v10 = vpop.permute.xlu1 %597  ;;  %v2390_v37 = vpop.permute.xlu0 %603 }
  0xf0   : > { %764 = vrot.lane.b32.xlu1 %v2388_v36, %s1940_s15  ;;  %v2450_v36 = vsel %vm415_vm8, %v2271_v50, %v2269_v49 }
  0xf1   : > { %762 = vrot.lane.b32.xlu0 %v2397_v40, %s1940_s15  ;;  %3178 = vst [vmem:[#allocation15_spill] sm:$0xff] %v2450_v36 }
  0xf2   : > { %v2401_v41 = vpop.permute.xlu1 %479  ;;  %v2403_v43 = vpop.permute.xlu0 %341 }
  0xf3   : > { %3175 = vst [vmem:[#allocation12_spill] sm:$0xff] %v2403_v43  ;;  %v345_v44 = vsel %vm343_vm2, %v2160_v14, %v2403_v43  ;;  %v2429_v14 = vcombine.high %v2422_v42, %v2422_v42  ;;  %v2500_v43 = vld [vmem:[%s2009_s25 + $0x4] ss:$16 sps:$4 sm:$0xff]   ;;  %vm617_vm2 = vcmask 900096  }
  0xf4   : > { %459 = vrot.lane.b32.xlu1 %v2020_v2, %s1947_s27  ;;  %1202 = vmatprep.subr.bf16.mxu1 %v345_v44 }
  0xf5   : > { %760 = vrot.lane.b32.xlu0 %v2409_v15, %s1940_s15  ;;  %1203 = vmatpush1.bf16.msra.mxu1 %v2238_v39  ;;  %v2438_v39 = vsel %vm415_vm8, %v2269_v49, %v2281_v53  ;;  %v2464_v49 = vsel %vm415_vm8, %v2276_v51, %v2271_v50  ;;  %v578_v51 = vsel %vm427_vm9, %v2289_v55, %v2299_v59 }
  0xf6   : > { %v2416_v26 = vpop.permute.xlu1 %483  ;;  %v2424_v35 = vpop.permute.xlu0 %481  ;;  %1228 = vmatprep.mubr.bf16.mxu1 %v2429_v14  ;;  %3177 = vst [vmem:[#allocation14_spill] sm:$0xff] %v2438_v39 }
  0xf8   : > { %457 = vrot.lane.b32.xlu1 %v2017_v1, %s1947_s27 }
  0xf9   : > { %461 = vrot.lane.b32.xlu0 %v2106_v4, %s1947_s27  ;;  %s1717_s27 = sshll.u32 %s3212_s18, 3 }
  0xfa   : > { %v2432_v46 = vpop.permute.xlu1 %353  ;;  %v2443_v28 = vpop.permute.xlu0 %477 }
  0xfb   : > { %3176 = vst [vmem:[#allocation13_spill] sm:$0xff] %v2432_v46  ;;  %v357_v44 = vsel %vm355_vm3, %v2173_v19, %v2432_v46  ;;  %v577_v19 = vsel %vm427_vm9, %v2291_v56, %v2289_v55  ;;  %v2493_v46 = vld [vmem:[%s2009_s25 + $0x8] ss:$16 sps:$4 sm:$0xff]   ;;  %v583_v55 = vsel %vm439_vm11, %v2306_v61, %v2304_v60  ;;  %vm451_vm3 = vcmask 826368  }
  0xfc   : > { %772 = vrot.lane.b32.xlu1 %v2438_v39, %s1940_s15  ;;  %1204 = vmatprep.subr.bf16.mxu1 %v357_v44 }
  0xfd   : > { %1205 = vmatpush1.bf16.msra.mxu1 %v2262_v47  ;;  %770 = vrot.lane.b32.xlu0 %v2450_v36, %s1940_s15  ;;  %v2475_v36 = vsel %vm427_vm9, %v2295_v57, %v2291_v56 }
  0xfe   : > { %v2455_v22 = vpop.permute.xlu1 %700  ;;  %v699_v40 = vpop.permute.xlu0 %698 }
  0xff   : > { %3179 = vst [vmem:[#allocation16_spill] sm:$0xff] %v2455_v22  ;;  %v826_v47 = vsel %vm824_vm10, %v699_v40, %v2455_v22  ;;  %v584_v22 = vsel %vm439_vm11, %v2304_v60, %v2317_v7  ;;  %v2512_v60 = vsel %vm439_vm11, %v2311_v62, %v2306_v61  ;;  %v596_v62 = vsel %vm593_vm13, %v2350_v24, %v2342_v17 }
 0x100   : > { %778 = vrot.lane.b32.xlu1 %v577_v19, %s1940_s15  ;;  %1237 = vmatprep.subr.bf16.mxu0 %v826_v47  ;;  %v595_v7 = vsel %vm593_vm13, %v2327_v9, %v2350_v24  ;;  %v594_v24 = vsel %vm593_vm13, %v2366_v30, %v2327_v9  ;;  %v607_v9 = vsel %vm605_vm15, %v2379_v34, %v2377_v33 }
 0x101   : > { %768 = vrot.lane.b32.xlu0 %v2464_v49, %s1940_s15 }
 0x102   : > { %v2470_v44 = vpop.permute.xlu1 %496  ;;  %v2477_v19 = vpop.permute.xlu0 %494 }
 0x104   : > { %776 = vrot.lane.b32.xlu1 %v2475_v36, %s1940_s15 }
 0x105   : > { %780 = vrot.lane.b32.xlu0 %v578_v51, %s1940_s15 }
 0x106   : > { %v697_v47 = vpop.permute.xlu1 %696  ;;  %v2489_v39 = vpop.permute.xlu0 %498 }
 0x107   : > { %v825_v57 = vsel %vm824_vm10, %v697_v47, %v699_v40  ;;  %v2507_v40 = vld [vmem:[%s2009_s25 + $0xc] ss:$16 sps:$4 sm:$0xff]  }
 0x108   : > { %788 = vrot.lane.b32.xlu1 %v584_v22, %s1940_s15  ;;  %1238 = vmatpush1.bf16.msra.mxu0 %v825_v57 }
 0x109   : > { %786 = vrot.lane.b32.xlu0 %v583_v55, %s1940_s15 }
 0x10a   : > { %v364_v51 = vpop.permute.xlu1 %363  ;;  %v2502_v6 = vpop.permute.xlu0 %492 }
 0x10c   : > { %648 = vrot.lane.b32.xlu1 %v2493_v46, %s1948_s30 }
 0x10d   : > { %646 = vrot.lane.b32.xlu0 %v2500_v43, %s1948_s30 }
 0x10e   : > { %v362_v22 = vpop.permute.xlu1 %361  ;;  %v2514_v47 = vpop.permute.xlu0 %365 }
 0x10f   : > { %v368_v57 = vsel %vm367_vm12, %v362_v22, %v364_v51  ;;  %v369_v55 = vsel %vm367_vm12, %v364_v51, %v2514_v47  ;;  %vm1572_vm12 = vcmask 781312  }
 0x110   : > { %784 = vrot.lane.b32.xlu1 %v2512_v60, %s1940_s15  ;;  %1206 = vmatprep.subr.bf16.mxu1 %v369_v55 }
 0x111   : > { %650 = vrot.lane.b32.xlu0 %v2507_v40, %s1948_s30  ;;  %1207 = vmatpush1.bf16.msra.mxu1 %v368_v57  ;;  %s285_s30 = scalar_lea.vmem %s3140_s5, %s1717_s27 }
 0x112   : > { %v2520_v21 = vpop.permute.xlu1 %708  ;;  %v707_v25 = vpop.permute.xlu0 %706 }
 0x113   : > { %3180 = vst [vmem:[#allocation17_spill] sm:$0xff] %v2520_v21  ;;  %v829_v51 = vsel %vm824_vm10, %v707_v25, %v2520_v21 }
 0x114   : > { %796 = vrot.lane.b32.xlu1 %v596_v62, %s1940_s15  ;;  %1239 = vmatprep.subr.bf16.mxu0 %v829_v51 }
 0x115   : > { %794 = vrot.lane.b32.xlu0 %v595_v7, %s1940_s15 }
 0x116   : > { %v376_v22 = vpop.permute.xlu1 %375  ;;  %v705_v55 = vpop.permute.xlu0 %704 }
 0x117   : > { %v828_v57 = vsel %vm824_vm10, %v705_v55, %v707_v25  ;;  %v608_v55 = vsel %vm605_vm15, %v2377_v33, %v2390_v37 }
 0x118   : > { %657 = vrot.lane.b32.xlu1 %v2493_v46, %s1949_s6  ;;  %1240 = vmatpush1.bf16.msra.mxu0 %v828_v57 }
 0x119   : > { %655 = vrot.lane.b32.xlu0 %v2500_v43, %s1949_s6 }
 0x11a   : > { %v374_v62 = vpop.permute.xlu1 %373  ;;  %v2538_v21 = vpop.permute.xlu0 %377 }
 0x11b   : > { %v380_v7 = vsel %vm379_vm14, %v374_v62, %v376_v22  ;;  %v381_v51 = vsel %vm379_vm14, %v376_v22, %v2538_v21  ;;  %vm1554_vm14 = vcmask 7168  }
 0x11c   : > { %792 = vrot.lane.b32.xlu1 %v594_v24, %s1940_s15  ;;  %1208 = vmatprep.subr.bf16.mxu1 %v381_v51  ;;  %v606_v51 = vsel %vm605_vm15, %v2383_v10, %v2379_v34 }
 0x11d   : > { %659 = vrot.lane.b32.xlu0 %v2507_v40, %s1949_s6  ;;  %1209 = vmatpush1.bf16.msra.mxu1 %v380_v7 }
 0x11e   : > { %v2543_v25 = vpop.permute.xlu1 %716  ;;  %v715_v57 = vpop.permute.xlu0 %714 }
 0x11f   : > { %3181 = vst [vmem:[#allocation18_spill] sm:$0xff] %v2543_v25  ;;  %v832_v30 = vsel %vm824_vm10, %v715_v57, %v2543_v25 }
 0x120   : > { %804 = vrot.lane.b32.xlu1 %v608_v55, %s1940_s15  ;;  %1241 = vmatprep.subr.bf16.mxu0 %v832_v30  ;;  %v2591_v30 = vsel %vm485_vm0, %v2401_v41, %v2424_v35 }
 0x121   : > { %802 = vrot.lane.b32.xlu0 %v607_v9, %s1940_s15  ;;  %v2581_v9 = vsel %vm485_vm0, %v2424_v35, %v2416_v26 }
 0x122   : > { %v2555_v22 = vpop.permute.xlu1 %389  ;;  %v713_v24 = vpop.permute.xlu0 %712 }
 0x123   : > { %v393_v62 = vsel %vm391_vm6, %v2232_v38, %v2555_v22  ;;  %v831_v7 = vsel %vm824_vm10, %v713_v24, %v715_v57  ;;  %vm652_vm6 = vcmask 719872  }
 0x124   : > { %666 = vrot.lane.b32.xlu1 %v2493_v46, %s1937_s12  ;;  %1210 = vmatprep.subr.bf16.mxu1 %v393_v62 }
 0x125   : > { %1211 = vmatpush1.bf16.msra.mxu1 %v2372_v31  ;;  %664 = vrot.lane.b32.xlu0 %v2500_v43, %s1937_s12 }
 0x126   : > { %1242 = vmatpush1.bf16.msra.mxu0 %v831_v7  ;;  %v2566_v33 = vpop.permute.xlu1 %724  ;;  %v723_v38 = vpop.permute.xlu0 %722 }
 0x127   : > { %3182 = vst [vmem:[#allocation19_spill] sm:$0xff] %v2566_v33  ;;  %v835_v55 = vsel %vm824_vm10, %v723_v38, %v2566_v33 }
 0x128   : > { %800 = vrot.lane.b32.xlu1 %v606_v51, %s1940_s15  ;;  %1243 = vmatprep.subr.bf16.mxu0 %v835_v55  ;;  %v2610_v51 = vsel %vm485_vm0, %v2443_v28, %v2401_v41  ;;  %v2631_v28 = vsel %vm500_vm1, %v2477_v19, %v2470_v44 }
 0x129   : > { %668 = vrot.lane.b32.xlu0 %v2507_v40, %s1937_s12 }
 0x12a   : > { %v2576_v57 = vpop.permute.xlu1 %401  ;;  %v721_v10 = vpop.permute.xlu0 %720 }
 0x12b   : > { %v405_v34 = vsel %vm403_vm7, %v2254_v45, %v2576_v57  ;;  %v834_v62 = vsel %vm824_vm10, %v721_v10, %v723_v38  ;;  %vm661_vm7 = vcmask 711680  }
 0x12c   : > { %812 = vrot.lane.b32.xlu1 %v2581_v9, %s1940_s15  ;;  %1212 = vmatprep.subr.bf16.mxu1 %v405_v34  ;;  %v2621_v34 = vsel %vm500_vm1, %v2470_v44, %v2489_v39 }
 0x12d   : > { %1213 = vmatpush1.bf16.msra.mxu1 %v2409_v15  ;;  %810 = vrot.lane.b32.xlu0 %v2591_v30, %s1940_s15 }
 0x12e   : > { %1244 = vmatpush1.bf16.msra.mxu0 %v834_v62  ;;  %v2597_v24 = vpop.permute.xlu1 %732  ;;  %v731_v45 = vpop.permute.xlu0 %730 }
 0x12f   : > { %3183 = vst [vmem:[#allocation20_spill] sm:$0xff] %v2597_v24  ;;  %v838_v7 = vsel %vm824_vm10, %v731_v45, %v2597_v24 }
 0x130   : > { %674 = vrot.lane.b32.xlu1 %v2493_v46, %s1938_s13  ;;  %1245 = vmatprep.subr.bf16.mxu0 %v838_v7 }
 0x131   : > { %672 = vrot.lane.b32.xlu0 %v2500_v43, %s1938_s13 }
 0x132   : > { %v2605_v35 = vpop.permute.xlu1 %613  ;;  %v2612_v38 = vpop.permute.xlu0 %611 }
 0x134   : > { %808 = vrot.lane.b32.xlu1 %v2610_v51, %s1940_s15 }
 0x135   : > { %676 = vrot.lane.b32.xlu0 %v2507_v40, %s1938_s13 }
 0x136   : > { %v729_v55 = vpop.permute.xlu1 %728  ;;  %v2624_v62 = vpop.permute.xlu0 %615 }
 0x137   : > { %v837_v10 = vsel %vm824_vm10, %v729_v55, %v731_v45  ;;  %v2652_v55 = vsel %vm500_vm1, %v2502_v6, %v2477_v19 }
 0x138   : > { %820 = vrot.lane.b32.xlu1 %v2621_v34, %s1940_s15  ;;  %1246 = vmatpush1.bf16.msra.mxu0 %v837_v10 }
 0x139   : > { %818 = vrot.lane.b32.xlu0 %v2631_v28, %s1940_s15 }
 0x13a   : > { %v2635_v41 = vpop.permute.xlu1 %413  ;;  %v2640_v7 = vpop.permute.xlu0 %609 }
 0x13b   : > { %v417_v45 = vsel %vm415_vm8, %v2271_v50, %v2635_v41  ;;  %v2657_v50 = vld [vmem:[%s3136_s1 + $0x8] sm:$0xff]  ;;  %vm1049_vm8 = vcmask 293888  }
 0x13c   : > { %682 = vrot.lane.b32.xlu1 %v2493_v46, %s1939_s14  ;;  %1214 = vmatprep.subr.bf16.mxu1 %v417_v45  ;;  %3185 = vst [vmem:[#allocation22_spill] sm:$0xff] %v2657_v50  ;;  %v2663_v45 = vcombine.high %v2657_v50, %v2657_v50 }
 0x13d   : > { %1215 = vmatpush1.bf16.msra.mxu1 %v2464_v49  ;;  %680 = vrot.lane.b32.xlu0 %v2500_v43, %s1939_s14 }
 0x13e   : > { %v2647_v44 = vpop.permute.xlu1 %740  ;;  %v739_v10 = vpop.permute.xlu0 %738  ;;  %1269 = vmatprep.mubr.bf16.mxu0 %v2663_v45 }
 0x13f   : > { %3184 = vst [vmem:[#allocation21_spill] sm:$0xff] %v2647_v44  ;;  %v841_v24 = vsel %vm824_vm10, %v739_v10, %v2647_v44 }
 0x140   : > { %816 = vrot.lane.b32.xlu1 %v2652_v55, %s1940_s15  ;;  %1247 = vmatprep.subr.bf16.mxu0 %v841_v24 }
 0x141   : > { %684 = vrot.lane.b32.xlu0 %v2507_v40, %s1939_s14 }
 0x142   : > { %v2669_v6 = vpop.permute.xlu1 %625  ;;  %v2672_v19 = vpop.permute.xlu0 %623 }
 0x144   : > { %925 = vrot.lane.b32.xlu1 %v2023_v3, %s1950_s9 }
 0x145   : > { %923 = vrot.lane.b32.xlu0 %v2020_v2, %s1950_s9 }
 0x146   : > { %v737_v33 = vpop.permute.xlu1 %736  ;;  %v2679_v25 = vpop.permute.xlu0 %627 }
 0x147   : > { %v840_v44 = vsel %vm824_vm10, %v737_v33, %v739_v10 }
 0x148   : > { %690 = vrot.lane.b32.xlu1 %v2493_v46, %s1941_s16  ;;  %1248 = vmatpush1.bf16.msra.mxu0 %v840_v44 }
 0x149   : > { %688 = vrot.lane.b32.xlu0 %v2500_v43, %s1941_s16 }
 0x14a   : > { %v2685_v24 = vpop.permute.xlu1 %425  ;;  %v622_v50 = vpop.permute.xlu0 %621 }
 0x14b   : > { %v429_v3 = vsel %vm427_vm9, %v2291_v56, %v2685_v24  ;;  %vm1152_vm9 = vcmask 965632  }
 0x14c   : > { %921 = vrot.lane.b32.xlu1 %v2017_v1, %s1950_s9  ;;  %1216 = vmatprep.subr.bf16.mxu1 %v429_v3 }
 0x14d   : > { %1217 = vmatpush1.bf16.msra.mxu1 %v2475_v36  ;;  %692 = vrot.lane.b32.xlu0 %v2507_v40, %s1941_s16 }
 0x14e   : > { %v2695_v2 = vpop.permute.xlu1 %748  ;;  %v747_v33 = vpop.permute.xlu0 %746 }
 0x14f   : > { %v844_v44 = vsel %vm824_vm10, %v747_v33, %v2695_v2 }
 0x150   : > { %933 = vrot.lane.b32.xlu1 %v2171_v18, %s1950_s9  ;;  %1249 = vmatprep.subr.bf16.mxu0 %v844_v44 }
 0x151   : > { %931 = vrot.lane.b32.xlu0 %v2179_v20, %s1950_s9 }
 0x152   : > { %v2703_v1 = vpop.permute.xlu1 %437  ;;  %v745_v36 = vpop.permute.xlu0 %744 }
 0x153   : > { %v441_v56 = vsel %vm439_vm11, %v2306_v61, %v2703_v1  ;;  %v843_v18 = vsel %vm824_vm10, %v745_v36, %v747_v33  ;;  %vm1954_vm11 = vmmov 0  }
 0x154   : > { %939 = vrot.lane.b32.xlu1 %v2204_v29, %s1950_s9  ;;  %1218 = vmatprep.subr.bf16.mxu1 %v441_v56  ;;  %v618_v56 = vsel %vm617_vm2, %v2640_v7, %v2612_v38  ;;  %v630_v7 = vsel %vm629_vm4, %v622_v50, %v2672_v19 }
 0x155   : > { %1219 = vmatpush1.bf16.msra.mxu1 %v2512_v60  ;;  %929 = vrot.lane.b32.xlu0 %v2188_v23, %s1950_s9  ;;  %v620_v23 = vsel %vm617_vm2, %v2605_v35, %v2624_v62 }
 0x156   : > { %1250 = vmatpush1.bf16.msra.mxu0 %v843_v18  ;;  %v2714_v20 = vpop.permute.xlu1 %756  ;;  %v755_v10 = vpop.permute.xlu0 %754  ;;  %v631_v18 = vsel %vm629_vm4, %v2672_v19, %v2669_v6 }
 0x157   : > { %v847_v61 = vsel %vm824_vm10, %v755_v10, %v2714_v20 }
 0x158   : > { %937 = vrot.lane.b32.xlu1 %v2216_v32, %s1950_s9  ;;  %1251 = vmatprep.subr.bf16.mxu0 %v847_v61  ;;  %v619_v32 = vsel %vm617_vm2, %v2612_v38, %v2605_v35 }
 0x159   : > { %941 = vrot.lane.b32.xlu0 %v2196_v27, %s1950_s9 }
 0x15a   : > { %v448_v29 = vpop.permute.xlu1 %447 }
 0x15b   : > { %v753_v60 = vpop.permute.xlu0 %752 }
 0x15c   : > { %949 = vrot.lane.b32.xlu1 %v620_v23, %s1950_s9  ;;  %v846_v3 = vsel %vm824_vm10, %v753_v60, %v755_v10  ;;  %v632_v23 = vsel %vm629_vm4, %v2669_v6, %v2679_v25 }
 0x15d   : > { %947 = vrot.lane.b32.xlu0 %v619_v32, %s1950_s9  ;;  %1252 = vmatpush1.bf16.msra.mxu0 %v846_v3 }
 0x15e   : > { %v446_v27 = vpop.permute.xlu1 %445 }
 0x15f   : > { %v2731_v33 = vpop.permute.xlu0 %449  ;;  %v452_v44 = vsel %vm451_vm3, %v446_v27, %v448_v29 }
 0x160   : > { %766 = vrot.lane.b32.xlu1 %v2264_v48, %s1940_s15  ;;  %v453_v35 = vsel %vm451_vm3, %v448_v29, %v2731_v33 }
 0x161   : > { %945 = vrot.lane.b32.xlu0 %v618_v56, %s1950_s9  ;;  %1220 = vmatprep.subr.bf16.mxu1 %v453_v35  ;;  %v3188_v35 = vld [vmem:[#allocation7_spill] sm:$0xff] }
 0x162   : > { %v2740_v36 = vpop.permute.xlu1 %764  ;;  %1221 = vmatpush1.bf16.msra.mxu1 %v452_v44 }
 0x163   : > { %v763_v10 = vpop.permute.xlu0 %762 }
 0x164   : > { %955 = vrot.lane.b32.xlu1 %v631_v18, %s1950_s9  ;;  %v850_v61 = vsel %vm824_vm10, %v763_v10, %v2740_v36 }
 0x165   : > { %702 = vrot.lane.b32.xlu0 %v2012_v0, %s1940_s15  ;;  %1253 = vmatprep.subr.bf16.mxu0 %v850_v61  ;;  %v3191_v61 = vld [vmem:[#allocation13_spill] sm:$0xff] }
 0x166   : > { %v460_v38 = vpop.permute.xlu1 %459 }
 0x167   : > { %v761_v29 = vpop.permute.xlu0 %760 }
 0x168   : > { %953 = vrot.lane.b32.xlu1 %v630_v7, %s1950_s9  ;;  %v849_v60 = vsel %vm824_vm10, %v761_v29, %v763_v10  ;;  %v3192_v7 = vld [vmem:[#allocation11_spill] sm:$0xff] }
 0x169   : > { %957 = vrot.lane.b32.xlu0 %v632_v23, %s1950_s9  ;;  %1254 = vmatpush1.bf16.msra.mxu0 %v849_v60  ;;  %v3194_v23 = vld [vmem:[#allocation10_spill] sm:$0xff] }
 0x16a   : > { %v458_v32 = vpop.permute.xlu1 %457 }
 0x16b   : > { %v2758_v0 = vpop.permute.xlu0 %461  ;;  %v464_v50 = vsel %vm463_vm5, %v458_v32, %v460_v38 }
 0x16c   : > { %710 = vrot.lane.b32.xlu1 %v2136_v5, %s1940_s15  ;;  %v465_v19 = vsel %vm463_vm5, %v460_v38, %v2758_v0 }
 0x16d   : > { %774 = vrot.lane.b32.xlu0 %v2281_v53, %s1940_s15  ;;  %1222 = vmatprep.subr.bf16.mxu1 %v465_v19 }
 0x16e   : > { %v2765_v6 = vpop.permute.xlu1 %772  ;;  %1223 = vmatpush1.bf16.msra.mxu1 %v464_v50  ;;  %v3196_v50 = vld [vmem:[#allocation14_spill] sm:$0xff] }
 0x16f   : > { %v771_v3 = vpop.permute.xlu0 %770  ;;  %1224 = vmatprep.subr.bf16.mxu1 %v2591_v30 }
 0x170   : > { %965 = vrot.lane.b32.xlu1 %v2279_v52, %s1950_s9  ;;  %v853_v27 = vsel %vm824_vm10, %v771_v3, %v2765_v6 }
 0x171   : > { %963 = vrot.lane.b32.xlu0 %v2285_v54, %s1950_s9  ;;  %1255 = vmatprep.subr.bf16.mxu0 %v853_v27  ;;  %v2784_v54 = vcombine.low %v2422_v42, %v2422_v42 }
 0x172   : > { %v779_v44 = vpop.permute.xlu1 %778  ;;  %1225 = vmatpush1.bf16.msra.mxu1 %v2610_v51 }
 0x173   : > { %v769_v56 = vpop.permute.xlu0 %768  ;;  %1226 = vmatprep.subr.bf16.mxu1 %v2631_v28 }
 0x174   : > { %782 = vrot.lane.b32.xlu1 %v2299_v59, %s1940_s15  ;;  %v852_v30 = vsel %vm824_vm10, %v769_v56, %v771_v3 }
 0x175   : > { %961 = vrot.lane.b32.xlu0 %v2297_v58, %s1950_s9  ;;  %1256 = vmatpush1.bf16.msra.mxu0 %v852_v30 }
 0x176   : > { %v777_v52 = vpop.permute.xlu1 %776  ;;  %1227 = vmatpush1.bf16.msra.mxu1 %v2652_v55  ;;  %v3187_v55 = vld [vmem:[#allocation9_spill] sm:$0xff] }
 0x177   : > { %v2786_v51 = vpop.permute.xlu0 %780  ;;  %1742 = vmatprep.subr.bf16.mxu1 %v2576_v57  ;;  %v855_v59 = vsel %vm824_vm10, %v777_v52, %v779_v44 }
 0x178   : > { %971 = vrot.lane.b32.xlu1 %v2323_v8, %s1950_s9  ;;  %v856_v58 = vsel %vm824_vm10, %v779_v44, %v2786_v51 }
 0x179   : > { %718 = vrot.lane.b32.xlu0 %v2154_v12, %s1940_s15  ;;  %1257 = vmatprep.subr.bf16.mxu0 %v856_v58 }
 0x17a   : > { %v2796_v28 = vpop.permute.xlu1 %788  ;;  %1229 = vmatmul.mubr.bf16.vlgmr.msra.gmra.mrb[0].mxu1 %v2784_v54  ;;  %1258 = vmatpush1.bf16.msra.mxu0 %v855_v59  ;;  %v3199_v59 = vld [vmem:[#allocation5_spill] sm:$0xff] }
 0x17b   : > { %1743 = vmatpush3.bf16.msra.mxu1 %v2106_v4  ;;  %v787_v42 = vpop.permute.xlu0 %786  ;;  %1392 = vmatprep.mubr.bf16.mxu1 %v2429_v14 }
 0x17c   : > { %969 = vrot.lane.b32.xlu1 %v2335_v13, %s1950_s9  ;;  %1744 = vmatprep.subr.bf16.mxu1 %v2635_v41  ;;  %v859_v8 = vsel %vm824_vm10, %v787_v42, %v2796_v28  ;;  %v3186_v13 = vld [vmem:[#allocation6_spill] sm:$0xff] }
 0x17d   : > { %973 = vrot.lane.b32.xlu0 %v2315_v63, %s1950_s9  ;;  %1259 = vmatprep.subr.bf16.mxu0 %v859_v8 }
 0x17e   : > { %v2808_v57 = vpop.permute.xlu1 %648 }
 0x17f   : > { %1745 = vmatpush3.bf16.msra.mxu1 %v2329_v11  ;;  %v2811_v4 = vpop.permute.xlu0 %646 }
 0x180   : > { %726 = vrot.lane.b32.xlu1 %v2165_v16, %s1940_s15  ;;  %1746 = vmatprep.subr.bf16.mxu1 %v2685_v24  ;;  %v3189_v16 = vld [vmem:[#allocation8_spill] sm:$0xff] }
 0x181   : > { %790 = vrot.lane.b32.xlu0 %v3186_v13, %s1940_s15  ;;  %v3190_v24 = vld [vmem:[#allocation12_spill] sm:$0xff] }
 0x182   : > { %v785_v41 = vpop.permute.xlu1 %784 }
 0x183   : > { %v858_v14 = vsel %vm824_vm10, %v785_v41, %v787_v42  ;;  %1747 = vmatpush3.bf16.msra.mxu1 %v3187_v55  ;;  %v2820_v63 = vpop.permute.xlu0 %650 }
 0x184   : > { %981 = vrot.lane.b32.xlu1 %v3188_v35, %s1950_s9  ;;  %1748 = vmatprep.subr.bf16.mxu1 %v2703_v1  ;;  %v3200_v35 = vld [vmem:[#allocation22_spill] sm:$0xff] }
 0x185   : > { %1260 = vmatpush1.bf16.msra.mxu0 %v858_v14  ;;  %979 = vrot.lane.b32.xlu0 %v3189_v16, %s1950_s9  ;;  %v2915_v16 = vcombine.low %v3200_v35, %v3200_v35 }
 0x186   : > { %v2827_v11 = vpop.permute.xlu1 %796 }
 0x187   : > { %1749 = vmatpush3.bf16.msra.mxu1 %v3190_v24  ;;  %v795_v18 = vpop.permute.xlu0 %794 }
 0x188   : > { %798 = vrot.lane.b32.xlu1 %v2342_v17, %s1940_s15  ;;  %1750 = vmatprep.subr.bf16.mxu1 %v2731_v33  ;;  %v862_v10 = vsel %vm824_vm10, %v795_v18, %v2827_v11  ;;  %v3193_v17 = vld [vmem:[#allocation2_spill] sm:$0xff] }
 0x189   : > { %977 = vrot.lane.b32.xlu0 %v2372_v31, %s1950_s9  ;;  %1261 = vmatprep.subr.bf16.mxu0 %v862_v10 }
 0x18a   : > { %v658_v1 = vpop.permute.xlu1 %657 }
 0x18b   : > { %1751 = vmatpush3.bf16.msra.mxu1 %v3191_v61  ;;  %v2838_v38 = vpop.permute.xlu0 %655 }
 0x18c   : > { %987 = vrot.lane.b32.xlu1 %v3192_v7, %s1950_s9  ;;  %1752 = vmatprep.subr.bf16.mxu1 %v2758_v0  ;;  %v3195_v0 = vld [vmem:[#allocation3_spill] sm:$0xff] }
 0x18d   : > { %734 = vrot.lane.b32.xlu0 %v3193_v17, %s1940_s15 }
 0x18e   : > { %v793_v33 = vpop.permute.xlu1 %792 }
 0x18f   : > { %v861_v29 = vsel %vm824_vm10, %v793_v33, %v795_v18  ;;  %1753 = vmatpush3.bf16.msra.mxu1 %v2514_v47  ;;  %v2847_v31 = vpop.permute.xlu0 %659  ;;  %v1901_v18 = vld [vmem:[%s2009_s25 + $0xc] ss:$16 sps:$4 sm:$0xff]  }
 0x190   : > { %985 = vrot.lane.b32.xlu1 %v2409_v15, %s1950_s9  ;;  %1754 = vmatprep.subr.bf16.mxu1 %v2581_v9  ;;  %v663_v42 = vsel %vm661_vm7, %v658_v1, %v2847_v31 }
 0x191   : > { %1262 = vmatpush1.bf16.msra.mxu0 %v861_v29  ;;  %989 = vrot.lane.b32.xlu0 %v3194_v23, %s1950_s9 }
 0x192   : > { %v2854_v60 = vpop.permute.xlu1 %804 }
 0x193   : > { %1755 = vmatpush3.bf16.msra.mxu1 %v2538_v21  ;;  %v803_v32 = vpop.permute.xlu0 %802  ;;  %v3197_v21 = vld [vmem:[#allocation15_spill] sm:$0xff] }
 0x194   : > { %742 = vrot.lane.b32.xlu1 %v3195_v0, %s1940_s15  ;;  %1756 = vmatprep.subr.bf16.mxu1 %v2621_v34  ;;  %v865_v47 = vsel %vm824_vm10, %v803_v32, %v2854_v60 }
 0x195   : > { %806 = vrot.lane.b32.xlu0 %v2390_v37, %s1940_s15  ;;  %1263 = vmatprep.subr.bf16.mxu0 %v865_v47 }
 0x196   : > { %v667_v15 = vpop.permute.xlu1 %666 }
 0x197   : > { %1757 = vmatpush3.bf16.msra.mxu1 %v2555_v22  ;;  %v665_v9 = vpop.permute.xlu0 %664  ;;  %v653_v22 = vsel %vm652_vm6, %v2811_v4, %v2808_v57 }
 0x198   : > { %997 = vrot.lane.b32.xlu1 %v3196_v50, %s1950_s9  ;;  %v670_v14 = vsel %vm593_vm13, %v665_v9, %v667_v15 }
 0x199   : > { %995 = vrot.lane.b32.xlu0 %v3197_v21, %s1950_s9 }
 0x19a   : > { %v801_v19 = vpop.permute.xlu1 %800  ;;  %1393 = vmatmul.mubr.bf16.vlgmr.msra.gmra.mrb[4].mxu1 %v2784_v54 }
 0x19b   : > { %v864_v34 = vsel %vm824_vm10, %v801_v19, %v803_v32  ;;  %v2871_v3 = vpop.permute.xlu0 %668  ;;  %1432 = vmatprep.mubr.bf16.mxu1 %v2663_v45 }
 0x19c   : > { %814 = vrot.lane.b32.xlu1 %v2416_v26, %s1940_s15  ;;  %1264 = vmatpush1.bf16.msra.mxu0 %v864_v34  ;;  %v3198_v26 = vld [vmem:[#allocation4_spill] sm:$0xff] }
 0x19d   : > { %993 = vrot.lane.b32.xlu0 %v2464_v49, %s1950_s9  ;;  %v654_v49 = vsel %vm652_vm6, %v2808_v57, %v2820_v63  ;;  %v662_v57 = vsel %vm661_vm7, %v2838_v38, %v658_v1  ;;  %v671_v1 = vsel %vm593_vm13, %v667_v15, %v2871_v3  ;;  %vm1541_vm13 = vcmask 785408  }
 0x19e   : > { %v2878_v37 = vpop.permute.xlu1 %812 }
 0x19f   : > { %v811_v27 = vpop.permute.xlu0 %810 }
 0x1a0   : > { %1003 = vrot.lane.b32.xlu1 %v653_v22, %s1950_s9  ;;  %v868_v44 = vsel %vm824_vm10, %v811_v27, %v2878_v37 }
 0x1a1   : > { %750 = vrot.lane.b32.xlu0 %v3198_v26, %s1940_s15  ;;  %1265 = vmatprep.subr.bf16.mxu0 %v868_v44 }
 0x1a2   : > { %v675_v56 = vpop.permute.xlu1 %674 }
 0x1a3   : > { %v673_v45 = vpop.permute.xlu0 %672 }
 0x1a4   : > { %1001 = vrot.lane.b32.xlu1 %v2811_v4, %s1950_s9  ;;  %v678_v32 = vsel %vm605_vm15, %v673_v45, %v675_v56 }
 0x1a5   : > { %1005 = vrot.lane.b32.xlu0 %v654_v49, %s1950_s9 }
 0x1a6   : > { %v809_v30 = vpop.permute.xlu1 %808 }
 0x1a7   : > { %v867_v52 = vsel %vm824_vm10, %v809_v30, %v811_v27  ;;  %v2893_v54 = vpop.permute.xlu0 %676 }
 0x1a8   : > { %758 = vrot.lane.b32.xlu1 %v3199_v59, %s1940_s15  ;;  %1266 = vmatpush1.bf16.msra.mxu0 %v867_v52  ;;  %v679_v33 = vsel %vm605_vm15, %v675_v56, %v2893_v54  ;;  %v2979_v52 = vld [vmem:[%s3136_s1 + $0x10] sm:$0xff]  ;;  %vm1556_vm15 = vcmask 15360  }
 0x1a9   : > { %822 = vrot.lane.b32.xlu0 %v2489_v39, %s1940_s15 }
 0x1aa   : > { %v2899_v58 = vpop.permute.xlu1 %820 }
 0x1ab   : > { %v819_v8 = vpop.permute.xlu0 %818 }
 0x1ac   : > { %1013 = vrot.lane.b32.xlu1 %v663_v42, %s1950_s9  ;;  %v871_v4 = vsel %vm824_vm10, %v819_v8, %v2899_v58 }
 0x1ad   : > { %1011 = vrot.lane.b32.xlu0 %v662_v57, %s1950_s9  ;;  %1267 = vmatprep.subr.bf16.mxu0 %v871_v4  ;;  %v3201_v4 = vld [vmem:[#allocation16_spill] sm:$0xff] }
 0x1ae   : > { %v683_v13 = vpop.permute.xlu1 %682 }
 0x1af   : > { %v681_v41 = vpop.permute.xlu0 %680 }
 0x1b0   : > { %991 = vrot.lane.b32.xlu1 %v2264_v48, %s1950_s9 }
 0x1b1   : > { %1009 = vrot.lane.b32.xlu0 %v2838_v38, %s1950_s9 }
 0x1b2   : > { %v817_v39 = vpop.permute.xlu1 %816 }
 0x1b3   : > { %v870_v55 = vsel %vm824_vm10, %v817_v39, %v819_v8  ;;  %v2917_v24 = vpop.permute.xlu0 %684  ;;  %v1951_v39 = vmov 0  }
 0x1b4   : > { %1019 = vrot.lane.b32.xlu1 %v670_v14, %s1950_s9  ;;  %1268 = vmatpush1.bf16.msra.mxu0 %v870_v55  ;;  %v687_v22 = vsel %vm485_vm0, %v683_v13, %v2917_v24 }
 0x1b5   : > { %927 = vrot.lane.b32.xlu0 %v1901_v18, %s1950_s9 }
 0x1b6   : > { %v2922_v48 = vpop.permute.xlu1 %925  ;;  %1882 = vset.pattern.permute.xlu0 %v1951_v39 }
 0x1b7   : > { %1270 = vmatmul.mubr.bf16.vlgmr.msra.gmra.mrb[0].mxu0 %v2915_v16  ;;  %v924_v10 = vpop.permute.xlu0 %923 }
 0x1b8   : > { %1017 = vrot.lane.b32.xlu1 %v665_v9, %s1950_s9  ;;  %v1051_v61 = vsel %vm1049_vm8, %v924_v10, %v2922_v48  ;;  %v686_v9 = vsel %vm485_vm0, %v681_v41, %v683_v13 }
 0x1b9   : > { %1021 = vrot.lane.b32.xlu0 %v671_v1, %s1950_s9  ;;  %1278 = vmatprep.subr.bf16.mxu0 %v1051_v61 }
 0x1ba   : > { %v691_v38 = vpop.permute.xlu1 %690 }
 0x1bb   : > { %v689_v7 = vpop.permute.xlu0 %688 }
 0x1bc   : > { %935 = vrot.lane.b32.xlu1 %v2136_v5, %s1950_s9  ;;  %v694_v42 = vsel %vm500_vm1, %v689_v7, %v691_v38 }
 0x1bd   : > { %999 = vrot.lane.b32.xlu0 %v2281_v53, %s1950_s9 }
 0x1be   : > { %v922_v17 = vpop.permute.xlu1 %921 }
 0x1bf   : > { %v1050_v29 = vsel %vm1049_vm8, %v922_v17, %v924_v10  ;;  %v2938_v23 = vpop.permute.xlu0 %692  ;;  %v3202_v10 = vld [vmem:[#allocation17_spill] sm:$0xff] }
 0x1c0   : > { %1029 = vrot.lane.b32.xlu1 %v679_v33, %s1950_s9  ;;  %1279 = vmatpush1.bf16.msra.mxu0 %v1050_v29  ;;  %v695_v49 = vsel %vm500_vm1, %v691_v38, %v2938_v23 }
 0x1c1   : > { %1027 = vrot.lane.b32.xlu0 %v678_v32, %s1950_s9 }
 0x1c2   : > { %v2943_v47 = vpop.permute.xlu1 %933 }
 0x1c3   : > { %v932_v5 = vpop.permute.xlu0 %931 }
 0x1c4   : > { %1007 = vrot.lane.b32.xlu1 %v2820_v63, %s1950_s9  ;;  %v1054_v53 = vsel %vm1049_vm8, %v932_v5, %v2943_v47 }
 0x1c5   : > { %1025 = vrot.lane.b32.xlu0 %v673_v45, %s1950_s9  ;;  %1280 = vmatprep.subr.bf16.mxu0 %v1054_v53  ;;  %v3204_v53 = vld [vmem:[#allocation19_spill] sm:$0xff] }
 0x1c6   : > { %v940_v15 = vpop.permute.xlu1 %939 }
 0x1c7   : > { %v930_v50 = vpop.permute.xlu0 %929 }
 0x1c8   : > { %1035 = vrot.lane.b32.xlu1 %v686_v9, %s1950_s9  ;;  %v1053_v21 = vsel %vm1049_vm8, %v930_v50, %v932_v5 }
 0x1c9   : > { %943 = vrot.lane.b32.xlu0 %v2154_v12, %s1950_s9  ;;  %1281 = vmatpush1.bf16.msra.mxu0 %v1053_v21 }
 0x1ca   : > { %v938_v19 = vpop.permute.xlu1 %937 }
 0x1cb   : > { %v2955_v63 = vpop.permute.xlu0 %941  ;;  %v1056_v34 = vsel %vm1049_vm8, %v938_v19, %v940_v15 }
 0x1cc   : > { %1033 = vrot.lane.b32.xlu1 %v681_v41, %s1950_s9  ;;  %v1057_v27 = vsel %vm1049_vm8, %v940_v15, %v2955_v63 }
 0x1cd   : > { %1037 = vrot.lane.b32.xlu0 %v687_v22, %s1950_s9  ;;  %1282 = vmatprep.subr.bf16.mxu0 %v1057_v27 }
 0x1ce   : > { %v2964_v44 = vpop.permute.xlu1 %949  ;;  %1283 = vmatpush1.bf16.msra.mxu0 %v1056_v34 }
 0x1cf   : > { %v948_v12 = vpop.permute.xlu0 %947 }
 0x1d0   : > { %951 = vrot.lane.b32.xlu1 %v2624_v62, %s1950_s9  ;;  %v1060_v56 = vsel %vm1049_vm8, %v948_v12, %v2964_v44 }
 0x1d1   : > { %1015 = vrot.lane.b32.xlu0 %v2847_v31, %s1950_s9  ;;  %1284 = vmatprep.subr.bf16.mxu0 %v1060_v56  ;;  %v2984_v31 = vcombine.high %v2979_v52, %v2979_v52  ;;  %v3205_v56 = vld [vmem:[#allocation20_spill] sm:$0xff] }
 0x1d2   : > { %v767_v45 = vpop.permute.xlu1 %766 }
 0x1d3   : > { %v851_v30 = vsel %vm824_vm10, %v2740_v36, %v767_v45  ;;  %v946_v62 = vpop.permute.xlu0 %945  ;;  %1310 = vmatprep.mubr.bf16.mxu0 %v2984_v31 }
 0x1d4   : > { %1045 = vrot.lane.b32.xlu1 %v695_v49, %s1950_s9  ;;  %1764 = vmatprep.subr.bf16.mxu1 %v851_v30  ;;  %v1059_v8 = vsel %vm1049_vm8, %v946_v62, %v948_v12 }
 0x1d5   : > { %1043 = vrot.lane.b32.xlu0 %v694_v42, %s1950_s9  ;;  %1285 = vmatpush1.bf16.msra.mxu0 %v1059_v8 }
 0x1d6   : > { %v956_v36 = vpop.permute.xlu1 %955 }
 0x1d7   : > { %v703_v57 = vpop.permute.xlu0 %702 }
 0x1d8   : > { %1023 = vrot.lane.b32.xlu1 %v2871_v3, %s1950_s9  ;;  %v827_v13 = vsel %vm824_vm10, %v3201_v4, %v703_v57 }
 0x1d9   : > { %1041 = vrot.lane.b32.xlu0 %v689_v7, %s1950_s9  ;;  %1765 = vmatpush3.bf16.msra.mxu1 %v827_v13 }
 0x1da   : > { %v954_v41 = vpop.permute.xlu1 %953 }
 0x1db   : > { %v2996_v14 = vpop.permute.xlu0 %957  ;;  %v1062_v55 = vsel %vm1049_vm8, %v954_v41, %v956_v36 }
 0x1dc   : > { %1031 = vrot.lane.b32.xlu1 %v2893_v54, %s1950_s9  ;;  %v1063_v3 = vsel %vm1049_vm8, %v956_v36, %v2996_v14  ;;  %v3206_v36 = vld [vmem:[#allocation21_spill] sm:$0xff] }
 0x1dd   : > { %959 = vrot.lane.b32.xlu0 %v2679_v25, %s1950_s9  ;;  %1286 = vmatprep.subr.bf16.mxu0 %v1063_v3 }
 0x1de   : > { %v711_v35 = vpop.permute.xlu1 %710  ;;  %1287 = vmatpush1.bf16.msra.mxu0 %v1062_v55 }
 0x1df   : > { %v775_v18 = vpop.permute.xlu0 %774  ;;  %v830_v1 = vsel %vm824_vm10, %v3202_v10, %v711_v35 }
 0x1e0   : > { %1039 = vrot.lane.b32.xlu1 %v2917_v24, %s1950_s9  ;;  %v854_v61 = vsel %vm824_vm10, %v2765_v6, %v775_v18 }
 0x1e1   : > { %967 = vrot.lane.b32.xlu0 %v3195_v0, %s1950_s9  ;;  %1766 = vmatprep.subr.bf16.mxu1 %v854_v61 }
 0x1e2   : > { %v3013_v54 = vpop.permute.xlu1 %965  ;;  %1767 = vmatpush3.bf16.msra.mxu1 %v830_v1 }
 0x1e3   : > { %v964_v25 = vpop.permute.xlu0 %963 }
 0x1e4   : > { %1148 = vrot.lane.b32.xlu1 %v2493_v46, %s1952_s11  ;;  %v1066_v38 = vsel %vm1049_vm8, %v964_v25, %v3013_v54 }
 0x1e5   : > { %975 = vrot.lane.b32.xlu0 %v3198_v26, %s1950_s9  ;;  %1288 = vmatprep.subr.bf16.mxu0 %v1066_v38  ;;  %v3203_v26 = vld [vmem:[#allocation18_spill] sm:$0xff] }
 0x1e6   : > { %v783_v24 = vpop.permute.xlu1 %782 }
 0x1e7   : > { %v857_v6 = vsel %vm824_vm10, %v2786_v51, %v783_v24  ;;  %v962_v0 = vpop.permute.xlu0 %961 }
 0x1e8   : > { %1146 = vrot.lane.b32.xlu1 %v2500_v43, %s1952_s11  ;;  %1768 = vmatprep.subr.bf16.mxu1 %v857_v6  ;;  %v1065_v7 = vsel %vm1049_vm8, %v962_v0, %v964_v25  ;;  %v1162_v43 = vld [vmem:[%s3137_s2] sm:$0xff] }
 0x1e9   : > { %1150 = vrot.lane.b32.xlu0 %v2507_v40, %s1952_s11  ;;  %1289 = vmatpush1.bf16.msra.mxu0 %v1065_v7 }
 0x1ea   : > { %v972_v46 = vpop.permute.xlu1 %971 }
 0x1eb   : > { %v719_v17 = vpop.permute.xlu0 %718 }
 0x1ec   : > { %983 = vrot.lane.b32.xlu1 %v3199_v59, %s1950_s9  ;;  %v833_v33 = vsel %vm824_vm10, %v3203_v26, %v719_v17 }
 0x1ed   : > { %1047 = vrot.lane.b32.xlu0 %v2938_v23, %s1950_s9  ;;  %1769 = vmatpush3.bf16.msra.mxu1 %v833_v33 }
 0x1ee   : > { %v970_v51 = vpop.permute.xlu1 %969 }
 0x1ef   : > { %v3034_v29 = vpop.permute.xlu0 %973  ;;  %v1068_v40 = vsel %vm1049_vm8, %v970_v51, %v972_v46 }
 0x1f0   : > { %v1069_v32 = vsel %vm1049_vm8, %v972_v46, %v3034_v29 }
 0x1f1   : > { %1290 = vmatprep.subr.bf16.mxu0 %v1069_v32  ;;  %1165 = vperm.xlu0 %1882, %v1162_v43  }
 0x1f2   : > { %v727_v59 = vpop.permute.xlu1 %726  ;;  %1291 = vmatpush1.bf16.msra.mxu0 %v1068_v40 }
 0x1f3   : > { %v791_v5 = vpop.permute.xlu0 %790  ;;  %v836_v23 = vsel %vm824_vm10, %v3204_v53, %v727_v59 }
 0x1f4   : > { %v860_v15 = vsel %vm824_vm10, %v2796_v28, %v791_v5 }
 0x1f5   : > { %1770 = vmatprep.subr.bf16.mxu1 %v860_v15 }
 0x1f6   : > { %v3043_v9 = vpop.permute.xlu1 %981  ;;  %1771 = vmatpush3.bf16.msra.mxu1 %v836_v23 }
 0x1f7   : > { %v980_v50 = vpop.permute.xlu0 %979 }
 0x1f8   : > { %v1072_v21 = vsel %vm1049_vm8, %v980_v50, %v3043_v9 }
 0x1f9   : > { %1292 = vmatprep.subr.bf16.mxu0 %v1072_v21 }
 0x1fa   : > { %v799_v19 = vpop.permute.xlu1 %798 }
 0x1fb   : > { %v863_v34 = vsel %vm824_vm10, %v2827_v11, %v799_v19  ;;  %v978_v22 = vpop.permute.xlu0 %977 }
 0x1fc   : > { %1772 = vmatprep.subr.bf16.mxu1 %v863_v34  ;;  %v1071_v27 = vsel %vm1049_vm8, %v978_v22, %v980_v50 }
 0x1fd   : > { %1293 = vmatpush1.bf16.msra.mxu0 %v1071_v27 }
 0x1fe   : > { %v988_v12 = vpop.permute.xlu1 %987 }
 0x1ff   : > { %v735_v28 = vpop.permute.xlu0 %734 }
 0x200   : > { %v839_v45 = vsel %vm824_vm10, %v3205_v56, %v735_v28 }
 0x201   : > { %1773 = vmatpush3.bf16.msra.mxu1 %v839_v45 }
 0x202   : > { %v986_v49 = vpop.permute.xlu1 %985 }
 0x203   : > { %v990_v30 = vpop.permute.xlu0 %989  ;;  %v1074_v62 = vsel %vm1049_vm8, %v986_v49, %v988_v12 }
 0x204   : > { %v1075_v42 = vsel %vm1049_vm8, %v988_v12, %v990_v30 }
 0x205   : > { %1294 = vmatprep.subr.bf16.mxu0 %v1075_v42 }
 0x206   : > { %v743_v8 = vpop.permute.xlu1 %742  ;;  %1295 = vmatpush1.bf16.msra.mxu0 %v1074_v62 }
 0x207   : > { %v807_v11 = vpop.permute.xlu0 %806  ;;  %v842_v57 = vsel %vm824_vm10, %v3206_v36, %v743_v8 }
 0x208   : > { %v866_v4 = vsel %vm824_vm10, %v2854_v60, %v807_v11 }
 0x209   : > { %1774 = vmatprep.subr.bf16.mxu1 %v866_v4 }
 0x20a   : > { %v998_v13 = vpop.permute.xlu1 %997  ;;  %1775 = vmatpush3.bf16.msra.mxu1 %v842_v57 }
 0x20b   : > { %v996_v41 = vpop.permute.xlu0 %995 }
 0x20c   : > { %v1078_v55 = vsel %vm1049_vm8, %v996_v41, %v998_v13 }
 0x20d   : > { %1296 = vmatprep.subr.bf16.mxu0 %v1078_v55 }
 0x20e   : > { %v815_v3 = vpop.permute.xlu1 %814 }
 0x20f   : > { %v869_v35 = vsel %vm824_vm10, %v2878_v37, %v815_v3  ;;  %v994_v18 = vpop.permute.xlu0 %993 }
 0x210   : > { %1776 = vmatprep.subr.bf16.mxu1 %v869_v35  ;;  %v1077_v10 = vsel %vm1049_vm8, %v994_v18, %v996_v41  ;;  %v1730_v35 = vcombine.low %v2979_v52, %v2979_v52 }
 0x211   : > { %1297 = vmatpush1.bf16.msra.mxu0 %v1077_v10 }
 0x212   : > { %v1004_v1 = vpop.permute.xlu1 %1003 }
 0x213   : > { %v751_v61 = vpop.permute.xlu0 %750 }
 0x214   : > { %v845_v60 = vsel %vm824_vm10, %v2695_v2, %v751_v61 }
 0x215   : > { %1777 = vmatpush3.bf16.msra.mxu1 %v845_v60 }
 0x216   : > { %v1002_v25 = vpop.permute.xlu1 %1001 }
 0x217   : > { %v1006_v38 = vpop.permute.xlu0 %1005  ;;  %v1080_v24 = vsel %vm1049_vm8, %v1002_v25, %v1004_v1 }
 0x218   : > { %v1081_v6 = vsel %vm1049_vm8, %v1004_v1, %v1006_v38 }
 0x219   : > { %1298 = vmatprep.subr.bf16.mxu0 %v1081_v6 }
 0x21a   : > { %v759_v0 = vpop.permute.xlu1 %758  ;;  %1299 = vmatpush1.bf16.msra.mxu0 %v1080_v24 }
 0x21b   : > { %v823_v37 = vpop.permute.xlu0 %822  ;;  %v848_v7 = vsel %vm824_vm10, %v2714_v20, %v759_v0 }
 0x21c   : > { %v872_v46 = vsel %vm824_vm10, %v2899_v58, %v823_v37  ;;  %vm1192_vm10 = vcmask 130048  }
 0x21d   : > { %1778 = vmatprep.subr.bf16.mxu1 %v872_v46 }
 0x21e   : > { %v1014_v17 = vpop.permute.xlu1 %1013  ;;  %1779 = vmatpush3.bf16.msra.mxu1 %v848_v7 }
 0x21f   : > { %v1012_v2 = vpop.permute.xlu0 %1011 }
 0x220   : > { %v1084_v26 = vsel %vm1049_vm8, %v1012_v2, %v1014_v17 }
 0x221   : > { %1300 = vmatprep.subr.bf16.mxu0 %v1084_v26  ;;  %1433 = vmatmul.mubr.bf16.vlgmr.msra.gmra.mrb[8].mxu1 %v2915_v16 }
 0x222   : > { %v992_v33 = vpop.permute.xlu1 %991  ;;  %1472 = vmatprep.mubr.bf16.mxu1 %v2984_v31 }
 0x223   : > { %v1076_v51 = vsel %vm1049_vm8, %v990_v30, %v992_v33  ;;  %v1010_v43 = vpop.permute.xlu0 %1009  ;;  %v1900_v33 = vld [vmem:[%s3136_s1 + $0x18] ss:$0 sps:$4 sm:$0xff]  }
 0x224   : > { %1786 = vmatprep.subr.bf16.mxu1 %v1076_v51  ;;  %v1083_v20 = vsel %vm1049_vm8, %v1010_v43, %v1012_v2  ;;  %v1953_v43 = vmov 0.0  }
 0x225   : > { %1301 = vmatpush1.bf16.msra.mxu0 %v1083_v20 }
 0x226   : > { %v1020_v58 = vpop.permute.xlu1 %1019 }
 0x227   : > { %v928_v40 = vpop.permute.xlu0 %927 }
 0x228   : > { %v1052_v32 = vsel %vm1049_vm8, %v2922_v48, %v928_v40 }
 0x229   : > { %1787 = vmatpush3.bf16.msra.mxu1 %v1052_v32 }
 0x22a   : > { %v1018_v59 = vpop.permute.xlu1 %1017 }
 0x22b   : > { %v1022_v5 = vpop.permute.xlu0 %1021  ;;  %v1086_v53 = vsel %vm1049_vm8, %v1018_v59, %v1020_v58 }
 0x22c   : > { %v1087_v16 = vsel %vm1049_vm8, %v1020_v58, %v1022_v5 }
 0x22d   : > { %1302 = vmatprep.subr.bf16.mxu0 %v1087_v16 }
 0x22e   : > { %v936_v23 = vpop.permute.xlu1 %935  ;;  %1303 = vmatpush1.bf16.msra.mxu0 %v1086_v53 }
 0x22f   : > { %v1000_v31 = vpop.permute.xlu0 %999  ;;  %v1055_v15 = vsel %vm1049_vm8, %v2943_v47, %v936_v23 }
 0x230   : > { %v1079_v50 = vsel %vm1049_vm8, %v998_v13, %v1000_v31 }
 0x231   : > { %1788 = vmatprep.subr.bf16.mxu1 %v1079_v50 }
 0x232   : > { %v1030_v21 = vpop.permute.xlu1 %1029  ;;  %1789 = vmatpush3.bf16.msra.mxu1 %v1055_v15 }
 0x233   : > { %v1028_v48 = vpop.permute.xlu0 %1027 }
 0x234   : > { %v1090_v19 = vsel %vm1049_vm8, %v1028_v48, %v1030_v21 }
 0x235   : > { %1304 = vmatprep.subr.bf16.mxu0 %v1090_v19 }
 0x236   : > { %v1008_v34 = vpop.permute.xlu1 %1007 }
 0x237   : > { %v1082_v22 = vsel %vm1049_vm8, %v1006_v38, %v1008_v34  ;;  %v1026_v27 = vpop.permute.xlu0 %1025  ;;  %v1520_v34 = vld [vmem:[%s3138_s3] sm:$0x7] }
 0x238   : > { %1790 = vmatprep.subr.bf16.mxu1 %v1082_v22  ;;  %v1089_v12 = vsel %vm1049_vm8, %v1026_v27, %v1028_v48 }
 0x239   : > { %1305 = vmatpush1.bf16.msra.mxu0 %v1089_v12 }
 0x23a   : > { %v1036_v28 = vpop.permute.xlu1 %1035 }
 0x23b   : > { %v944_v56 = vpop.permute.xlu0 %943 }
 0x23c   : > { %v1058_v47 = vsel %vm1049_vm8, %v2955_v63, %v944_v56 }
 0x23d   : > { %1791 = vmatpush3.bf16.msra.mxu1 %v1058_v47 }
 0x23e   : > { %v1034_v45 = vpop.permute.xlu1 %1033 }
 0x23f   : > { %v1038_v49 = vpop.permute.xlu0 %1037  ;;  %v1092_v30 = vsel %vm1049_vm8, %v1034_v45, %v1036_v28 }
 0x240   : > { %v1093_v62 = vsel %vm1049_vm8, %v1036_v28, %v1038_v49 }
 0x241   : > { %1306 = vmatprep.subr.bf16.mxu0 %v1093_v62 }
 0x242   : > { %v952_v42 = vpop.permute.xlu1 %951  ;;  %1307 = vmatpush1.bf16.msra.mxu0 %v1092_v30 }
 0x243   : > { %v1016_v8 = vpop.permute.xlu0 %1015  ;;  %v1061_v11 = vsel %vm1049_vm8, %v2964_v44, %v952_v42 }
 0x244   : > { %v1085_v36 = vsel %vm1049_vm8, %v1014_v17, %v1016_v8 }
 0x245   : > { %1792 = vmatprep.subr.bf16.mxu1 %v1085_v36 }
 0x246   : > { %v1046_v57 = vpop.permute.xlu1 %1045  ;;  %1793 = vmatpush3.bf16.msra.mxu1 %v1061_v11 }
 0x247   : > { %v1044_v63 = vpop.permute.xlu0 %1043 }
 0x248   : > { %v1096_v4 = vsel %vm1049_vm8, %v1044_v63, %v1046_v57 }
 0x249   : > { %1308 = vmatprep.subr.bf16.mxu0 %v1096_v4 }
 0x24a   : > { %v1024_v13 = vpop.permute.xlu1 %1023 }
 0x24b   : > { %v1088_v41 = vsel %vm1049_vm8, %v1022_v5, %v1024_v13  ;;  %v1042_v55 = vpop.permute.xlu0 %1041 }
 0x24c   : > { %1794 = vmatprep.subr.bf16.mxu1 %v1088_v41  ;;  %v1095_v3 = vsel %vm1049_vm8, %v1042_v55, %v1044_v63 }
 0x24d   : > { %1309 = vmatpush1.bf16.msra.mxu0 %v1095_v3  ;;  %v1230_v18 = vpop.f32.mrb[0].mxu1 }
 0x24e   : > { %v1032_v44 = vpop.permute.xlu1 %1031  ;;  %v3097_v10 = vpop.f32.mrb[1].mxu1 }
 0x24f   : > { %v960_v1 = vpop.permute.xlu0 %959  ;;  %v1091_v61 = vsel %vm1049_vm8, %v1030_v21, %v1032_v44  ;;  %v1234_v60 = vpop.f32.mrb[2].mxu1  ;;  %v1522_v21 = vlaneseq }
 0x250   : > { %v1064_v25 = vsel %vm1049_vm8, %v2996_v14, %v960_v1  ;;  %1311 = vmatmul.mubr.bf16.vlgmr.msra.gmra.mrb[0].mxu0 %v1730_v35  ;;  %v1235_v38 = vpop.f32.mrb[3].mxu1 }
 0x251   : > { %1795 = vmatpush3.bf16.msra.mxu1 %v1064_v25  ;;  %1351 = vmatprep.mubr.bf16.mxu0 %v1951_v39  ;;  %v1523_v48 = vshrl.u32 %v1522_v21, 7 }
 0x252   : > { %v1040_v24 = vpop.permute.xlu1 %1039  ;;  %1796 = vmatprep.subr.bf16.mxu1 %v1091_v61 }
 0x253   : > { %v968_v52 = vpop.permute.xlu0 %967  ;;  %v1094_v6 = vsel %vm1049_vm8, %v1038_v49, %v1040_v24  ;;  %v1524_v19 = vsub.s32 0, %v1523_v48  ;;  %v1528_v22 = vsub.s32 1, %v1523_v48  ;;  %v1532_v63 = vsub.s32 2, %v1523_v48 }
 0x254   : > { %v1067_v0 = vsel %vm1049_vm8, %v3013_v54, %v968_v52 }
 0x255   : > { %1797 = vmatpush3.bf16.msra.mxu1 %v1067_v0  ;;  %v1525_v12 = vrot.slane %v1520_v34, %v1524_v19  ;;  %v1529_v47 = vrot.slane %v1520_v34, %v1528_v22  ;;  %v1533_v1 = vrot.slane %v1520_v34, %v1532_v63 }
 0x256   : > { %v1149_v37 = vpop.permute.xlu1 %1148  ;;  %1798 = vmatprep.subr.bf16.mxu1 %v1094_v6 }
 0x257   : > { %v976_v7 = vpop.permute.xlu0 %975 }
 0x258   : > { %v1070_v14 = vsel %vm1049_vm8, %v3034_v29, %v976_v7 }
 0x259   : > { %1799 = vmatpush3.bf16.msra.mxu1 %v1070_v14 }
 0x25a   : > { %v1147_v46 = vpop.permute.xlu1 %1146 }
 0x25b   : > { %v1151_v17 = vpop.permute.xlu0 %1150  ;;  %v1153_v2 = vsel %vm1152_vm9, %v1147_v46, %v1149_v37 }
 0x25c   : > { %v1154_v39 = vsel %vm1152_vm9, %v1149_v37, %v1151_v17 }
 0x25d   : > { %1319 = vmatprep.subr.bf16.mxu0 %v1154_v39 }
 0x25e   : > { %v984_v26 = vpop.permute.xlu1 %983  ;;  %1320 = vmatpush1.bf16.msra.mxu0 %v1153_v2 }
 0x25f   : > { %v1048_v54 = vpop.permute.xlu0 %1047  ;;  %v1073_v51 = vsel %vm1049_vm8, %v3043_v9, %v984_v26  ;;  %1810 = vmatprep.subr.bf16.mxu0 %v1953_v43 }
 0x260   : > { %v1097_v29 = vsel %vm1049_vm8, %v1046_v57, %v1048_v54 }
 0x261   : > { %1733 = vmatmul.mubr.msk.bf16.vlgmr.msra.gmra.mrb[0].mxu0 %vm1192_vm10, %v1900_v33  ;;  %1800 = vmatprep.subr.bf16.mxu1 %v1097_v29 }
 0x262   : > { %1801 = vmatpush3.bf16.msra.mxu1 %v1073_v51  ;;  %1811 = vmatpush3.bf16.msra.mxu0 %v1151_v17 }
 0x263   : > { %1812 = vmatprep.mubr.msk.bf16.mxu0 %vm1954_vm11, %v1953_v43 }
 0x265   : > { %1473 = vmatmul.mubr.bf16.vlgmr.msra.gmra.mrb[12].mxu1 %v1730_v35 }
 0x269   : > { %1813 = vmatmul.mubr.msk.bf16.vlgmr.msra.gmra.mrb[4].mxu0 %vm1192_vm10, %v1900_v33 }
 0x26d   : > { %v1758_v20 = vpop.f32.mrb[4].mxu1 }
 0x26e   : > { %v1759_v58 = vpop.f32.mrb[5].mxu1 }
 0x26f   : > { %v1760_v40 = vadd.f32 %v1759_v58, %v1758_v20  ;;  %v1761_v32 = vpop.f32.mrb[6].mxu1 }
 0x270   : > { %v1762_v59 = vpop.f32.mrb[7].mxu1  ;;  %v1166_v5 = vpop.permute.xlu0 %1165 }
 0x271   : > { %v1395_v9 = vadd.f32 %v1760_v40, %v1166_v5  ;;  %v1231_v27 = vadd.f32 %v1230_v18, %v1166_v5  ;;  %v1233_v56 = vadd.f32 %v3097_v10, %v1166_v5 }
 0x2f4   : > { %v1780_v53 = vpop.f32.mrb[8].mxu1 }
 0x2f5   : > { %v1781_v16 = vpop.f32.mrb[9].mxu1 }
 0x2f6   : > { %v1782_v23 = vadd.f32 %v1781_v16, %v1780_v53  ;;  %v1783_v31 = vpop.f32.mrb[10].mxu1 }
 0x2f7   : > { %v1784_v15 = vpop.f32.mrb[11].mxu1 }
 0x2f8   : > { %v1435_v50 = vadd.f32 %v1782_v23, %v1395_v9 }
 0x334   : > { %v1353_v28 = vpop.f32.mrb[0].mxu0 }
 0x335   : > { %v1817_v45 = vadd.f32 %v1353_v28, %v1231_v27  ;;  %v1355_v49 = vpop.f32.mrb[1].mxu0 }
 0x336   : > { %v1819_v30 = vadd.f32 %v1355_v49, %v1233_v56  ;;  %v1357_v62 = vpop.f32.mrb[2].mxu0 }
 0x337   : > { %v1537_v42 = vmul.f32 %v1817_v45, %v1525_v12  ;;  %v1358_v8 = vpop.f32.mrb[3].mxu0 }
 0x338   : > { %v1538_v11 = vmul.f32 %v1819_v30, %v1529_v47  ;;  %v1740_v36 = vpack.c.bf16 %v1819_v30, %v1817_v45  ;;  %v1802_v57 = vpop.f32.mrb[12].mxu1 }
 0x339   : > { %v1546_v4 = vmul.f32 %v1817_v45, %v1537_v42  ;;  %v1803_v13 = vpop.f32.mrb[13].mxu1 }
 0x33a   : > { %v1547_v41 = vmul.f32 %v1819_v30, %v1538_v11  ;;  %1571 = vst [vmem:[%s277_s26] sm:$0xff] %v1740_v36  ;;  %v1804_v55 = vadd.f32 %v1803_v13, %v1802_v57  ;;  %v1805_v3 = vpop.f32.mrb[14].mxu1  ;;  %v1540_v35 = vadd.f32 %v1538_v11, %v1537_v42 }
 0x33b   : > { %v1806_v44 = vpop.f32.mrb[15].mxu1 }
 0x33c   : > { %v1475_v18 = vadd.f32 %v1804_v55, %v1435_v50  ;;  %v1514_v10 = vpop.f32.mrb[4].mxu0  ;;  %v1549_v61 = vadd.f32 %v1547_v41, %v1546_v4 }
 0x33d   : > { %v1814_v60 = vpop.f32.mrb[5].mxu0 }
 0x33e   : > { %v1515_v25 = vadd.f32 %v1514_v10, %v1475_v18  ;;  %v1517_v38 = vpop.f32.mrb[6].mxu0 }
 0x33f   : > { %v1815_v24 = vpop.f32.mrb[7].mxu0 }
 0x340   : > { %v1539_v52 = vmul.f32 %v1533_v1, %v1515_v25  ;;  %v1741_v6 = vpack.c.bf16 %v1515_v25, %v1515_v25 }
 0x342   : > { %v1548_v0 = vmul.f32 %v1539_v52, %v1515_v25  ;;  %1573 = vst.msk [vmem:[%s277_s26 + $0x8] sm:$0xf] %vm1572_vm12, %v1741_v6  ;;  %v1542_v37 = vsel %vm1541_vm13, %v1539_v52, 0.0 }
 0x343   : > { %v1543_v7 = vadd.f32 %v1542_v37, %v1540_v35 }
 0x344   : > { %v1550_v14 = vsel %vm1541_vm13, %v1548_v0, 0.0 }
 0x345   : > { %1544 = vadd.xlane.f32.xlu1 %v1543_v7  ;;  %v1551_v46 = vadd.f32 %v1550_v14, %v1549_v61 }
 0x347   : > { %1552 = vadd.xlane.f32.xlu0 %v1551_v46 }
 0x3d2   : > { %v1545_v17 = vpop.xlane.xlu1 %1544 }
 0x3d4   : > { %v1553_v2 = vpop.xlane.xlu0 %1552 }
 0x3d5   : > { %v1555_v39 = vsel %vm1554_vm14, %v1545_v17, %v1553_v2 }
 0x3d6   : > { %1557 = vst.msk [vmem:[%s285_s30] sm:$0xff] %vm1556_vm15, %v1555_v39 }
 0x3d7 PF: > { %s16_s20 = sadd.s32 1, %s1924_s20   ;;  %s3207_s18 = smov %s1920_s19 }
 0x3d8   : > { %p13_p5 = scmp.ge.s32.totalorder %s16_s20, 4   ;;  %s3208_s19 = smov %s3210_s21 }
 0x3da   :  { %15 = sbr.rel (!%p13_p5) target bundleno = 2 (0x2), region = 81 }

// kernel: tile.48
= control target key start
LH: loop header
LB: loop body
LE: loop exit
PB: predicated region body
PF: predicated region fallthrough
CT: control target
= control target key end

     0   :  { %s22_s0 = inlined_call_operand.vmem [shape: f32[9], index: 0, kind: input, shape index: {}]   ;;  %s23_s1 = inlined_call_operand.vmem [shape: f32[8,9], index: 1, kind: output, shape index: {}]  }
   0x1   :  { %v4_v0 = vld [vmem:[%s22_s0] ss:$0 sm:$0xff] }
   0x2   :  { %5 = vst [vmem:[%s23_s1] sm:$0xff] %v4_v0 }

// kernel: tile.49
= control target key start
LH: loop header
LB: loop body
LE: loop exit
PB: predicated region body
PF: predicated region fallthrough
CT: control target
= control target key end

     0   :  { %s67_s10 = smov 63   ;;  %s68_s11 = smov 45   ;;  %vm3_vm0 = vcmask 72704   ;;  %vm9_vm1 = vcmask 589304   ;;  %vm15_vm2 = vcmask 515504   ;;  %vm21_vm3 = vcmask 441704   ;;  %s111_s0 = inlined_call_operand.vmem [shape: f32[8,9], index: 0, kind: input, shape index: {}]   ;;  %s112_s1 = inlined_call_operand.vmem [shape: f32[1,72], index: 1, kind: output, shape index: {}]  }
   0x1   :  { %v53_v0 = vld [vmem:[%s111_s0 + $0x7] sm:$0x1]   ;;  %v55_v1 = vld [vmem:[%s111_s0 + $0x5] sm:$0x1]   ;;  %v54_v2 = vld [vmem:[%s111_s0 + $0x6] sm:$0x1]  }
   0x2   :  { %7 = vrot.lane.b32.xlu0 %v53_v0, %s67_s10  ;;  %19 = vrot.lane.b32.xlu1 %v55_v1, %s68_s11  ;;  %v56_v3 = vld [vmem:[%s111_s0 + $0x4] sm:$0x1]   ;;  %v2_v4 = vld [vmem:[%s111_s0] sm:$0x1]   ;;  %s69_s18 = smov 54   ;;  %s70_s19 = smov 36  }
   0x3   :  { %4 = vst.msk [vmem:[#allocation0] sm:$0x1] %vm3_vm0, %v2_v4   ;;  %v57_v5 = vld [vmem:[%s111_s0 + $0x3] sm:$0x1]   ;;  %v58_v6 = vld [vmem:[%s111_s0 + $0x2] sm:$0x1]  }
   0x4   :  { %s71_s24 = smov 27   ;;  %s72_s25 = smov 18   ;;  %v59_v7 = vld [vmem:[%s111_s0 + $0x1] sm:$0x1]   ;;  %vm27_vm4 = vcmask 367904   ;;  %vm33_vm5 = vcmask 294104  }
   0x5   :  { %s73_s0 = smov 9   ;;  %vm39_vm6 = vcmask 220304   ;;  %vm45_vm7 = vcmask 146504  }
   0x6   :  { %13 = vrot.lane.b32.xlu0 %v54_v2, %s69_s18  ;;  %25 = vrot.lane.b32.xlu1 %v56_v3, %s70_s19 }
   0xa   :  { %31 = vrot.lane.b32.xlu0 %v57_v5, %s71_s24  ;;  %37 = vrot.lane.b32.xlu1 %v58_v6, %s72_s25 }
   0xe   :  { %43 = vrot.lane.b32.xlu0 %v59_v7, %s73_s0 }
  0x74   :  { %v8_v8 = vpop.permute.xlu0 %7   ;;  %v20_v9 = vpop.permute.xlu1 %19  }
  0x75   :  { %10 = vst.msk [vmem:[#allocation0] sm:$0x1] %vm9_vm1, %v8_v8  }
  0x78   :  { %v14_v10 = vpop.permute.xlu0 %13   ;;  %v26_v11 = vpop.permute.xlu1 %25  }
  0x79   :  { %16 = vst.msk [vmem:[#allocation0] sm:$0x1] %vm15_vm2, %v14_v10  }
  0x7a   :  { %22 = vst.msk [vmem:[#allocation0] sm:$0x1] %vm21_vm3, %v20_v9  }
  0x7b   :  { %28 = vst.msk [vmem:[#allocation0] sm:$0x1] %vm27_vm4, %v26_v11  }
  0x7c   :  { %v32_v12 = vpop.permute.xlu0 %31   ;;  %v38_v13 = vpop.permute.xlu1 %37  }
  0x7d   :  { %34 = vst.msk [vmem:[#allocation0] sm:$0x1] %vm33_vm5, %v32_v12  }
  0x7e   :  { %40 = vst.msk [vmem:[#allocation0] sm:$0x1] %vm39_vm6, %v38_v13  }
  0x80   :  { %v44_v14 = vpop.permute.xlu0 %43  }
  0x81   :  { %46 = vst.msk [vmem:[#allocation0] sm:$0x1] %vm45_vm7, %v44_v14  }
  0x88   :  { %v50_v15 = vld [vmem:[#allocation0] sm:$0x1] }
  0x89   :  { %52 = vst [vmem:[%s112_s1] sm:$0x1] %v50_v15 }

// kernel: encoder_forward.8
= control target key start
LH: loop header
LB: loop body
LE: loop exit
PB: predicated region body
PF: predicated region fallthrough
CT: control target
= control target key end

     0   :  { %s711_s18 = smov 0   ;;  %s713_s19 = smov 0   ;;  %s771_s0 = inlined_call_operand.vmem [shape: bf16[2,32,90], index: 0, kind: input, shape index: {}]   ;;  %s772_s1 = inlined_call_operand.vmem [shape: bf16[16,128], index: 1, kind: input, shape index: {}]   ;;  %s773_s2 = inlined_call_operand.vmem [shape: f32[16,1], index: 2, kind: input, shape index: {}]   ;;  %s774_s3 = inlined_call_operand.vmem [shape: f32[1,72], index: 3, kind: input, shape index: {}]   ;;  %s775_s4 = inlined_call_operand.vmem [shape: bf16[2,16,72], index: 4, kind: output, shape index: {0}]   ;;  %s776_s5 = inlined_call_operand.vmem [shape: f32[2,1,16,2], index: 5, kind: output, shape index: {1}]  }
   0x1   :  { %s715_s20 = smov 0  }
   0x2 LB: > { %s28_s21 = sadd.s32 1, %s669_s19  ;;  %p567_p0 = scmp.ge.s32.totalorder %s673_s20, 1  ;;  %s673_s20 = sphi %s715_s20, %s16_s20   ;;  %s669_s19 = sphi %s713_s19, %s778_s19   ;;  %s665_s18 = sphi %s711_s18, %s777_s18  }
   0x3   : > { %p30_p1 = scmp.ge.s32.totalorder %s28_s21, 2  ;;  %p214_p2 = scmp.lt.s32.totalorder %s673_s20, 3 }
   0x5   : > { %s780_s21 = smov (%p30_p1, %s28_s21), 0  ;;  %p215_p3 = pnand %p567_p0, %p214_p2 }
   0x6   : > { %p257_p4 = scmp.lt.s32.totalorder (!%p215_p3), %s665_s18, 1  ;;  %v675_v0 = vmov (!%p215_p3), 0.0   ;;  %s676_s26 = smov (!%p215_p3), 127   ;;  %vm679_vm0 = vmmov (!%p215_p3), 0   ;;  %v319_v3 = vld [vmem:[%s773_s2] sm:$0xff] (!%p215_p3)  ;;  %v320_v4 = vld [vmem:[%s773_s2 + $0x8] sm:$0xff] (!%p215_p3) }
   0x7   : > { %218 = sbr.rel (%p215_p3) target bundleno = 523 (0x20b), region = 36  ;;  %596 = vmatprep.subr.bf16.mxu0 (!%p215_p3), %v675_v0  ;;  %s677_s27 = smov (!%p215_p3), 119   ;;  %612 = vmatprep.mubr.msk.bf16.mxu0 (!%p215_p3), %vm679_vm0, %v675_v0  ;;  %v680_v5 = vmov (!%p215_p3), 0   ;;  %v650_v12 = vld [vmem:[%s772_s1] sm:$0xff] (!%p215_p3)   ;;  %vm416_vm1 = vcmask (!%p215_p3), 584704   ;;  %vm387_vm2 = vcmask (!%p215_p3), 588800  }
   0x8   : > { %s678_s28 = smov (!%p215_p3), 118   ;;  %646 = vset.pattern.permute.xlu0 (!%p215_p3), %v680_v5  ;;  %647 = vset.pattern.permute.xlu1 (!%p215_p3), %v680_v5  ;;  %v577_v16 = vld [vmem:[%s774_s3] ss:$0 sm:$0xff] (!%p215_p3)  ;;  %vm402_vm3 = vcmask (!%p215_p3), 7168   ;;  %vm405_vm4 = vcmask (!%p215_p3), 15360  }
   0xe   : > { %s782_s18 = smov (!%p257_p4, %s665_s18), 1 }
   0xf   : > { %s582_s22 = sshll.u32 %s782_s18, 4  ;;  %s583_s10 = sshll.u32 %s782_s18, 3 }
  0x10   : > { %s261_s25 = scalar_lea.vmem %s771_s0, %s582_s22  ;;  %s272_s15 = scalar_lea.vmem %s775_s4, %s583_s10 }
  0x11   : > { %v648_v1 = vld [vmem:[%s261_s25] sm:$0xff]   ;;  %v649_v2 = vld [vmem:[%s261_s25 + $0x8] sm:$0xff]   ;;  %s281_s23 = scalar_lea.vmem %s776_s5, %s582_s22 }
  0x12   : > { %299 = vrot.lane.b32.xlu0 %v648_v1, %s676_s26  ;;  %305 = vrot.lane.b32.xlu1 %v648_v1, %s677_s27 }
  0x13   : > { %597 = vmatpush3.bf16.msra.mxu0 %v648_v1 }
  0x14   : > { %598 = vmatprep.subr.bf16.mxu0 %v675_v0 }
  0x16   : > { %301 = vrot.lane.b32.xlu0 %v649_v2, %s676_s26  ;;  %307 = vrot.lane.b32.xlu1 %v649_v2, %s677_s27 }
  0x17   : > { %599 = vmatpush3.bf16.msra.mxu0 %v649_v2 }
  0x18   : > { %600 = vmatprep.subr.bf16.mxu0 %v675_v0 }
  0x1a   : > { %311 = vrot.lane.b32.xlu0 %v648_v1, %s678_s28  ;;  %313 = vrot.lane.b32.xlu1 %v649_v2, %s678_s28 }
  0x1e   : > { %323 = vperm.xlu0 %646, %v319_v3   ;;  %328 = vperm.xlu1 %647, %v320_v4  }
  0x84   : > { %v300_v6 = vpop.permute.xlu0 %299  ;;  %v306_v8 = vpop.permute.xlu1 %305 }
  0x85   : > { %601 = vmatpush3.bf16.msra.mxu0 %v300_v6 }
  0x86   : > { %602 = vmatprep.subr.bf16.mxu0 %v675_v0 }
  0x88   : > { %v302_v7 = vpop.permute.xlu0 %301  ;;  %v308_v9 = vpop.permute.xlu1 %307 }
  0x89   : > { %603 = vmatpush3.bf16.msra.mxu0 %v302_v7 }
  0x8a   : > { %604 = vmatprep.subr.bf16.mxu0 %v675_v0 }
  0x8c   : > { %v312_v10 = vpop.permute.xlu0 %311  ;;  %v314_v11 = vpop.permute.xlu1 %313 }
  0x8d   : > { %605 = vmatpush3.bf16.msra.mxu0 %v306_v8 }
  0x8e   : > { %606 = vmatprep.subr.bf16.mxu0 %v675_v0 }
  0x91   : > { %607 = vmatpush3.bf16.msra.mxu0 %v308_v9 }
  0x92   : > { %608 = vmatprep.subr.bf16.mxu0 %v675_v0 }
  0x95   : > { %609 = vmatpush3.bf16.msra.mxu0 %v312_v10 }
  0x96   : > { %610 = vmatprep.subr.bf16.mxu0 %v675_v0 }
  0x99   : > { %611 = vmatpush3.bf16.msra.mxu0 %v314_v11 }
  0x9c   : > { %613 = vmatmul.mubr.bf16.vlgmr.msra.gmra.mrb[0].mxu0 %v650_v12 }
  0x9d   : > { %v324_v13 = vpop.permute.xlu0 %323  ;;  %v329_v15 = vpop.permute.xlu1 %328 }
 0x16f   : > { %v371_v14 = vpop.f32.mrb[0].mxu0 }
 0x170   : > { %v372_v17 = vadd.f32 %v371_v14, %v324_v13  ;;  %v614_v18 = vpop.f32.mrb[1].mxu0 }
 0x171   : > { %v374_v19 = vpop.f32.mrb[2].mxu0 }
 0x172   : > { %v585_v20 = vpack.c.bf16 %v372_v17, %v372_v17  ;;  %v375_v21 = vadd.f32 %v374_v19, %v329_v15  ;;  %v615_v22 = vpop.f32.mrb[3].mxu0  ;;  %v385_v23 = vmul.f32 %v577_v16, %v372_v17 }
 0x174   : > { %417 = vst.msk [vmem:[%s272_s15] sm:$0xf] %vm416_vm1, %v585_v20  ;;  %v586_v24 = vpack.c.bf16 %v375_v21, %v375_v21  ;;  %v388_v25 = vsel %vm387_vm2, %v385_v23, 0.0  ;;  %v386_v26 = vmul.f32 %v577_v16, %v375_v21  ;;  %v394_v29 = vmul.f32 %v385_v23, %v372_v17 }
 0x175   : > { %389 = vadd.xlane.f32.xlu1 %v388_v25 }
 0x176   : > { %418 = vst.msk [vmem:[%s272_s15 + $0x4] sm:$0xf] %vm416_vm1, %v586_v24  ;;  %v391_v27 = vsel %vm387_vm2, %v386_v26, 0.0  ;;  %v395_v28 = vmul.f32 %v386_v26, %v375_v21  ;;  %v396_v31 = vsel %vm387_vm2, %v394_v29, 0.0 }
 0x177   : > { %392 = vadd.xlane.f32.xlu0 %v391_v27 }
 0x178   : > { %v399_v30 = vsel %vm387_vm2, %v395_v28, 0.0 }
 0x179   : > { %400 = vadd.xlane.f32.xlu1 %v399_v30 }
 0x17b   : > { %397 = vadd.xlane.f32.xlu0 %v396_v31 }
 0x202   : > { %v390_v32 = vpop.xlane.xlu1 %389 }
 0x204   : > { %v393_v33 = vpop.xlane.xlu0 %392 }
 0x206   : > { %v401_v34 = vpop.xlane.xlu1 %400 }
 0x207   : > { %v404_v35 = vsel %vm402_vm3, %v393_v33, %v401_v34 }
 0x208   : > { %407 = vst.msk [vmem:[%s281_s23 + $0x8] sm:$0xff] %vm405_vm4, %v404_v35  ;;  %v398_v36 = vpop.xlane.xlu0 %397 }
 0x209   : > { %v403_v37 = vsel %vm402_vm3, %v390_v32, %v398_v36 }
 0x20a   : > { %406 = vst.msk [vmem:[%s281_s23] sm:$0xff] %vm405_vm4, %v403_v37 }
 0x20b PF: > { %s16_s20 = sadd.s32 1, %s673_s20   ;;  %s777_s18 = smov %s669_s19 }
 0x20c   : > { %p13_p5 = scmp.ge.s32.totalorder %s16_s20, 4   ;;  %s778_s19 = smov %s780_s21 }
 0x20e   :  { %15 = sbr.rel (!%p13_p5) target bundleno = 2 (0x2), region = 81 }

// kernel: tile.53
= control target key start
LH: loop header
LB: loop body
LE: loop exit
PB: predicated region body
PF: predicated region fallthrough
CT: control target
= control target key end

     0   :  { %s22_s0 = inlined_call_operand.vmem [shape: f32[5], index: 0, kind: input, shape index: {}]   ;;  %s23_s1 = inlined_call_operand.vmem [shape: f32[4,5], index: 1, kind: output, shape index: {}]  }
   0x1   :  { %v4_v0 = vld [vmem:[%s22_s0] ss:$0 sm:$0xff] }
   0x2   :  { %5 = vst [vmem:[%s23_s1] sm:$0xf] %v4_v0 }

// kernel: tile.54
= control target key start
LH: loop header
LB: loop body
LE: loop exit
PB: predicated region body
PF: predicated region fallthrough
CT: control target
= control target key end

     0   :  { %vm7_vm0 = vcmask 39936   ;;  %s37_s8 = smov 5   ;;  %s38_s9 = smov 10   ;;  %vm13_vm1 = vcmask 162936   ;;  %vm19_vm2 = vcmask 121936   ;;  %vm25_vm3 = vcmask 80936   ;;  %s55_s0 = inlined_call_operand.vmem [shape: f32[4,5], index: 0, kind: input, shape index: {}]   ;;  %s56_s1 = inlined_call_operand.vmem [shape: f32[1,20], index: 1, kind: output, shape index: {}]  }
   0x1   :  { %v4_v0 = vld [vmem:[%s55_s0] sm:$0xf]  ;;  %s36_s0 = smov 15  }
   0x2   :  { %5 = vst [vmem:[#allocation1] sm:$0xf] %v4_v0 }
   0x9   :  { %v10_v1 = vld [vmem:[#allocation1 + $0x3] sm:$0x1]   ;;  %v22_v2 = vld [vmem:[#allocation1 + $0x1] sm:$0x1]   ;;  %v6_v3 = vld [vmem:[#allocation1] sm:$0x1]  }
   0xa   :  { %11 = vrot.lane.b32.xlu0 %v10_v1, %s36_s0  ;;  %23 = vrot.lane.b32.xlu1 %v22_v2, %s37_s8  ;;  %v16_v4 = vld [vmem:[#allocation1 + $0x2] sm:$0x1]   ;;  %8 = vst.msk [vmem:[#allocation0] sm:$0x1] %vm7_vm0, %v6_v3  }
   0xe   :  { %17 = vrot.lane.b32.xlu0 %v16_v4, %s38_s9 }
  0x7c   :  { %v12_v5 = vpop.permute.xlu0 %11   ;;  %v24_v6 = vpop.permute.xlu1 %23  }
  0x7d   :  { %14 = vst.msk [vmem:[#allocation0] sm:$0x1] %vm13_vm1, %v12_v5  }
  0x80   :  { %v18_v7 = vpop.permute.xlu0 %17  }
  0x81   :  { %20 = vst.msk [vmem:[#allocation0] sm:$0x1] %vm19_vm2, %v18_v7  }
  0x82   :  { %26 = vst.msk [vmem:[#allocation0] sm:$0x1] %vm25_vm3, %v24_v6  }
  0x89   :  { %v30_v8 = vld [vmem:[#allocation0] sm:$0x1] }
  0x8a   :  { %32 = vst [vmem:[%s56_s1] sm:$0x1] %v30_v8 }

// kernel: tile.58
= control target key start
LH: loop header
LB: loop body
LE: loop exit
PB: predicated region body
PF: predicated region fallthrough
CT: control target
= control target key end

     0   :  { %s22_s0 = inlined_call_operand.vmem [shape: f32[16], index: 0, kind: input, shape index: {}]   ;;  %s23_s1 = inlined_call_operand.vmem [shape: f32[4,16], index: 1, kind: output, shape index: {}]  }
   0x1   :  { %v4_v0 = vld [vmem:[%s22_s0] ss:$0 sm:$0xff] }
   0x2   :  { %5 = vst [vmem:[%s23_s1] sm:$0xf] %v4_v0 }

// kernel: tile.0
= control target key start
LH: loop header
LB: loop body
LE: loop exit
PB: predicated region body
PF: predicated region fallthrough
CT: control target
= control target key end

     0   :  { %s176_s8 = smov 125   ;;  %s177_s9 = smov 126   ;;  %vm7_vm0 = vcmask 7168   ;;  %s331_s0 = inlined_call_operand.vmem [shape: f32[4,16], index: 0, kind: input, shape index: {}]   ;;  %s332_s1 = inlined_call_operand.vmem [shape: f32[64,1], index: 1, kind: output, shape index: {}]  }
   0x1   :  { %v4_v0 = vld [vmem:[%s331_s0] sm:$0xf]  ;;  %s175_s0 = smov 127   ;;  %s178_s10 = smov 124  }
   0x2   :  { %5 = vst [vmem:[#allocation0] sm:$0xf] %v4_v0  ;;  %s179_s11 = smov 123   ;;  %s180_s12 = smov 122  }
   0x3   :  { %s181_s13 = smov 121   ;;  %s182_s14 = smov 120  }
   0x4   :  { %s183_s19 = smov 119   ;;  %s184_s20 = smov 118  }
   0x5   :  { %s185_s21 = smov 117   ;;  %s186_s22 = smov 116  }
   0x6   :  { %s187_s23 = smov 115   ;;  %s188_s24 = smov 114  }
   0x7   :  { %s189_s25 = smov 113  }
   0x9   :  { %v10_v1 = vld [vmem:[#allocation0] sm:$0xf]  }
   0xa   :  { %v26_v2 = vld [vmem:[#allocation0] sm:$0xf]   ;;  %11 = vrot.lane.b32.xlu0 %v10_v1, %s175_s0 }
   0xb   :  { %27 = vrot.lane.b32.xlu1 %v26_v2, %s176_s8  ;;  %v18_v3 = vld [vmem:[#allocation0] sm:$0xf]  }
   0xc   :  { %v34_v4 = vld [vmem:[#allocation0] sm:$0xf]  }
   0xd   :  { %v42_v5 = vld [vmem:[#allocation0] sm:$0xf]  }
   0xe   :  { %19 = vrot.lane.b32.xlu0 %v18_v3, %s177_s9  ;;  %v50_v6 = vld [vmem:[#allocation0] sm:$0xf]  }
   0xf   :  { %35 = vrot.lane.b32.xlu1 %v34_v4, %s178_s10  ;;  %v58_v7 = vld [vmem:[#allocation0] sm:$0xf]  }
  0x10   :  { %v66_v8 = vld [vmem:[#allocation0] sm:$0xf]  }
  0x11   :  { %v74_v9 = vld [vmem:[#allocation0] sm:$0xf]  }
  0x12   :  { %43 = vrot.lane.b32.xlu0 %v42_v5, %s179_s11  ;;  %v82_v10 = vld [vmem:[#allocation0] sm:$0xf]  }
  0x13   :  { %51 = vrot.lane.b32.xlu1 %v50_v6, %s180_s12  ;;  %v6_v11 = vld [vmem:[#allocation0] sm:$0xf]  }
  0x14   :  { %8 = vst.msk [vmem:[%s332_s1] ss:$16 sm:$0x3] %vm7_vm0, %v6_v11   ;;  %9 = vst.msk [vmem:[%s332_s1] ss:$16 sm:$0xc] %vm7_vm0, %v6_v11  }
  0x15   :  { %v90_v12 = vld [vmem:[#allocation0] sm:$0xf]  }
  0x16   :  { %59 = vrot.lane.b32.xlu0 %v58_v7, %s181_s13  ;;  %v98_v13 = vld [vmem:[#allocation0] sm:$0xf]  }
  0x17   :  { %67 = vrot.lane.b32.xlu1 %v66_v8, %s182_s14  ;;  %v106_v14 = vld [vmem:[#allocation0] sm:$0xf]  }
  0x18   :  { %v114_v15 = vld [vmem:[#allocation0] sm:$0xf]  }
  0x19   :  { %v122_v16 = vld [vmem:[#allocation0] sm:$0xf]  }
  0x1a   :  { %75 = vrot.lane.b32.xlu0 %v74_v9, %s183_s19 }
  0x1b   :  { %83 = vrot.lane.b32.xlu1 %v82_v10, %s184_s20 }
  0x1e   :  { %91 = vrot.lane.b32.xlu0 %v90_v12, %s185_s21 }
  0x1f   :  { %99 = vrot.lane.b32.xlu1 %v98_v13, %s186_s22 }
  0x22   :  { %107 = vrot.lane.b32.xlu0 %v106_v14, %s187_s23 }
  0x23   :  { %115 = vrot.lane.b32.xlu1 %v114_v15, %s188_s24 }
  0x26   :  { %123 = vrot.lane.b32.xlu0 %v122_v16, %s189_s25 }
  0x7c   :  { %v12_v17 = vpop.permute.xlu0 %11  }
  0x7d   :  { %v28_v18 = vpop.permute.xlu1 %27   ;;  %130 = vst.msk [vmem:[%s332_s1 + $0x1] ss:$16 sm:$0x3] %vm7_vm0, %v12_v17   ;;  %131 = vst.msk [vmem:[%s332_s1 + $0x1] ss:$16 sm:$0xc] %vm7_vm0, %v12_v17  }
  0x7e   :  { %134 = vst.msk [vmem:[%s332_s1 + $0x3] ss:$16 sm:$0x3] %vm7_vm0, %v28_v18   ;;  %135 = vst.msk [vmem:[%s332_s1 + $0x3] ss:$16 sm:$0xc] %vm7_vm0, %v28_v18  }
  0x80   :  { %v20_v19 = vpop.permute.xlu0 %19  }
  0x81   :  { %v36_v20 = vpop.permute.xlu1 %35   ;;  %132 = vst.msk [vmem:[%s332_s1 + $0x2] ss:$16 sm:$0x3] %vm7_vm0, %v20_v19   ;;  %133 = vst.msk [vmem:[%s332_s1 + $0x2] ss:$16 sm:$0xc] %vm7_vm0, %v20_v19  }
  0x82   :  { %136 = vst.msk [vmem:[%s332_s1 + $0x4] ss:$16 sm:$0x3] %vm7_vm0, %v36_v20   ;;  %137 = vst.msk [vmem:[%s332_s1 + $0x4] ss:$16 sm:$0xc] %vm7_vm0, %v36_v20  }
  0x84   :  { %v44_v21 = vpop.permute.xlu0 %43  }
  0x85   :  { %v52_v22 = vpop.permute.xlu1 %51   ;;  %138 = vst.msk [vmem:[%s332_s1 + $0x5] ss:$16 sm:$0x3] %vm7_vm0, %v44_v21   ;;  %139 = vst.msk [vmem:[%s332_s1 + $0x5] ss:$16 sm:$0xc] %vm7_vm0, %v44_v21  }
  0x86   :  { %140 = vst.msk [vmem:[%s332_s1 + $0x6] ss:$16 sm:$0x3] %vm7_vm0, %v52_v22   ;;  %141 = vst.msk [vmem:[%s332_s1 + $0x6] ss:$16 sm:$0xc] %vm7_vm0, %v52_v22  }
  0x88   :  { %v60_v23 = vpop.permute.xlu0 %59  }
  0x89   :  { %v68_v24 = vpop.permute.xlu1 %67   ;;  %142 = vst.msk [vmem:[%s332_s1 + $0x7] ss:$16 sm:$0x3] %vm7_vm0, %v60_v23   ;;  %143 = vst.msk [vmem:[%s332_s1 + $0x7] ss:$16 sm:$0xc] %vm7_vm0, %v60_v23  }
  0x8a   :  { %144 = vst.msk [vmem:[%s332_s1 + $0x8] ss:$16 sm:$0x3] %vm7_vm0, %v68_v24   ;;  %145 = vst.msk [vmem:[%s332_s1 + $0x8] ss:$16 sm:$0xc] %vm7_vm0, %v68_v24  }
  0x8c   :  { %v76_v25 = vpop.permute.xlu0 %75  }
  0x8d   :  { %v84_v26 = vpop.permute.xlu1 %83   ;;  %146 = vst.msk [vmem:[%s332_s1 + $0x9] ss:$16 sm:$0x3] %vm7_vm0, %v76_v25   ;;  %147 = vst.msk [vmem:[%s332_s1 + $0x9] ss:$16 sm:$0xc] %vm7_vm0, %v76_v25  }
  0x8e   :  { %148 = vst.msk [vmem:[%s332_s1 + $0xa] ss:$16 sm:$0x3] %vm7_vm0, %v84_v26   ;;  %149 = vst.msk [vmem:[%s332_s1 + $0xa] ss:$16 sm:$0xc] %vm7_vm0, %v84_v26  }
  0x90   :  { %v92_v27 = vpop.permute.xlu0 %91  }
  0x91   :  { %v100_v28 = vpop.permute.xlu1 %99   ;;  %150 = vst.msk [vmem:[%s332_s1 + $0xb] ss:$16 sm:$0x3] %vm7_vm0, %v92_v27   ;;  %151 = vst.msk [vmem:[%s332_s1 + $0xb] ss:$16 sm:$0xc] %vm7_vm0, %v92_v27  }
  0x92   :  { %152 = vst.msk [vmem:[%s332_s1 + $0xc] ss:$16 sm:$0x3] %vm7_vm0, %v100_v28   ;;  %153 = vst.msk [vmem:[%s332_s1 + $0xc] ss:$16 sm:$0xc] %vm7_vm0, %v100_v28  }
  0x94   :  { %v108_v29 = vpop.permute.xlu0 %107  }
  0x95   :  { %v116_v30 = vpop.permute.xlu1 %115   ;;  %154 = vst.msk [vmem:[%s332_s1 + $0xd] ss:$16 sm:$0x3] %vm7_vm0, %v108_v29   ;;  %155 = vst.msk [vmem:[%s332_s1 + $0xd] ss:$16 sm:$0xc] %vm7_vm0, %v108_v29  }
  0x96   :  { %156 = vst.msk [vmem:[%s332_s1 + $0xe] ss:$16 sm:$0x3] %vm7_vm0, %v116_v30   ;;  %157 = vst.msk [vmem:[%s332_s1 + $0xe] ss:$16 sm:$0xc] %vm7_vm0, %v116_v30  }
  0x98   :  { %v124_v31 = vpop.permute.xlu0 %123  }
  0x99   :  { %158 = vst.msk [vmem:[%s332_s1 + $0xf] ss:$16 sm:$0x3] %vm7_vm0, %v124_v31   ;;  %159 = vst.msk [vmem:[%s332_s1 + $0xf] ss:$16 sm:$0xc] %vm7_vm0, %v124_v31  }

// kernel: encoder_forward.9
= control target key start
LH: loop header
LB: loop body
LE: loop exit
PB: predicated region body
PF: predicated region fallthrough
CT: control target
= control target key end

     0   :  { %s838_s18 = smov 0   ;;  %s840_s19 = smov 0   ;;  %s921_s0 = inlined_call_operand.vmem [shape: bf16[2,64,30], index: 0, kind: input, shape index: {}]   ;;  %s922_s1 = inlined_call_operand.vmem [shape: bf16[32,256], index: 1, kind: input, shape index: {}]   ;;  %s923_s2 = inlined_call_operand.vmem [shape: f32[32,1], index: 2, kind: input, shape index: {}]   ;;  %s924_s3 = inlined_call_operand.vmem [shape: f32[1,20], index: 3, kind: input, shape index: {}]   ;;  %s925_s4 = inlined_call_operand.vmem [shape: bf16[2,32,20], index: 4, kind: output, shape index: {0}]   ;;  %s926_s5 = inlined_call_operand.vmem [shape: f32[2,1,32,2], index: 5, kind: output, shape index: {1}]  }
   0x1   :  { %s842_s20 = smov 0  }
   0x2 LB: > { %s28_s21 = sadd.s32 1, %s798_s19  ;;  %p667_p0 = scmp.ge.s32.totalorder %s802_s20, 1  ;;  %s802_s20 = sphi %s842_s20, %s16_s20   ;;  %s798_s19 = sphi %s840_s19, %s928_s19   ;;  %s794_s18 = sphi %s838_s18, %s927_s18  }
   0x3   : > { %p30_p1 = scmp.ge.s32.totalorder %s28_s21, 2  ;;  %p214_p2 = scmp.lt.s32.totalorder %s802_s20, 3 }
   0x5   : > { %s930_s21 = smov (%p30_p1, %s28_s21), 0  ;;  %p215_p3 = pnand %p667_p0, %p214_p2 }
   0x6   : > { %p257_p4 = scmp.lt.s32.totalorder (!%p215_p3), %s794_s18, 1  ;;  %s804_s26 = smov (!%p215_p3), 123   ;;  %v776_v4 = vld [vmem:[%s922_s1 + $0x4] ss:$8 sps:$4 sm:$0xff] (!%p215_p3)   ;;  %v779_v5 = vld [vmem:[%s922_s1 + $0x14] ss:$8 sps:$4 sm:$0xff] (!%p215_p3)  }
   0x7   : > { %218 = sbr.rel (%p215_p3) target bundleno = 542 (0x21e), region = 36  ;;  %s805_s27 = smov (!%p215_p3), 122   ;;  %431 = vmatprep.mubr.bf16.mxu0 (!%p215_p3), %v776_v4  ;;  %439 = vmatprep.mubr.bf16.mxu1 (!%p215_p3), %v779_v5  ;;  %v807_v6 = vmov (!%p215_p3), 0   ;;  %v355_v7 = vld [vmem:[%s923_s2] sm:$0xff] (!%p215_p3)  ;;  %v356_v8 = vld [vmem:[%s923_s2 + $0x8] sm:$0xff] (!%p215_p3)  ;;  %v358_v9 = vld [vmem:[%s923_s2 + $0x18] sm:$0xff] (!%p215_p3) }
   0x8   : > { %s806_s28 = smov (!%p215_p3), 127   ;;  %769 = vset.pattern.permute.xlu1 (!%p215_p3), %v807_v6  ;;  %768 = vset.pattern.permute.xlu0 (!%p215_p3), %v807_v6  ;;  %v357_v10 = vld [vmem:[%s923_s2 + $0x10] sm:$0xff] (!%p215_p3)  ;;  %v774_v23 = vld [vmem:[%s922_s1] ss:$8 sps:$4 sm:$0xff] (!%p215_p3)   ;;  %vm514_vm0 = vcmask (!%p215_p3), 158720   ;;  %vm459_vm1 = vcmask (!%p215_p3), 162816  }
   0x9   : > { %v777_v24 = vld [vmem:[%s922_s1 + $0x10] ss:$8 sps:$4 sm:$0xff] (!%p215_p3)   ;;  %v682_v42 = vld [vmem:[%s924_s3] ss:$0 sm:$0xff] (!%p215_p3)  ;;  %vm488_vm2 = vcmask (!%p215_p3), 7168   ;;  %vm493_vm3 = vcmask (!%p215_p3), 15360  }
   0xe   : > { %s932_s18 = smov (!%p257_p4, %s794_s18), 1 }
   0xf   : > { %s689_s22 = sshll.u32 %s932_s18, 5 }
  0x10   : > { %s261_s25 = scalar_lea.vmem %s921_s0, %s689_s22  ;;  %s281_s8 = scalar_lea.vmem %s926_s5, %s689_s22 }
  0x11   : > { %v770_v0 = vld [vmem:[%s261_s25] sm:$0xff]   ;;  %v771_v1 = vld [vmem:[%s261_s25 + $0x8] sm:$0xff]   ;;  %v772_v2 = vld [vmem:[%s261_s25 + $0x10] sm:$0xff]  }
  0x12   : > { %327 = vrot.lane.b32.xlu0 %v770_v0, %s804_s26  ;;  %331 = vrot.lane.b32.xlu1 %v772_v2, %s804_s26  ;;  %v773_v3 = vld [vmem:[%s261_s25 + $0x18] sm:$0xff]   ;;  %s690_s25 = sshll.u32 %s932_s18, 4 }
  0x13   : > { %s272_s30 = scalar_lea.vmem %s925_s4, %s690_s25 }
  0x16   : > { %329 = vrot.lane.b32.xlu0 %v771_v1, %s804_s26  ;;  %333 = vrot.lane.b32.xlu1 %v773_v3, %s804_s26 }
  0x1a   : > { %339 = vrot.lane.b32.xlu0 %v770_v0, %s805_s27  ;;  %315 = vrot.lane.b32.xlu1 %v770_v0, %s806_s28 }
  0x1e   : > { %341 = vrot.lane.b32.xlu0 %v771_v1, %s805_s27  ;;  %317 = vrot.lane.b32.xlu1 %v771_v1, %s806_s28 }
  0x22   : > { %343 = vrot.lane.b32.xlu0 %v772_v2, %s805_s27  ;;  %319 = vrot.lane.b32.xlu1 %v772_v2, %s806_s28 }
  0x26   : > { %345 = vrot.lane.b32.xlu0 %v773_v3, %s805_s27  ;;  %321 = vrot.lane.b32.xlu1 %v773_v3, %s806_s28 }
  0x2a   : > { %361 = vperm.xlu0 %768, %v355_v7   ;;  %366 = vperm.xlu1 %769, %v356_v8  }
  0x2e   : > { %376 = vperm.xlu0 %768, %v358_v9   ;;  %371 = vperm.xlu1 %769, %v357_v10  }
  0x84   : > { %v328_v11 = vpop.permute.xlu0 %327  ;;  %v332_v12 = vpop.permute.xlu1 %331 }
  0x85   : > { %696 = vmatprep.subr.bf16.mxu0 %v328_v11  ;;  %724 = vmatprep.subr.bf16.mxu1 %v328_v11 }
  0x86   : > { %697 = vmatpush3.bf16.msra.mxu0 %v770_v0  ;;  %732 = vmatpush3.bf16.msra.mxu1 %v770_v0 }
  0x88   : > { %v330_v13 = vpop.permute.xlu0 %329  ;;  %v334_v14 = vpop.permute.xlu1 %333 }
  0x89   : > { %698 = vmatprep.subr.bf16.mxu0 %v330_v13  ;;  %725 = vmatprep.subr.bf16.mxu1 %v330_v13 }
  0x8a   : > { %699 = vmatpush3.bf16.msra.mxu0 %v771_v1  ;;  %733 = vmatpush3.bf16.msra.mxu1 %v771_v1 }
  0x8b   : > { %700 = vmatprep.subr.bf16.mxu0 %v332_v12  ;;  %726 = vmatprep.subr.bf16.mxu1 %v332_v12 }
  0x8c   : > { %v340_v15 = vpop.permute.xlu0 %339  ;;  %v316_v16 = vpop.permute.xlu1 %315 }
  0x8e   : > { %701 = vmatpush3.bf16.msra.mxu0 %v772_v2  ;;  %734 = vmatpush3.bf16.msra.mxu1 %v772_v2 }
  0x8f   : > { %702 = vmatprep.subr.bf16.mxu0 %v334_v14  ;;  %727 = vmatprep.subr.bf16.mxu1 %v334_v14 }
  0x90   : > { %v342_v17 = vpop.permute.xlu0 %341  ;;  %v318_v18 = vpop.permute.xlu1 %317 }
  0x92   : > { %703 = vmatpush3.bf16.msra.mxu0 %v773_v3  ;;  %735 = vmatpush3.bf16.msra.mxu1 %v773_v3 }
  0x93   : > { %704 = vmatprep.subr.bf16.mxu0 %v340_v15  ;;  %728 = vmatprep.subr.bf16.mxu1 %v340_v15 }
  0x94   : > { %v344_v19 = vpop.permute.xlu0 %343  ;;  %v320_v20 = vpop.permute.xlu1 %319 }
  0x96   : > { %705 = vmatpush3.bf16.msra.mxu0 %v316_v16  ;;  %736 = vmatpush3.bf16.msra.mxu1 %v316_v16 }
  0x97   : > { %706 = vmatprep.subr.bf16.mxu0 %v342_v17  ;;  %729 = vmatprep.subr.bf16.mxu1 %v342_v17 }
  0x98   : > { %v346_v21 = vpop.permute.xlu0 %345  ;;  %v322_v22 = vpop.permute.xlu1 %321 }
  0x9a   : > { %707 = vmatpush3.bf16.msra.mxu0 %v318_v18  ;;  %737 = vmatpush3.bf16.msra.mxu1 %v318_v18 }
  0x9b   : > { %708 = vmatprep.subr.bf16.mxu0 %v344_v19  ;;  %730 = vmatprep.subr.bf16.mxu1 %v344_v19 }
  0x9e   : > { %709 = vmatpush3.bf16.msra.mxu0 %v320_v20  ;;  %738 = vmatpush3.bf16.msra.mxu1 %v320_v20 }
  0x9f   : > { %710 = vmatprep.subr.bf16.mxu0 %v346_v21  ;;  %731 = vmatprep.subr.bf16.mxu1 %v346_v21 }
  0xa2   : > { %711 = vmatpush3.bf16.msra.mxu0 %v322_v22  ;;  %739 = vmatpush3.bf16.msra.mxu1 %v322_v22 }
  0xa5   : > { %432 = vmatmul.mubr.bf16.vlgmr.msra.gmra.mrb[0].mxu0 %v774_v23  ;;  %440 = vmatmul.mubr.bf16.vlgmr.msra.gmra.mrb[0].mxu1 %v777_v24 }
  0xa9   : > { %v367_v25 = vpop.permute.xlu1 %366  ;;  %v362_v27 = vpop.permute.xlu0 %361 }
  0xad   : > { %v372_v26 = vpop.permute.xlu1 %371  ;;  %v377_v43 = vpop.permute.xlu0 %376 }
 0x178   : > { %v712_v28 = vpop.f32.mrb[0].mxu0  ;;  %v718_v29 = vpop.f32.mrb[0].mxu1 }
 0x179   : > { %v713_v30 = vpop.f32.mrb[1].mxu0  ;;  %v719_v31 = vpop.f32.mrb[1].mxu1 }
 0x17a   : > { %v714_v32 = vadd.f32 %v713_v30, %v712_v28  ;;  %v720_v33 = vadd.f32 %v719_v31, %v718_v29  ;;  %v715_v34 = vpop.f32.mrb[2].mxu0  ;;  %v721_v35 = vpop.f32.mrb[2].mxu1 }
 0x17b   : > { %v716_v36 = vpop.f32.mrb[3].mxu0  ;;  %v722_v37 = vpop.f32.mrb[3].mxu1 }
 0x17c   : > { %v434_v38 = vadd.f32 %v714_v32, %v362_v27  ;;  %v442_v39 = vadd.f32 %v720_v33, %v372_v26  ;;  %v717_v40 = vadd.f32 %v716_v36, %v715_v34  ;;  %v723_v41 = vadd.f32 %v722_v37, %v721_v35 }
 0x17e   : > { %v692_v44 = vpack.c.bf16 %v434_v38, %v434_v38  ;;  %v694_v45 = vpack.c.bf16 %v442_v39, %v442_v39  ;;  %v437_v46 = vadd.f32 %v717_v40, %v367_v25  ;;  %v445_v47 = vadd.f32 %v723_v41, %v377_v43 }
 0x17f   : > { %v457_v48 = vmul.f32 %v682_v42, %v442_v39  ;;  %v455_v49 = vmul.f32 %v682_v42, %v434_v38 }
 0x180   : > { %515 = vst.msk [vmem:[%s272_s30] sm:$0xf] %vm514_vm0, %v692_v44  ;;  %517 = vst.msk [vmem:[%s272_s30 + $0x8] sm:$0xf] %vm514_vm0, %v694_v45  ;;  %v693_v50 = vpack.c.bf16 %v437_v46, %v437_v46  ;;  %v695_v51 = vpack.c.bf16 %v445_v47, %v445_v47  ;;  %v456_v54 = vmul.f32 %v682_v42, %v437_v46 }
 0x181   : > { %v466_v52 = vsel %vm459_vm1, %v457_v48, 0.0  ;;  %v460_v53 = vsel %vm459_vm1, %v455_v49, 0.0  ;;  %v458_v55 = vmul.f32 %v682_v42, %v445_v47  ;;  %v472_v58 = vmul.f32 %v455_v49, %v434_v38 }
 0x182   : > { %516 = vst.msk [vmem:[%s272_s30 + $0x4] sm:$0xf] %vm514_vm0, %v693_v50  ;;  %518 = vst.msk [vmem:[%s272_s30 + $0xc] sm:$0xf] %vm514_vm0, %v695_v51  ;;  %467 = vadd.xlane.f32.xlu0 %v466_v52  ;;  %461 = vadd.xlane.f32.xlu1 %v460_v53  ;;  %v463_v56 = vsel %vm459_vm1, %v456_v54, 0.0  ;;  %v473_v59 = vmul.f32 %v456_v54, %v437_v46  ;;  %v474_v62 = vmul.f32 %v457_v48, %v442_v39 }
 0x183   : > { %v469_v57 = vsel %vm459_vm1, %v458_v55, 0.0  ;;  %v476_v60 = vsel %vm459_vm1, %v472_v58, 0.0  ;;  %v475_v63 = vmul.f32 %v458_v55, %v445_v47 }
 0x184   : > { %v479_v61 = vsel %vm459_vm1, %v473_v59, 0.0  ;;  %v482_v0 = vsel %vm459_vm1, %v474_v62, 0.0 }
 0x185   : > { %v485_v1 = vsel %vm459_vm1, %v475_v63, 0.0 }
 0x186   : > { %464 = vadd.xlane.f32.xlu0 %v463_v56  ;;  %470 = vadd.xlane.f32.xlu1 %v469_v57 }
 0x18a   : > { %477 = vadd.xlane.f32.xlu0 %v476_v60  ;;  %480 = vadd.xlane.f32.xlu1 %v479_v61 }
 0x18e   : > { %483 = vadd.xlane.f32.xlu0 %v482_v0  ;;  %486 = vadd.xlane.f32.xlu1 %v485_v1 }
 0x20f   : > { %v462_v2 = vpop.xlane.xlu1 %461  ;;  %v468_v3 = vpop.xlane.xlu0 %467 }
 0x213   : > { %v471_v4 = vpop.xlane.xlu1 %470  ;;  %v465_v5 = vpop.xlane.xlu0 %464 }
 0x217   : > { %v481_v6 = vpop.xlane.xlu1 %480  ;;  %v478_v7 = vpop.xlane.xlu0 %477 }
 0x218   : > { %v490_v8 = vsel %vm488_vm2, %v465_v5, %v481_v6  ;;  %v489_v9 = vsel %vm488_vm2, %v462_v2, %v478_v7 }
 0x219   : > { %495 = vst.msk [vmem:[%s281_s8 + $0x8] sm:$0xff] %vm493_vm3, %v490_v8  ;;  %494 = vst.msk [vmem:[%s281_s8] sm:$0xff] %vm493_vm3, %v489_v9 }
 0x21b   : > { %v487_v10 = vpop.xlane.xlu1 %486  ;;  %v484_v11 = vpop.xlane.xlu0 %483 }
 0x21c   : > { %v492_v12 = vsel %vm488_vm2, %v471_v4, %v487_v10  ;;  %v491_v13 = vsel %vm488_vm2, %v468_v3, %v484_v11 }
 0x21d   : > { %497 = vst.msk [vmem:[%s281_s8 + $0x18] sm:$0xff] %vm493_vm3, %v492_v12  ;;  %496 = vst.msk [vmem:[%s281_s8 + $0x10] sm:$0xff] %vm493_vm3, %v491_v13 }
 0x21e PF: > { %s16_s20 = sadd.s32 1, %s802_s20   ;;  %s927_s18 = smov %s798_s19 }
 0x21f   : > { %p13_p5 = scmp.ge.s32.totalorder %s16_s20, 4   ;;  %s928_s19 = smov %s930_s21 }
 0x221   :  { %15 = sbr.rel (!%p13_p5) target bundleno = 2 (0x2), region = 81 }

// kernel: tile.68
= control target key start
LH: loop header
LB: loop body
LE: loop exit
PB: predicated region body
PF: predicated region fallthrough
CT: control target
= control target key end

     0   :  { %s22_s0 = inlined_call_operand.vmem [shape: f32[8], index: 0, kind: input, shape index: {}]   ;;  %s23_s1 = inlined_call_operand.vmem [shape: f32[4,8], index: 1, kind: output, shape index: {}]  }
   0x1   :  { %v4_v0 = vld [vmem:[%s22_s0] ss:$0 sm:$0xff] }
   0x2   :  { %5 = vst [vmem:[%s23_s1] sm:$0xf] %v4_v0 }

// kernel: encoder_forward.10
= control target key start
LH: loop header
LB: loop body
LE: loop exit
PB: predicated region body
PF: predicated region fallthrough
CT: control target
= control target key end

     0   :  { %s922_s18 = smov 0   ;;  %s924_s19 = smov 0   ;;  %s1058_s0 = inlined_call_operand.vmem [shape: bf16[2,32,30], index: 0, kind: input, shape index: {}]   ;;  %s1059_s1 = inlined_call_operand.vmem [shape: bf16[64,128], index: 1, kind: input, shape index: {}]   ;;  %s1060_s2 = inlined_call_operand.vmem [shape: f32[64,1], index: 2, kind: input, shape index: {}]   ;;  %s1061_s3 = inlined_call_operand.vmem [shape: f32[1,20], index: 3, kind: input, shape index: {}]   ;;  %s1062_s4 = inlined_call_operand.vmem [shape: bf16[2,64,20], index: 4, kind: output, shape index: {0}]   ;;  %s1063_s5 = inlined_call_operand.vmem [shape: f32[2,1,64,2], index: 5, kind: output, shape index: {1}]  }
   0x1   :  { %s926_s20 = smov 0  }
   0x2 LB: > { %s28_s21 = sadd.s32 1, %s882_s19  ;;  %p741_p0 = scmp.ge.s32.totalorder %s886_s20, 1  ;;  %s886_s20 = sphi %s926_s20, %s16_s20   ;;  %s882_s19 = sphi %s924_s19, %s1065_s19   ;;  %s878_s18 = sphi %s922_s18, %s1064_s18  }
   0x3   : > { %p30_p1 = scmp.ge.s32.totalorder %s28_s21, 2  ;;  %p214_p2 = scmp.lt.s32.totalorder %s886_s20, 3 }
   0x5   : > { %s1067_s21 = smov (%p30_p1, %s28_s21), 0  ;;  %p215_p3 = pnand %p741_p0, %p214_p2 }
   0x6   : > { %p257_p4 = scmp.lt.s32.totalorder (!%p215_p3), %s878_s18, 1  ;;  %s888_s26 = smov (!%p215_p3), 127   ;;  %v860_v2 = vld [vmem:[%s1059_s1] sm:$0xff] (!%p215_p3)   ;;  %v861_v3 = vld [vmem:[%s1059_s1 + $0x10] sm:$0xff] (!%p215_p3)   ;;  %v326_v4 = vld [vmem:[%s1060_s2 + $0x8] sm:$0xff] (!%p215_p3)  ;;  %v891_v6 = vmov (!%p215_p3), 0  }
   0x7   : > { %218 = sbr.rel (%p215_p3) target bundleno = 549 (0x225), region = 36  ;;  %s889_s27 = smov (!%p215_p3), 123   ;;  %804 = vmatprep.mubr.bf16.mxu0 (!%p215_p3), %v860_v2  ;;  %808 = vmatprep.mubr.bf16.mxu1 (!%p215_p3), %v861_v3  ;;  %v325_v5 = vld [vmem:[%s1060_s2] sm:$0xff] (!%p215_p3)  ;;  %v327_v7 = vld [vmem:[%s1060_s2 + $0x10] sm:$0xff] (!%p215_p3)  ;;  %v328_v8 = vld [vmem:[%s1060_s2 + $0x18] sm:$0xff] (!%p215_p3)  ;;  %vm584_vm0 = vcmask (!%p215_p3), 158720  }
   0x8   : > { %s890_s28 = smov (!%p215_p3), 122   ;;  %857 = vset.pattern.permute.xlu1 (!%p215_p3), %v891_v6  ;;  %856 = vset.pattern.permute.xlu0 (!%p215_p3), %v891_v6  ;;  %v329_v9 = vld [vmem:[%s1060_s2 + $0x20] sm:$0xff] (!%p215_p3)  ;;  %v330_v10 = vld [vmem:[%s1060_s2 + $0x28] sm:$0xff] (!%p215_p3)  ;;  %v331_v11 = vld [vmem:[%s1060_s2 + $0x30] sm:$0xff] (!%p215_p3)  ;;  %vm477_vm1 = vcmask (!%p215_p3), 162816   ;;  %vm534_vm2 = vcmask (!%p215_p3), 7168  }
   0x9   : > { %v332_v12 = vld [vmem:[%s1060_s2 + $0x38] sm:$0xff] (!%p215_p3)  ;;  %v862_v19 = vld [vmem:[%s1059_s1 + $0x8] sm:$0xff] (!%p215_p3)   ;;  %v754_v39 = vld [vmem:[%s1061_s3] ss:$0 sm:$0xff] (!%p215_p3)  ;;  %vm543_vm3 = vcmask (!%p215_p3), 15360  }
   0xa   : > { %v863_v20 = vld [vmem:[%s1059_s1 + $0x18] sm:$0xff] (!%p215_p3)  }
   0xe   : > { %s1069_s18 = smov (!%p257_p4, %s878_s18), 1 }
   0xf   : > { %s765_s22 = sshll.u32 %s1069_s18, 4  ;;  %s766_s7 = sshll.u32 %s1069_s18, 5 }
  0x10   : > { %s261_s25 = scalar_lea.vmem %s1058_s0, %s765_s22  ;;  %s988_s10 = scalar_lea.vmem %s1062_s4, %s766_s7 }
  0x11   : > { %v858_v0 = vld [vmem:[%s261_s25] sm:$0xff]   ;;  %v859_v1 = vld [vmem:[%s261_s25 + $0x8] sm:$0xff]   ;;  %s767_s13 = sshll.u32 %s1069_s18, 6 }
  0x12   : > { %299 = vrot.lane.b32.xlu0 %v858_v0, %s888_s26  ;;  %305 = vrot.lane.b32.xlu1 %v858_v0, %s889_s27  ;;  %s281_s16 = scalar_lea.vmem %s1063_s5, %s767_s13 }
  0x13   : > { %788 = vmatprep.subr.bf16.mxu0 %v858_v0  ;;  %812 = vmatprep.subr.bf16.mxu1 %v858_v0 }
  0x14   : > { %789 = vmatpush3.bf16.msra.mxu0 %v858_v0  ;;  %820 = vmatpush3.bf16.msra.mxu1 %v858_v0 }
  0x15   : > { %790 = vmatprep.subr.bf16.mxu0 %v859_v1  ;;  %813 = vmatprep.subr.bf16.mxu1 %v859_v1 }
  0x16   : > { %301 = vrot.lane.b32.xlu0 %v859_v1, %s888_s26  ;;  %307 = vrot.lane.b32.xlu1 %v859_v1, %s889_s27 }
  0x18   : > { %791 = vmatpush3.bf16.msra.mxu0 %v859_v1  ;;  %821 = vmatpush3.bf16.msra.mxu1 %v859_v1 }
  0x1a   : > { %311 = vrot.lane.b32.xlu0 %v858_v0, %s890_s28  ;;  %313 = vrot.lane.b32.xlu1 %v859_v1, %s890_s28 }
  0x1e   : > { %340 = vperm.xlu1 %857, %v326_v4   ;;  %335 = vperm.xlu0 %856, %v325_v5  }
  0x22   : > { %345 = vperm.xlu1 %857, %v327_v7   ;;  %350 = vperm.xlu0 %856, %v328_v8  }
  0x26   : > { %355 = vperm.xlu1 %857, %v329_v9   ;;  %360 = vperm.xlu0 %856, %v330_v10  }
  0x2a   : > { %365 = vperm.xlu1 %857, %v331_v11   ;;  %370 = vperm.xlu0 %856, %v332_v12  }
  0x84   : > { %v300_v13 = vpop.permute.xlu0 %299  ;;  %v306_v14 = vpop.permute.xlu1 %305 }
  0x85   : > { %792 = vmatprep.subr.bf16.mxu0 %v300_v13  ;;  %814 = vmatprep.subr.bf16.mxu1 %v300_v13 }
  0x86   : > { %793 = vmatpush3.bf16.msra.mxu0 %v300_v13  ;;  %822 = vmatpush3.bf16.msra.mxu1 %v300_v13 }
  0x88   : > { %v302_v15 = vpop.permute.xlu0 %301  ;;  %v308_v16 = vpop.permute.xlu1 %307 }
  0x89   : > { %794 = vmatprep.subr.bf16.mxu0 %v302_v15  ;;  %815 = vmatprep.subr.bf16.mxu1 %v302_v15 }
  0x8a   : > { %795 = vmatpush3.bf16.msra.mxu0 %v302_v15  ;;  %823 = vmatpush3.bf16.msra.mxu1 %v302_v15 }
  0x8b   : > { %796 = vmatprep.subr.bf16.mxu0 %v306_v14  ;;  %816 = vmatprep.subr.bf16.mxu1 %v306_v14 }
  0x8c   : > { %v312_v17 = vpop.permute.xlu0 %311  ;;  %v314_v18 = vpop.permute.xlu1 %313 }
  0x8e   : > { %797 = vmatpush3.bf16.msra.mxu0 %v306_v14  ;;  %824 = vmatpush3.bf16.msra.mxu1 %v306_v14 }
  0x8f   : > { %798 = vmatprep.subr.bf16.mxu0 %v308_v16  ;;  %817 = vmatprep.subr.bf16.mxu1 %v308_v16 }
  0x92   : > { %799 = vmatpush3.bf16.msra.mxu0 %v308_v16  ;;  %825 = vmatpush3.bf16.msra.mxu1 %v308_v16 }
  0x93   : > { %800 = vmatprep.subr.bf16.mxu0 %v312_v17  ;;  %818 = vmatprep.subr.bf16.mxu1 %v312_v17 }
  0x96   : > { %801 = vmatpush3.bf16.msra.mxu0 %v312_v17  ;;  %826 = vmatpush3.bf16.msra.mxu1 %v312_v17 }
  0x97   : > { %802 = vmatprep.subr.bf16.mxu0 %v314_v18  ;;  %819 = vmatprep.subr.bf16.mxu1 %v314_v18 }
  0x9a   : > { %803 = vmatpush3.bf16.msra.mxu0 %v314_v18  ;;  %827 = vmatpush3.bf16.msra.mxu1 %v314_v18 }
  0x9d   : > { %805 = vmatmul.mubr.bf16.vlgmr.msra.gmra.mrb[0].mxu0 %v862_v19  ;;  %809 = vmatmul.mubr.bf16.vlgmr.msra.gmra.mrb[0].mxu1 %v863_v20  ;;  %v341_v21 = vpop.permute.xlu1 %340  ;;  %v336_v22 = vpop.permute.xlu0 %335 }
  0xa1   : > { %v346_v23 = vpop.permute.xlu1 %345  ;;  %v351_v24 = vpop.permute.xlu0 %350 }
  0xa5   : > { %v356_v25 = vpop.permute.xlu1 %355  ;;  %v361_v26 = vpop.permute.xlu0 %360 }
  0xa9   : > { %v366_v27 = vpop.permute.xlu1 %365  ;;  %v371_v28 = vpop.permute.xlu0 %370 }
 0x170   : > { %v806_v29 = vpop.f32.mrb[0].mxu0  ;;  %v810_v30 = vpop.f32.mrb[0].mxu1 }
 0x171   : > { %v440_v31 = vadd.f32 %v806_v29, %v346_v23  ;;  %v983_v32 = vadd.f32 %v810_v30, %v366_v27  ;;  %v431_v33 = vpop.f32.mrb[1].mxu0  ;;  %v447_v34 = vpop.f32.mrb[1].mxu1 }
 0x172   : > { %v432_v35 = vadd.f32 %v431_v33, %v336_v22  ;;  %v448_v36 = vadd.f32 %v447_v34, %v356_v25  ;;  %v807_v37 = vpop.f32.mrb[2].mxu0  ;;  %v811_v38 = vpop.f32.mrb[2].mxu1 }
 0x173   : > { %v770_v40 = vpack.c.bf16 %v440_v31, %v440_v31  ;;  %v774_v41 = vpack.c.bf16 %v983_v32, %v983_v32  ;;  %v443_v42 = vadd.f32 %v807_v37, %v351_v24  ;;  %v459_v43 = vadd.f32 %v811_v38, %v371_v28  ;;  %v434_v44 = vpop.f32.mrb[3].mxu0  ;;  %v450_v45 = vpop.f32.mrb[3].mxu1 }
 0x174   : > { %v768_v46 = vpack.c.bf16 %v432_v35, %v432_v35  ;;  %v772_v47 = vpack.c.bf16 %v448_v36, %v448_v36  ;;  %v435_v48 = vadd.f32 %v434_v44, %v341_v21  ;;  %v451_v49 = vadd.f32 %v450_v45, %v361_v26 }
 0x175   : > { %587 = vst.msk [vmem:[%s988_s10 + $0x8] sm:$0xf] %vm584_vm0, %v770_v40  ;;  %591 = vst.msk [vmem:[%s988_s10 + $0x18] sm:$0xf] %vm584_vm0, %v774_v41  ;;  %v771_v50 = vpack.c.bf16 %v443_v42, %v443_v42  ;;  %v775_v51 = vpack.c.bf16 %v459_v43, %v459_v43  ;;  %v471_v52 = vmul.f32 %v754_v39, %v440_v31 }
 0x176   : > { %v469_v53 = vmul.f32 %v754_v39, %v432_v35  ;;  %585 = vst.msk [vmem:[%s988_s10] sm:$0xf] %vm584_vm0, %v768_v46  ;;  %589 = vst.msk [vmem:[%s988_s10 + $0x10] sm:$0xf] %vm584_vm0, %v772_v47  ;;  %v769_v54 = vpack.c.bf16 %v435_v48, %v435_v48  ;;  %v773_v55 = vpack.c.bf16 %v451_v49, %v451_v49 }
 0x177   : > { %588 = vst.msk [vmem:[%s988_s10 + $0xc] sm:$0xf] %vm584_vm0, %v771_v50  ;;  %592 = vst.msk [vmem:[%s988_s10 + $0x1c] sm:$0xf] %vm584_vm0, %v775_v51  ;;  %v484_v56 = vsel %vm477_vm1, %v471_v52, 0.0  ;;  %v475_v58 = vmul.f32 %v754_v39, %v983_v32  ;;  %v472_v59 = vmul.f32 %v754_v39, %v443_v42  ;;  %v473_v62 = vmul.f32 %v754_v39, %v448_v36 }
 0x178   : > { %v478_v57 = vsel %vm477_vm1, %v469_v53, 0.0  ;;  %586 = vst.msk [vmem:[%s988_s10 + $0x4] sm:$0xf] %vm584_vm0, %v769_v54  ;;  %590 = vst.msk [vmem:[%s988_s10 + $0x14] sm:$0xf] %vm584_vm0, %v773_v55  ;;  %485 = vadd.xlane.f32.xlu0 %v484_v56  ;;  %v476_v63 = vmul.f32 %v754_v39, %v459_v43  ;;  %v504_v2 = vmul.f32 %v471_v52, %v440_v31 }
 0x179   : > { %479 = vadd.xlane.f32.xlu1 %v478_v57  ;;  %v496_v60 = vsel %vm477_vm1, %v475_v58, 0.0  ;;  %v487_v61 = vsel %vm477_vm1, %v472_v59, 0.0  ;;  %v490_v0 = vsel %vm477_vm1, %v473_v62, 0.0  ;;  %v474_v3 = vmul.f32 %v754_v39, %v451_v49 }
 0x17a   : > { %v499_v1 = vsel %vm477_vm1, %v476_v63, 0.0  ;;  %v516_v4 = vsel %vm477_vm1, %v504_v2, 0.0  ;;  %v470_v6 = vmul.f32 %v754_v39, %v435_v48  ;;  %v505_v7 = vmul.f32 %v472_v59, %v443_v42 }
 0x17b   : > { %v493_v5 = vsel %vm477_vm1, %v474_v3, 0.0  ;;  %v502_v10 = vmul.f32 %v469_v53, %v432_v35  ;;  %v506_v14 = vmul.f32 %v473_v62, %v448_v36  ;;  %v507_v15 = vmul.f32 %v474_v3, %v451_v49 }
 0x17c   : > { %497 = vadd.xlane.f32.xlu0 %v496_v60  ;;  %v481_v8 = vsel %vm477_vm1, %v470_v6, 0.0  ;;  %v519_v9 = vsel %vm477_vm1, %v505_v7, 0.0  ;;  %v503_v11 = vmul.f32 %v470_v6, %v435_v48  ;;  %v508_v18 = vmul.f32 %v475_v58, %v983_v32 }
 0x17d   : > { %488 = vadd.xlane.f32.xlu1 %v487_v61  ;;  %v510_v12 = vsel %vm477_vm1, %v502_v10, 0.0  ;;  %v522_v16 = vsel %vm477_vm1, %v506_v14, 0.0  ;;  %v525_v17 = vsel %vm477_vm1, %v507_v15, 0.0  ;;  %v509_v19 = vmul.f32 %v476_v63, %v459_v43 }
 0x17e   : > { %v513_v13 = vsel %vm477_vm1, %v503_v11, 0.0  ;;  %v528_v20 = vsel %vm477_vm1, %v508_v18, 0.0 }
 0x17f   : > { %v531_v21 = vsel %vm477_vm1, %v509_v19, 0.0 }
 0x180   : > { %491 = vadd.xlane.f32.xlu0 %v490_v0 }
 0x181   : > { %500 = vadd.xlane.f32.xlu1 %v499_v1 }
 0x184   : > { %517 = vadd.xlane.f32.xlu0 %v516_v4 }
 0x185   : > { %494 = vadd.xlane.f32.xlu1 %v493_v5 }
 0x188   : > { %482 = vadd.xlane.f32.xlu0 %v481_v8 }
 0x189   : > { %520 = vadd.xlane.f32.xlu1 %v519_v9 }
 0x18c   : > { %511 = vadd.xlane.f32.xlu0 %v510_v12 }
 0x18d   : > { %514 = vadd.xlane.f32.xlu1 %v513_v13 }
 0x190   : > { %523 = vadd.xlane.f32.xlu0 %v522_v16 }
 0x191   : > { %526 = vadd.xlane.f32.xlu1 %v525_v17 }
 0x194   : > { %529 = vadd.xlane.f32.xlu0 %v528_v20 }
 0x195   : > { %532 = vadd.xlane.f32.xlu1 %v531_v21 }
 0x205   : > { %v486_v22 = vpop.xlane.xlu0 %485 }
 0x206   : > { %v480_v23 = vpop.xlane.xlu1 %479 }
 0x209   : > { %v498_v24 = vpop.xlane.xlu0 %497 }
 0x20a   : > { %v489_v25 = vpop.xlane.xlu1 %488 }
 0x20d   : > { %v492_v26 = vpop.xlane.xlu0 %491 }
 0x20e   : > { %v501_v27 = vpop.xlane.xlu1 %500 }
 0x211   : > { %v518_v28 = vpop.xlane.xlu0 %517 }
 0x212   : > { %v495_v29 = vpop.xlane.xlu1 %494  ;;  %v537_v30 = vsel %vm534_vm2, %v486_v22, %v518_v28 }
 0x213   : > { %546 = vst.msk [vmem:[%s281_s16 + $0x10] sm:$0xff] %vm543_vm3, %v537_v30 }
 0x215   : > { %v483_v31 = vpop.xlane.xlu0 %482 }
 0x216   : > { %v521_v32 = vpop.xlane.xlu1 %520 }
 0x217   : > { %v538_v33 = vsel %vm534_vm2, %v489_v25, %v521_v32 }
 0x218   : > { %547 = vst.msk [vmem:[%s281_s16 + $0x18] sm:$0xff] %vm543_vm3, %v538_v33 }
 0x219   : > { %v512_v34 = vpop.xlane.xlu0 %511 }
 0x21a   : > { %v515_v35 = vpop.xlane.xlu1 %514  ;;  %v535_v36 = vsel %vm534_vm2, %v480_v23, %v512_v34 }
 0x21b   : > { %v536_v37 = vsel %vm534_vm2, %v483_v31, %v515_v35  ;;  %544 = vst.msk [vmem:[%s281_s16] sm:$0xff] %vm543_vm3, %v535_v36 }
 0x21c   : > { %545 = vst.msk [vmem:[%s281_s16 + $0x8] sm:$0xff] %vm543_vm3, %v536_v37 }
 0x21d   : > { %v524_v38 = vpop.xlane.xlu0 %523 }
 0x21e   : > { %v527_v39 = vpop.xlane.xlu1 %526  ;;  %v539_v40 = vsel %vm534_vm2, %v492_v26, %v524_v38 }
 0x21f   : > { %v540_v41 = vsel %vm534_vm2, %v495_v29, %v527_v39  ;;  %548 = vst.msk [vmem:[%s281_s16 + $0x20] sm:$0xff] %vm543_vm3, %v539_v40 }
 0x220   : > { %549 = vst.msk [vmem:[%s281_s16 + $0x28] sm:$0xff] %vm543_vm3, %v540_v41 }
 0x221   : > { %v530_v42 = vpop.xlane.xlu0 %529 }
 0x222   : > { %v533_v43 = vpop.xlane.xlu1 %532  ;;  %v541_v44 = vsel %vm534_vm2, %v498_v24, %v530_v42 }
 0x223   : > { %v542_v45 = vsel %vm534_vm2, %v501_v27, %v533_v43  ;;  %550 = vst.msk [vmem:[%s281_s16 + $0x30] sm:$0xff] %vm543_vm3, %v541_v44 }
 0x224   : > { %551 = vst.msk [vmem:[%s281_s16 + $0x38] sm:$0xff] %vm543_vm3, %v542_v45 }
 0x225 PF: > { %s16_s20 = sadd.s32 1, %s886_s20   ;;  %s1064_s18 = smov %s882_s19 }
 0x226   : > { %p13_p5 = scmp.ge.s32.totalorder %s16_s20, 4   ;;  %s1065_s19 = smov %s1067_s21 }
 0x228   :  { %15 = sbr.rel (!%p13_p5) target bundleno = 2 (0x2), region = 81 }

// kernel: tile.1
= control target key start
LH: loop header
LB: loop body
LE: loop exit
PB: predicated region body
PF: predicated region fallthrough
CT: control target
= control target key end

     0   :  { %s66_s8 = smov 125   ;;  %vm7_vm0 = vcmask 7168   ;;  %s67_s11 = smov 126   ;;  %s117_s0 = inlined_call_operand.vmem [shape: f32[4,8], index: 0, kind: input, shape index: {}]   ;;  %s118_s1 = inlined_call_operand.vmem [shape: f32[32,1], index: 1, kind: output, shape index: {}]  }
   0x1   :  { %v4_v0 = vld [vmem:[%s117_s0] sm:$0xf]  ;;  %s65_s0 = smov 127   ;;  %s68_s12 = smov 124  }
   0x2   :  { %5 = vst [vmem:[#allocation0] sm:$0xf] %v4_v0  ;;  %s69_s13 = smov 123   ;;  %s70_s14 = smov 122  }
   0x3   :  { %s71_s15 = smov 121  }
   0x9   :  { %v9_v1 = vld [vmem:[#allocation0] sm:$0xf]  }
   0xa   :  { %v21_v2 = vld [vmem:[#allocation0] sm:$0xf]   ;;  %10 = vrot.lane.b32.xlu0 %v9_v1, %s65_s0 }
   0xb   :  { %22 = vrot.lane.b32.xlu1 %v21_v2, %s66_s8  ;;  %v15_v3 = vld [vmem:[#allocation0] sm:$0xf]  }
   0xc   :  { %v27_v4 = vld [vmem:[#allocation0] sm:$0xf]  }
   0xd   :  { %v6_v5 = vld [vmem:[#allocation0] sm:$0xf]  }
   0xe   :  { %8 = vst.msk [vmem:[%s118_s1] ss:$8 sm:$0xf] %vm7_vm0, %v6_v5   ;;  %16 = vrot.lane.b32.xlu0 %v15_v3, %s67_s11  ;;  %v33_v6 = vld [vmem:[#allocation0] sm:$0xf]  }
   0xf   :  { %28 = vrot.lane.b32.xlu1 %v27_v4, %s68_s12  ;;  %v39_v7 = vld [vmem:[#allocation0] sm:$0xf]  }
  0x10   :  { %v45_v8 = vld [vmem:[#allocation0] sm:$0xf]  }
  0x12   :  { %34 = vrot.lane.b32.xlu0 %v33_v6, %s69_s13 }
  0x13   :  { %40 = vrot.lane.b32.xlu1 %v39_v7, %s70_s14 }
  0x16   :  { %46 = vrot.lane.b32.xlu0 %v45_v8, %s71_s15 }
  0x7c   :  { %v11_v9 = vpop.permute.xlu0 %10  }
  0x7d   :  { %v23_v10 = vpop.permute.xlu1 %22   ;;  %51 = vst.msk [vmem:[%s118_s1 + $0x1] ss:$8 sm:$0xf] %vm7_vm0, %v11_v9  }
  0x7e   :  { %53 = vst.msk [vmem:[%s118_s1 + $0x3] ss:$8 sm:$0xf] %vm7_vm0, %v23_v10  }
  0x80   :  { %v17_v11 = vpop.permute.xlu0 %16  }
  0x81   :  { %v29_v12 = vpop.permute.xlu1 %28   ;;  %52 = vst.msk [vmem:[%s118_s1 + $0x2] ss:$8 sm:$0xf] %vm7_vm0, %v17_v11  }
  0x82   :  { %54 = vst.msk [vmem:[%s118_s1 + $0x4] ss:$8 sm:$0xf] %vm7_vm0, %v29_v12  }
  0x84   :  { %v35_v13 = vpop.permute.xlu0 %34  }
  0x85   :  { %v41_v14 = vpop.permute.xlu1 %40   ;;  %55 = vst.msk [vmem:[%s118_s1 + $0x5] ss:$8 sm:$0xf] %vm7_vm0, %v35_v13  }
  0x86   :  { %56 = vst.msk [vmem:[%s118_s1 + $0x6] ss:$8 sm:$0xf] %vm7_vm0, %v41_v14  }
  0x88   :  { %v47_v15 = vpop.permute.xlu0 %46  }
  0x89   :  { %57 = vst.msk [vmem:[%s118_s1 + $0x7] ss:$8 sm:$0xf] %vm7_vm0, %v47_v15  }

// kernel: encoder_forward.11
= control target key start
LH: loop header
LB: loop body
LE: loop exit
PB: predicated region body
PF: predicated region fallthrough
CT: control target
= control target key end

     0   :  { %s748_s18 = smov 0   ;;  %s750_s19 = smov 0   ;;  %s824_s0 = inlined_call_operand.vmem [shape: bf16[2,16,90], index: 0, kind: input, shape index: {}]   ;;  %s825_s1 = inlined_call_operand.vmem [shape: bf16[32,64], index: 1, kind: input, shape index: {}]   ;;  %s826_s2 = inlined_call_operand.vmem [shape: f32[32,1], index: 2, kind: input, shape index: {}]   ;;  %s827_s3 = inlined_call_operand.vmem [shape: f32[1,72], index: 3, kind: input, shape index: {}]   ;;  %s828_s4 = inlined_call_operand.vmem [shape: bf16[2,32,72], index: 4, kind: output, shape index: {0}]   ;;  %s829_s5 = inlined_call_operand.vmem [shape: f32[2,1,32,2], index: 5, kind: output, shape index: {1}]  }
   0x1   :  { %s752_s20 = smov 0  }
   0x2 LB: > { %s28_s21 = sadd.s32 1, %s708_s19  ;;  %p613_p0 = scmp.ge.s32.totalorder %s712_s20, 1  ;;  %s712_s20 = sphi %s752_s20, %s16_s20   ;;  %s708_s19 = sphi %s750_s19, %s831_s19   ;;  %s704_s18 = sphi %s748_s18, %s830_s18  }
   0x3   : > { %p30_p1 = scmp.ge.s32.totalorder %s28_s21, 2  ;;  %p214_p2 = scmp.lt.s32.totalorder %s712_s20, 3 }
   0x5   : > { %s833_s21 = smov (%p30_p1, %s28_s21), 0  ;;  %p215_p3 = pnand %p613_p0, %p214_p2 }
   0x6   : > { %p257_p4 = scmp.lt.s32.totalorder (!%p215_p3), %s704_s18, 1  ;;  %v688_v0 = vld [vmem:[%s825_s1] sm:$0xff] (!%p215_p3)   ;;  %vm338_vm0 = vcmask (!%p215_p3), 523264   ;;  %s714_s28 = smov (!%p215_p3), 127   ;;  %v716_v2 = vmov (!%p215_p3), 0   ;;  %v306_v4 = vld [vmem:[%s826_s2 + $0x10] sm:$0xff] (!%p215_p3) }
   0x7   : > { %218 = sbr.rel (%p215_p3) target bundleno = 522 (0x20a), region = 36  ;;  %653 = vmatprep.mubr.msk.bf16.mxu0 (!%p215_p3), %vm338_vm0, %v688_v0  ;;  %s715_s29 = smov (!%p215_p3), 118   ;;  %685 = vset.pattern.permute.xlu1 (!%p215_p3), %v716_v2  ;;  %v304_v3 = vld [vmem:[%s826_s2] sm:$0xff] (!%p215_p3)  ;;  %v305_v5 = vld [vmem:[%s826_s2 + $0x8] sm:$0xff] (!%p215_p3)  ;;  %v307_v6 = vld [vmem:[%s826_s2 + $0x18] sm:$0xff] (!%p215_p3)  ;;  %vm460_vm1 = vcmask (!%p215_p3), 584704  }
   0x8   : > { %686 = vset.pattern.permute.xlu0 (!%p215_p3), %v716_v2  ;;  %s717_s7 = smov (!%p215_p3), 119   ;;  %v689_v10 = vld [vmem:[%s825_s1 + $0x8] sm:$0xff] (!%p215_p3)   ;;  %v625_v14 = vld [vmem:[%s827_s3] ss:$0 sm:$0xff] (!%p215_p3)  ;;  %vm405_vm2 = vcmask (!%p215_p3), 588800   ;;  %vm434_vm3 = vcmask (!%p215_p3), 7168  }
   0x9   : > { %vm439_vm4 = vcmask (!%p215_p3), 15360  }
   0xe   : > { %s835_s18 = smov (!%p257_p4, %s704_s18), 1 }
   0xf   : > { %s632_s22 = sshll.u32 %s835_s18, 3  ;;  %s633_s16 = sshll.u32 %s835_s18, 4 }
  0x10   : > { %s261_s27 = scalar_lea.vmem %s824_s0, %s632_s22  ;;  %s272_s25 = scalar_lea.vmem %s828_s4, %s633_s16 }
  0x11   : > { %v687_v1 = vld [vmem:[%s261_s27] sm:$0xff]   ;;  %s634_s26 = sshll.u32 %s835_s18, 5 }
  0x12   : > { %291 = vrot.lane.b32.xlu0 %v687_v1, %s714_s28  ;;  %297 = vrot.lane.b32.xlu1 %v687_v1, %s715_s29  ;;  %s281_s29 = scalar_lea.vmem %s829_s5, %s634_s26 }
  0x13   : > { %645 = vmatprep.subr.bf16.mxu0 %v687_v1 }
  0x14   : > { %646 = vmatpush3.bf16.msra.mxu0 %v687_v1 }
  0x16   : > { %294 = vrot.lane.b32.xlu0 %v687_v1, %s717_s7  ;;  %310 = vperm.xlu1 %685, %v304_v3  }
  0x1a   : > { %320 = vperm.xlu1 %685, %v306_v4   ;;  %315 = vperm.xlu0 %686, %v305_v5  }
  0x1e   : > { %325 = vperm.xlu1 %685, %v307_v6  }
  0x84   : > { %v292_v7 = vpop.permute.xlu0 %291  ;;  %v298_v9 = vpop.permute.xlu1 %297 }
  0x85   : > { %647 = vmatprep.subr.bf16.mxu0 %v292_v7 }
  0x86   : > { %648 = vmatpush3.bf16.msra.mxu0 %v292_v7 }
  0x88   : > { %v295_v8 = vpop.permute.xlu0 %294 }
  0x89   : > { %649 = vmatprep.subr.bf16.mxu0 %v295_v8 }
  0x8a   : > { %650 = vmatpush3.bf16.msra.mxu0 %v295_v8 }
  0x8b   : > { %651 = vmatprep.subr.bf16.mxu0 %v298_v9 }
  0x8e   : > { %652 = vmatpush3.bf16.msra.mxu0 %v298_v9 }
  0x91   : > { %654 = vmatmul.mubr.msk.bf16.vlgmr.msra.gmra.mrb[0].mxu0 %vm338_vm0, %v689_v10 }
  0x95   : > { %v311_v11 = vpop.permute.xlu1 %310 }
  0x99   : > { %v321_v12 = vpop.permute.xlu1 %320  ;;  %v316_v17 = vpop.permute.xlu0 %315 }
  0x9d   : > { %v326_v18 = vpop.permute.xlu1 %325 }
 0x164   : > { %v655_v13 = vpop.f32.mrb[0].mxu0 }
 0x165   : > { %v388_v15 = vadd.f32 %v655_v13, %v321_v12  ;;  %v379_v16 = vpop.f32.mrb[1].mxu0 }
 0x166   : > { %v380_v19 = vadd.f32 %v379_v16, %v311_v11  ;;  %v656_v20 = vpop.f32.mrb[2].mxu0 }
 0x167   : > { %v637_v21 = vpack.c.bf16 %v388_v15, %v388_v15  ;;  %v391_v22 = vadd.f32 %v656_v20, %v326_v18  ;;  %v382_v23 = vpop.f32.mrb[3].mxu0  ;;  %v403_v24 = vmul.f32 %v625_v14, %v388_v15 }
 0x168   : > { %v635_v25 = vpack.c.bf16 %v380_v19, %v380_v19  ;;  %v383_v26 = vadd.f32 %v382_v23, %v316_v17  ;;  %v401_v27 = vmul.f32 %v625_v14, %v380_v19 }
 0x169   : > { %463 = vst.msk [vmem:[%s272_s25 + $0x8] sm:$0xf] %vm460_vm1, %v637_v21  ;;  %v638_v28 = vpack.c.bf16 %v391_v22, %v391_v22  ;;  %v412_v29 = vsel %vm405_vm2, %v403_v24, 0.0  ;;  %v404_v35 = vmul.f32 %v625_v14, %v391_v22  ;;  %v420_v37 = vmul.f32 %v403_v24, %v388_v15 }
 0x16a   : > { %461 = vst.msk [vmem:[%s272_s25] sm:$0xf] %vm460_vm1, %v635_v25  ;;  %v636_v30 = vpack.c.bf16 %v383_v26, %v383_v26  ;;  %413 = vadd.xlane.f32.xlu0 %v412_v29  ;;  %v402_v31 = vmul.f32 %v625_v14, %v383_v26  ;;  %v418_v33 = vmul.f32 %v401_v27, %v380_v19  ;;  %v406_v34 = vsel %vm405_vm2, %v401_v27, 0.0 }
 0x16b   : > { %464 = vst.msk [vmem:[%s272_s25 + $0xc] sm:$0xf] %vm460_vm1, %v638_v28  ;;  %v415_v38 = vsel %vm405_vm2, %v404_v35, 0.0  ;;  %v428_v40 = vsel %vm405_vm2, %v420_v37, 0.0  ;;  %v421_v42 = vmul.f32 %v404_v35, %v391_v22 }
 0x16c   : > { %462 = vst.msk [vmem:[%s272_s25 + $0x4] sm:$0xf] %vm460_vm1, %v636_v30  ;;  %v409_v32 = vsel %vm405_vm2, %v402_v31, 0.0  ;;  %v422_v36 = vsel %vm405_vm2, %v418_v33, 0.0  ;;  %v419_v39 = vmul.f32 %v402_v31, %v383_v26 }
 0x16d   : > { %410 = vadd.xlane.f32.xlu1 %v409_v32  ;;  %v431_v43 = vsel %vm405_vm2, %v421_v42, 0.0 }
 0x16e   : > { %407 = vadd.xlane.f32.xlu0 %v406_v34  ;;  %v425_v41 = vsel %vm405_vm2, %v419_v39, 0.0 }
 0x171   : > { %423 = vadd.xlane.f32.xlu1 %v422_v36 }
 0x172   : > { %416 = vadd.xlane.f32.xlu0 %v415_v38 }
 0x175   : > { %429 = vadd.xlane.f32.xlu1 %v428_v40 }
 0x176   : > { %426 = vadd.xlane.f32.xlu0 %v425_v41 }
 0x17a   : > { %432 = vadd.xlane.f32.xlu0 %v431_v43 }
 0x1f7   : > { %v414_v44 = vpop.xlane.xlu0 %413 }
 0x1fa   : > { %v411_v45 = vpop.xlane.xlu1 %410 }
 0x1fb   : > { %v408_v46 = vpop.xlane.xlu0 %407 }
 0x1fe   : > { %v424_v47 = vpop.xlane.xlu1 %423 }
 0x1ff   : > { %v435_v48 = vsel %vm434_vm3, %v408_v46, %v424_v47  ;;  %v417_v49 = vpop.xlane.xlu0 %416 }
 0x200   : > { %440 = vst.msk [vmem:[%s281_s29] sm:$0xff] %vm439_vm4, %v435_v48 }
 0x202   : > { %v430_v50 = vpop.xlane.xlu1 %429 }
 0x203   : > { %v437_v51 = vsel %vm434_vm3, %v414_v44, %v430_v50  ;;  %v427_v52 = vpop.xlane.xlu0 %426 }
 0x204   : > { %442 = vst.msk [vmem:[%s281_s29 + $0x10] sm:$0xff] %vm439_vm4, %v437_v51  ;;  %v436_v53 = vsel %vm434_vm3, %v411_v45, %v427_v52 }
 0x205   : > { %441 = vst.msk [vmem:[%s281_s29 + $0x8] sm:$0xff] %vm439_vm4, %v436_v53 }
 0x207   : > { %v433_v54 = vpop.xlane.xlu0 %432 }
 0x208   : > { %v438_v55 = vsel %vm434_vm3, %v417_v49, %v433_v54 }
 0x209   : > { %443 = vst.msk [vmem:[%s281_s29 + $0x18] sm:$0xff] %vm439_vm4, %v438_v55 }
 0x20a PF: > { %s16_s20 = sadd.s32 1, %s712_s20   ;;  %s830_s18 = smov %s708_s19 }
 0x20b   : > { %p13_p5 = scmp.ge.s32.totalorder %s16_s20, 4   ;;  %s831_s19 = smov %s833_s21 }
 0x20d   :  { %15 = sbr.rel (!%p13_p5) target bundleno = 2 (0x2), region = 81 }

// kernel: encoder_forward.13
= control target key start
LH: loop header
LB: loop body
LE: loop exit
PB: predicated region body
PF: predicated region fallthrough
CT: control target
= control target key end

     0   :  { %s735_s12 = smov 0   ;;  %s763_s0 = inlined_call_operand.vmem [shape: bf16[2,3,256], index: 0, kind: input, shape index: {}]   ;;  %s764_s1 = inlined_call_operand.vmem [shape: s32[2,1,256], index: 1, kind: input, shape index: {}]   ;;  %s765_s2 = inlined_call_operand.vmem [shape: s32[128,1], index: 2, kind: input, shape index: {}]   ;;  %s766_s3 = inlined_call_operand.vmem [shape: f32[2,3,256], index: 3, kind: output, shape index: {}]  }
   0x1 LB: > { %s653_s13 = sadd.s32 4294967295, %s708_s12   ;;  %p657_p0 = scmp.ge.s32.totalorder %s708_s12, 1  ;;  %s708_s12 = sphi %s735_s12, %s13_s12  }
   0x2   : > { %p146_p1 = scmp.lt.s32.totalorder %s708_s12, 3 }
   0x4   : > { %p147_p2 = pnand %p657_p0, %p146_p1 }
   0x5   : > { %v192_v0 = vld [vmem:[%s765_s2] sm:$0xff] (!%p147_p2)  ;;  %v710_v1 = vmov (!%p147_p2), 0   ;;  %p174_p3 = scmp.lt.s32.totalorder (!%p147_p2), %s653_s13, 1  ;;  %v711_v2 = vmov (!%p147_p2), 1065369472   ;;  %v208_v5 = vlaneseq (!%p147_p2)  ;;  %v712_v13 = vmov (!%p147_p2), 0.0  }
   0x6   : > { %150 = sbr.rel (%p147_p2) target bundleno = 594 (0x252), region = 32  ;;  %699 = vset.pattern.permute.xlu0 (!%p147_p2), %v710_v1  ;;  %524 = vmatprep.mubr.bf16.mxu1 (!%p147_p2), %v711_v2  ;;  %v713_v14 = vmov (!%p147_p2), 1.0   ;;  %vm714_vm5 = vmmov (!%p147_p2), 1  }
   0x7   : > { %242 = vperm.xlu0 (!%p147_p2), %699, %v192_v0   ;;  %v209_v6 = vshrl.u32 (!%p147_p2), %v208_v5, 7  ;;  %v665_v15 = vpack.c.bf16 (!%p147_p2), %v712_v13, %v713_v14 }
   0x9   : > { %v291_v7 = vsub.s32 (!%p147_p2), 0, %v209_v6  ;;  %v295_v8 = vsub.s32 (!%p147_p2), 1, %v209_v6  ;;  %vm225_vm0 = vcmp.lt.s32.totalorder (!%p147_p2), %v209_v6, 3 }
   0xd   : > { %s768_s13 = smov (!%p174_p3, %s653_s13), 1 }
   0xe   : > { %s684_s16 = sshll.u32 %s768_s13, 2  ;;  %s660_s20 = sshll.u32 %s768_s13, 1 }
   0xf   : > { %s178_s19 = scalar_lea.vmem %s763_s0, %s684_s16  ;;  %s182_s23 = scalar_lea.vmem %s764_s1, %s660_s20 }
  0x10   : > { %v663_v3 = vld.sshfl [vmem:[%s178_s19] sm:$0x33 pattern:$0x76325410]  ;;  %s685_s24 = sshll.u32 %s768_s13, 3 }
  0x11   : > { %v449_v4 = vcombine.high %v663_v3, %v663_v3  ;;  %v191_v9 = vld [vmem:[%s182_s23] sm:$0x3]  ;;  %s187_s27 = scalar_lea.vmem %s766_s3, %s685_s24 }
  0x12   : > { %v292_v10 = vrot.slane %v191_v9, %v291_v7  ;;  %v296_v11 = vrot.slane %v191_v9, %v295_v8 }
  0x13   : > { %484 = vmatprep.mubr.bf16.mxu0 %v449_v4 }
  0x86   : > { %v243_v12 = vpop.permute.xlu0 %242 }
  0x87   : > { %vm297_vm1 = vcmp.eq.s32.totalorder %v243_v12, %v292_v10  ;;  %vm298_vm2 = vcmp.eq.s32.totalorder %v243_v12, %v296_v11 }
  0x88   : > { %vm361_vm3 = vmand %vm297_vm1, %vm225_vm0 }
  0x89   : > { %vm362_vm4 = vmand %vm298_vm2, %vm225_vm0 }
  0x8a   : > { %vm664_vm6 = vmpackc.low %vm714_vm5, %vm362_vm4 }
  0x8b   : > { %666 = vmatprep.subr.msk.bf16.mxu0 %vm664_vm6, %v665_v15  ;;  %672 = vmatprep.subr.msk.bf16.mxu1 %vm664_vm6, %v665_v15  ;;  %vm667_vm7 = vmpackc.low %vm714_vm5, %vm361_vm3 }
  0x8c   : > { %669 = vmatpush1.bf16.xpose.msk.msra.mxu0 %vm667_vm7, %v665_v15  ;;  %675 = vmatpush1.bf16.xpose.msk.msra.mxu1 %vm667_vm7, %v665_v15 }
  0x8d   : > { %678 = vmatprep.subr.msk.bf16.mxu0 %vm664_vm6, %v665_v15 }
  0x93   : > { %525 = vmatmul.mubr.bf16.vlgmr.msra.gmra.mrb[0].mxu1 %v711_v2  ;;  %485 = vmatmul.mubr.bf16.vlgmr.msra.gmra.mrb[0].mxu0 %v663_v3 }
  0x94   : > { %681 = vmatpush1.bf16.msk.msra.mxu0 %vm667_vm7, %v665_v15  ;;  %572 = vmatprep.mubr.bf16.mxu0 %v710_v1 }
 0x166   : > { %v526_v16 = vpop.f32.mrb[0].mxu1  ;;  %v486_v17 = vpop.f32.mrb[0].mxu0 }
 0x167   : > { %v532_v18 = vmax.f32 %v526_v16, 1.0  ;;  %v528_v19 = vpop.f32.mrb[1].mxu1  ;;  %v488_v20 = vpop.f32.mrb[1].mxu0 }
 0x168   : > { %v529_v21 = vpop.f32.mrb[2].mxu1  ;;  %v489_v22 = vpop.f32.mrb[2].mxu0 }
 0x169   : > { %v536_v23 = vrot.slane %v532_v18, %v291_v7  ;;  %v530_v24 = vpop.f32.mrb[3].mxu1  ;;  %v490_v25 = vpop.f32.mrb[3].mxu0 }
 0x16b   : > { %700 = vrcp.f32 %v536_v23 }
 0x175   : > { %v701_v26 = vpop.eup %700 }
 0x176   : > { %v538_v27 = vmul.f32 %v701_v26, %v486_v17 }
 0x178   : > { %v539_v28 = vpack.c.bf16 %v538_v27, %v538_v27 }
 0x17a   : > { %573 = vmatmul.mubr.bf16.vlgmr.msra.gmra.mrb[4].mxu0 %v539_v28 }
 0x24d   : > { %v574_v29 = vpop.f32.mrb[4].mxu0 }
 0x24e   : > { %v576_v30 = vpop.f32.mrb[5].mxu0 }
 0x24f   : > { %v583_v31 = vcombine.low %v574_v29, %v576_v30  ;;  %v578_v32 = vpop.f32.mrb[6].mxu0 }
 0x250   : > { %v579_v33 = vpop.f32.mrb[7].mxu0 }
 0x251   : > { %585 = vst [vmem:[%s187_s27] sm:$0x77] %v583_v31 }
 0x252 PF: > { %s13_s12 = sadd.s32 1, %s708_s12  }
 0x253   : > { %p10_p4 = scmp.ge.s32.totalorder %s13_s12, 4  }
 0x255   :  { %12 = sbr.rel (!%p10_p4) target bundleno = 1 (0x1), region = 65 }

// kernel: encoder_forward.12
= control target key start
LH: loop header
LB: loop body
LE: loop exit
PB: predicated region body
PF: predicated region fallthrough
CT: control target
= control target key end

     0   :  { %11 = vsyncpa [#allocation3], 0  ;;  %s3328_s0 = inlined_call_operand.vmem [shape: bf16[2,16,506], index: 0, kind: input, shape index: {}]   ;;  %s3329_s1 = inlined_call_operand.vmem [shape: bf16[3,784], index: 1, kind: input, shape index: {}]   ;;  %s3330_s2 = inlined_call_operand.vmem [shape: f32[3,1], index: 2, kind: input, shape index: {}]   ;;  %s3331_s3 = inlined_call_operand.vmem [shape: f32[1,352], index: 3, kind: input, shape index: {}]   ;;  %s3332_s4 = inlined_call_operand.vmem [shape: f32[2,3,352], index: 4, kind: output, shape index: {0}]   ;;  %s3333_s5 = inlined_call_operand.hbm [shape: f32[2,1,3,2], index: 5, kind: output, shape index: {1}]  }
   0x1   :  { %13 = vsyncpa [#allocation3 + $0x1], 0  ;;  %s2085_s18 = smov 0   ;;  %s2087_s19 = smov 0  }
   0x2   :  { %s2089_s20 = smov 0   ;;  %s2091_s21 = smov 0  }
   0x3   :  { %s2093_s22 = smov 0   ;;  %s2095_s23 = smov 0  }
   0x4 LB: > { %s1726_s24 = sadd.s32 4294967295, %s2022_s23   ;;  %s1727_s25 = sadd.s32 4294967294, %s2022_s23   ;;  %s2022_s23 = sphi %s2095_s23, %s19_s23   ;;  %s2018_s22 = sphi %s2093_s22, %s3413_s22   ;;  %s2014_s21 = sphi %s2091_s21, %s3412_s21   ;;  %s2010_s20 = sphi %s2089_s20, %s3411_s20   ;;  %s2006_s19 = sphi %s2087_s19, %s3410_s19   ;;  %s2002_s18 = sphi %s2085_s18, %s3409_s18  }
   0x5   : > { %s31_s26 = sadd.s32 1, %s2018_s22  ;;  %s162_s27 = sadd.s32 1, %s2010_s20 }
   0x6   : > { %p33_p0 = scmp.ge.s32.totalorder %s31_s26, 2  ;;  %p172_p1 = scmp.ne.s32.totalorder %s2010_s20, %s2006_s19 }
   0x7   : > { %p173_p2 = scmp.eq.s32.totalorder %s1726_s24, 1  ;;  %p178_p3 = scmp.ne.s32.totalorder %s2006_s19, %s2002_s18 }
   0x8   : > { %s3415_s26 = smov (%p33_p0, %s31_s26), 0  ;;  %p179_p5 = scmp.eq.s32.totalorder %s1727_s25, 1 }
   0x9   : > { %p2125_p4 = por %p173_p2, %p172_p1  ;;  %s157_s29 = ssub.s32 %s2018_s22, %s3415_s26 }
   0xa   : > { %p1731_p6 = scmp.ge.s32.totalorder %s2022_s23, 1  ;;  %p160_p7 = scmp.eq.s32.totalorder %s157_s29, 0 }
   0xb   : > { %p2132_p8 = por %p179_p5, %p178_p3  ;;  %p219_p9 = scmp.lt.s32.totalorder %s2022_s23, 3 }
   0xc   : > { %s2138_s6 = scalar_select %p160_p7, %s2010_s20, %s162_s27  }
   0xd   : > { %p220_p10 = pnand %p1731_p6, %p219_p9 }
   0xf   : > { %223 = sbr.rel (%p220_p10) target bundleno = 1005 (0x3ed), region = 36 }
  0x16   : > { %p260_p11 = scmp.lt.s32.totalorder %s2014_s21, 1  ;;  %s2024_s12 = smov 127   ;;  %vm313_vm0 = vcmask 1039360   ;;  %vm325_vm1 = vcmask 1031168   ;;  %vm337_vm2 = vcmask 1022976   ;;  %vm349_vm3 = vcmask 1014784  }
  0x17   : > { %s2025_s13 = smov 126   ;;  %s2026_s14 = smov 125   ;;  %vm533_vm4 = vcmask 883712   ;;  %vm545_vm5 = vcmask 875520   ;;  %vm385_vm6 = vcmask 867328   ;;  %vm397_vm7 = vcmask 859136  }
  0x18   : > { %s2142_s7 = scalar_select %p260_p11, %s2014_s21, 1  ;;  %vm409_vm8 = vcmask 850944   ;;  %vm421_vm9 = vcmask 842752   ;;  %vm818_vm10 = vcmask 670720   ;;  %vm433_vm11 = vcmask 834560  }
  0x19   : > { %s2027_s15 = smov 124   ;;  %s2028_s16 = smov 108   ;;  %vm361_vm12 = vcmask 1006592   ;;  %vm587_vm13 = vcmask 703488   ;;  %vm373_vm14 = vcmask 998400   ;;  %vm599_vm15 = vcmask 695296  }
  0x1a   : > { %s1750_s8 = sshll.u32 %s2142_s7, 5  ;;  %s2029_s17 = smov 107  }
  0x1b   : > { %s2148_s11 = scalar_lea.vmem %s3328_s0, %s1750_s8  ;;  %s2030_s24 = smov 106  }
  0x1c   : > { %v2151_v0 = vld [vmem:[%s2148_s11 + $0xc] ss:$16 sps:$4 sm:$0xff]   ;;  %v2156_v1 = vld [vmem:[%s2148_s11] ss:$16 sps:$4 sm:$0xff]   ;;  %v2159_v2 = vld [vmem:[%s2148_s11 + $0x4] ss:$16 sps:$4 sm:$0xff]  }
  0x1d   : > { %503 = vrot.lane.b32.xlu1 %v2151_v0, %s2024_s12  ;;  %v2162_v3 = vld [vmem:[%s2148_s11 + $0x8] ss:$16 sps:$4 sm:$0xff]   ;;  %309 = vrot.lane.b32.xlu0 %v2159_v2, %s2024_s12  ;;  %s2031_s25 = smov 105   ;;  %s2032_s27 = smov 104  }
  0x1e   : > { %1205 = vmatprep.subr.bf16.mxu1 %v2159_v2  ;;  %s2033_s29 = smov 103   ;;  %s2034_s8 = smov 102   ;;  %v2245_v4 = vld [vmem:[%s2148_s11 + $0x8] ss:$16 sps:$4 sm:$0xff]  }
  0x1f   : > { %1206 = vmatpush1.bf16.msra.mxu1 %v2156_v1  ;;  %s2035_s9 = smov 86   ;;  %s2036_s10 = smov 85  }
  0x21   : > { %307 = vrot.lane.b32.xlu1 %v2156_v1, %s2024_s12  ;;  %501 = vrot.lane.b32.xlu0 %v2162_v3, %s2024_s12 }
  0x25   : > { %507 = vrot.lane.b32.xlu1 %v2162_v3, %s2025_s13  ;;  %321 = vrot.lane.b32.xlu0 %v2159_v2, %s2025_s13 }
  0x29   : > { %319 = vrot.lane.b32.xlu1 %v2156_v1, %s2025_s13  ;;  %509 = vrot.lane.b32.xlu0 %v2151_v0, %s2025_s13 }
  0x2d   : > { %513 = vrot.lane.b32.xlu1 %v2162_v3, %s2026_s14  ;;  %333 = vrot.lane.b32.xlu0 %v2159_v2, %s2026_s14 }
  0x31   : > { %331 = vrot.lane.b32.xlu1 %v2156_v1, %s2026_s14  ;;  %515 = vrot.lane.b32.xlu0 %v2151_v0, %s2026_s14 }
  0x35   : > { %519 = vrot.lane.b32.xlu1 %v2162_v3, %s2027_s15  ;;  %345 = vrot.lane.b32.xlu0 %v2159_v2, %s2027_s15 }
  0x39   : > { %343 = vrot.lane.b32.xlu1 %v2156_v1, %s2027_s15  ;;  %521 = vrot.lane.b32.xlu0 %v2151_v0, %s2027_s15 }
  0x3d   : > { %529 = vrot.lane.b32.xlu1 %v2162_v3, %s2028_s16  ;;  %527 = vrot.lane.b32.xlu0 %v2159_v2, %s2028_s16 }
  0x41   : > { %525 = vrot.lane.b32.xlu1 %v2156_v1, %s2028_s16  ;;  %531 = vrot.lane.b32.xlu0 %v2151_v0, %s2028_s16  ;;  %s2041_s16 = smov 122  }
  0x45   : > { %541 = vrot.lane.b32.xlu1 %v2162_v3, %s2029_s17  ;;  %539 = vrot.lane.b32.xlu0 %v2159_v2, %s2029_s17 }
  0x49   : > { %537 = vrot.lane.b32.xlu1 %v2156_v1, %s2029_s17  ;;  %543 = vrot.lane.b32.xlu0 %v2151_v0, %s2029_s17  ;;  %s2042_s17 = smov 110  }
  0x4d   : > { %549 = vrot.lane.b32.xlu1 %v2162_v3, %s2030_s24  ;;  %381 = vrot.lane.b32.xlu0 %v2159_v2, %s2030_s24 }
  0x51   : > { %379 = vrot.lane.b32.xlu1 %v2156_v1, %s2030_s24  ;;  %551 = vrot.lane.b32.xlu0 %v2151_v0, %s2030_s24 }
  0x55   : > { %555 = vrot.lane.b32.xlu1 %v2162_v3, %s2031_s25  ;;  %393 = vrot.lane.b32.xlu0 %v2159_v2, %s2031_s25 }
  0x59   : > { %391 = vrot.lane.b32.xlu1 %v2156_v1, %s2031_s25  ;;  %557 = vrot.lane.b32.xlu0 %v2151_v0, %s2031_s25 }
  0x5d   : > { %561 = vrot.lane.b32.xlu1 %v2162_v3, %s2032_s27  ;;  %405 = vrot.lane.b32.xlu0 %v2159_v2, %s2032_s27 }
  0x61   : > { %403 = vrot.lane.b32.xlu1 %v2156_v1, %s2032_s27  ;;  %563 = vrot.lane.b32.xlu0 %v2151_v0, %s2032_s27 }
  0x65   : > { %567 = vrot.lane.b32.xlu1 %v2162_v3, %s2033_s29  ;;  %417 = vrot.lane.b32.xlu0 %v2159_v2, %s2033_s29 }
  0x69   : > { %415 = vrot.lane.b32.xlu1 %v2156_v1, %s2033_s29  ;;  %569 = vrot.lane.b32.xlu0 %v2151_v0, %s2033_s29 }
  0x6d   : > { %573 = vrot.lane.b32.xlu1 %v2162_v3, %s2034_s8  ;;  %429 = vrot.lane.b32.xlu0 %v2159_v2, %s2034_s8 }
  0x71   : > { %427 = vrot.lane.b32.xlu1 %v2156_v1, %s2034_s8  ;;  %575 = vrot.lane.b32.xlu0 %v2151_v0, %s2034_s8 }
  0x75   : > { %581 = vrot.lane.b32.xlu1 %v2159_v2, %s2035_s9  ;;  %311 = vrot.lane.b32.xlu0 %v2245_v4, %s2024_s12  ;;  %s2037_s12 = smov 84  }
  0x79   : > { %585 = vrot.lane.b32.xlu1 %v2151_v0, %s2035_s9  ;;  %583 = vrot.lane.b32.xlu0 %v2162_v3, %s2035_s9 }
  0x7d   : > { %323 = vrot.lane.b32.xlu1 %v2245_v4, %s2025_s13  ;;  %579 = vrot.lane.b32.xlu0 %v2156_v1, %s2035_s9  ;;  %s2038_s13 = smov 82  }
  0x81   : > { %595 = vrot.lane.b32.xlu1 %v2162_v3, %s2036_s10  ;;  %593 = vrot.lane.b32.xlu0 %v2159_v2, %s2036_s10 }
  0x85   : > { %591 = vrot.lane.b32.xlu1 %v2156_v1, %s2036_s10  ;;  %597 = vrot.lane.b32.xlu0 %v2151_v0, %s2036_s10 }
  0x89   : > { %473 = vrot.lane.b32.xlu1 %v2159_v2, %s2037_s12  ;;  %335 = vrot.lane.b32.xlu0 %v2245_v4, %s2026_s14  ;;  %s2039_s14 = smov 83  }
  0x8d   : > { %477 = vrot.lane.b32.xlu1 %v2151_v0, %s2037_s12  ;;  %475 = vrot.lane.b32.xlu0 %v2162_v3, %s2037_s12 }
  0x8f   : > { %v2275_v5 = vpop.permute.xlu1 %503  ;;  %v2277_v6 = vpop.permute.xlu0 %309 }
  0x91   : > { %347 = vrot.lane.b32.xlu1 %v2245_v4, %s2027_s15  ;;  %471 = vrot.lane.b32.xlu0 %v2156_v1, %s2037_s12  ;;  %s2040_s15 = smov 123  }
  0x93   : > { %v308_v7 = vpop.permute.xlu1 %307  ;;  %v502_v8 = vpop.permute.xlu0 %501 }
  0x94   : > { %v2310_v18 = vsel %vm313_vm0, %v502_v8, %v2275_v5  ;;  %v2318_v20 = vsel %vm313_vm0, %v2277_v6, %v502_v8  ;;  %v2327_v23 = vsel %vm313_vm0, %v308_v7, %v2277_v6 }
  0x95   : > { %694 = vrot.lane.b32.xlu1 %v2162_v3, %s2038_s13  ;;  %692 = vrot.lane.b32.xlu0 %v2159_v2, %s2038_s13 }
  0x97   : > { %v508_v9 = vpop.permute.xlu1 %507  ;;  %v2287_v10 = vpop.permute.xlu0 %321 }
  0x98   : > { %v2343_v29 = vsel %vm325_vm1, %v2287_v10, %v508_v9 }
  0x99   : > { %490 = vrot.lane.b32.xlu1 %v2162_v3, %s2039_s14  ;;  %488 = vrot.lane.b32.xlu0 %v2159_v2, %s2039_s14 }
  0x9b   : > { %v320_v11 = vpop.permute.xlu1 %319  ;;  %v2293_v12 = vpop.permute.xlu0 %509 }
  0x9c   : > { %v2335_v27 = vsel %vm325_vm1, %v508_v9, %v2293_v12  ;;  %v2355_v32 = vsel %vm325_vm1, %v320_v11, %v2287_v10 }
  0x9d   : > { %690 = vrot.lane.b32.xlu1 %v2156_v1, %s2038_s13  ;;  %492 = vrot.lane.b32.xlu0 %v2151_v0, %s2039_s14 }
  0x9f   : > { %v514_v13 = vpop.permute.xlu1 %513  ;;  %v2299_v14 = vpop.permute.xlu0 %333 }
  0xa0   : > { %v517_v36 = vsel %vm337_vm2, %v2299_v14, %v514_v13 }
  0xa1   : > { %357 = vrot.lane.b32.xlu1 %v2159_v2, %s2040_s15  ;;  %486 = vrot.lane.b32.xlu0 %v2156_v1, %s2039_s14 }
  0xa3   : > { %v332_v15 = vpop.permute.xlu1 %331  ;;  %v2304_v16 = vpop.permute.xlu0 %515 }
  0xa4   : > { %3363 = vst [vmem:[#allocation5_spill] sm:$0xff] %v2304_v16  ;;  %v518_v34 = vsel %vm337_vm2, %v514_v13, %v2304_v16  ;;  %v2377_v39 = vsel %vm337_vm2, %v332_v15, %v2299_v14 }
  0xa5   : > { %355 = vrot.lane.b32.xlu1 %v2156_v1, %s2040_s15  ;;  %359 = vrot.lane.b32.xlu0 %v2245_v4, %s2040_s15  ;;  %s2047_s15 = smov 88  }
  0xa7   : > { %v520_v17 = vpop.permute.xlu1 %519  ;;  %v2312_v19 = vpop.permute.xlu0 %345 }
  0xa8   : > { %v523_v43 = vsel %vm349_vm3, %v2312_v19, %v520_v17 }
  0xa9   : > { %702 = vrot.lane.b32.xlu1 %v2310_v18, %s2038_s13  ;;  %700 = vrot.lane.b32.xlu0 %v2318_v20, %s2038_s13 }
  0xab   : > { %v344_v21 = vpop.permute.xlu1 %343  ;;  %v2322_v22 = vpop.permute.xlu0 %521 }
  0xac   : > { %3364 = vst [vmem:[#allocation6_spill] sm:$0xff] %v2322_v22  ;;  %v524_v41 = vsel %vm349_vm3, %v520_v17, %v2322_v22  ;;  %v2401_v47 = vsel %vm349_vm3, %v344_v21, %v2312_v19 }
  0xad   : > { %369 = vrot.lane.b32.xlu1 %v2159_v2, %s2041_s16  ;;  %698 = vrot.lane.b32.xlu0 %v2327_v23, %s2038_s13 }
  0xaf   : > { %v530_v24 = vpop.permute.xlu1 %529  ;;  %v528_v25 = vpop.permute.xlu0 %527 }
  0xb0   : > { %v2424_v54 = vsel %vm533_vm4, %v528_v25, %v530_v24 }
  0xb1   : > { %367 = vrot.lane.b32.xlu1 %v2156_v1, %s2041_s16  ;;  %371 = vrot.lane.b32.xlu0 %v2245_v4, %s2041_s16  ;;  %s2048_s16 = smov 87  }
  0xb3   : > { %v526_v26 = vpop.permute.xlu1 %525  ;;  %v2337_v28 = vpop.permute.xlu0 %531 }
  0xb4   : > { %3365 = vst [vmem:[#allocation7_spill] sm:$0xff] %v2337_v28  ;;  %v2418_v52 = vsel %vm533_vm4, %v530_v24, %v2337_v28  ;;  %v2436_v58 = vsel %vm533_vm4, %v526_v26, %v528_v25  ;;  %vm623_vm4 = vcmask 891904  }
  0xb5   : > { %710 = vrot.lane.b32.xlu1 %v2335_v27, %s2038_s13  ;;  %708 = vrot.lane.b32.xlu0 %v2343_v29, %s2038_s13 }
  0xb7   : > { %v2347_v30 = vpop.permute.xlu1 %541  ;;  %v2349_v31 = vpop.permute.xlu0 %539 }
  0xb8   : > { %v2462_v8 = vsel %vm545_vm5, %v2349_v31, %v2347_v30 }
  0xb9   : > { %383 = vrot.lane.b32.xlu1 %v2245_v4, %s2030_s24  ;;  %706 = vrot.lane.b32.xlu0 %v2355_v32, %s2038_s13  ;;  %s2043_s24 = smov 109  }
  0xbb   : > { %v2359_v33 = vpop.permute.xlu1 %537  ;;  %v2363_v35 = vpop.permute.xlu0 %543 }
  0xbc   : > { %3366 = vst [vmem:[#allocation8_spill] sm:$0xff] %v2363_v35  ;;  %v2454_v63 = vsel %vm545_vm5, %v2347_v30, %v2363_v35  ;;  %v2474_v13 = vsel %vm545_vm5, %v2359_v33, %v2349_v31  ;;  %vm457_vm5 = vcmask 818176  }
  0xbd   : > { %718 = vrot.lane.b32.xlu1 %v518_v34, %s2038_s13  ;;  %716 = vrot.lane.b32.xlu0 %v517_v36, %s2038_s13 }
  0xbf   : > { %v2369_v37 = vpop.permute.xlu1 %549  ;;  %v2371_v38 = vpop.permute.xlu0 %381 }
  0xc1   : > { %395 = vrot.lane.b32.xlu1 %v2245_v4, %s2031_s25  ;;  %714 = vrot.lane.b32.xlu0 %v2377_v39, %s2038_s13  ;;  %s2044_s25 = smov 101  }
  0xc3   : > { %v2381_v40 = vpop.permute.xlu1 %379  ;;  %v2385_v42 = vpop.permute.xlu0 %551 }
  0xc4   : > { %3367 = vst [vmem:[#allocation9_spill] sm:$0xff] %v2385_v42  ;;  %v2487_v21 = vsel %vm385_vm6, %v2369_v37, %v2385_v42  ;;  %v2511_v31 = vsel %vm385_vm6, %v2381_v40, %v2371_v38  ;;  %v2045_v40 = vmov 1983009808  }
  0xc5   : > { %726 = vrot.lane.b32.xlu1 %v524_v41, %s2038_s13  ;;  %724 = vrot.lane.b32.xlu0 %v523_v43, %s2038_s13  ;;  %3370 = vst [vmem:[#allocation12_spill] sm:$0xff] %v2487_v21  ;;  %v1164_v41 = vunpack.c.l.s4 %v2045_v40  ;;  %v1166_v43 = vlaneseq }
  0xc7   : > { %v2391_v44 = vpop.permute.xlu1 %555  ;;  %v2393_v45 = vpop.permute.xlu0 %393  ;;  %v1165_v42 = vunpack.c.0.s8 %v1164_v41  ;;  %v2542_v35 = vshrl.u32 %v1166_v43, 7  ;;  %v2561_v41 = vld [vmem:[%s3329_s1] sm:$0xff] }
  0xc9   : > { %607 = vrot.lane.b32.xlu1 %v2162_v3, %s2042_s17  ;;  %605 = vrot.lane.b32.xlu0 %v2159_v2, %s2042_s17  ;;  %3375 = vst [vmem:[#allocation17_spill] sm:$0xff] %v2542_v35  ;;  %v2548_v40 = vsub.s32 %v1165_v42, %v2542_v35 }
  0xcb   : > { %v2397_v46 = vpop.permute.xlu1 %391  ;;  %v2403_v48 = vpop.permute.xlu0 %557  ;;  %v2569_v43 = vrot.slane %v2561_v41, %v2548_v40 }
  0xcc   : > { %v2527_v36 = vsel %vm397_vm7, %v2391_v44, %v2403_v48 }
  0xcd   : > { %722 = vrot.lane.b32.xlu1 %v2401_v47, %s2038_s13  ;;  %609 = vrot.lane.b32.xlu0 %v2151_v0, %s2042_s17  ;;  %3373 = vst [vmem:[#allocation15_spill] sm:$0xff] %v2527_v36 }
  0xcf   : > { %v2408_v49 = vpop.permute.xlu1 %561  ;;  %v2410_v50 = vpop.permute.xlu0 %405 }
  0xd1   : > { %407 = vrot.lane.b32.xlu1 %v2245_v4, %s2032_s27  ;;  %603 = vrot.lane.b32.xlu0 %v2156_v1, %s2042_s17  ;;  %s2046_s27 = smov 100   ;;  %s2054_s17 = smov [#allocation2]  }
  0xd3   : > { %v2415_v51 = vpop.permute.xlu1 %403  ;;  %v2420_v53 = vpop.permute.xlu0 %563 }
  0xd4   : > { %v2586_v35 = vsel %vm409_vm8, %v2408_v49, %v2420_v53 }
  0xd5   : > { %734 = vrot.lane.b32.xlu1 %v2418_v52, %s2038_s13  ;;  %732 = vrot.lane.b32.xlu0 %v2424_v54, %s2038_s13  ;;  %3378 = vst [vmem:[#allocation20_spill] sm:$0xff] %v2586_v35 }
  0xd7   : > { %v2428_v55 = vpop.permute.xlu1 %567  ;;  %v2430_v56 = vpop.permute.xlu0 %417 }
  0xd9   : > { %619 = vrot.lane.b32.xlu1 %v2162_v3, %s2043_s24  ;;  %617 = vrot.lane.b32.xlu0 %v2159_v2, %s2043_s24 }
  0xdb   : > { %v2434_v57 = vpop.permute.xlu1 %415  ;;  %v2438_v59 = vpop.permute.xlu0 %569 }
  0xdd   : > { %730 = vrot.lane.b32.xlu1 %v2436_v58, %s2038_s13  ;;  %621 = vrot.lane.b32.xlu0 %v2151_v0, %s2043_s24 }
  0xdf   : > { %v2443_v60 = vpop.permute.xlu1 %573  ;;  %v2445_v61 = vpop.permute.xlu0 %429 }
  0xe1   : > { %419 = vrot.lane.b32.xlu1 %v2245_v4, %s2033_s29  ;;  %615 = vrot.lane.b32.xlu0 %v2156_v1, %s2043_s24  ;;  %s1948_s24 = sshll.u32 %s2054_s17, 4  ;;  %s1949_s24 = int_to_ptr.vmem [resolvable:$false] %s1948_s24 }
  0xe3   : > { %v2450_v62 = vpop.permute.xlu1 %427  ;;  %v2456_v7 = vpop.permute.xlu0 %575 }
  0xe4   : > { %3368 = vst [vmem:[#allocation10_spill] sm:$0xff] %v2456_v7 }
  0xe5   : > { %742 = vrot.lane.b32.xlu1 %v2454_v63, %s2038_s13  ;;  %740 = vrot.lane.b32.xlu0 %v2462_v8, %s2038_s13 }
  0xe7   : > { %v2466_v9 = vpop.permute.xlu1 %581  ;;  %v2468_v11 = vpop.permute.xlu0 %311 }
  0xe8   : > { %3369 = vst [vmem:[#allocation11_spill] sm:$0xff] %v2468_v11  ;;  %v315_v15 = vsel %vm313_vm0, %v2277_v6, %v2468_v11  ;;  %v2496_v6 = vsel %vm385_vm6, %v2371_v38, %v2369_v37  ;;  %vm479_vm0 = vcmask 687104  }
  0xe9   : > { %431 = vrot.lane.b32.xlu1 %v2245_v4, %s2034_s8  ;;  %738 = vrot.lane.b32.xlu0 %v2474_v13, %s2038_s13  ;;  %3371 = vst [vmem:[#allocation13_spill] sm:$0xff] %v2496_v6 }
  0xea   : > { %1207 = vmatprep.subr.bf16.mxu1 %v315_v15  ;;  %v2536_v15 = vsel %vm397_vm7, %v2393_v45, %v2391_v44  ;;  %v2553_v44 = vsel %vm397_vm7, %v2397_v46, %v2393_v45 }
  0xeb   : > { %v2481_v17 = vpop.permute.xlu1 %585  ;;  %1208 = vmatpush1.bf16.msra.mxu1 %v2327_v23  ;;  %v2489_v24 = vpop.permute.xlu0 %583  ;;  %3374 = vst [vmem:[#allocation16_spill] sm:$0xff] %v2536_v15 }
  0xec   : > { %v589_v11 = vsel %vm587_vm13, %v2466_v9, %v2489_v24 }
  0xed   : > { %750 = vrot.lane.b32.xlu1 %v2487_v21, %s2038_s13  ;;  %748 = vrot.lane.b32.xlu0 %v2496_v6, %s2038_s13  ;;  %v2641_v6 = vld [vmem:[%s2148_s11 + $0x8] ss:$16 sps:$4 sm:$0xff]   ;;  %v2648_v21 = vld [vmem:[%s2148_s11 + $0x4] ss:$16 sps:$4 sm:$0xff]  }
  0xef   : > { %v2500_v25 = vpop.permute.xlu1 %323  ;;  %v2505_v30 = vpop.permute.xlu0 %579 }
  0xf0   : > { %3372 = vst [vmem:[#allocation14_spill] sm:$0xff] %v2500_v25  ;;  %v327_v26 = vsel %vm325_vm1, %v2287_v10, %v2500_v25  ;;  %vm494_vm1 = vcmask 678912  }
  0xf1   : > { %441 = vrot.lane.b32.xlu1 %v2159_v2, %s2044_s25  ;;  %1209 = vmatprep.subr.bf16.mxu1 %v327_v26 }
  0xf2   : > { %1210 = vmatpush1.bf16.msra.mxu1 %v2355_v32  ;;  %746 = vrot.lane.b32.xlu0 %v2511_v31, %s2038_s13 }
  0xf3   : > { %v2516_v33 = vpop.permute.xlu1 %595  ;;  %v2518_v34 = vpop.permute.xlu0 %593 }
  0xf5   : > { %439 = vrot.lane.b32.xlu1 %v2156_v1, %s2044_s25 }
  0xf6   : > { %443 = vrot.lane.b32.xlu0 %v2245_v4, %s2044_s25  ;;  %s1837_s25 = smul.u32 12, %s2142_s7  ;;  %s257_s7 = sand.u32 1, %s2006_s19  }
  0xf7   : > { %v2522_v10 = vpop.permute.xlu1 %591  ;;  %v2529_v37 = vpop.permute.xlu0 %597 }
  0xf8   : > { %s278_s8 = scalar_lea.vmem %s3332_s4, %s1837_s25  ;;  %s1950_s25 = scalar_lea.vmem %s1949_s24, 128 }
  0xf9   : > { %758 = vrot.lane.b32.xlu1 %v2527_v36, %s2038_s13 }
  0xfa   : > { %756 = vrot.lane.b32.xlu0 %v2536_v15, %s2038_s13  ;;  %v2598_v15 = vsel %vm409_vm8, %v2410_v50, %v2408_v49  ;;  %v2612_v49 = vsel %vm409_vm8, %v2415_v51, %v2410_v50  ;;  %v572_v51 = vsel %vm421_vm9, %v2428_v55, %v2438_v59 }
  0xfb   : > { %v2540_v26 = vpop.permute.xlu1 %473  ;;  %v2544_v28 = vpop.permute.xlu0 %335  ;;  %3379 = vst [vmem:[#allocation21_spill] sm:$0xff] %v2598_v15 }
  0xfc   : > { %3376 = vst [vmem:[#allocation18_spill] sm:$0xff] %v2544_v28  ;;  %v339_v36 = vsel %vm337_vm2, %v2299_v14, %v2544_v28  ;;  %v2577_v14 = vcombine.high %v2569_v43, %v2569_v43  ;;  %vm611_vm2 = vcmask 900096  }
  0xfd   : > { %453 = vrot.lane.b32.xlu1 %v2159_v2, %s2046_s27  ;;  %1211 = vmatprep.subr.bf16.mxu1 %v339_v36 }
  0xfe   : > { %754 = vrot.lane.b32.xlu0 %v2553_v44, %s2038_s13  ;;  %1212 = vmatpush1.bf16.msra.mxu1 %v2377_v39 }
  0xff   : > { %v2565_v42 = vpop.permute.xlu1 %477  ;;  %v2572_v46 = vpop.permute.xlu0 %475  ;;  %1237 = vmatprep.mubr.bf16.mxu1 %v2577_v14 }
 0x101   : > { %451 = vrot.lane.b32.xlu1 %v2156_v1, %s2046_s27 }
 0x102   : > { %455 = vrot.lane.b32.xlu0 %v2245_v4, %s2046_s27 }
 0x103   : > { %v2580_v36 = vpop.permute.xlu1 %347  ;;  %v2591_v22 = vpop.permute.xlu0 %471 }
 0x104   : > { %3377 = vst [vmem:[#allocation19_spill] sm:$0xff] %v2580_v36  ;;  %v351_v39 = vsel %vm349_vm3, %v2312_v19, %v2580_v36  ;;  %v571_v19 = vsel %vm421_vm9, %v2430_v56, %v2428_v55  ;;  %v577_v55 = vsel %vm433_vm11, %v2445_v61, %v2443_v60  ;;  %vm445_vm3 = vcmask 826368  }
 0x105   : > { %766 = vrot.lane.b32.xlu1 %v2586_v35, %s2038_s13  ;;  %1213 = vmatprep.subr.bf16.mxu1 %v351_v39 }
 0x106   : > { %1214 = vmatpush1.bf16.msra.mxu1 %v2401_v47  ;;  %764 = vrot.lane.b32.xlu0 %v2598_v15, %s2038_s13  ;;  %v2623_v15 = vsel %vm421_vm9, %v2434_v57, %v2430_v56 }
 0x107   : > { %v2603_v28 = vpop.permute.xlu1 %694  ;;  %v693_v36 = vpop.permute.xlu0 %692 }
 0x108   : > { %3380 = vst [vmem:[#allocation22_spill] sm:$0xff] %v2603_v28  ;;  %v820_v47 = vsel %vm818_vm10, %v693_v36, %v2603_v28  ;;  %v578_v28 = vsel %vm433_vm11, %v2443_v60, %v2456_v7  ;;  %v2660_v60 = vsel %vm433_vm11, %v2450_v62, %v2445_v61  ;;  %v590_v62 = vsel %vm587_vm13, %v2489_v24, %v2481_v17 }
 0x109   : > { %772 = vrot.lane.b32.xlu1 %v571_v19, %s2038_s13  ;;  %1246 = vmatprep.subr.bf16.mxu0 %v820_v47  ;;  %v588_v24 = vsel %vm587_vm13, %v2505_v30, %v2466_v9  ;;  %v601_v9 = vsel %vm599_vm15, %v2518_v34, %v2516_v33 }
 0x10a   : > { %762 = vrot.lane.b32.xlu0 %v2612_v49, %s2038_s13 }
 0x10b   : > { %v2618_v39 = vpop.permute.xlu1 %490  ;;  %v2625_v19 = vpop.permute.xlu0 %488 }
 0x10d   : > { %770 = vrot.lane.b32.xlu1 %v2623_v15, %s2038_s13 }
 0x10e   : > { %774 = vrot.lane.b32.xlu0 %v572_v51, %s2038_s13 }
 0x10f   : > { %v691_v47 = vpop.permute.xlu1 %690  ;;  %v2637_v35 = vpop.permute.xlu0 %492 }
 0x110   : > { %v819_v57 = vsel %vm818_vm10, %v691_v47, %v693_v36  ;;  %v2655_v36 = vld [vmem:[%s2148_s11 + $0xc] ss:$16 sps:$4 sm:$0xff]  }
 0x111   : > { %782 = vrot.lane.b32.xlu1 %v578_v28, %s2038_s13  ;;  %1247 = vmatpush1.bf16.msra.mxu0 %v819_v57 }
 0x112   : > { %780 = vrot.lane.b32.xlu0 %v577_v55, %s2038_s13 }
 0x113   : > { %v358_v51 = vpop.permute.xlu1 %357  ;;  %v2650_v25 = vpop.permute.xlu0 %486 }
 0x115   : > { %642 = vrot.lane.b32.xlu1 %v2641_v6, %s2047_s15 }
 0x116   : > { %640 = vrot.lane.b32.xlu0 %v2648_v21, %s2047_s15 }
 0x117   : > { %v356_v28 = vpop.permute.xlu1 %355  ;;  %v2662_v47 = vpop.permute.xlu0 %359 }
 0x118   : > { %v362_v57 = vsel %vm361_vm12, %v356_v28, %v358_v51  ;;  %v363_v55 = vsel %vm361_vm12, %v358_v51, %v2662_v47  ;;  %vm1549_vm12 = vcmask 1042432  }
 0x119   : > { %778 = vrot.lane.b32.xlu1 %v2660_v60, %s2038_s13  ;;  %1215 = vmatprep.subr.bf16.mxu1 %v363_v55 }
 0x11a   : > { %644 = vrot.lane.b32.xlu0 %v2655_v36, %s2047_s15  ;;  %1216 = vmatpush1.bf16.msra.mxu1 %v362_v57  ;;  %s1732_s15 = sshll.u32 %s257_s7, 2 }
 0x11b   : > { %v2668_v7 = vpop.permute.xlu1 %702  ;;  %v701_v16 = vpop.permute.xlu0 %700 }
 0x11c   : > { %3381 = vst [vmem:[#allocation23_spill] sm:$0xff] %v2668_v7  ;;  %v823_v51 = vsel %vm818_vm10, %v701_v16, %v2668_v7 }
 0x11d   : > { %790 = vrot.lane.b32.xlu1 %v590_v62, %s2038_s13  ;;  %1248 = vmatprep.subr.bf16.mxu0 %v823_v51 }
 0x11e   : > { %788 = vrot.lane.b32.xlu0 %v589_v11, %s2038_s13 }
 0x11f   : > { %v370_v28 = vpop.permute.xlu1 %369  ;;  %v699_v55 = vpop.permute.xlu0 %698 }
 0x120   : > { %v822_v57 = vsel %vm818_vm10, %v699_v55, %v701_v16  ;;  %v602_v55 = vsel %vm599_vm15, %v2516_v33, %v2529_v37 }
 0x121   : > { %651 = vrot.lane.b32.xlu1 %v2641_v6, %s2048_s16  ;;  %1249 = vmatpush1.bf16.msra.mxu0 %v822_v57 }
 0x122   : > { %649 = vrot.lane.b32.xlu0 %v2648_v21, %s2048_s16 }
 0x123   : > { %v368_v62 = vpop.permute.xlu1 %367  ;;  %v2686_v7 = vpop.permute.xlu0 %371 }
 0x124   : > { %v374_v11 = vsel %vm373_vm14, %v368_v62, %v370_v28  ;;  %v375_v51 = vsel %vm373_vm14, %v370_v28, %v2686_v7  ;;  %vm1568_vm14 = vcmask 7168  }
 0x125   : > { %786 = vrot.lane.b32.xlu1 %v588_v24, %s2038_s13  ;;  %1217 = vmatprep.subr.bf16.mxu1 %v375_v51  ;;  %v600_v51 = vsel %vm599_vm15, %v2522_v10, %v2518_v34 }
 0x126   : > { %653 = vrot.lane.b32.xlu0 %v2655_v36, %s2048_s16  ;;  %1218 = vmatpush1.bf16.msra.mxu1 %v374_v11  ;;  %s1747_s16 = sshll.u32 %s2014_s21, 6 }
 0x127   : > { %v2691_v16 = vpop.permute.xlu1 %710  ;;  %v709_v57 = vpop.permute.xlu0 %708 }
 0x128   : > { %3382 = vst [vmem:[#allocation24_spill] sm:$0xff] %v2691_v16  ;;  %v826_v30 = vsel %vm818_vm10, %v709_v57, %v2691_v16 }
 0x129   : > { %798 = vrot.lane.b32.xlu1 %v602_v55, %s2038_s13  ;;  %1250 = vmatprep.subr.bf16.mxu0 %v826_v30  ;;  %v2739_v30 = vsel %vm479_vm0, %v2540_v26, %v2572_v46 }
 0x12a   : > { %796 = vrot.lane.b32.xlu0 %v601_v9, %s2038_s13  ;;  %v2729_v9 = vsel %vm479_vm0, %v2572_v46, %v2565_v42 }
 0x12b   : > { %v2703_v28 = vpop.permute.xlu1 %383  ;;  %v707_v24 = vpop.permute.xlu0 %706 }
 0x12c   : > { %v387_v62 = vsel %vm385_vm6, %v2371_v38, %v2703_v28  ;;  %v825_v11 = vsel %vm818_vm10, %v707_v24, %v709_v57  ;;  %vm646_vm6 = vcmask 719872  }
 0x12d   : > { %660 = vrot.lane.b32.xlu1 %v2641_v6, %s2035_s9  ;;  %1219 = vmatprep.subr.bf16.mxu1 %v387_v62 }
 0x12e   : > { %1220 = vmatpush1.bf16.msra.mxu1 %v2511_v31  ;;  %658 = vrot.lane.b32.xlu0 %v2648_v21, %s2035_s9 }
 0x12f   : > { %1251 = vmatpush1.bf16.msra.mxu0 %v825_v11  ;;  %v2714_v33 = vpop.permute.xlu1 %718  ;;  %v717_v38 = vpop.permute.xlu0 %716 }
 0x130   : > { %3383 = vst [vmem:[#allocation25_spill] sm:$0xff] %v2714_v33  ;;  %v829_v55 = vsel %vm818_vm10, %v717_v38, %v2714_v33 }
 0x131   : > { %794 = vrot.lane.b32.xlu1 %v600_v51, %s2038_s13  ;;  %1252 = vmatprep.subr.bf16.mxu0 %v829_v55  ;;  %v2758_v51 = vsel %vm479_vm0, %v2591_v22, %v2540_v26  ;;  %v2779_v22 = vsel %vm494_vm1, %v2625_v19, %v2618_v39 }
 0x132   : > { %662 = vrot.lane.b32.xlu0 %v2655_v36, %s2035_s9  ;;  %s2049_s9 = smov 36  }
 0x133   : > { %v2724_v57 = vpop.permute.xlu1 %395  ;;  %v715_v10 = vpop.permute.xlu0 %714 }
 0x134   : > { %v399_v34 = vsel %vm397_vm7, %v2393_v45, %v2724_v57  ;;  %v828_v62 = vsel %vm818_vm10, %v715_v10, %v717_v38  ;;  %vm655_vm7 = vcmask 711680  }
 0x135   : > { %806 = vrot.lane.b32.xlu1 %v2729_v9, %s2038_s13  ;;  %1221 = vmatprep.subr.bf16.mxu1 %v399_v34  ;;  %v2769_v34 = vsel %vm494_vm1, %v2618_v39, %v2637_v35 }
 0x136   : > { %1222 = vmatpush1.bf16.msra.mxu1 %v2553_v44  ;;  %804 = vrot.lane.b32.xlu0 %v2739_v30, %s2038_s13 }
 0x137   : > { %1253 = vmatpush1.bf16.msra.mxu0 %v828_v62  ;;  %v2745_v24 = vpop.permute.xlu1 %726  ;;  %v725_v45 = vpop.permute.xlu0 %724 }
 0x138   : > { %3384 = vst [vmem:[#allocation26_spill] sm:$0xff] %v2745_v24  ;;  %v832_v11 = vsel %vm818_vm10, %v725_v45, %v2745_v24 }
 0x139   : > { %668 = vrot.lane.b32.xlu1 %v2641_v6, %s2036_s10  ;;  %1254 = vmatprep.subr.bf16.mxu0 %v832_v11 }
 0x13a   : > { %666 = vrot.lane.b32.xlu0 %v2648_v21, %s2036_s10 }
 0x13b   : > { %v2753_v46 = vpop.permute.xlu1 %607  ;;  %v2760_v38 = vpop.permute.xlu0 %605 }
 0x13d   : > { %802 = vrot.lane.b32.xlu1 %v2758_v51, %s2038_s13 }
 0x13e   : > { %670 = vrot.lane.b32.xlu0 %v2655_v36, %s2036_s10 }
 0x13f   : > { %v723_v55 = vpop.permute.xlu1 %722  ;;  %v2772_v62 = vpop.permute.xlu0 %609 }
 0x140   : > { %v831_v10 = vsel %vm818_vm10, %v723_v55, %v725_v45  ;;  %v1162_v55 = vcombine.high %v2561_v41, %v2561_v41 }
 0x141   : > { %814 = vrot.lane.b32.xlu1 %v2769_v34, %s2038_s13  ;;  %1255 = vmatpush1.bf16.msra.mxu0 %v831_v10 }
 0x142   : > { %812 = vrot.lane.b32.xlu0 %v2779_v22, %s2038_s13  ;;  %v2800_v10 = vrot.slane %v1162_v55, %v2548_v40 }
 0x143   : > { %v2783_v26 = vpop.permute.xlu1 %407  ;;  %v2788_v11 = vpop.permute.xlu0 %603 }
 0x144   : > { %v411_v45 = vsel %vm409_vm8, %v2410_v50, %v2783_v26  ;;  %v2805_v50 = vsel %vm494_vm1, %v2650_v25, %v2625_v19  ;;  %v2811_v41 = vcombine.high %v2800_v10, %v2800_v10  ;;  %vm1043_vm8 = vcmask 293888  }
 0x145   : > { %676 = vrot.lane.b32.xlu1 %v2641_v6, %s2037_s12  ;;  %1223 = vmatprep.subr.bf16.mxu1 %v411_v45 }
 0x146   : > { %1224 = vmatpush1.bf16.msra.mxu1 %v2612_v49  ;;  %674 = vrot.lane.b32.xlu0 %v2648_v21, %s2037_s12 }
 0x147   : > { %v2797_v39 = vpop.permute.xlu1 %734  ;;  %v733_v24 = vpop.permute.xlu0 %732  ;;  %1278 = vmatprep.mubr.bf16.mxu0 %v2811_v41 }
 0x148   : > { %3385 = vst [vmem:[#allocation27_spill] sm:$0xff] %v2797_v39  ;;  %v835_v45 = vsel %vm818_vm10, %v733_v24, %v2797_v39 }
 0x149   : > { %810 = vrot.lane.b32.xlu1 %v2805_v50, %s2038_s13  ;;  %1256 = vmatprep.subr.bf16.mxu0 %v835_v45 }
 0x14a   : > { %678 = vrot.lane.b32.xlu0 %v2655_v36, %s2037_s12  ;;  %s2051_s12 = smov 118  }
 0x14b   : > { %v2817_v55 = vpop.permute.xlu1 %619  ;;  %v2820_v25 = vpop.permute.xlu0 %617 }
 0x14d   : > { %919 = vrot.lane.b32.xlu1 %v2162_v3, %s2049_s9 }
 0x14e   : > { %917 = vrot.lane.b32.xlu0 %v2159_v2, %s2049_s9 }
 0x14f   : > { %v731_v19 = vpop.permute.xlu1 %730  ;;  %v2827_v33 = vpop.permute.xlu0 %621 }
 0x150   : > { %v834_v39 = vsel %vm818_vm10, %v731_v19, %v733_v24 }
 0x151   : > { %684 = vrot.lane.b32.xlu1 %v2641_v6, %s2039_s14  ;;  %1257 = vmatpush1.bf16.msra.mxu0 %v834_v39 }
 0x152   : > { %682 = vrot.lane.b32.xlu0 %v2648_v21, %s2039_s14 }
 0x153   : > { %v2833_v45 = vpop.permute.xlu1 %419  ;;  %v616_v16 = vpop.permute.xlu0 %615 }
 0x154   : > { %v423_v3 = vsel %vm421_vm9, %v2430_v56, %v2833_v45  ;;  %vm1146_vm9 = vcmask 965632  }
 0x155   : > { %915 = vrot.lane.b32.xlu1 %v2156_v1, %s2049_s9  ;;  %1225 = vmatprep.subr.bf16.mxu1 %v423_v3 }
 0x156   : > { %1226 = vmatpush1.bf16.msra.mxu1 %v2623_v15  ;;  %686 = vrot.lane.b32.xlu0 %v2655_v36, %s2039_s14  ;;  %s1591_s14 = scalar_lea.sflag [#allocation3], %s257_s7 }
 0x157   : > { %v2843_v2 = vpop.permute.xlu1 %742  ;;  %v741_v24 = vpop.permute.xlu0 %740 }
 0x158   : > { %v838_v39 = vsel %vm818_vm10, %v741_v24, %v2843_v2 }
 0x159   : > { %927 = vrot.lane.b32.xlu1 %v2310_v18, %s2049_s9  ;;  %1258 = vmatprep.subr.bf16.mxu0 %v838_v39 }
 0x15a   : > { %925 = vrot.lane.b32.xlu0 %v2318_v20, %s2049_s9 }
 0x15b   : > { %v2851_v1 = vpop.permute.xlu1 %431  ;;  %v739_v15 = vpop.permute.xlu0 %738 }
 0x15c   : > { %v435_v56 = vsel %vm433_vm11, %v2445_v61, %v2851_v1  ;;  %v837_v18 = vsel %vm818_vm10, %v739_v15, %v741_v24  ;;  %vm2053_vm11 = vmmov 0  }
 0x15d   : > { %933 = vrot.lane.b32.xlu1 %v2343_v29, %s2049_s9  ;;  %1227 = vmatprep.subr.bf16.mxu1 %v435_v56  ;;  %v612_v56 = vsel %vm611_vm2, %v2788_v11, %v2760_v38  ;;  %v624_v11 = vsel %vm623_vm4, %v616_v16, %v2820_v25 }
 0x15e   : > { %1228 = vmatpush1.bf16.msra.mxu1 %v2660_v60  ;;  %923 = vrot.lane.b32.xlu0 %v2327_v23, %s2049_s9  ;;  %v614_v23 = vsel %vm611_vm2, %v2753_v46, %v2772_v62 }
 0x15f   : > { %1259 = vmatpush1.bf16.msra.mxu0 %v837_v18  ;;  %v2862_v20 = vpop.permute.xlu1 %750  ;;  %v749_v19 = vpop.permute.xlu0 %748  ;;  %v625_v18 = vsel %vm623_vm4, %v2820_v25, %v2817_v55 }
 0x160   : > { %v841_v61 = vsel %vm818_vm10, %v749_v19, %v2862_v20 }
 0x161   : > { %931 = vrot.lane.b32.xlu1 %v2355_v32, %s2049_s9  ;;  %1260 = vmatprep.subr.bf16.mxu0 %v841_v61  ;;  %v613_v32 = vsel %vm611_vm2, %v2760_v38, %v2753_v46 }
 0x162   : > { %935 = vrot.lane.b32.xlu0 %v2335_v27, %s2049_s9 }
 0x163   : > { %v442_v29 = vpop.permute.xlu1 %441 }
 0x164   : > { %v747_v60 = vpop.permute.xlu0 %746 }
 0x165   : > { %943 = vrot.lane.b32.xlu1 %v614_v23, %s2049_s9  ;;  %v840_v3 = vsel %vm818_vm10, %v747_v60, %v749_v19  ;;  %v626_v23 = vsel %vm623_vm4, %v2817_v55, %v2827_v33 }
 0x166   : > { %941 = vrot.lane.b32.xlu0 %v613_v32, %s2049_s9  ;;  %1261 = vmatpush1.bf16.msra.mxu0 %v840_v3 }
 0x167   : > { %v440_v27 = vpop.permute.xlu1 %439 }
 0x168   : > { %v2879_v24 = vpop.permute.xlu0 %443  ;;  %v446_v39 = vsel %vm445_vm3, %v440_v27, %v442_v29 }
 0x169   : > { %760 = vrot.lane.b32.xlu1 %v2403_v48, %s2038_s13  ;;  %v447_v46 = vsel %vm445_vm3, %v442_v29, %v2879_v24 }
 0x16a   : > { %939 = vrot.lane.b32.xlu0 %v612_v56, %s2049_s9  ;;  %1229 = vmatprep.subr.bf16.mxu1 %v447_v46  ;;  %v3387_v46 = vld [vmem:[#allocation5_spill] sm:$0xff] }
 0x16b   : > { %v2888_v15 = vpop.permute.xlu1 %758  ;;  %1230 = vmatpush1.bf16.msra.mxu1 %v446_v39 }
 0x16c   : > { %v757_v19 = vpop.permute.xlu0 %756 }
 0x16d   : > { %949 = vrot.lane.b32.xlu1 %v625_v18, %s2049_s9  ;;  %v844_v61 = vsel %vm818_vm10, %v757_v19, %v2888_v15  ;;  %v3389_v18 = vld [vmem:[#allocation14_spill] sm:$0xff] }
 0x16e   : > { %696 = vrot.lane.b32.xlu0 %v2151_v0, %s2038_s13  ;;  %1262 = vmatprep.subr.bf16.mxu0 %v844_v61  ;;  %v3391_v61 = vld [vmem:[#allocation13_spill] sm:$0xff] }
 0x16f   : > { %v454_v38 = vpop.permute.xlu1 %453 }
 0x170   : > { %v755_v29 = vpop.permute.xlu0 %754 }
 0x171   : > { %947 = vrot.lane.b32.xlu1 %v624_v11, %s2049_s9  ;;  %v843_v60 = vsel %vm818_vm10, %v755_v29, %v757_v19  ;;  %v3390_v19 = vld [vmem:[#allocation12_spill] sm:$0xff] }
 0x172   : > { %951 = vrot.lane.b32.xlu0 %v626_v23, %s2049_s9  ;;  %1263 = vmatpush1.bf16.msra.mxu0 %v843_v60  ;;  %v3393_v23 = vld [vmem:[#allocation19_spill] sm:$0xff] }
 0x173   : > { %v452_v32 = vpop.permute.xlu1 %451 }
 0x174   : > { %v2906_v0 = vpop.permute.xlu0 %455  ;;  %v458_v16 = vsel %vm457_vm5, %v452_v32, %v454_v38  ;;  %v3394_v32 = vld [vmem:[#allocation16_spill] sm:$0xff] }
 0x175   : > { %704 = vrot.lane.b32.xlu1 %v2275_v5, %s2038_s13  ;;  %v459_v25 = vsel %vm457_vm5, %v454_v38, %v2906_v0  ;;  %v3392_v38 = vld [vmem:[#allocation18_spill] sm:$0xff] }
 0x176   : > { %768 = vrot.lane.b32.xlu0 %v2420_v53, %s2038_s13  ;;  %1231 = vmatprep.subr.bf16.mxu1 %v459_v25  ;;  %v3396_v25 = vld [vmem:[#allocation15_spill] sm:$0xff] }
 0x177   : > { %v2913_v55 = vpop.permute.xlu1 %766  ;;  %1232 = vmatpush1.bf16.msra.mxu1 %v458_v16 }
 0x178   : > { %v765_v3 = vpop.permute.xlu0 %764  ;;  %1233 = vmatprep.subr.bf16.mxu1 %v2739_v30 }
 0x179   : > { %959 = vrot.lane.b32.xlu1 %v2418_v52, %s2049_s9  ;;  %v847_v27 = vsel %vm818_vm10, %v765_v3, %v2913_v55 }
 0x17a   : > { %957 = vrot.lane.b32.xlu0 %v2424_v54, %s2049_s9  ;;  %1264 = vmatprep.subr.bf16.mxu0 %v847_v27  ;;  %v3397_v27 = vld [vmem:[#allocation7_spill] sm:$0xff] }
 0x17b   : > { %v773_v39 = vpop.permute.xlu1 %772  ;;  %1234 = vmatpush1.bf16.msra.mxu1 %v2758_v51 }
 0x17c   : > { %v763_v56 = vpop.permute.xlu0 %762  ;;  %1235 = vmatprep.subr.bf16.mxu1 %v2779_v22 }
 0x17d   : > { %776 = vrot.lane.b32.xlu1 %v2438_v59, %s2038_s13  ;;  %v846_v30 = vsel %vm818_vm10, %v763_v56, %v765_v3 }
 0x17e   : > { %955 = vrot.lane.b32.xlu0 %v2436_v58, %s2049_s9  ;;  %1265 = vmatpush1.bf16.msra.mxu0 %v846_v30 }
 0x17f   : > { %v771_v52 = vpop.permute.xlu1 %770  ;;  %1236 = vmatpush1.bf16.msra.mxu1 %v2805_v50  ;;  %v3386_v50 = vld [vmem:[#allocation11_spill] sm:$0xff] }
 0x180   : > { %v2930_v54 = vpop.permute.xlu0 %774  ;;  %1751 = vmatprep.subr.bf16.mxu1 %v2724_v57  ;;  %v849_v51 = vsel %vm818_vm10, %v771_v52, %v773_v39 }
 0x181   : > { %965 = vrot.lane.b32.xlu1 %v2462_v8, %s2049_s9  ;;  %v850_v59 = vsel %vm818_vm10, %v773_v39, %v2930_v54  ;;  %v3398_v39 = vld [vmem:[#allocation20_spill] sm:$0xff] }
 0x182   : > { %712 = vrot.lane.b32.xlu0 %v2293_v12, %s2038_s13  ;;  %1266 = vmatprep.subr.bf16.mxu0 %v850_v59 }
 0x183   : > { %v2940_v58 = vpop.permute.xlu1 %782  ;;  %1238 = vmatmul.mubr.bf16.vlgmr.msra.gmra.mrb[0].mxu1 %v2569_v43  ;;  %1267 = vmatpush1.bf16.msra.mxu0 %v849_v51 }
 0x184   : > { %1752 = vmatpush3.bf16.msra.mxu1 %v2245_v4  ;;  %v781_v57 = vpop.permute.xlu0 %780  ;;  %1401 = vmatprep.mubr.bf16.mxu1 %v2577_v14 }
 0x185   : > { %963 = vrot.lane.b32.xlu1 %v2474_v13, %s2049_s9  ;;  %1753 = vmatprep.subr.bf16.mxu1 %v2783_v26  ;;  %v853_v8 = vsel %vm818_vm10, %v781_v57, %v2940_v58  ;;  %v3388_v13 = vld [vmem:[#allocation10_spill] sm:$0xff] }
 0x186   : > { %967 = vrot.lane.b32.xlu0 %v2454_v63, %s2049_s9  ;;  %1268 = vmatprep.subr.bf16.mxu0 %v853_v8 }
 0x187   : > { %v2952_v22 = vpop.permute.xlu1 %642 }
 0x188   : > { %1754 = vmatpush3.bf16.msra.mxu1 %v3386_v50  ;;  %v2955_v4 = vpop.permute.xlu0 %640  ;;  %v3401_v50 = vld [vmem:[#allocation9_spill] sm:$0xff] }
 0x189   : > { %720 = vrot.lane.b32.xlu1 %v3387_v46, %s2038_s13  ;;  %1755 = vmatprep.subr.bf16.mxu1 %v2833_v45 }
 0x18a   : > { %784 = vrot.lane.b32.xlu0 %v3388_v13, %s2038_s13 }
 0x18b   : > { %v779_v26 = vpop.permute.xlu1 %778 }
 0x18c   : > { %v852_v14 = vsel %vm818_vm10, %v779_v26, %v781_v57  ;;  %1756 = vmatpush3.bf16.msra.mxu1 %v3389_v18  ;;  %v2964_v63 = vpop.permute.xlu0 %644 }
 0x18d   : > { %975 = vrot.lane.b32.xlu1 %v3390_v19, %s2049_s9  ;;  %1757 = vmatprep.subr.bf16.mxu1 %v2851_v1 }
 0x18e   : > { %1269 = vmatpush1.bf16.msra.mxu0 %v852_v14  ;;  %973 = vrot.lane.b32.xlu0 %v3391_v61, %s2049_s9 }
 0x18f   : > { %v2971_v45 = vpop.permute.xlu1 %790 }
 0x190   : > { %1758 = vmatpush3.bf16.msra.mxu1 %v3392_v38  ;;  %v789_v11 = vpop.permute.xlu0 %788 }
 0x191   : > { %792 = vrot.lane.b32.xlu1 %v2481_v17, %s2038_s13  ;;  %1759 = vmatprep.subr.bf16.mxu1 %v2879_v24  ;;  %v856_v29 = vsel %vm818_vm10, %v789_v11, %v2971_v45  ;;  %v3395_v17 = vld [vmem:[#allocation6_spill] sm:$0xff] }
 0x192   : > { %971 = vrot.lane.b32.xlu0 %v2511_v31, %s2049_s9  ;;  %1270 = vmatprep.subr.bf16.mxu0 %v856_v29 }
 0x193   : > { %v652_v1 = vpop.permute.xlu1 %651 }
 0x194   : > { %1760 = vmatpush3.bf16.msra.mxu1 %v3393_v23  ;;  %v2982_v60 = vpop.permute.xlu0 %649 }
 0x195   : > { %981 = vrot.lane.b32.xlu1 %v3394_v32, %s2049_s9  ;;  %1761 = vmatprep.subr.bf16.mxu1 %v2906_v0  ;;  %v656_v13 = vsel %vm655_vm7, %v2982_v60, %v652_v1 }
 0x196   : > { %728 = vrot.lane.b32.xlu0 %v3395_v17, %s2038_s13 }
 0x197   : > { %v787_v24 = vpop.permute.xlu1 %786 }
 0x198   : > { %v855_v16 = vsel %vm818_vm10, %v787_v24, %v789_v11  ;;  %1762 = vmatpush3.bf16.msra.mxu1 %v2662_v47  ;;  %v2991_v31 = vpop.permute.xlu0 %653  ;;  %v1943_v11 = vld [vmem:[%s2148_s11 + $0xc] ss:$16 sps:$4 sm:$0xff]  }
 0x199   : > { %979 = vrot.lane.b32.xlu1 %v2553_v44, %s2049_s9  ;;  %1763 = vmatprep.subr.bf16.mxu1 %v2729_v9 }
 0x19a   : > { %1271 = vmatpush1.bf16.msra.mxu0 %v855_v16  ;;  %983 = vrot.lane.b32.xlu0 %v3396_v25, %s2049_s9 }
 0x19b   : > { %v2998_v0 = vpop.permute.xlu1 %798 }
 0x19c   : > { %1764 = vmatpush3.bf16.msra.mxu1 %v2686_v7  ;;  %v797_v3 = vpop.permute.xlu0 %796  ;;  %v3399_v7 = vld [vmem:[#allocation21_spill] sm:$0xff] }
 0x19d   : > { %736 = vrot.lane.b32.xlu1 %v3397_v27, %s2038_s13  ;;  %1765 = vmatprep.subr.bf16.mxu1 %v2769_v34  ;;  %v859_v47 = vsel %vm818_vm10, %v797_v3, %v2998_v0 }
 0x19e   : > { %800 = vrot.lane.b32.xlu0 %v2529_v37, %s2038_s13  ;;  %1272 = vmatprep.subr.bf16.mxu0 %v859_v47 }
 0x19f   : > { %v661_v44 = vpop.permute.xlu1 %660 }
 0x1a0   : > { %1766 = vmatpush3.bf16.msra.mxu1 %v2703_v28  ;;  %v659_v9 = vpop.permute.xlu0 %658  ;;  %v647_v28 = vsel %vm646_vm6, %v2955_v4, %v2952_v22 }
 0x1a1   : > { %991 = vrot.lane.b32.xlu1 %v3398_v39, %s2049_s9  ;;  %v664_v19 = vsel %vm587_vm13, %v659_v9, %v661_v44 }
 0x1a2   : > { %989 = vrot.lane.b32.xlu0 %v3399_v7, %s2049_s9 }
 0x1a3   : > { %v795_v56 = vpop.permute.xlu1 %794  ;;  %1402 = vmatmul.mubr.bf16.vlgmr.msra.gmra.mrb[4].mxu1 %v2569_v43 }
 0x1a4   : > { %v858_v34 = vsel %vm818_vm10, %v795_v56, %v797_v3  ;;  %v3015_v30 = vpop.permute.xlu0 %662  ;;  %1441 = vmatprep.mubr.bf16.mxu1 %v2811_v41 }
 0x1a5   : > { %808 = vrot.lane.b32.xlu1 %v2565_v42, %s2038_s13  ;;  %1273 = vmatpush1.bf16.msra.mxu0 %v858_v34  ;;  %v3400_v42 = vld [vmem:[#allocation8_spill] sm:$0xff] }
 0x1a6   : > { %987 = vrot.lane.b32.xlu0 %v2612_v49, %s2049_s9  ;;  %v648_v49 = vsel %vm646_vm6, %v2952_v22, %v2964_v63 }
 0x1a7   : > { %v3022_v37 = vpop.permute.xlu1 %806 }
 0x1a8   : > { %v805_v52 = vpop.permute.xlu0 %804 }
 0x1a9   : > { %997 = vrot.lane.b32.xlu1 %v647_v28, %s2049_s9  ;;  %v862_v43 = vsel %vm818_vm10, %v805_v52, %v3022_v37 }
 0x1aa   : > { %744 = vrot.lane.b32.xlu0 %v3400_v42, %s2038_s13  ;;  %1274 = vmatprep.subr.bf16.mxu0 %v862_v43 }
 0x1ab   : > { %v669_v51 = vpop.permute.xlu1 %668 }
 0x1ac   : > { %v667_v41 = vpop.permute.xlu0 %666 }
 0x1ad   : > { %995 = vrot.lane.b32.xlu1 %v2955_v4, %s2049_s9  ;;  %v657_v4 = vsel %vm655_vm7, %v652_v1, %v2991_v31  ;;  %v665_v1 = vsel %vm587_vm13, %v661_v44, %v3015_v30  ;;  %v672_v3 = vsel %vm599_vm15, %v667_v41, %v669_v51  ;;  %vm1553_vm13 = vcmask 780288  }
 0x1ae   : > { %999 = vrot.lane.b32.xlu0 %v648_v49, %s2049_s9 }
 0x1af   : > { %v803_v59 = vpop.permute.xlu1 %802 }
 0x1b0   : > { %v861_v57 = vsel %vm818_vm10, %v803_v59, %v805_v52  ;;  %v3037_v8 = vpop.permute.xlu0 %670 }
 0x1b1   : > { %752 = vrot.lane.b32.xlu1 %v3401_v50, %s2038_s13  ;;  %1275 = vmatpush1.bf16.msra.mxu0 %v861_v57  ;;  %v673_v24 = vsel %vm599_vm15, %v669_v51, %v3037_v8  ;;  %vm1570_vm15 = vcmask 10240  }
 0x1b2   : > { %816 = vrot.lane.b32.xlu0 %v2637_v35, %s2038_s13  ;;  %s3281_s13 = scalar_lea.hbm %s3333_s5, %s1747_s16 }
 0x1b3   : > { %v3043_v46 = vpop.permute.xlu1 %814 }
 0x1b4   : > { %v813_v22 = vpop.permute.xlu0 %812 }
 0x1b5   : > { %1007 = vrot.lane.b32.xlu1 %v657_v4, %s2049_s9  ;;  %v865_v26 = vsel %vm818_vm10, %v813_v22, %v3043_v46 }
 0x1b6   : > { %1005 = vrot.lane.b32.xlu0 %v656_v13, %s2049_s9  ;;  %1276 = vmatprep.subr.bf16.mxu0 %v865_v26 }
 0x1b7   : > { %v677_v14 = vpop.permute.xlu1 %676 }
 0x1b8   : > { %v675_v18 = vpop.permute.xlu0 %674 }
 0x1b9   : > { %985 = vrot.lane.b32.xlu1 %v2403_v48, %s2049_s9 }
 0x1ba   : > { %1003 = vrot.lane.b32.xlu0 %v2982_v60, %s2049_s9 }
 0x1bb   : > { %v811_v35 = vpop.permute.xlu1 %810 }
 0x1bc   : > { %v864_v61 = vsel %vm818_vm10, %v811_v35, %v813_v22  ;;  %v3057_v38 = vpop.permute.xlu0 %678 }
 0x1bd   : > { %1013 = vrot.lane.b32.xlu1 %v664_v19, %s2049_s9  ;;  %1277 = vmatpush1.bf16.msra.mxu0 %v864_v61  ;;  %v681_v28 = vsel %vm479_vm0, %v677_v14, %v3057_v38  ;;  %v2050_v19 = vmov 0  }
 0x1be   : > { %921 = vrot.lane.b32.xlu0 %v1943_v11, %s2049_s9 }
 0x1bf   : > { %v3062_v29 = vpop.permute.xlu1 %919  ;;  %1923 = vset.pattern.permute.xlu0 %v2050_v19 }
 0x1c0   : > { %1279 = vmatmul.mubr.bf16.vlgmr.msra.gmra.mrb[0].mxu0 %v2800_v10  ;;  %v918_v48 = vpop.permute.xlu0 %917 }
 0x1c1   : > { %1011 = vrot.lane.b32.xlu1 %v659_v9, %s2049_s9  ;;  %v1045_v23 = vsel %vm1043_vm8, %v918_v48, %v3062_v29  ;;  %v680_v9 = vsel %vm479_vm0, %v675_v18, %v677_v14 }
 0x1c2   : > { %1015 = vrot.lane.b32.xlu0 %v665_v1, %s2049_s9  ;;  %1287 = vmatprep.subr.bf16.mxu0 %v1045_v23  ;;  %v3403_v23 = vld [vmem:[#allocation23_spill] sm:$0xff] }
 0x1c3   : > { %v685_v60 = vpop.permute.xlu1 %684 }
 0x1c4   : > { %v683_v32 = vpop.permute.xlu0 %682 }
 0x1c5   : > { %929 = vrot.lane.b32.xlu1 %v2275_v5, %s2049_s9 }
 0x1c6   : > { %993 = vrot.lane.b32.xlu0 %v2420_v53, %s2049_s9 }
 0x1c7   : > { %v916_v17 = vpop.permute.xlu1 %915 }
 0x1c8   : > { %v1044_v16 = vsel %vm1043_vm8, %v916_v17, %v918_v48  ;;  %v3078_v25 = vpop.permute.xlu0 %686 }
 0x1c9   : > { %1023 = vrot.lane.b32.xlu1 %v673_v24, %s2049_s9  ;;  %1288 = vmatpush1.bf16.msra.mxu0 %v1044_v16 }
 0x1ca   : > { %1021 = vrot.lane.b32.xlu0 %v672_v3, %s2049_s9 }
 0x1cb   : > { %v3083_v47 = vpop.permute.xlu1 %927 }
 0x1cc   : > { %v926_v5 = vpop.permute.xlu0 %925 }
 0x1cd   : > { %1001 = vrot.lane.b32.xlu1 %v2964_v63, %s2049_s9  ;;  %v1048_v53 = vsel %vm1043_vm8, %v926_v5, %v3083_v47 }
 0x1ce   : > { %1019 = vrot.lane.b32.xlu0 %v667_v41, %s2049_s9  ;;  %1289 = vmatprep.subr.bf16.mxu0 %v1048_v53  ;;  %v3113_v41 = vld [vmem:[%s3329_s1 + $0x8] sm:$0x3f] }
 0x1cf   : > { %v934_v44 = vpop.permute.xlu1 %933  ;;  %v3119_v59 = vrot.slane %v3113_v41, %v2548_v40 }
 0x1d0   : > { %v924_v39 = vpop.permute.xlu0 %923 }
 0x1d1   : > { %1029 = vrot.lane.b32.xlu1 %v680_v9, %s2049_s9  ;;  %v1047_v7 = vsel %vm1043_vm8, %v924_v39, %v926_v5  ;;  %v3128_v22 = vcombine.high %v3119_v59, %v3119_v59  ;;  %v3405_v9 = vld [vmem:[#allocation25_spill] sm:$0xff] }
 0x1d2   : > { %937 = vrot.lane.b32.xlu0 %v2293_v12, %s2049_s9  ;;  %1290 = vmatpush1.bf16.msra.mxu0 %v1047_v7 }
 0x1d3   : > { %v932_v56 = vpop.permute.xlu1 %931  ;;  %1319 = vmatprep.mubr.bf16.mxu0 %v3128_v22 }
 0x1d4   : > { %v3095_v63 = vpop.permute.xlu0 %935  ;;  %v1050_v34 = vsel %vm1043_vm8, %v932_v56, %v934_v44 }
 0x1d5   : > { %1027 = vrot.lane.b32.xlu1 %v675_v18, %s2049_s9  ;;  %v1051_v52 = vsel %vm1043_vm8, %v934_v44, %v3095_v63 }
 0x1d6   : > { %1031 = vrot.lane.b32.xlu0 %v681_v28, %s2049_s9  ;;  %1291 = vmatprep.subr.bf16.mxu0 %v1051_v52 }
 0x1d7   : > { %v3104_v43 = vpop.permute.xlu1 %943  ;;  %1292 = vmatpush1.bf16.msra.mxu0 %v1050_v34 }
 0x1d8   : > { %v942_v12 = vpop.permute.xlu0 %941 }
 0x1d9   : > { %945 = vrot.lane.b32.xlu1 %v2772_v62, %s2049_s9  ;;  %v1054_v51 = vsel %vm1043_vm8, %v942_v12, %v3104_v43  ;;  %v689_v62 = vsel %vm494_vm1, %v685_v60, %v3078_v25 }
 0x1da   : > { %1009 = vrot.lane.b32.xlu0 %v2991_v31, %s2049_s9  ;;  %1293 = vmatprep.subr.bf16.mxu0 %v1054_v51  ;;  %v688_v31 = vsel %vm494_vm1, %v683_v32, %v685_v60 }
 0x1db   : > { %v761_v49 = vpop.permute.xlu1 %760 }
 0x1dc   : > { %v845_v57 = vsel %vm818_vm10, %v2888_v15, %v761_v49  ;;  %v940_v4 = vpop.permute.xlu0 %939  ;;  %v3402_v15 = vld [vmem:[#allocation22_spill] sm:$0xff] }
 0x1dd   : > { %1039 = vrot.lane.b32.xlu1 %v689_v62, %s2049_s9  ;;  %1773 = vmatprep.subr.bf16.mxu1 %v845_v57  ;;  %v1053_v13 = vsel %vm1043_vm8, %v940_v4, %v942_v12  ;;  %v3406_v62 = vld [vmem:[#allocation26_spill] sm:$0xff] }
 0x1de   : > { %1037 = vrot.lane.b32.xlu0 %v688_v31, %s2049_s9  ;;  %1294 = vmatpush1.bf16.msra.mxu0 %v1053_v13 }
 0x1df   : > { %v950_v26 = vpop.permute.xlu1 %949 }
 0x1e0   : > { %v697_v14 = vpop.permute.xlu0 %696 }
 0x1e1   : > { %1017 = vrot.lane.b32.xlu1 %v3015_v30, %s2049_s9  ;;  %v821_v18 = vsel %vm818_vm10, %v3402_v15, %v697_v14  ;;  %v3407_v15 = vld [vmem:[#allocation27_spill] sm:$0xff] }
 0x1e2   : > { %1035 = vrot.lane.b32.xlu0 %v683_v32, %s2049_s9  ;;  %1774 = vmatpush3.bf16.msra.mxu1 %v821_v18 }
 0x1e3   : > { %v948_v35 = vpop.permute.xlu1 %947 }
 0x1e4   : > { %v3140_v61 = vpop.permute.xlu0 %951  ;;  %v1056_v11 = vsel %vm1043_vm8, %v948_v35, %v950_v26 }
 0x1e5   : > { %1025 = vrot.lane.b32.xlu1 %v3037_v8, %s2049_s9  ;;  %v1057_v30 = vsel %vm1043_vm8, %v950_v26, %v3140_v61 }
 0x1e6   : > { %953 = vrot.lane.b32.xlu0 %v2827_v33, %s2049_s9  ;;  %1295 = vmatprep.subr.bf16.mxu0 %v1057_v30 }
 0x1e7   : > { %v705_v48 = vpop.permute.xlu1 %704  ;;  %1296 = vmatpush1.bf16.msra.mxu0 %v1056_v11 }
 0x1e8   : > { %v769_v1 = vpop.permute.xlu0 %768  ;;  %v824_v60 = vsel %vm818_vm10, %v3403_v23, %v705_v48 }
 0x1e9   : > { %1033 = vrot.lane.b32.xlu1 %v3057_v38, %s2049_s9  ;;  %v848_v32 = vsel %vm818_vm10, %v2913_v55, %v769_v1 }
 0x1ea   : > { %961 = vrot.lane.b32.xlu0 %v3397_v27, %s2049_s9  ;;  %1775 = vmatprep.subr.bf16.mxu1 %v848_v32 }
 0x1eb   : > { %v3157_v8 = vpop.permute.xlu1 %959  ;;  %1776 = vmatpush3.bf16.msra.mxu1 %v824_v60 }
 0x1ec   : > { %v958_v33 = vpop.permute.xlu0 %957 }
 0x1ed   : > { %1142 = vrot.lane.b32.xlu1 %v2641_v6, %s2051_s12  ;;  %v1060_v17 = vsel %vm1043_vm8, %v958_v33, %v3157_v8 }
 0x1ee   : > { %969 = vrot.lane.b32.xlu0 %v3400_v42, %s2049_s9  ;;  %1297 = vmatprep.subr.bf16.mxu0 %v1060_v17  ;;  %v3404_v42 = vld [vmem:[#allocation24_spill] sm:$0xff] }
 0x1ef   : > { %v777_v38 = vpop.permute.xlu1 %776 }
 0x1f0   : > { %v851_v55 = vsel %vm818_vm10, %v2930_v54, %v777_v38  ;;  %v956_v27 = vpop.permute.xlu0 %955 }
 0x1f1   : > { %1140 = vrot.lane.b32.xlu1 %v2648_v21, %s2051_s12  ;;  %1777 = vmatprep.subr.bf16.mxu1 %v851_v55  ;;  %v1059_v24 = vsel %vm1043_vm8, %v956_v27, %v958_v33  ;;  %v1154_v21 = vld [vmem:[%s3330_s2] sm:$0x7] }
 0x1f2   : > { %1144 = vrot.lane.b32.xlu0 %v2655_v36, %s2051_s12  ;;  %1298 = vmatpush1.bf16.msra.mxu0 %v1059_v24 }
 0x1f3   : > { %v966_v6 = vpop.permute.xlu1 %965 }
 0x1f4   : > { %v713_v16 = vpop.permute.xlu0 %712 }
 0x1f5   : > { %977 = vrot.lane.b32.xlu1 %v3401_v50, %s2049_s9  ;;  %v827_v3 = vsel %vm818_vm10, %v3404_v42, %v713_v16 }
 0x1f6   : > { %1041 = vrot.lane.b32.xlu0 %v3078_v25, %s2049_s9  ;;  %1778 = vmatpush3.bf16.msra.mxu1 %v827_v3  ;;  %s259_s9 = scalar_lea.vmem [#allocation2], %s1732_s15 }
 0x1f7   : > { %v964_v54 = vpop.permute.xlu1 %963  ;;  %s1609_s11 = sshll.u32 %s259_s9, 4  ;;  %s3283_s11 = int_to_ptr.vmem [resolvable:$true] %s1609_s11 }
 0x1f8   : > { %v3178_v5 = vpop.permute.xlu0 %967  ;;  %v1062_v36 = vsel %vm1043_vm8, %v964_v54, %v966_v6  ;;  %s1944_s21 = scalar_lea.vmem %s3283_s11, 64  ;;  %p1951_p1 = scmp.lt.s32.totalorder %s3283_s11, %s1949_s24 }
 0x1f9   : > { %v1063_v53 = vsel %vm1043_vm8, %v966_v6, %v3178_v5  ;;  %p1945_p12 = scmp.ne.s32.totalorder %s3283_s11, %s1944_s21  ;;  %p1952_p2 = scmp.lt.s32.totalorder %s1950_s25, %s1944_s21 }
 0x1fa   : > { %1299 = vmatprep.subr.bf16.mxu0 %v1063_v53  ;;  %1157 = vperm.xlu0 %1923, %v1154_v21  }
 0x1fb   : > { %v721_v50 = vpop.permute.xlu1 %720  ;;  %1300 = vmatpush1.bf16.msra.mxu0 %v1062_v36  ;;  %p1946_p13 = pnand %p1945_p12, %p2125_p4  ;;  %p1953_p3 = por %p1952_p2, %p1951_p1 }
 0x1fc   : > { %v785_v44 = vpop.permute.xlu0 %784  ;;  %v830_v25 = vsel %vm818_vm10, %v3405_v9, %v721_v50 }
 0x1fd   : > { %v854_v39 = vsel %vm818_vm10, %v2940_v58, %v785_v44  ;;  %p1947_p0 = pneg %p1946_p13 }
 0x1fe   : > { %1779 = vmatprep.subr.bf16.mxu1 %v854_v39 }
 0x1ff   : > { %v3187_v7 = vpop.permute.xlu1 %975  ;;  %1780 = vmatpush3.bf16.msra.mxu1 %v830_v25  ;;  %p1954_p5 = pnand %p1953_p3, %p1947_p0 }
 0x200   : > { %v974_v56 = vpop.permute.xlu0 %973 }
 0x201   : > { %v1066_v34 = vsel %vm1043_vm8, %v974_v56, %v3187_v7 }
 0x202   : > { %1301 = vmatprep.subr.bf16.mxu0 %v1066_v34 }
 0x203   : > { %v793_v28 = vpop.permute.xlu1 %792 }
 0x204   : > { %v857_v52 = vsel %vm818_vm10, %v2971_v45, %v793_v28  ;;  %v972_v12 = vpop.permute.xlu0 %971 }
 0x205   : > { %1781 = vmatprep.subr.bf16.mxu1 %v857_v52  ;;  %v1065_v51 = vsel %vm1043_vm8, %v972_v12, %v974_v56 }
 0x206   : > { %1302 = vmatpush1.bf16.msra.mxu0 %v1065_v51 }
 0x207   : > { %v982_v49 = vpop.permute.xlu1 %981 }
 0x208   : > { %v729_v58 = vpop.permute.xlu0 %728 }
 0x209   : > { %v833_v57 = vsel %vm818_vm10, %v3406_v62, %v729_v58 }
 0x20a   : > { %1782 = vmatpush3.bf16.msra.mxu1 %v833_v57 }
 0x20b   : > { %v980_v4 = vpop.permute.xlu1 %979 }
 0x20c   : > { %v984_v31 = vpop.permute.xlu0 %983  ;;  %v1068_v13 = vsel %vm1043_vm8, %v980_v4, %v982_v49 }
 0x20d   : > { %v1069_v26 = vsel %vm1043_vm8, %v982_v49, %v984_v31 }
 0x20e   : > { %1303 = vmatprep.subr.bf16.mxu0 %v1069_v26 }
 0x20f   : > { %v737_v14 = vpop.permute.xlu1 %736  ;;  %1304 = vmatpush1.bf16.msra.mxu0 %v1068_v13 }
 0x210   : > { %v801_v45 = vpop.permute.xlu0 %800  ;;  %v836_v18 = vsel %vm818_vm10, %v3407_v15, %v737_v14 }
 0x211   : > { %v860_v35 = vsel %vm818_vm10, %v2998_v0, %v801_v45 }
 0x212   : > { %1783 = vmatprep.subr.bf16.mxu1 %v860_v35 }
 0x213   : > { %v992_v11 = vpop.permute.xlu1 %991  ;;  %1784 = vmatpush3.bf16.msra.mxu1 %v836_v18 }
 0x214   : > { %v990_v30 = vpop.permute.xlu0 %989 }
 0x215   : > { %v1072_v48 = vsel %vm1043_vm8, %v990_v30, %v992_v11 }
 0x216   : > { %1305 = vmatprep.subr.bf16.mxu0 %v1072_v48 }
 0x217   : > { %v809_v1 = vpop.permute.xlu1 %808 }
 0x218   : > { %v863_v23 = vsel %vm818_vm10, %v3022_v37, %v809_v1  ;;  %v988_v60 = vpop.permute.xlu0 %987 }
 0x219   : > { %1785 = vmatprep.subr.bf16.mxu1 %v863_v23  ;;  %v1071_v32 = vsel %vm1043_vm8, %v988_v60, %v990_v30 }
 0x21a   : > { %1306 = vmatpush1.bf16.msra.mxu0 %v1071_v32 }
 0x21b   : > { %v998_v33 = vpop.permute.xlu1 %997 }
 0x21c   : > { %v745_v17 = vpop.permute.xlu0 %744 }
 0x21d   : > { %v839_v0 = vsel %vm818_vm10, %v2843_v2, %v745_v17 }
 0x21e   : > { %1786 = vmatpush3.bf16.msra.mxu1 %v839_v0 }
 0x21f   : > { %v996_v38 = vpop.permute.xlu1 %995 }
 0x220   : > { %v1000_v55 = vpop.permute.xlu0 %999  ;;  %v1074_v27 = vsel %vm1043_vm8, %v996_v38, %v998_v33 }
 0x221   : > { %v1075_v24 = vsel %vm1043_vm8, %v998_v33, %v1000_v55 }
 0x222   : > { %1307 = vmatprep.subr.bf16.mxu0 %v1075_v24 }
 0x223   : > { %v753_v6 = vpop.permute.xlu1 %752  ;;  %1308 = vmatpush1.bf16.msra.mxu0 %v1074_v27 }
 0x224   : > { %v817_v37 = vpop.permute.xlu0 %816  ;;  %v842_v16 = vsel %vm818_vm10, %v2862_v20, %v753_v6 }
 0x225   : > { %v866_v42 = vsel %vm818_vm10, %v3043_v46, %v817_v37  ;;  %vm1201_vm10 = vcmask 130048  }
 0x226   : > { %1787 = vmatprep.subr.bf16.mxu1 %v866_v42 }
 0x227   : > { %v1008_v3 = vpop.permute.xlu1 %1007  ;;  %1788 = vmatpush3.bf16.msra.mxu1 %v842_v16 }
 0x228   : > { %v1006_v2 = vpop.permute.xlu0 %1005 }
 0x229   : > { %v1078_v54 = vsel %vm1043_vm8, %v1006_v2, %v1008_v3 }
 0x22a   : > { %1309 = vmatprep.subr.bf16.mxu0 %v1078_v54  ;;  %1442 = vmatmul.mubr.bf16.vlgmr.msra.gmra.mrb[8].mxu1 %v2800_v10 }
 0x22b   : > { %v986_v21 = vpop.permute.xlu1 %985  ;;  %1481 = vmatprep.mubr.bf16.mxu1 %v3128_v22 }
 0x22c   : > { %v1070_v36 = vsel %vm1043_vm8, %v984_v31, %v986_v21  ;;  %v1004_v53 = vpop.permute.xlu0 %1003 }
 0x22d   : > { %1795 = vmatprep.subr.bf16.mxu1 %v1070_v36  ;;  %v1077_v20 = vsel %vm1043_vm8, %v1004_v53, %v1006_v2  ;;  %v1179_v2 = vcombine.high %v3113_v41, %v3113_v41 }
 0x22e   : > { %1310 = vmatpush1.bf16.msra.mxu0 %v1077_v20 }
 0x22f   : > { %v1014_v46 = vpop.permute.xlu1 %1013 }
 0x230   : > { %v922_v50 = vpop.permute.xlu0 %921 }
 0x231   : > { %v1046_v44 = vsel %vm1043_vm8, %v3062_v29, %v922_v50 }
 0x232   : > { %1796 = vmatpush3.bf16.msra.mxu1 %v1046_v44 }
 0x233   : > { %v1012_v9 = vpop.permute.xlu1 %1011 }
 0x234   : > { %v1016_v25 = vpop.permute.xlu0 %1015  ;;  %v1080_v39 = vsel %vm1043_vm8, %v1012_v9, %v1014_v46 }
 0x235   : > { %v1081_v10 = vsel %vm1043_vm8, %v1014_v46, %v1016_v25 }
 0x236   : > { %1311 = vmatprep.subr.bf16.mxu0 %v1081_v10 }
 0x237   : > { %v930_v56 = vpop.permute.xlu1 %929  ;;  %1312 = vmatpush1.bf16.msra.mxu0 %v1080_v39 }
 0x238   : > { %v994_v22 = vpop.permute.xlu0 %993  ;;  %v1049_v34 = vsel %vm1043_vm8, %v3083_v47, %v930_v56 }
 0x239   : > { %v1073_v28 = vsel %vm1043_vm8, %v992_v11, %v994_v22 }
 0x23a   : > { %1797 = vmatprep.subr.bf16.mxu1 %v1073_v28 }
 0x23b   : > { %v1024_v52 = vpop.permute.xlu1 %1023  ;;  %1798 = vmatpush3.bf16.msra.mxu1 %v1049_v34 }
 0x23c   : > { %v1022_v29 = vpop.permute.xlu0 %1021 }
 0x23d   : > { %v1084_v12 = vsel %vm1043_vm8, %v1022_v29, %v1024_v52 }
 0x23e   : > { %1313 = vmatprep.subr.bf16.mxu0 %v1084_v12 }
 0x23f   : > { %v1002_v51 = vpop.permute.xlu1 %1001 }
 0x240   : > { %v1076_v49 = vsel %vm1043_vm8, %v1000_v55, %v1002_v51  ;;  %v1020_v58 = vpop.permute.xlu0 %1019 }
 0x241   : > { %1799 = vmatprep.subr.bf16.mxu1 %v1076_v49  ;;  %v1083_v62 = vsel %vm1043_vm8, %v1020_v58, %v1022_v29  ;;  %v3408_v29 = vld [vmem:[#allocation17_spill] sm:$0xff] }
 0x242   : > { %1314 = vmatpush1.bf16.msra.mxu0 %v1083_v62  ;;  %v1533_v12 = vsub.s32 0, %v3408_v29  ;;  %v1537_v51 = vsub.s32 1, %v3408_v29 }
 0x243   : > { %v1030_v57 = vpop.permute.xlu1 %1029 }
 0x244   : > { %v938_v4 = vpop.permute.xlu0 %937 }
 0x245   : > { %v1052_v47 = vsel %vm1043_vm8, %v3095_v63, %v938_v4 }
 0x246   : > { %1800 = vmatpush3.bf16.msra.mxu1 %v1052_v47 }
 0x247   : > { %v1028_v31 = vpop.permute.xlu1 %1027 }
 0x248   : > { %v1032_v13 = vpop.permute.xlu0 %1031  ;;  %v1086_v26 = vsel %vm1043_vm8, %v1028_v31, %v1030_v57 }
 0x249   : > { %v1087_v14 = vsel %vm1043_vm8, %v1030_v57, %v1032_v13 }
 0x24a   : > { %1315 = vmatprep.subr.bf16.mxu0 %v1087_v14 }
 0x24b   : > { %v946_v45 = vpop.permute.xlu1 %945  ;;  %1316 = vmatpush1.bf16.msra.mxu0 %v1086_v26 }
 0x24c   : > { %v1010_v15 = vpop.permute.xlu0 %1009  ;;  %v1055_v18 = vsel %vm1043_vm8, %v3104_v43, %v946_v45 }
 0x24d   : > { %v1079_v35 = vsel %vm1043_vm8, %v1008_v3, %v1010_v15 }
 0x24e   : > { %1801 = vmatprep.subr.bf16.mxu1 %v1079_v35  ;;  %v1541_v35 = vsub.s32 2, %v3408_v29 }
 0x24f   : > { %v1040_v11 = vpop.permute.xlu1 %1039  ;;  %1802 = vmatpush3.bf16.msra.mxu1 %v1055_v18 }
 0x250   : > { %v1038_v63 = vpop.permute.xlu0 %1037 }
 0x251   : > { %v1090_v30 = vsel %vm1043_vm8, %v1038_v63, %v1040_v11 }
 0x252   : > { %1317 = vmatprep.subr.bf16.mxu0 %v1090_v30 }
 0x253   : > { %v1018_v48 = vpop.permute.xlu1 %1017 }
 0x254   : > { %v1082_v1 = vsel %vm1043_vm8, %v1016_v25, %v1018_v48  ;;  %v1036_v23 = vpop.permute.xlu0 %1035 }
 0x255   : > { %1803 = vmatprep.subr.bf16.mxu1 %v1082_v1  ;;  %v1089_v60 = vsel %vm1043_vm8, %v1036_v23, %v1038_v63 }
 0x256   : > { %1318 = vmatpush1.bf16.msra.mxu0 %v1089_v60  ;;  %v1239_v33 = vpop.f32.mrb[0].mxu1 }
 0x257   : > { %v1026_v32 = vpop.permute.xlu1 %1025  ;;  %v3239_v43 = vpop.f32.mrb[1].mxu1 }
 0x258   : > { %v954_v17 = vpop.permute.xlu0 %953  ;;  %v1085_v0 = vsel %vm1043_vm8, %v1024_v52, %v1026_v32  ;;  %v1243_v38 = vpop.f32.mrb[2].mxu1 }
 0x259   : > { %v1058_v55 = vsel %vm1043_vm8, %v3140_v61, %v954_v17  ;;  %1320 = vmatmul.mubr.bf16.vlgmr.msra.gmra.mrb[0].mxu0 %v3119_v59  ;;  %v1244_v27 = vpop.f32.mrb[3].mxu1 }
 0x25a   : > { %1804 = vmatpush3.bf16.msra.mxu1 %v1058_v55  ;;  %1360 = vmatprep.mubr.bf16.mxu0 %v2050_v19 }
 0x25b   : > { %v1034_v24 = vpop.permute.xlu1 %1033  ;;  %1805 = vmatprep.subr.bf16.mxu1 %v1085_v0 }
 0x25c   : > { %v962_v6 = vpop.permute.xlu0 %961  ;;  %v1088_v37 = vsel %vm1043_vm8, %v1032_v13, %v1034_v24 }
 0x25d   : > { %v1061_v16 = vsel %vm1043_vm8, %v3157_v8, %v962_v6  ;;  %v1193_v8 = vrot.slane %v1179_v2, %v2548_v40 }
 0x25e   : > { %1806 = vmatpush3.bf16.msra.mxu1 %v1061_v16 }
 0x25f   : > { %v1143_v42 = vpop.permute.xlu1 %1142  ;;  %1807 = vmatprep.subr.bf16.mxu1 %v1088_v37 }
 0x260   : > { %v970_v3 = vpop.permute.xlu0 %969 }
 0x261   : > { %v1064_v61 = vsel %vm1043_vm8, %v3178_v5, %v970_v3  ;;  %v2052_v5 = vmov 0.0  }
 0x262   : > { %1808 = vmatpush3.bf16.msra.mxu1 %v1064_v61 }
 0x263   : > { %v1141_v19 = vpop.permute.xlu1 %1140 }
 0x264   : > { %v1145_v54 = vpop.permute.xlu0 %1144  ;;  %v1147_v21 = vsel %vm1146_vm9, %v1141_v19, %v1143_v42 }
 0x265   : > { %v1148_v36 = vsel %vm1146_vm9, %v1143_v42, %v1145_v54 }
 0x266   : > { %1328 = vmatprep.subr.bf16.mxu0 %v1148_v36 }
 0x267   : > { %v978_v53 = vpop.permute.xlu1 %977  ;;  %1329 = vmatpush1.bf16.msra.mxu0 %v1147_v21 }
 0x268   : > { %v1042_v20 = vpop.permute.xlu0 %1041  ;;  %v1067_v46 = vsel %vm1043_vm8, %v3187_v7, %v978_v53  ;;  %1819 = vmatprep.subr.bf16.mxu0 %v2052_v5 }
 0x269   : > { %v1091_v50 = vsel %vm1043_vm8, %v1040_v11, %v1042_v20 }
 0x26a   : > { %1744 = vmatmul.mubr.msk.bf16.vlgmr.msra.gmra.mrb[0].mxu0 %vm1201_vm10, %v1193_v8  ;;  %1809 = vmatprep.subr.bf16.mxu1 %v1091_v50 }
 0x26b   : > { %1810 = vmatpush3.bf16.msra.mxu1 %v1067_v46  ;;  %1820 = vmatpush3.bf16.msra.mxu0 %v1145_v54 }
 0x26c   : > { %1821 = vmatprep.mubr.msk.bf16.mxu0 %vm2053_vm11, %v2052_v5 }
 0x26e   : > { %1482 = vmatmul.mubr.bf16.vlgmr.msra.gmra.mrb[12].mxu1 %v3119_v59  ;;  %v1529_v59 = vld [vmem:[%s3331_s3] sm:$0x7] }
 0x26f   : > { %v1534_v58 = vrot.slane %v1529_v59, %v1533_v12  ;;  %v1538_v4 = vrot.slane %v1529_v59, %v1537_v51  ;;  %v1542_v38 = vrot.slane %v1529_v59, %v1541_v35 }
 0x272   : > { %1822 = vmatmul.mubr.msk.bf16.vlgmr.msra.gmra.mrb[4].mxu0 %vm1201_vm10, %v1193_v8 }
 0x276   : > { %v1767_v40 = vpop.f32.mrb[4].mxu1 }
 0x277   : > { %v1768_v41 = vpop.f32.mrb[5].mxu1 }
 0x278   : > { %v1769_v44 = vadd.f32 %v1768_v41, %v1767_v40  ;;  %v1770_v9 = vpop.f32.mrb[6].mxu1 }
 0x279   : > { %v1771_v25 = vpop.f32.mrb[7].mxu1  ;;  %v1158_v39 = vpop.permute.xlu0 %1157 }
 0x27a   : > { %v1404_v7 = vadd.f32 %v1769_v44, %v1158_v39  ;;  %v1240_v49 = vadd.f32 %v1239_v33, %v1158_v39  ;;  %v1242_v57 = vadd.f32 %v3239_v43, %v1158_v39 }
 0x2fd   : > { %v1789_v10 = vpop.f32.mrb[8].mxu1 }
 0x2fe   : > { %v1790_v56 = vpop.f32.mrb[9].mxu1 }
 0x2ff   : > { %v1791_v22 = vadd.f32 %v1790_v56, %v1789_v10  ;;  %v1792_v34 = vpop.f32.mrb[10].mxu1 }
 0x300   : > { %v1793_v28 = vpop.f32.mrb[11].mxu1 }
 0x301   : > { %v1444_v52 = vadd.f32 %v1791_v22, %v1404_v7 }
 0x33d   : > { %v1362_v62 = vpop.f32.mrb[0].mxu0 }
 0x33e   : > { %v1826_v47 = vadd.f32 %v1362_v62, %v1240_v49  ;;  %v1364_v31 = vpop.f32.mrb[1].mxu0 }
 0x33f   : > { %v1828_v13 = vadd.f32 %v1364_v31, %v1242_v57  ;;  %v1366_v26 = vpop.f32.mrb[2].mxu0 }
 0x340   : > { %v1546_v14 = vmul.f32 %v1826_v47, %v1534_v58  ;;  %1937 = vtanh.f32 %v1826_v47  ;;  %v1367_v45 = vpop.f32.mrb[3].mxu0 }
 0x341   : > { %v1547_v15 = vmul.f32 %v1828_v13, %v1538_v4  ;;  %1939 = vtanh.f32 %v1828_v13  ;;  %v1811_v18 = vpop.f32.mrb[12].mxu1 }
 0x342   : > { %v1558_v11 = vmul.f32 %v1826_v47, %v1546_v14  ;;  %v1812_v63 = vpop.f32.mrb[13].mxu1  ;;  %v1550_v30 = vsel %vm1549_vm12, %v1546_v14, 0.0 }
 0x343   : > { %v1559_v48 = vmul.f32 %v1828_v13, %v1547_v15  ;;  %v1813_v1 = vadd.f32 %v1812_v63, %v1811_v18  ;;  %v1814_v23 = vpop.f32.mrb[14].mxu1  ;;  %v1551_v60 = vsel %vm1549_vm12, %v1547_v15, 0.0 }
 0x344   : > { %v1815_v32 = vpop.f32.mrb[15].mxu1  ;;  %v1552_v33 = vadd.f32 %v1551_v60, %v1550_v30  ;;  %v1561_v43 = vsel %vm1549_vm12, %v1558_v11, 0.0 }
 0x345   : > { %v1484_v17 = vadd.f32 %v1813_v1, %v1444_v52  ;;  %v1523_v0 = vpop.f32.mrb[4].mxu0  ;;  %v1562_v55 = vsel %vm1549_vm12, %v1559_v48, 0.0 }
 0x346   : > { %v1823_v27 = vpop.f32.mrb[5].mxu0  ;;  %v1563_v24 = vadd.f32 %v1562_v55, %v1561_v43 }
 0x347   : > { %v1524_v6 = vadd.f32 %v1523_v0, %v1484_v17  ;;  %v1526_v37 = vpop.f32.mrb[6].mxu0 }
 0x348   : > { %v1824_v16 = vpop.f32.mrb[7].mxu0 }
 0x349   : > { %v1548_v42 = vmul.f32 %v1542_v38, %v1524_v6  ;;  %1941 = vtanh.f32 %v1524_v6 }
 0x34a   : > { %v1938_v3 = vpop.eup %1937 }
 0x34b   : > { %v1940_v61 = vpop.eup %1939  ;;  %v1560_v2 = vmul.f32 %v1548_v42, %v1524_v6  ;;  %v1554_v19 = vsel %vm1553_vm13, %v1548_v42, 0.0 }
 0x34c   : > { %v1555_v54 = vadd.f32 %v1554_v19, %v1552_v33  ;;  %v1577_v21 = vcombine.low %v1938_v3, %v1940_v61 }
 0x34d   : > { %v1564_v36 = vsel %vm1553_vm13, %v1560_v2, 0.0 }
 0x34e   : > { %1579 = vst [vmem:[%s278_s8] sm:$0x77] %v1577_v21  ;;  %1556 = vadd.xlane.f32.xlu1 %v1555_v54  ;;  %v1565_v53 = vadd.f32 %v1564_v36, %v1563_v24 }
 0x350   : > { %1566 = vadd.xlane.f32.xlu0 %v1565_v53 }
 0x353   : > { %v1942_v8 = vpop.eup %1941 }
 0x354   : > { %1580 = vst.msk [vmem:[%s278_s8 + $0x8] sm:$0x7] %vm1553_vm13, %v1942_v8 }
 0x3db   : > { %v1557_v20 = vpop.xlane.xlu1 %1556 }
 0x3dd   : > { %v1567_v46 = vpop.xlane.xlu0 %1566 }
 0x3de   : > { %v1569_v5 = vsel %vm1568_vm14, %v1557_v20, %v1567_v46 }
 0x3df   : > { %1571 = vst.msk [vmem:[%s259_s9] sm:$0x7] %vm1570_vm15, %v1569_v5 }
 0x3e0   : > { %1957 = shalt.err (!%p1954_p5)
}
 0x3e1   : > { %s1958_s27 = scalar_lea.hbm %s3281_s13, 64  ;;  %s1962_s7 = scalar_lea.hbm %s3333_s5, 128 }
 0x3e2   : > { %p1959_p6 = scmp.ne.s32.totalorder %s3281_s13, %s1958_s27  ;;  %p1963_p10 = scmp.lt.u32.totalorder %s3281_s13, %s3333_s5 }
 0x3e3   : > { %p1964_p11 = scmp.lt.u32.totalorder %s1962_s7, %s1958_s27  ;;  %p1966_p13 = scmp.lt.u32.totalorder %s1958_s27, %s3281_s13 }
 0x3e4   : > { %p1960_p7 = pnand %p1959_p6, %p2125_p4 }
 0x3e5   : > { %p1965_p12 = por %p1964_p11, %p1963_p10 }
 0x3e6   : > { %p1961_p9 = pneg %p1960_p7 }
 0x3e7   : > { %p1967_p0 = por %p1966_p13, %p1965_p12 }
 0x3e9   : > { %p1968_p1 = pnand %p1967_p0, %p1961_p9 }
 0x3eb   : > { %1971 = shalt.err (!%p1968_p1)
}
 0x3ec   : > { %1838 = dma.vmem_to_hbm [thread:$0]  (%p2125_p4), %s3283_s11, 64, %s3281_s13, %s1591_s14  }
 0x3ed PF: > { %p1844_p2 = scmp.ge.s32.totalorder %s2022_s23, 2  ;;  %s1633_s9 = sand.u32 1, %s2002_s18  }
 0x3ee   : > { %s1634_s10 = scalar_lea.sflag [#allocation3], %s1633_s9 }
 0x3ef   : > { %p1841_p3 = pnand %p1844_p2, %p2132_p8 }
 0x3f1   : > { %1997 = dma.done.wait (!%p1841_p3), %s1634_s10, 64  }
 0x3f2   : > { %1999 = vsyncadd (!%p1841_p3), %s1634_s10, 4294967232  ;;  %s19_s23 = sadd.s32 1, %s2022_s23   ;;  %s3409_s18 = smov %s2006_s19 }
 0x3f3   : > { %p16_p5 = scmp.ge.s32.totalorder %s19_s23, 4   ;;  %s3410_s19 = smov %s2010_s20 }
 0x3f4   : > { %s3411_s20 = smov %s2138_s6  ;;  %s3412_s21 = smov %s2018_s22 }
 0x3f5   : > { %s3413_s22 = smov %s3415_s26  ;;  %18 = sbr.rel (!%p16_p5) target bundleno = 4 (0x4), region = 86 }
 0x3fc   :  { %1639 = vsyncpa [#allocation3], 1 }
 0x3fd   :  { %1641 = vsyncpa [#allocation3 + $0x1], 1 }

</bundles_post_ra>
